<compile_context>
chip_gen: v6e
topology: v6e:2x2x1
jax: 0.10.0
libtpu: 0.0.40
codegen_flags: <defaults>
</compile_context>

<pallas_src>
import math

import jax
import jax.numpy as jnp
from jax.experimental import pallas as pl
from jax.experimental.pallas import tpu as pltpu


def _round_up(x, m):
    return (x + m - 1) // m * m


def _cdiv(a, b):
    return (a + b - 1) // b


# --------------------------------------------------------------------------
# FC head configuration (static).
# --------------------------------------------------------------------------
K1 = 16 * 34 * 34                 # 18496 fc1 in-features
N1P = 128                         # fc1 out features (120) lane-padded to 128
NSPLIT = 2                        # parallel K halves (v7x megacore)
KSTEPS = 2                        # pipelined K tiles per half
K_GRAN = NSPLIT * KSTEPS * 128    # 512: K padding granularity
K1_PAD = _round_up(K1, K_GRAN)    # 18944 = 4 x 4736


# --------------------------------------------------------------------------
# Pallas kernels
# --------------------------------------------------------------------------
def _conv_mm_kernel(w_ref, p_ref, b_ref, o_ref):
    """out[co, p] = relu(sum_k W[co, k] * patches[k, p] + b[co]).

    Lane-dense orientation: the huge pixel axis is the lane dim so stores are
    unmasked full-width; K (25/150) is a single full-extent contraction block
    (no accumulator scratch). Inputs are bf16, accumulation is f32.
    """
    y = jnp.dot(w_ref[...], p_ref[...], preferred_element_type=jnp.float32)
    o_ref[...] = jnp.maximum(y + b_ref[...], 0.0)


def _fc1_partial_kernel(x_ref, w_ref, o_ref):
    """Partial fc1 pre-activations for one K half (grid = (half, k_tile)).

    The output block (1, B, 128) stays VMEM-resident across the "arbitrary"
    k_tile axis and is used directly as the f32 accumulator.
    """
    j = pl.program_id(1)

    @pl.when(j == 0)
    def _():
        o_ref[...] = jnp.zeros_like(o_ref)

    o_ref[0] += jnp.dot(x_ref[...], w_ref[...],
                        preferred_element_type=jnp.float32)


def _fc_head_epilogue_kernel(p_ref, b1_ref, w2_ref, b2_ref, w3_ref, b3_ref,
                             o_ref):
    """Combine the K-half partials, then relu -> fc2 -> relu -> fc3."""
    h1 = jnp.maximum(jnp.sum(p_ref[...], axis=0) + b1_ref[...], 0.0)  # (B,128)
    h2 = jnp.maximum(
        jnp.dot(h1, w2_ref[...], preferred_element_type=jnp.float32)
        + b2_ref[...], 0.0)                                           # (B,128)
    o_ref[...] = (jnp.dot(h2, w3_ref[...], preferred_element_type=jnp.float32)
                  + b3_ref[...])                                      # (B,10)


# --------------------------------------------------------------------------
# Wrappers
# --------------------------------------------------------------------------
def conv2d_relu(x, w, b, *, max_tn=12288):
    """Valid conv (stride 1) + ReLU in CBHW layout via an MXU matmul.

    x: (Cin, B, H, W) f32, w: (Cout, Cin, kh, kw) f32, b: (Cout,) f32.
    Returns (Cout, B, Ho, Wo) f32. The im2col patch matrix is built by XLA
    (pure layout glue) but in bf16, halving its HBM round trip.
    """
    Cin, B, H, W = x.shape
    Cout, _, kh, kw = w.shape
    Ho, Wo = H - kh + 1, W - kw + 1
    P = B * Ho * Wo
    K = Cin * kh * kw

    xb = x.astype(jnp.bfloat16)
    # (K, P) im2col; k ordered (ci, i, j) to match w.reshape(Cout, K),
    # p ordered (b, ho, wo).
    cols = [xb[:, :, i:i + Ho, j:j + Wo] for i in range(kh) for j in range(kw)]
    patT = jnp.stack(cols, axis=1).reshape(K, P)

    # Smallest EVEN block count (v7x 2-TC balance) whose lane tile <= max_tn.
    # conv1: P=41472 -> 4 x 10368 (exact); conv2: P=9248 -> 2 x 4736 (+224 pad).
    nblocks = 2
    while _round_up(_cdiv(P, nblocks), 128) > max_tn:
        nblocks += 2
    tn = _round_up(_cdiv(P, nblocks), 128)
    P_pad = tn * nblocks
    if P_pad > P:
        patT = jnp.pad(patT, ((0, 0), (0, P_pad - P)))

    wmat = w.reshape(Cout, K).astype(jnp.bfloat16)

    out = pl.pallas_call(
        _conv_mm_kernel,
        out_shape=jax.ShapeDtypeStruct((Cout, P_pad), jnp.float32),
        grid_spec=pltpu.PrefetchScalarGridSpec(
            num_scalar_prefetch=0,
            grid=(nblocks,),
            in_specs=[
                pl.BlockSpec((Cout, K), lambda n: (0, 0)),   # weights (resident)
                pl.BlockSpec((K, tn), lambda n: (0, n)),     # patch tile (bf16)
                pl.BlockSpec((Cout, 1), lambda n: (0, 0)),   # bias (resident)
            ],
            out_specs=pl.BlockSpec((Cout, tn), lambda n: (0, n)),
        ),
        compiler_params=pltpu.CompilerParams(
            dimension_semantics=("parallel",),
            vmem_limit_bytes=32 * 1024 * 1024),
    )(wmat, patT, b.reshape(Cout, 1))

    return out[:, :P].reshape(Cout, B, Ho, Wo)


def maxpool2x2(x):
    """MaxPool2d(2,2) on CBHW activations; intentionally plain jnp/XLA —
    the data is tiny (<1 MB) and a fused reshape+max beats a Pallas launch."""
    C, B, H, W = x.shape
    return x.reshape(C, B, H // 2, 2, W // 2, 2).max(axis=(3, 5))


def fc_head(x, w1t, b1, w2t, b2, w3t, b3):
    """fc1 (split-K, f32 accumulation) + fused relu/fc2/relu/fc3 epilogue.

    x: (B, K1_PAD) bf16; w1t: (K1_PAD, 128) bf16; w2t: (128, 128) f32;
    w3t: (128, 10) f32; biases f32 (lane-padded where applicable).
    """
    B, Kp = x.shape
    assert Kp == w1t.shape[0] and Kp % K_GRAN == 0
    tk = Kp // (NSPLIT * KSTEPS)
    n3 = w3t.shape[1]

    partial = pl.pallas_call(
        _fc1_partial_kernel,
        out_shape=jax.ShapeDtypeStruct((NSPLIT, B, N1P), jnp.float32),
        grid_spec=pltpu.PrefetchScalarGridSpec(
            num_scalar_prefetch=0,
            grid=(NSPLIT, KSTEPS),
            in_specs=[
                pl.BlockSpec((B, tk), lambda h, j: (0, h * KSTEPS + j)),
                pl.BlockSpec((tk, N1P), lambda h, j: (h * KSTEPS + j, 0)),
            ],
            out_specs=pl.BlockSpec((1, B, N1P), lambda h, j: (h, 0, 0)),
        ),
        compiler_params=pltpu.CompilerParams(
            dimension_semantics=("parallel", "arbitrary"),
            vmem_limit_bytes=32 * 1024 * 1024),
        cost_estimate=pl.CostEstimate(
            flops=2 * B * Kp * N1P,
            transcendentals=0,
            bytes_accessed=(x.size * x.dtype.itemsize
                            + w1t.size * w1t.dtype.itemsize
                            + NSPLIT * B * N1P * 4)),
    )(x, w1t)

    # Tiny whole-array epilogue kernel (everything VMEM-resident, no grid).
    return pl.pallas_call(
        _fc_head_epilogue_kernel,
        out_shape=jax.ShapeDtypeStruct((B, n3), jnp.float32),
    )(partial, b1.reshape(1, N1P), w2t, b2.reshape(1, N1P), w3t,
      b3.reshape(1, n3))


# --------------------------------------------------------------------------
# Parameter init (deterministic, PyTorch-default-style uniform).
# FC weights stored pre-transposed (K, N), zero-padded to lane-friendly
# shapes once at init; fc1's weight is additionally stored in bf16.
# --------------------------------------------------------------------------
def init_params(key):
    def uni(k, shape, fan_in):
        bound = 1.0 / math.sqrt(fan_in)
        return jax.random.uniform(k, shape, jnp.float32, -bound, bound)

    ks = jax.random.split(key, 10)
    fc1_w = uni(ks[4], (120, K1), K1)          # torch layout (out, in)
    fc2_w = uni(ks[6], (84, 120), 120)
    fc3_w = uni(ks[8], (10, 84), 84)

    fc1_wt = jnp.pad(fc1_w.T, ((0, K1_PAD - K1), (0, N1P - 120)))
    fc1_wt = fc1_wt.astype(jnp.bfloat16)        # (K1_PAD, 128) bf16
    fc2_wt = jnp.pad(fc2_w.T, ((0, N1P - 120), (0, 128 - 84)))   # (128, 128)
    fc3_wt = jnp.pad(fc3_w.T, ((0, 128 - 84), (0, 0)))           # (128, 10)

    return {
        "w1": uni(ks[0], (6, 1, 5, 5), 1 * 5 * 5),
        "b1": uni(ks[1], (6,), 1 * 5 * 5),
        "w2": uni(ks[2], (16, 6, 5, 5), 6 * 5 * 5),
        "b2": uni(ks[3], (16,), 6 * 5 * 5),
        "fc1_wt": fc1_wt,
        "fc1_b": jnp.pad(uni(ks[5], (120,), K1), (0, N1P - 120)),
        "fc2_wt": fc2_wt,
        "fc2_b": jnp.pad(uni(ks[7], (84,), 120), (0, 128 - 84)),
        "fc3_wt": fc3_wt,
        "fc3_b": uni(ks[9], (10,), 84),
    }


def net_forward(x, p):
    # NCHW -> CBHW (tiny; keeps conv outputs reshaping to the next stage
    # without a full-tensor transpose).
    x = x.transpose(1, 0, 2, 3)                              # (1, B, 148, 148)
    x = maxpool2x2(conv2d_relu(x, p["w1"], p["b1"]))         # (6, B, 72, 72)
    x = maxpool2x2(conv2d_relu(x, p["w2"], p["b2"]))         # (16, B, 34, 34)
    B = x.shape[1]
    # match torch .view(-1, 16*34*34): per-batch (c, h, w) order (148 KB move),
    # then pad the feature axis once to the kernel's K granularity, bf16.
    x = x.transpose(1, 0, 2, 3).reshape(B, K1)
    x = jnp.pad(x, ((0, 0), (0, K1_PAD - K1))).astype(jnp.bfloat16)
    return fc_head(x, p["fc1_wt"], p["fc1_b"], p["fc2_wt"], p["fc2_b"],
                   p["fc3_wt"], p["fc3_b"])                  # (B, 10)


if __name__ == "__main__":
    key = jax.random.PRNGKey(0)
    k_x, k_p = jax.random.split(key)
    # Input spatial size 148x148 is what the fc1 dimension (16*34*34) implies.
    x = jax.random.normal(k_x, (2, 1, 148, 148), dtype=jnp.float32)
    params = init_params(k_p)

    fwd = jax.jit(net_forward)
    out = jax.block_until_ready(fwd(x, params))
    assert out.shape == (2, 10) and out.dtype == jnp.float32
    print("KERNEL_OK")
</pallas_src>

<mosaic_0001>
module attributes {stable_mosaic.version = 11 : i64} {
  func.func @_conv_mm_kernel(%arg0: i32, %arg1: memref<6x25xbf16, #tpu.memory_space<vmem>>, %arg2: memref<25x10368xbf16, #tpu.memory_space<vmem>>, %arg3: memref<6x1xf32, #tpu.memory_space<vmem>>, %arg4: memref<6x10368xf32, #tpu.memory_space<vmem>>) attributes {dimension_semantics = [#tpu.dimension_semantics<parallel>], iteration_bounds = array<i64: 4>, scalar_prefetch = 0 : i64, scratch_operands = 0 : i64, tpu.core_type = #tpu.core_type<tc>, window_params = [{pipeline_mode = #tpu.pipeline_mode<synchronous>, transform_indices = @transform_0, window_bounds = array<i64: 6, 25>}, {transform_indices = @transform_1, window_bounds = array<i64: 25, 10368>}, {pipeline_mode = #tpu.pipeline_mode<synchronous>, transform_indices = @transform_2, window_bounds = array<i64: 6, 1>}, {transform_indices = @transform_3, window_bounds = array<i64: 6, 10368>}]} {
    %c0 = arith.constant 0 : index
    %c0_0 = arith.constant 0 : index
    %0 = vector.load %arg1[%c0, %c0_0] : memref<6x25xbf16, #tpu.memory_space<vmem>>, vector<6x25xbf16>
    %c0_1 = arith.constant 0 : index
    %c0_2 = arith.constant 0 : index
    %1 = vector.load %arg2[%c0_1, %c0_2] : memref<25x10368xbf16, #tpu.memory_space<vmem>>, vector<25x10368xbf16>
    %cst = arith.constant dense<0.000000e+00> : vector<6x10368xf32>
    %2 = tpu.matmul %0, %1, %cst {dimension_numbers = #tpu.dot_dimension_numbers<[1], [0], [0], [1], [0, 0, 1, 1], [], []>} : vector<6x25xbf16>, vector<25x10368xbf16>, vector<6x10368xf32> -> vector<6x10368xf32>
    %c0_3 = arith.constant 0 : index
    %c0_4 = arith.constant 0 : index
    %3 = vector.load %arg3[%c0_3, %c0_4] : memref<6x1xf32, #tpu.memory_space<vmem>>, vector<6x1xf32>
    %4 = vector.broadcast %3 : vector<6x1xf32> to vector<6x10368xf32>
    %5 = arith.addf %2, %4 : vector<6x10368xf32>
    %cst_5 = arith.constant 0.000000e+00 : f32
    %6 = vector.broadcast %cst_5 : f32 to vector<6x10368xf32>
    %7 = arith.maximumf %5, %6 : vector<6x10368xf32>
    %c0_6 = arith.constant 0 : index
    %c0_7 = arith.constant 0 : index
    %8 = vector.load %arg4[%c0_6, %c0_7] : memref<6x10368xf32, #tpu.memory_space<vmem>>, vector<6x10368xf32>
    tpu.vector_store %arg4[%c0_6, %c0_7], %7 {strides = array<i32>} : memref<6x10368xf32, #tpu.memory_space<vmem>>, vector<6x10368xf32>,
    return
  }
  func.func @transform_0(%arg0: i32) -> (i32, i32) {
    %c0_i32 = arith.constant 0 : i32
    %c0_i32_0 = arith.constant 0 : i32
    %c0_i32_1 = arith.constant 0 : i32
    return %c0_i32, %c0_i32_0 : i32, i32
  }
  func.func @transform_1(%arg0: i32) -> (i32, i32) {
    %c0_i32 = arith.constant 0 : i32
    %c0_i32_0 = arith.constant 0 : i32
    return %c0_i32, %arg0 : i32, i32
  }
  func.func @transform_2(%arg0: i32) -> (i32, i32) {
    %c0_i32 = arith.constant 0 : i32
    %c0_i32_0 = arith.constant 0 : i32
    %c0_i32_1 = arith.constant 0 : i32
    return %c0_i32, %c0_i32_0 : i32, i32
  }
  func.func @transform_3(%arg0: i32) -> (i32, i32) {
    %c0_i32 = arith.constant 0 : i32
    %c0_i32_0 = arith.constant 0 : i32
    return %c0_i32, %arg0 : i32, i32
  }
}

module attributes {stable_mosaic.version = 11 : i64} {
  func.func @_conv_mm_kernel(%arg0: i32, %arg1: memref<16x150xbf16, #tpu.memory_space<vmem>>, %arg2: memref<150x4736xbf16, #tpu.memory_space<vmem>>, %arg3: memref<16x1xf32, #tpu.memory_space<vmem>>, %arg4: memref<16x4736xf32, #tpu.memory_space<vmem>>) attributes {dimension_semantics = [#tpu.dimension_semantics<parallel>], iteration_bounds = array<i64: 2>, scalar_prefetch = 0 : i64, scratch_operands = 0 : i64, tpu.core_type = #tpu.core_type<tc>, window_params = [{pipeline_mode = #tpu.pipeline_mode<synchronous>, transform_indices = @transform_0, window_bounds = array<i64: 16, 150>}, {transform_indices = @transform_1, window_bounds = array<i64: 150, 4736>}, {pipeline_mode = #tpu.pipeline_mode<synchronous>, transform_indices = @transform_2, window_bounds = array<i64: 16, 1>}, {transform_indices = @transform_3, window_bounds = array<i64: 16, 4736>}]} {
    %c0 = arith.constant 0 : index
    %c0_0 = arith.constant 0 : index
    %0 = vector.load %arg1[%c0, %c0_0] : memref<16x150xbf16, #tpu.memory_space<vmem>>, vector<16x150xbf16>
    %c0_1 = arith.constant 0 : index
    %c0_2 = arith.constant 0 : index
    %1 = vector.load %arg2[%c0_1, %c0_2] : memref<150x4736xbf16, #tpu.memory_space<vmem>>, vector<150x4736xbf16>
    %cst = arith.constant dense<0.000000e+00> : vector<16x4736xf32>
    %2 = tpu.matmul %0, %1, %cst {dimension_numbers = #tpu.dot_dimension_numbers<[1], [0], [0], [1], [0, 0, 1, 1], [], []>} : vector<16x150xbf16>, vector<150x4736xbf16>, vector<16x4736xf32> -> vector<16x4736xf32>
    %c0_3 = arith.constant 0 : index
    %c0_4 = arith.constant 0 : index
    %3 = vector.load %arg3[%c0_3, %c0_4] : memref<16x1xf32, #tpu.memory_space<vmem>>, vector<16x1xf32>
    %4 = vector.broadcast %3 : vector<16x1xf32> to vector<16x4736xf32>
    %5 = arith.addf %2, %4 : vector<16x4736xf32>
    %cst_5 = arith.constant 0.000000e+00 : f32
    %6 = vector.broadcast %cst_5 : f32 to vector<16x4736xf32>
    %7 = arith.maximumf %5, %6 : vector<16x4736xf32>
    %c0_6 = arith.constant 0 : index
    %c0_7 = arith.constant 0 : index
    %8 = vector.load %arg4[%c0_6, %c0_7] : memref<16x4736xf32, #tpu.memory_space<vmem>>, vector<16x4736xf32>
    tpu.vector_store %arg4[%c0_6, %c0_7], %7 {strides = array<i32>} : memref<16x4736xf32, #tpu.memory_space<vmem>>, vector<16x4736xf32>,
    return
  }
  func.func @transform_0(%arg0: i32) -> (i32, i32) {
    %c0_i32 = arith.constant 0 : i32
    %c0_i32_0 = arith.constant 0 : i32
    %c0_i32_1 = arith.constant 0 : i32
    return %c0_i32, %c0_i32_0 : i32, i32
  }
  func.func @transform_1(%arg0: i32) -> (i32, i32) {
    %c0_i32 = arith.constant 0 : i32
    %c0_i32_0 = arith.constant 0 : i32
    return %c0_i32, %arg0 : i32, i32
  }
  func.func @transform_2(%arg0: i32) -> (i32, i32) {
    %c0_i32 = arith.constant 0 : i32
    %c0_i32_0 = arith.constant 0 : i32
    %c0_i32_1 = arith.constant 0 : i32
    return %c0_i32, %c0_i32_0 : i32, i32
  }
  func.func @transform_3(%arg0: i32) -> (i32, i32) {
    %c0_i32 = arith.constant 0 : i32
    %c0_i32_0 = arith.constant 0 : i32
    return %c0_i32, %arg0 : i32, i32
  }
}

module attributes {stable_mosaic.version = 11 : i64} {
  func.func @_fc1_partial_kernel(%arg0: i32, %arg1: i32, %arg2: memref<2x4736xbf16, #tpu.memory_space<vmem>>, %arg3: memref<4736x128xbf16, #tpu.memory_space<vmem>>, %arg4: memref<1x2x128xf32, #tpu.memory_space<vmem>>) attributes {dimension_semantics = [#tpu.dimension_semantics<parallel>, #tpu.dimension_semantics<arbitrary>], iteration_bounds = array<i64: 2, 2>, scalar_prefetch = 0 : i64, scratch_operands = 0 : i64, tpu.core_type = #tpu.core_type<tc>, window_params = [{transform_indices = @transform_0, window_bounds = array<i64: 2, 4736>}, {transform_indices = @transform_1, window_bounds = array<i64: 4736, 128>}, {transform_indices = @transform_2, window_bounds = array<i64: 1, 2, 128>}]} {
    %c0_i32 = arith.constant 0 : i32
    %0 = arith.cmpi eq, %arg1, %c0_i32 : i32
    %1 = arith.extui %0 : i1 to i32
    %c0_i32_0 = arith.constant 0 : i32
    %2 = arith.cmpi ne, %1, %c0_i32_0 : i32
    scf.if %2 {
      %cst_10 = arith.constant 0.000000e+00 : f32
      %12 = vector.broadcast %cst_10 : f32 to vector<1x2x128xf32>
      %c0_11 = arith.constant 0 : index
      %c0_12 = arith.constant 0 : index
      %c0_13 = arith.constant 0 : index
      %13 = vector.load %arg4[%c0_11, %c0_12, %c0_13] : memref<1x2x128xf32, #tpu.memory_space<vmem>>, vector<1x2x128xf32>
      tpu.vector_store %arg4[%c0_11, %c0_12, %c0_13], %12 {strides = array<i32>} : memref<1x2x128xf32, #tpu.memory_space<vmem>>, vector<1x2x128xf32>,
    } else {
    }
    %c0 = arith.constant 0 : index
    %c0_1 = arith.constant 0 : index
    %c0_2 = arith.constant 0 : index
    %3 = vector.load %arg4[%c0, %c0_1, %c0_2] : memref<1x2x128xf32, #tpu.memory_space<vmem>>, vector<1x2x128xf32>
    %4 = vector.shape_cast %3 : vector<1x2x128xf32> to vector<2x128xf32>
    %c0_3 = arith.constant 0 : index
    %c0_4 = arith.constant 0 : index
    %5 = vector.load %arg2[%c0_3, %c0_4] : memref<2x4736xbf16, #tpu.memory_space<vmem>>, vector<2x4736xbf16>
    %c0_5 = arith.constant 0 : index
    %c0_6 = arith.constant 0 : index
    %6 = vector.load %arg3[%c0_5, %c0_6] : memref<4736x128xbf16, #tpu.memory_space<vmem>>, vector<4736x128xbf16>
    %cst = arith.constant dense<0.000000e+00> : vector<2x128xf32>
    %7 = tpu.matmul %5, %6, %cst {dimension_numbers = #tpu.dot_dimension_numbers<[1], [0], [0], [1], [0, 0, 1, 1], [], []>} : vector<2x4736xbf16>, vector<4736x128xbf16>, vector<2x128xf32> -> vector<2x128xf32>
    %8 = arith.addf %4, %7 : vector<2x128xf32>
    %c0_7 = arith.constant 0 : index
    %c0_8 = arith.constant 0 : index
    %c0_9 = arith.constant 0 : index
    %9 = vector.load %arg4[%c0_7, %c0_8, %c0_9] : memref<1x2x128xf32, #tpu.memory_space<vmem>>, vector<1x2x128xf32>
    %10 = vector.shape_cast %9 : vector<1x2x128xf32> to vector<2x128xf32>
    %11 = vector.shape_cast %8 : vector<2x128xf32> to vector<1x2x128xf32>
    tpu.vector_store %arg4[%c0_7, %c0_8, %c0_9], %11 {strides = array<i32>} : memref<1x2x128xf32, #tpu.memory_space<vmem>>, vector<1x2x128xf32>,
    return
  }
  func.func @transform_0(%arg0: i32, %arg1: i32) -> (i32, i32) {
    %c2_i32 = arith.constant 2 : i32
    %0 = arith.muli %arg0, %c2_i32 : i32
    %1 = arith.addi %0, %arg1 : i32
    %c0_i32 = arith.constant 0 : i32
    %c0_i32_0 = arith.constant 0 : i32
    return %c0_i32, %1 : i32, i32
  }
  func.func @transform_1(%arg0: i32, %arg1: i32) -> (i32, i32) {
    %c2_i32 = arith.constant 2 : i32
    %0 = arith.muli %arg0, %c2_i32 : i32
    %1 = arith.addi %0, %arg1 : i32
    %c0_i32 = arith.constant 0 : i32
    %c0_i32_0 = arith.constant 0 : i32
    return %1, %c0_i32 : i32, i32
  }
  func.func @transform_2(%arg0: i32, %arg1: i32) -> (i32, i32, i32) {
    %c0_i32 = arith.constant 0 : i32
    %c0_i32_0 = arith.constant 0 : i32
    %c0_i32_1 = arith.constant 0 : i32
    return %arg0, %c0_i32, %c0_i32_0 : i32, i32, i32
  }
}

module attributes {stable_mosaic.version = 11 : i64} {
  func.func @_fc_head_epilogue_kernel(%arg0: memref<2x2x128xf32, #tpu.memory_space<vmem>>, %arg1: memref<1x128xf32, #tpu.memory_space<vmem>>, %arg2: memref<128x128xf32, #tpu.memory_space<vmem>>, %arg3: memref<1x128xf32, #tpu.memory_space<vmem>>, %arg4: memref<128x10xf32, #tpu.memory_space<vmem>>, %arg5: memref<1x10xf32, #tpu.memory_space<vmem>>, %arg6: memref<2x10xf32, #tpu.memory_space<vmem>>) attributes {dimension_semantics = [], scalar_prefetch = 0 : i64, scratch_operands = 0 : i64, tpu.core_type = #tpu.core_type<tc>} {
    %c0 = arith.constant 0 : index
    %c0_0 = arith.constant 0 : index
    %c0_1 = arith.constant 0 : index
    %0 = vector.load %arg0[%c0, %c0_0, %c0_1] : memref<2x2x128xf32, #tpu.memory_space<vmem>>, vector<2x2x128xf32>
    %cst = arith.constant dense<0.000000e+00> : vector<2x128xf32>
    %1 = vector.multi_reduction <add>, %0, %cst [0] : vector<2x2x128xf32> to vector<2x128xf32>
    %c0_2 = arith.constant 0 : index
    %c0_3 = arith.constant 0 : index
    %2 = vector.load %arg1[%c0_2, %c0_3] : memref<1x128xf32, #tpu.memory_space<vmem>>, vector<1x128xf32>
    %3 = vector.broadcast %2 : vector<1x128xf32> to vector<2x128xf32>
    %4 = arith.addf %1, %3 : vector<2x128xf32>
    %cst_4 = arith.constant 0.000000e+00 : f32
    %5 = vector.broadcast %cst_4 : f32 to vector<2x128xf32>
    %6 = arith.maximumf %4, %5 : vector<2x128xf32>
    %c0_5 = arith.constant 0 : index
    %c0_6 = arith.constant 0 : index
    %7 = vector.load %arg2[%c0_5, %c0_6] : memref<128x128xf32, #tpu.memory_space<vmem>>, vector<128x128xf32>
    %cst_7 = arith.constant dense<0.000000e+00> : vector<2x128xf32>
    %8 = tpu.matmul %6, %7, %cst_7 {dimension_numbers = #tpu.dot_dimension_numbers<[1], [0], [0], [1], [0, 0, 1, 1], [], []>} : vector<2x128xf32>, vector<128x128xf32>, vector<2x128xf32> -> vector<2x128xf32>
    %c0_8 = arith.constant 0 : index
    %c0_9 = arith.constant 0 : index
    %9 = vector.load %arg3[%c0_8, %c0_9] : memref<1x128xf32, #tpu.memory_space<vmem>>, vector<1x128xf32>
    %10 = vector.broadcast %9 : vector<1x128xf32> to vector<2x128xf32>
    %11 = arith.addf %8, %10 : vector<2x128xf32>
    %cst_10 = arith.constant 0.000000e+00 : f32
    %12 = vector.broadcast %cst_10 : f32 to vector<2x128xf32>
    %13 = arith.maximumf %11, %12 : vector<2x128xf32>
    %c0_11 = arith.constant 0 : index
    %c0_12 = arith.constant 0 : index
    %14 = vector.load %arg4[%c0_11, %c0_12] : memref<128x10xf32, #tpu.memory_space<vmem>>, vector<128x10xf32>
    %cst_13 = arith.constant dense<0.000000e+00> : vector<2x10xf32>
    %15 = tpu.matmul %13, %14, %cst_13 {dimension_numbers = #tpu.dot_dimension_numbers<[1], [0], [0], [1], [0, 0, 1, 1], [], []>} : vector<2x128xf32>, vector<128x10xf32>, vector<2x10xf32> -> vector<2x10xf32>
    %c0_14 = arith.constant 0 : index
    %c0_15 = arith.constant 0 : index
    %16 = vector.load %arg5[%c0_14, %c0_15] : memref<1x10xf32, #tpu.memory_space<vmem>>, vector<1x10xf32>
    %17 = vector.broadcast %16 : vector<1x10xf32> to vector<2x10xf32>
    %18 = arith.addf %15, %17 : vector<2x10xf32>
    %c0_16 = arith.constant 0 : index
    %c0_17 = arith.constant 0 : index
    %19 = vector.load %arg6[%c0_16, %c0_17] : memref<2x10xf32, #tpu.memory_space<vmem>>, vector<2x10xf32>
    tpu.vector_store %arg6[%c0_16, %c0_17], %18 {strides = array<i32>} : memref<2x10xf32, #tpu.memory_space<vmem>>, vector<2x10xf32>,
    return
  }
}

</mosaic_0001>

<bundles_post_ra>
// kernel: net_forward.4
= control target key start
LH: loop header
LB: loop body
LE: loop exit
PB: predicated region body
PF: predicated region fallthrough
CT: control target
= control target key end

     0   :  { %s4145_s12 = smov 0   ;;  %s4147_s13 = smov 0   ;;  %s5078_s0 = inlined_call_operand.vmem [shape: bf16[6,25], index: 0, kind: input, shape index: {}]   ;;  %s5079_s1 = inlined_call_operand.vmem [shape: bf16[25,41472], index: 1, kind: input, shape index: {}]   ;;  %s5080_s2 = inlined_call_operand.vmem [shape: f32[6,1], index: 2, kind: input, shape index: {}]   ;;  %s5081_s3 = inlined_call_operand.vmem [shape: f32[6,41472], index: 3, kind: output, shape index: {}]  }
   0x1   :  { %s4149_s14 = smov 0  }
   0x2 LB: > { %s3591_s15 = sadd.s32 4294967295, %s4119_s14   ;;  %s4162_s16 = sadd.s32 1, %s4119_s14   ;;  %s4119_s14 = sphi %s4149_s14, %s5084_s14   ;;  %s4115_s13 = sphi %s4147_s13, %s5083_s13   ;;  %s4111_s12 = sphi %s4145_s12, %s5082_s12  }
   0x3   : > { %s38_s17 = ssub.s32 %s4119_s14, %s4162_s16  ;;  %s41_s18 = sadd.s32 1, %s4115_s13 }
   0x4   : > { %p39_p0 = scmp.eq.s32.totalorder %s38_s17, 0  ;;  %p48_p1 = scmp.ne.s32.totalorder %s4115_s13, %s4111_s12 }
   0x5   : > { %p49_p2 = scmp.eq.s32.totalorder %s4119_s14, 0  ;;  %p3594_p4 = scmp.ge.s32.totalorder %s4119_s14, 4 }
   0x6   : > { %s4171_s19 = scalar_select %p39_p0, %s4115_s13, %s41_s18  }
   0x7   : > { %p50_p3 = por %p49_p2, %p48_p1  ;;  %127 = sbr.rel (%p3594_p4) target bundleno = 99 (0x63), region = 24 }
   0xc   : > { %130 = sbr.rel (!%p50_p3) target bundleno = 99 (0x63), region = 28  ;;  %s132_s20 = sand.u32 (%p50_p3), 1, %s4115_s13  }
   0xd   : > { %s3811_s21 = smul.u32 (%p50_p3), 324, %s4119_s14 }
   0xe   : > { %s3823_s22 = smul.u32 (%p50_p3), 1296, %s132_s20 }
   0xf   : > { %s4179_s25 = scalar_lea.vmem (%p50_p3), %s5079_s1, %s3811_s21 }
  0x10   : > { %v152_v0 = vld [vmem:[%s4179_s25] sm:$0xff] (%p50_p3)  ;;  %v154_v1 = vld [vmem:[%s4179_s25 + $0x8] sm:$0xff] (%p50_p3)  ;;  %v156_v2 = vld [vmem:[%s4179_s25 + $0x10] sm:$0xff] (%p50_p3)  ;;  %s4184_s26 = scalar_lea.vmem (%p50_p3), [#allocation2], %s3823_s22 }
  0x11   : > { %153 = vst [vmem:[%s4184_s26] sm:$0xff] %v152_v0  ;;  %155 = vst [vmem:[%s4184_s26 + $0x8] sm:$0xff] %v154_v1  ;;  %v158_v3 = vld [vmem:[%s4179_s25 + $0x18] sm:$0xff]  ;;  %v160_v4 = vld [vmem:[%s4179_s25 + $0x20] sm:$0xff] }
  0x12   : > { %157 = vst [vmem:[%s4184_s26 + $0x10] sm:$0xff] %v156_v2  ;;  %v162_v5 = vld [vmem:[%s4179_s25 + $0x28] sm:$0xff]  ;;  %159 = vst [vmem:[%s4184_s26 + $0x18] sm:$0xff] %v158_v3  ;;  %v164_v6 = vld [vmem:[%s4179_s25 + $0x30] sm:$0xff] }
  0x13   : > { %161 = vst [vmem:[%s4184_s26 + $0x20] sm:$0xff] %v160_v4  ;;  %163 = vst [vmem:[%s4184_s26 + $0x28] sm:$0xff] %v162_v5  ;;  %v166_v7 = vld [vmem:[%s4179_s25 + $0x38] sm:$0xff]  ;;  %v168_v8 = vld [vmem:[%s4179_s25 + $0x40] sm:$0xff] }
  0x14   : > { %165 = vst [vmem:[%s4184_s26 + $0x30] sm:$0xff] %v164_v6  ;;  %167 = vst [vmem:[%s4184_s26 + $0x38] sm:$0xff] %v166_v7  ;;  %v170_v9 = vld [vmem:[%s4179_s25 + $0x48] sm:$0xff]  ;;  %v172_v10 = vld [vmem:[%s4179_s25 + $0x50] sm:$0xff] }
  0x15   : > { %169 = vst [vmem:[%s4184_s26 + $0x40] sm:$0xff] %v168_v8  ;;  %v174_v11 = vld [vmem:[%s4179_s25 + $0x58] sm:$0xff]  ;;  %171 = vst [vmem:[%s4184_s26 + $0x48] sm:$0xff] %v170_v9  ;;  %v176_v12 = vld [vmem:[%s4179_s25 + $0x60] sm:$0xff] }
  0x16   : > { %173 = vst [vmem:[%s4184_s26 + $0x50] sm:$0xff] %v172_v10  ;;  %175 = vst [vmem:[%s4184_s26 + $0x58] sm:$0xff] %v174_v11  ;;  %v178_v13 = vld [vmem:[%s4179_s25 + $0x68] sm:$0xff]  ;;  %v180_v14 = vld [vmem:[%s4179_s25 + $0x70] sm:$0xff] }
  0x17   : > { %177 = vst [vmem:[%s4184_s26 + $0x60] sm:$0xff] %v176_v12  ;;  %179 = vst [vmem:[%s4184_s26 + $0x68] sm:$0xff] %v178_v13  ;;  %v182_v15 = vld [vmem:[%s4179_s25 + $0x78] sm:$0xff]  ;;  %v184_v16 = vld [vmem:[%s4179_s25 + $0x80] sm:$0xff] }
  0x18   : > { %181 = vst [vmem:[%s4184_s26 + $0x70] sm:$0xff] %v180_v14  ;;  %v186_v17 = vld [vmem:[%s4179_s25 + $0x88] sm:$0xff]  ;;  %183 = vst [vmem:[%s4184_s26 + $0x78] sm:$0xff] %v182_v15  ;;  %v188_v18 = vld [vmem:[%s4179_s25 + $0x90] sm:$0xff] }
  0x19   : > { %185 = vst [vmem:[%s4184_s26 + $0x80] sm:$0xff] %v184_v16  ;;  %187 = vst [vmem:[%s4184_s26 + $0x88] sm:$0xff] %v186_v17  ;;  %v190_v19 = vld [vmem:[%s4179_s25 + $0x98] sm:$0xff]  ;;  %v192_v20 = vld [vmem:[%s4179_s25 + $0xa0] sm:$0xff] }
  0x1a   : > { %189 = vst [vmem:[%s4184_s26 + $0x90] sm:$0xff] %v188_v18  ;;  %191 = vst [vmem:[%s4184_s26 + $0x98] sm:$0xff] %v190_v19  ;;  %v194_v21 = vld [vmem:[%s4179_s25 + $0xa8] sm:$0xff]  ;;  %v196_v22 = vld [vmem:[%s4179_s25 + $0xb0] sm:$0xff] }
  0x1b   : > { %193 = vst [vmem:[%s4184_s26 + $0xa0] sm:$0xff] %v192_v20  ;;  %v198_v23 = vld [vmem:[%s4179_s25 + $0xb8] sm:$0xff]  ;;  %195 = vst [vmem:[%s4184_s26 + $0xa8] sm:$0xff] %v194_v21  ;;  %v200_v24 = vld [vmem:[%s4179_s25 + $0xc0] sm:$0xff] }
  0x1c   : > { %197 = vst [vmem:[%s4184_s26 + $0xb0] sm:$0xff] %v196_v22  ;;  %199 = vst [vmem:[%s4184_s26 + $0xb8] sm:$0xff] %v198_v23  ;;  %v202_v25 = vld [vmem:[%s4179_s25 + $0xc8] sm:$0xff]  ;;  %v204_v26 = vld [vmem:[%s4179_s25 + $0xd0] sm:$0xff] }
  0x1d   : > { %201 = vst [vmem:[%s4184_s26 + $0xc0] sm:$0xff] %v200_v24  ;;  %203 = vst [vmem:[%s4184_s26 + $0xc8] sm:$0xff] %v202_v25  ;;  %v206_v27 = vld [vmem:[%s4179_s25 + $0xd8] sm:$0xff]  ;;  %v208_v28 = vld [vmem:[%s4179_s25 + $0xe0] sm:$0xff] }
  0x1e   : > { %205 = vst [vmem:[%s4184_s26 + $0xd0] sm:$0xff] %v204_v26  ;;  %v210_v29 = vld [vmem:[%s4179_s25 + $0xe8] sm:$0xff]  ;;  %207 = vst [vmem:[%s4184_s26 + $0xd8] sm:$0xff] %v206_v27  ;;  %v212_v30 = vld [vmem:[%s4179_s25 + $0xf0] sm:$0xff] }
  0x1f   : > { %209 = vst [vmem:[%s4184_s26 + $0xe0] sm:$0xff] %v208_v28  ;;  %211 = vst [vmem:[%s4184_s26 + $0xe8] sm:$0xff] %v210_v29  ;;  %v214_v31 = vld [vmem:[%s4179_s25 + $0xf8] sm:$0xff]  ;;  %v216_v32 = vld [vmem:[%s4179_s25 + $0x100] sm:$0xff] }
  0x20   : > { %213 = vst [vmem:[%s4184_s26 + $0xf0] sm:$0xff] %v212_v30  ;;  %215 = vst [vmem:[%s4184_s26 + $0xf8] sm:$0xff] %v214_v31  ;;  %v218_v33 = vld [vmem:[%s4179_s25 + $0x108] sm:$0xff]  ;;  %v220_v34 = vld [vmem:[%s4179_s25 + $0x110] sm:$0xff] }
  0x21   : > { %217 = vst [vmem:[%s4184_s26 + $0x100] sm:$0xff] %v216_v32  ;;  %v222_v35 = vld [vmem:[%s4179_s25 + $0x118] sm:$0xff]  ;;  %219 = vst [vmem:[%s4184_s26 + $0x108] sm:$0xff] %v218_v33  ;;  %v224_v36 = vld [vmem:[%s4179_s25 + $0x120] sm:$0xff] }
  0x22   : > { %221 = vst [vmem:[%s4184_s26 + $0x110] sm:$0xff] %v220_v34  ;;  %223 = vst [vmem:[%s4184_s26 + $0x118] sm:$0xff] %v222_v35  ;;  %v226_v37 = vld [vmem:[%s4179_s25 + $0x128] sm:$0xff]  ;;  %v228_v38 = vld [vmem:[%s4179_s25 + $0x130] sm:$0xff] }
  0x23   : > { %225 = vst [vmem:[%s4184_s26 + $0x120] sm:$0xff] %v224_v36  ;;  %227 = vst [vmem:[%s4184_s26 + $0x128] sm:$0xff] %v226_v37  ;;  %v230_v39 = vld [vmem:[%s4179_s25 + $0x138] sm:$0xff]  ;;  %v232_v40 = vld [vmem:[%s4179_s25 + $0x510] sm:$0xff] }
  0x24   : > { %229 = vst [vmem:[%s4184_s26 + $0x130] sm:$0xff] %v228_v38  ;;  %v234_v41 = vld [vmem:[%s4179_s25 + $0x518] sm:$0xff]  ;;  %231 = vst [vmem:[%s4184_s26 + $0x138] sm:$0xff] %v230_v39  ;;  %v236_v42 = vld [vmem:[%s4179_s25 + $0x520] sm:$0xff] }
  0x25   : > { %233 = vst [vmem:[%s4184_s26 + $0x144] sm:$0xff] %v232_v40  ;;  %235 = vst [vmem:[%s4184_s26 + $0x14c] sm:$0xff] %v234_v41  ;;  %v238_v43 = vld [vmem:[%s4179_s25 + $0x528] sm:$0xff]  ;;  %v240_v44 = vld [vmem:[%s4179_s25 + $0x530] sm:$0xff] }
  0x26   : > { %237 = vst [vmem:[%s4184_s26 + $0x154] sm:$0xff] %v236_v42  ;;  %239 = vst [vmem:[%s4184_s26 + $0x15c] sm:$0xff] %v238_v43  ;;  %v242_v45 = vld [vmem:[%s4179_s25 + $0x538] sm:$0xff]  ;;  %v244_v46 = vld [vmem:[%s4179_s25 + $0x540] sm:$0xff] }
  0x27   : > { %241 = vst [vmem:[%s4184_s26 + $0x164] sm:$0xff] %v240_v44  ;;  %v246_v47 = vld [vmem:[%s4179_s25 + $0x548] sm:$0xff]  ;;  %243 = vst [vmem:[%s4184_s26 + $0x16c] sm:$0xff] %v242_v45  ;;  %v248_v48 = vld [vmem:[%s4179_s25 + $0x550] sm:$0xff] }
  0x28   : > { %245 = vst [vmem:[%s4184_s26 + $0x174] sm:$0xff] %v244_v46  ;;  %247 = vst [vmem:[%s4184_s26 + $0x17c] sm:$0xff] %v246_v47  ;;  %v250_v49 = vld [vmem:[%s4179_s25 + $0x558] sm:$0xff]  ;;  %v252_v50 = vld [vmem:[%s4179_s25 + $0x560] sm:$0xff] }
  0x29   : > { %249 = vst [vmem:[%s4184_s26 + $0x184] sm:$0xff] %v248_v48  ;;  %251 = vst [vmem:[%s4184_s26 + $0x18c] sm:$0xff] %v250_v49  ;;  %v254_v51 = vld [vmem:[%s4179_s25 + $0x568] sm:$0xff]  ;;  %v256_v52 = vld [vmem:[%s4179_s25 + $0x570] sm:$0xff] }
  0x2a   : > { %253 = vst [vmem:[%s4184_s26 + $0x194] sm:$0xff] %v252_v50  ;;  %v258_v53 = vld [vmem:[%s4179_s25 + $0x578] sm:$0xff]  ;;  %255 = vst [vmem:[%s4184_s26 + $0x19c] sm:$0xff] %v254_v51  ;;  %v260_v54 = vld [vmem:[%s4179_s25 + $0x580] sm:$0xff] }
  0x2b   : > { %257 = vst [vmem:[%s4184_s26 + $0x1a4] sm:$0xff] %v256_v52  ;;  %259 = vst [vmem:[%s4184_s26 + $0x1ac] sm:$0xff] %v258_v53  ;;  %v262_v55 = vld [vmem:[%s4179_s25 + $0x588] sm:$0xff]  ;;  %v264_v56 = vld [vmem:[%s4179_s25 + $0x590] sm:$0xff] }
  0x2c   : > { %261 = vst [vmem:[%s4184_s26 + $0x1b4] sm:$0xff] %v260_v54  ;;  %263 = vst [vmem:[%s4184_s26 + $0x1bc] sm:$0xff] %v262_v55  ;;  %v266_v57 = vld [vmem:[%s4179_s25 + $0x598] sm:$0xff]  ;;  %v268_v58 = vld [vmem:[%s4179_s25 + $0x5a0] sm:$0xff] }
  0x2d   : > { %265 = vst [vmem:[%s4184_s26 + $0x1c4] sm:$0xff] %v264_v56  ;;  %v270_v59 = vld [vmem:[%s4179_s25 + $0x5a8] sm:$0xff]  ;;  %267 = vst [vmem:[%s4184_s26 + $0x1cc] sm:$0xff] %v266_v57  ;;  %v272_v60 = vld [vmem:[%s4179_s25 + $0x5b0] sm:$0xff] }
  0x2e   : > { %269 = vst [vmem:[%s4184_s26 + $0x1d4] sm:$0xff] %v268_v58  ;;  %271 = vst [vmem:[%s4184_s26 + $0x1dc] sm:$0xff] %v270_v59  ;;  %v274_v61 = vld [vmem:[%s4179_s25 + $0x5b8] sm:$0xff]  ;;  %v276_v62 = vld [vmem:[%s4179_s25 + $0x5c0] sm:$0xff] }
  0x2f   : > { %273 = vst [vmem:[%s4184_s26 + $0x1e4] sm:$0xff] %v272_v60  ;;  %275 = vst [vmem:[%s4184_s26 + $0x1ec] sm:$0xff] %v274_v61  ;;  %v278_v63 = vld [vmem:[%s4179_s25 + $0x5c8] sm:$0xff]  ;;  %v280_v0 = vld [vmem:[%s4179_s25 + $0x5d0] sm:$0xff] }
  0x30   : > { %277 = vst [vmem:[%s4184_s26 + $0x1f4] sm:$0xff] %v276_v62  ;;  %v282_v1 = vld [vmem:[%s4179_s25 + $0x5d8] sm:$0xff]  ;;  %279 = vst [vmem:[%s4184_s26 + $0x1fc] sm:$0xff] %v278_v63  ;;  %v284_v2 = vld [vmem:[%s4179_s25 + $0x5e0] sm:$0xff] }
  0x31   : > { %281 = vst [vmem:[%s4184_s26 + $0x204] sm:$0xff] %v280_v0  ;;  %283 = vst [vmem:[%s4184_s26 + $0x20c] sm:$0xff] %v282_v1  ;;  %v286_v3 = vld [vmem:[%s4179_s25 + $0x5e8] sm:$0xff]  ;;  %v288_v4 = vld [vmem:[%s4179_s25 + $0x5f0] sm:$0xff] }
  0x32   : > { %285 = vst [vmem:[%s4184_s26 + $0x214] sm:$0xff] %v284_v2  ;;  %287 = vst [vmem:[%s4184_s26 + $0x21c] sm:$0xff] %v286_v3  ;;  %v290_v5 = vld [vmem:[%s4179_s25 + $0x5f8] sm:$0xff]  ;;  %v292_v6 = vld [vmem:[%s4179_s25 + $0x600] sm:$0xff] }
  0x33   : > { %289 = vst [vmem:[%s4184_s26 + $0x224] sm:$0xff] %v288_v4  ;;  %v294_v7 = vld [vmem:[%s4179_s25 + $0x608] sm:$0xff]  ;;  %291 = vst [vmem:[%s4184_s26 + $0x22c] sm:$0xff] %v290_v5  ;;  %v296_v8 = vld [vmem:[%s4179_s25 + $0x610] sm:$0xff] }
  0x34   : > { %293 = vst [vmem:[%s4184_s26 + $0x234] sm:$0xff] %v292_v6  ;;  %295 = vst [vmem:[%s4184_s26 + $0x23c] sm:$0xff] %v294_v7  ;;  %v298_v9 = vld [vmem:[%s4179_s25 + $0x618] sm:$0xff]  ;;  %v300_v10 = vld [vmem:[%s4179_s25 + $0x620] sm:$0xff] }
  0x35   : > { %297 = vst [vmem:[%s4184_s26 + $0x244] sm:$0xff] %v296_v8  ;;  %299 = vst [vmem:[%s4184_s26 + $0x24c] sm:$0xff] %v298_v9  ;;  %v302_v11 = vld [vmem:[%s4179_s25 + $0x628] sm:$0xff]  ;;  %v304_v12 = vld [vmem:[%s4179_s25 + $0x630] sm:$0xff] }
  0x36   : > { %301 = vst [vmem:[%s4184_s26 + $0x254] sm:$0xff] %v300_v10  ;;  %v306_v13 = vld [vmem:[%s4179_s25 + $0x638] sm:$0xff]  ;;  %303 = vst [vmem:[%s4184_s26 + $0x25c] sm:$0xff] %v302_v11  ;;  %v308_v14 = vld [vmem:[%s4179_s25 + $0x640] sm:$0xff] }
  0x37   : > { %305 = vst [vmem:[%s4184_s26 + $0x264] sm:$0xff] %v304_v12  ;;  %307 = vst [vmem:[%s4184_s26 + $0x26c] sm:$0xff] %v306_v13  ;;  %v310_v15 = vld [vmem:[%s4179_s25 + $0x648] sm:$0xff]  ;;  %v312_v16 = vld [vmem:[%s4179_s25 + $0xa20] sm:$0xff] }
  0x38   : > { %309 = vst [vmem:[%s4184_s26 + $0x274] sm:$0xff] %v308_v14  ;;  %311 = vst [vmem:[%s4184_s26 + $0x27c] sm:$0xff] %v310_v15  ;;  %v314_v17 = vld [vmem:[%s4179_s25 + $0xa28] sm:$0xff]  ;;  %v316_v18 = vld [vmem:[%s4179_s25 + $0xa30] sm:$0xff] }
  0x39   : > { %313 = vst [vmem:[%s4184_s26 + $0x288] sm:$0xff] %v312_v16  ;;  %v318_v19 = vld [vmem:[%s4179_s25 + $0xa38] sm:$0xff]  ;;  %315 = vst [vmem:[%s4184_s26 + $0x290] sm:$0xff] %v314_v17  ;;  %v320_v20 = vld [vmem:[%s4179_s25 + $0xa40] sm:$0xff] }
  0x3a   : > { %317 = vst [vmem:[%s4184_s26 + $0x298] sm:$0xff] %v316_v18  ;;  %319 = vst [vmem:[%s4184_s26 + $0x2a0] sm:$0xff] %v318_v19  ;;  %v322_v21 = vld [vmem:[%s4179_s25 + $0xa48] sm:$0xff]  ;;  %v324_v22 = vld [vmem:[%s4179_s25 + $0xa50] sm:$0xff] }
  0x3b   : > { %321 = vst [vmem:[%s4184_s26 + $0x2a8] sm:$0xff] %v320_v20  ;;  %323 = vst [vmem:[%s4184_s26 + $0x2b0] sm:$0xff] %v322_v21  ;;  %v326_v23 = vld [vmem:[%s4179_s25 + $0xa58] sm:$0xff]  ;;  %v328_v24 = vld [vmem:[%s4179_s25 + $0xa60] sm:$0xff] }
  0x3c   : > { %325 = vst [vmem:[%s4184_s26 + $0x2b8] sm:$0xff] %v324_v22  ;;  %v330_v25 = vld [vmem:[%s4179_s25 + $0xa68] sm:$0xff]  ;;  %327 = vst [vmem:[%s4184_s26 + $0x2c0] sm:$0xff] %v326_v23  ;;  %v332_v26 = vld [vmem:[%s4179_s25 + $0xa70] sm:$0xff] }
  0x3d   : > { %329 = vst [vmem:[%s4184_s26 + $0x2c8] sm:$0xff] %v328_v24  ;;  %331 = vst [vmem:[%s4184_s26 + $0x2d0] sm:$0xff] %v330_v25  ;;  %v334_v27 = vld [vmem:[%s4179_s25 + $0xa78] sm:$0xff]  ;;  %v336_v28 = vld [vmem:[%s4179_s25 + $0xa80] sm:$0xff] }
  0x3e   : > { %333 = vst [vmem:[%s4184_s26 + $0x2d8] sm:$0xff] %v332_v26  ;;  %335 = vst [vmem:[%s4184_s26 + $0x2e0] sm:$0xff] %v334_v27  ;;  %v338_v29 = vld [vmem:[%s4179_s25 + $0xa88] sm:$0xff]  ;;  %v340_v30 = vld [vmem:[%s4179_s25 + $0xa90] sm:$0xff] }
  0x3f   : > { %337 = vst [vmem:[%s4184_s26 + $0x2e8] sm:$0xff] %v336_v28  ;;  %v342_v31 = vld [vmem:[%s4179_s25 + $0xa98] sm:$0xff]  ;;  %339 = vst [vmem:[%s4184_s26 + $0x2f0] sm:$0xff] %v338_v29  ;;  %v344_v32 = vld [vmem:[%s4179_s25 + $0xaa0] sm:$0xff] }
  0x40   : > { %341 = vst [vmem:[%s4184_s26 + $0x2f8] sm:$0xff] %v340_v30  ;;  %343 = vst [vmem:[%s4184_s26 + $0x300] sm:$0xff] %v342_v31  ;;  %v346_v33 = vld [vmem:[%s4179_s25 + $0xaa8] sm:$0xff]  ;;  %v348_v34 = vld [vmem:[%s4179_s25 + $0xab0] sm:$0xff] }
  0x41   : > { %345 = vst [vmem:[%s4184_s26 + $0x308] sm:$0xff] %v344_v32  ;;  %347 = vst [vmem:[%s4184_s26 + $0x310] sm:$0xff] %v346_v33  ;;  %v350_v35 = vld [vmem:[%s4179_s25 + $0xab8] sm:$0xff]  ;;  %v352_v36 = vld [vmem:[%s4179_s25 + $0xac0] sm:$0xff] }
  0x42   : > { %349 = vst [vmem:[%s4184_s26 + $0x318] sm:$0xff] %v348_v34  ;;  %v354_v37 = vld [vmem:[%s4179_s25 + $0xac8] sm:$0xff]  ;;  %351 = vst [vmem:[%s4184_s26 + $0x320] sm:$0xff] %v350_v35  ;;  %v356_v38 = vld [vmem:[%s4179_s25 + $0xad0] sm:$0xff] }
  0x43   : > { %353 = vst [vmem:[%s4184_s26 + $0x328] sm:$0xff] %v352_v36  ;;  %355 = vst [vmem:[%s4184_s26 + $0x330] sm:$0xff] %v354_v37  ;;  %v358_v39 = vld [vmem:[%s4179_s25 + $0xad8] sm:$0xff]  ;;  %v360_v40 = vld [vmem:[%s4179_s25 + $0xae0] sm:$0xff] }
  0x44   : > { %357 = vst [vmem:[%s4184_s26 + $0x338] sm:$0xff] %v356_v38  ;;  %359 = vst [vmem:[%s4184_s26 + $0x340] sm:$0xff] %v358_v39  ;;  %v362_v41 = vld [vmem:[%s4179_s25 + $0xae8] sm:$0xff]  ;;  %v364_v42 = vld [vmem:[%s4179_s25 + $0xaf0] sm:$0xff] }
  0x45   : > { %361 = vst [vmem:[%s4184_s26 + $0x348] sm:$0xff] %v360_v40  ;;  %v366_v43 = vld [vmem:[%s4179_s25 + $0xaf8] sm:$0xff]  ;;  %363 = vst [vmem:[%s4184_s26 + $0x350] sm:$0xff] %v362_v41  ;;  %v368_v44 = vld [vmem:[%s4179_s25 + $0xb00] sm:$0xff] }
  0x46   : > { %365 = vst [vmem:[%s4184_s26 + $0x358] sm:$0xff] %v364_v42  ;;  %367 = vst [vmem:[%s4184_s26 + $0x360] sm:$0xff] %v366_v43  ;;  %v370_v45 = vld [vmem:[%s4179_s25 + $0xb08] sm:$0xff]  ;;  %v372_v46 = vld [vmem:[%s4179_s25 + $0xb10] sm:$0xff] }
  0x47   : > { %369 = vst [vmem:[%s4184_s26 + $0x368] sm:$0xff] %v368_v44  ;;  %371 = vst [vmem:[%s4184_s26 + $0x370] sm:$0xff] %v370_v45  ;;  %v374_v47 = vld [vmem:[%s4179_s25 + $0xb18] sm:$0xff]  ;;  %v376_v48 = vld [vmem:[%s4179_s25 + $0xb20] sm:$0xff] }
  0x48   : > { %373 = vst [vmem:[%s4184_s26 + $0x378] sm:$0xff] %v372_v46  ;;  %v378_v49 = vld [vmem:[%s4179_s25 + $0xb28] sm:$0xff]  ;;  %375 = vst [vmem:[%s4184_s26 + $0x380] sm:$0xff] %v374_v47  ;;  %v380_v50 = vld [vmem:[%s4179_s25 + $0xb30] sm:$0xff] }
  0x49   : > { %377 = vst [vmem:[%s4184_s26 + $0x388] sm:$0xff] %v376_v48  ;;  %379 = vst [vmem:[%s4184_s26 + $0x390] sm:$0xff] %v378_v49  ;;  %v382_v51 = vld [vmem:[%s4179_s25 + $0xb38] sm:$0xff]  ;;  %v384_v52 = vld [vmem:[%s4179_s25 + $0xb40] sm:$0xff] }
  0x4a   : > { %381 = vst [vmem:[%s4184_s26 + $0x398] sm:$0xff] %v380_v50  ;;  %383 = vst [vmem:[%s4184_s26 + $0x3a0] sm:$0xff] %v382_v51  ;;  %v386_v53 = vld [vmem:[%s4179_s25 + $0xb48] sm:$0xff]  ;;  %v388_v54 = vld [vmem:[%s4179_s25 + $0xb50] sm:$0xff] }
  0x4b   : > { %385 = vst [vmem:[%s4184_s26 + $0x3a8] sm:$0xff] %v384_v52  ;;  %v390_v55 = vld [vmem:[%s4179_s25 + $0xb58] sm:$0xff]  ;;  %387 = vst [vmem:[%s4184_s26 + $0x3b0] sm:$0xff] %v386_v53  ;;  %v392_v56 = vld [vmem:[%s4179_s25 + $0xf30] sm:$0xff] }
  0x4c   : > { %389 = vst [vmem:[%s4184_s26 + $0x3b8] sm:$0xff] %v388_v54  ;;  %391 = vst [vmem:[%s4184_s26 + $0x3c0] sm:$0xff] %v390_v55  ;;  %v394_v57 = vld [vmem:[%s4179_s25 + $0xf38] sm:$0xff]  ;;  %v396_v58 = vld [vmem:[%s4179_s25 + $0xf40] sm:$0xff] }
  0x4d   : > { %393 = vst [vmem:[%s4184_s26 + $0x3cc] sm:$0xff] %v392_v56  ;;  %395 = vst [vmem:[%s4184_s26 + $0x3d4] sm:$0xff] %v394_v57  ;;  %v398_v59 = vld [vmem:[%s4179_s25 + $0xf48] sm:$0xff]  ;;  %v400_v60 = vld [vmem:[%s4179_s25 + $0xf50] sm:$0xff] }
  0x4e   : > { %397 = vst [vmem:[%s4184_s26 + $0x3dc] sm:$0xff] %v396_v58  ;;  %v402_v61 = vld [vmem:[%s4179_s25 + $0xf58] sm:$0xff]  ;;  %399 = vst [vmem:[%s4184_s26 + $0x3e4] sm:$0xff] %v398_v59  ;;  %v404_v62 = vld [vmem:[%s4179_s25 + $0xf60] sm:$0xff] }
  0x4f   : > { %401 = vst [vmem:[%s4184_s26 + $0x3ec] sm:$0xff] %v400_v60  ;;  %403 = vst [vmem:[%s4184_s26 + $0x3f4] sm:$0xff] %v402_v61  ;;  %v406_v63 = vld [vmem:[%s4179_s25 + $0xf68] sm:$0xff]  ;;  %v408_v0 = vld [vmem:[%s4179_s25 + $0xf70] sm:$0xff] }
  0x50   : > { %405 = vst [vmem:[%s4184_s26 + $0x3fc] sm:$0xff] %v404_v62  ;;  %407 = vst [vmem:[%s4184_s26 + $0x404] sm:$0xff] %v406_v63  ;;  %v410_v1 = vld [vmem:[%s4179_s25 + $0xf78] sm:$0xff]  ;;  %v412_v2 = vld [vmem:[%s4179_s25 + $0xf80] sm:$0xff] }
  0x51   : > { %409 = vst [vmem:[%s4184_s26 + $0x40c] sm:$0xff] %v408_v0  ;;  %v414_v3 = vld [vmem:[%s4179_s25 + $0xf88] sm:$0xff]  ;;  %411 = vst [vmem:[%s4184_s26 + $0x414] sm:$0xff] %v410_v1  ;;  %v416_v4 = vld [vmem:[%s4179_s25 + $0xf90] sm:$0xff] }
  0x52   : > { %413 = vst [vmem:[%s4184_s26 + $0x41c] sm:$0xff] %v412_v2  ;;  %415 = vst [vmem:[%s4184_s26 + $0x424] sm:$0xff] %v414_v3  ;;  %v418_v5 = vld [vmem:[%s4179_s25 + $0xf98] sm:$0xff]  ;;  %v420_v6 = vld [vmem:[%s4179_s25 + $0xfa0] sm:$0xff] }
  0x53   : > { %417 = vst [vmem:[%s4184_s26 + $0x42c] sm:$0xff] %v416_v4  ;;  %419 = vst [vmem:[%s4184_s26 + $0x434] sm:$0xff] %v418_v5  ;;  %v422_v7 = vld [vmem:[%s4179_s25 + $0xfa8] sm:$0xff]  ;;  %v424_v8 = vld [vmem:[%s4179_s25 + $0xfb0] sm:$0xff] }
  0x54   : > { %421 = vst [vmem:[%s4184_s26 + $0x43c] sm:$0xff] %v420_v6  ;;  %v426_v9 = vld [vmem:[%s4179_s25 + $0xfb8] sm:$0xff]  ;;  %423 = vst [vmem:[%s4184_s26 + $0x444] sm:$0xff] %v422_v7  ;;  %v428_v10 = vld [vmem:[%s4179_s25 + $0xfc0] sm:$0xff] }
  0x55   : > { %425 = vst [vmem:[%s4184_s26 + $0x44c] sm:$0xff] %v424_v8  ;;  %427 = vst [vmem:[%s4184_s26 + $0x454] sm:$0xff] %v426_v9  ;;  %v430_v11 = vld [vmem:[%s4179_s25 + $0xfc8] sm:$0xff]  ;;  %v432_v12 = vld [vmem:[%s4179_s25 + $0xfd0] sm:$0xff] }
  0x56   : > { %429 = vst [vmem:[%s4184_s26 + $0x45c] sm:$0xff] %v428_v10  ;;  %431 = vst [vmem:[%s4184_s26 + $0x464] sm:$0xff] %v430_v11  ;;  %v434_v13 = vld [vmem:[%s4179_s25 + $0xfd8] sm:$0xff]  ;;  %v436_v14 = vld [vmem:[%s4179_s25 + $0xfe0] sm:$0xff] }
  0x57   : > { %433 = vst [vmem:[%s4184_s26 + $0x46c] sm:$0xff] %v432_v12  ;;  %v438_v15 = vld [vmem:[%s4179_s25 + $0xfe8] sm:$0xff]  ;;  %435 = vst [vmem:[%s4184_s26 + $0x474] sm:$0xff] %v434_v13  ;;  %v440_v16 = vld [vmem:[%s4179_s25 + $0xff0] sm:$0xff] }
  0x58   : > { %437 = vst [vmem:[%s4184_s26 + $0x47c] sm:$0xff] %v436_v14  ;;  %439 = vst [vmem:[%s4184_s26 + $0x484] sm:$0xff] %v438_v15  ;;  %v442_v17 = vld [vmem:[%s4179_s25 + $0xff8] sm:$0xff]  ;;  %v444_v18 = vld [vmem:[%s4179_s25 + $0x1000] sm:$0xff] }
  0x59   : > { %441 = vst [vmem:[%s4184_s26 + $0x48c] sm:$0xff] %v440_v16  ;;  %443 = vst [vmem:[%s4184_s26 + $0x494] sm:$0xff] %v442_v17  ;;  %v446_v19 = vld [vmem:[%s4179_s25 + $0x1008] sm:$0xff]  ;;  %v448_v20 = vld [vmem:[%s4179_s25 + $0x1010] sm:$0xff] }
  0x5a   : > { %445 = vst [vmem:[%s4184_s26 + $0x49c] sm:$0xff] %v444_v18  ;;  %v450_v21 = vld [vmem:[%s4179_s25 + $0x1018] sm:$0xff]  ;;  %447 = vst [vmem:[%s4184_s26 + $0x4a4] sm:$0xff] %v446_v19  ;;  %v452_v22 = vld [vmem:[%s4179_s25 + $0x1020] sm:$0xff] }
  0x5b   : > { %449 = vst [vmem:[%s4184_s26 + $0x4ac] sm:$0xff] %v448_v20  ;;  %451 = vst [vmem:[%s4184_s26 + $0x4b4] sm:$0xff] %v450_v21  ;;  %v454_v23 = vld [vmem:[%s4179_s25 + $0x1028] sm:$0xff]  ;;  %v456_v24 = vld [vmem:[%s4179_s25 + $0x1030] sm:$0xff] }
  0x5c   : > { %453 = vst [vmem:[%s4184_s26 + $0x4bc] sm:$0xff] %v452_v22  ;;  %455 = vst [vmem:[%s4184_s26 + $0x4c4] sm:$0xff] %v454_v23  ;;  %v458_v25 = vld [vmem:[%s4179_s25 + $0x1038] sm:$0xff]  ;;  %v460_v26 = vld [vmem:[%s4179_s25 + $0x1040] sm:$0xff] }
  0x5d   : > { %457 = vst [vmem:[%s4184_s26 + $0x4cc] sm:$0xff] %v456_v24  ;;  %v462_v27 = vld [vmem:[%s4179_s25 + $0x1048] sm:$0xff]  ;;  %459 = vst [vmem:[%s4184_s26 + $0x4d4] sm:$0xff] %v458_v25  ;;  %v464_v28 = vld [vmem:[%s4179_s25 + $0x1050] sm:$0xff] }
  0x5e   : > { %461 = vst [vmem:[%s4184_s26 + $0x4dc] sm:$0xff] %v460_v26  ;;  %463 = vst [vmem:[%s4184_s26 + $0x4e4] sm:$0xff] %v462_v27  ;;  %v466_v29 = vld [vmem:[%s4179_s25 + $0x1058] sm:$0xff]  ;;  %v468_v30 = vld [vmem:[%s4179_s25 + $0x1060] sm:$0xff] }
  0x5f   : > { %465 = vst [vmem:[%s4184_s26 + $0x4ec] sm:$0xff] %v464_v28  ;;  %467 = vst [vmem:[%s4184_s26 + $0x4f4] sm:$0xff] %v466_v29  ;;  %v470_v31 = vld [vmem:[%s4179_s25 + $0x1068] sm:$0xff]  ;;  %v3596_v32 = vld [vmem:[%s4179_s25 + $0x140] sm:$0xf] }
  0x60   : > { %469 = vst [vmem:[%s4184_s26 + $0x4fc] sm:$0xff] %v468_v30  ;;  %v3598_v33 = vld [vmem:[%s4179_s25 + $0x650] sm:$0xf]  ;;  %471 = vst [vmem:[%s4184_s26 + $0x504] sm:$0xff] %v470_v31  ;;  %v3600_v34 = vld [vmem:[%s4179_s25 + $0xb60] sm:$0xf] }
  0x61   : > { %3597 = vst [vmem:[%s4184_s26 + $0x140] sm:$0xf] %v3596_v32  ;;  %3599 = vst [vmem:[%s4184_s26 + $0x284] sm:$0xf] %v3598_v33  ;;  %v3602_v35 = vld [vmem:[%s4179_s25 + $0x1070] sm:$0xf] }
  0x62   : > { %3601 = vst [vmem:[%s4184_s26 + $0x3c8] sm:$0xf] %v3600_v34  ;;  %3603 = vst [vmem:[%s4184_s26 + $0x50c] sm:$0xf] %v3602_v35 }
  0x63 PF: > { %p3604_p5 = scmp.ge.s32.totalorder %s4119_s14, 1  ;;  %p492_p6 = scmp.lt.s32.totalorder %s4119_s14, 5 }
  0x65   : > { %p493_p7 = pnand %p3604_p5, %p492_p6 }
  0x66   : > { %s499_s27 = sand.u32 (!%p493_p7), 1, %s4111_s12   ;;  %s523_s9 = smul.u32 (!%p493_p7), 81, %s3591_s15 }
  0x67   : > { %496 = sbr.rel (%p493_p7) target bundleno = 480 (0x1e0), region = 54 }
  0x68   : > { %s3824_s28 = smul.u32 (!%p493_p7), 1296, %s499_s27  ;;  %p524_p8 = scmp.lt.s32.totalorder (!%p493_p7), %s523_s9, 323 }
  0x6a   : > { %s4522_s4 = scalar_lea.vmem (!%p493_p7), [#allocation2], %s3824_s28 }
  0x6c   : > { %vm1436_vm0 = vcmask 1043456   ;;  %vm1437_vm1 = vcmask 1044480   ;;  %v4121_v36 = vmov 65535   ;;  %v4122_v38 = vmov 0   ;;  %v695_v39 = vld [vmem:[%s5080_s2] sm:$0x3f] }
  0x6d   : > { %v1438_v37 = vsel %vm1436_vm0, 4294967295, %v4121_v36  ;;  %1715 = vmatprep.mubr.bf16.mxu0 %v4122_v38  ;;  %1756 = vmatprep.mubr.bf16.mxu1 %v4122_v38  ;;  %v3854_v41 = vld [vmem:[%s4522_s4 + $0x28c] ss:$324 sps:$4 sm:$0x1f]   ;;  %v3860_v47 = vld [vmem:[%s4522_s4 + $0x4] ss:$324 sps:$4 sm:$0xff]  }
  0x6e   : > { %3853 = vset.pattern.permute.xlu0 %v4122_v38  ;;  %v4520_v40 = vsel %vm1437_vm1, %v1438_v37, 0  ;;  %v3856_v42 = vld [vmem:[%s4522_s4 + $0x288] ss:$324 sps:$4 sm:$0x1f]   ;;  %v3862_v50 = vld [vmem:[%s4522_s4] ss:$324 sps:$4 sm:$0xff]  }
  0x6f   : > { %698 = vperm.xlu0 %3853, %v695_v39   ;;  %v1444_v43 = vand.u32 %v3854_v41, %v4520_v40  ;;  %v3857_v44 = vld [vmem:[%s4522_s4 + $0x294] ss:$324 sps:$4 sm:$0x1f]   ;;  %v1441_v46 = vand.u32 %v3856_v42, %v4520_v40  ;;  %v3863_v51 = vld [vmem:[%s4522_s4 + $0xc] ss:$324 sps:$4 sm:$0xff]   ;;  %vm1432_vm2 = vcmask 203776  }
  0x70   : > { %v3859_v45 = vld [vmem:[%s4522_s4 + $0x290] ss:$324 sps:$4 sm:$0x1f]   ;;  %v1450_v48 = vand.u32 %v3857_v44, %v4520_v40  ;;  %v3865_v52 = vld [vmem:[%s4522_s4 + $0x8] ss:$324 sps:$4 sm:$0xff]   ;;  %vm4124_vm3 = vmmov 0  }
  0x71   : > { %1695 = vmatprep.subr.bf16.mxu0 %v1444_v43  ;;  %v1447_v49 = vand.u32 %v3859_v45, %v4520_v40  ;;  %v3866_v53 = vld [vmem:[%s4522_s4 + $0x298] ss:$324 sps:$4 sm:$0x1f]   ;;  %v3869_v55 = vld [vmem:[%s4522_s4 + $0x2a0] ss:$324 sps:$4 sm:$0x1f]  }
  0x72   : > { %1696 = vmatpush1.bf16.msra.mxu0 %v1441_v46  ;;  %1736 = vmatprep.subr.bf16.mxu1 %v1450_v48  ;;  %v3868_v54 = vld [vmem:[%s4522_s4 + $0x29c] ss:$324 sps:$4 sm:$0x1f]   ;;  %v3871_v56 = vld [vmem:[%s4522_s4 + $0x2a4] ss:$324 sps:$4 sm:$0x1f]   ;;  %v1453_v59 = vand.u32 %v3866_v53, %v4520_v40  ;;  %v1459_v62 = vand.u32 %v3869_v55, %v4520_v40 }
  0x73   : > { %1697 = vmatprep.subr.bf16.mxu0 %v3860_v47  ;;  %1737 = vmatpush1.bf16.msra.mxu1 %v1447_v49  ;;  %v4543_v57 = vld [vmem:[%s5078_s0] sm:$0x7]  ;;  %v1456_v58 = vand.u32 %v3868_v54, %v4520_v40  ;;  %v1462_v60 = vand.u32 %v3871_v56, %v4520_v40  ;;  %v3874_v61 = vld [vmem:[%s4522_s4 + $0x14] ss:$324 sps:$4 sm:$0xff]   ;;  %v3886_v9 = vld [vmem:[%s4522_s4 + $0x24] ss:$324 sps:$4 sm:$0xff]  }
  0x74   : > { %1738 = vmatprep.subr.bf16.mxu1 %v3863_v51  ;;  %v3872_v63 = vld [vmem:[%s4522_s4 + $0x10] ss:$324 sps:$4 sm:$0xff]   ;;  %v3877_v0 = vld [vmem:[%s4522_s4 + $0x1c] ss:$324 sps:$4 sm:$0xff]   ;;  %v3887_v16 = vld [vmem:[%s4522_s4 + $0x28] ss:$324 sps:$4 sm:$0xff]  }
  0x75   : > { %v3880_v1 = vld [vmem:[%s4522_s4 + $0x2ac] ss:$324 sps:$4 sm:$0x1f]   ;;  %v3883_v4 = vld [vmem:[%s4522_s4 + $0x2b4] ss:$324 sps:$4 sm:$0x1f]  }
  0x76   : > { %1698 = vmatpush1.bf16.msra.mxu0 %v3862_v50  ;;  %v3878_v2 = vld [vmem:[%s4522_s4 + $0x2a8] ss:$324 sps:$4 sm:$0x1f]   ;;  %v1468_v3 = vand.u32 %v3880_v1, %v4520_v40  ;;  %v3875_v5 = vld [vmem:[%s4522_s4 + $0x18] ss:$324 sps:$4 sm:$0xff]   ;;  %v1474_v7 = vand.u32 %v3883_v4, %v4520_v40  ;;  %s5086_s9 = smov (!%p524_p8, %s523_s9), 323 }
  0x77   : > { %1739 = vmatpush1.bf16.msra.mxu1 %v3865_v52  ;;  %1777 = vmatprep.subr.bf16.mxu0 %v1456_v58  ;;  %v3881_v6 = vld [vmem:[%s4522_s4 + $0x2b0] ss:$324 sps:$4 sm:$0x1f]   ;;  %v1465_v8 = vand.u32 %v3878_v2, %v4520_v40  ;;  %v3892_v10 = vld [vmem:[%s4522_s4 + $0x2bc] ss:$324 sps:$4 sm:$0x1f]  }
  0x78   : > { %1818 = vmatprep.subr.bf16.mxu1 %v1462_v60  ;;  %v1471_v11 = vand.u32 %v3881_v6, %v4520_v40  ;;  %v3884_v12 = vld [vmem:[%s4522_s4 + $0x20] ss:$324 sps:$4 sm:$0xff]   ;;  %v3889_v13 = vld [vmem:[%s4522_s4 + $0x2c] ss:$324 sps:$4 sm:$0xff]   ;;  %v1480_v17 = vand.u32 %v3892_v10, %v4520_v40  ;;  %v3898_v21 = vld [vmem:[%s4522_s4 + $0x34] ss:$324 sps:$4 sm:$0xff]  }
  0x79   : > { %3768 = vmatmul.mubr.msk.bf16.vlgmr.msra.gmra.mxu0 %vm1432_vm2, %v4543_v57  ;;  %v3895_v14 = vld [vmem:[%s4522_s4 + $0x2c4] ss:$324 sps:$4 sm:$0x1f]   ;;  %v3890_v15 = vld [vmem:[%s4522_s4 + $0x2b8] ss:$324 sps:$4 sm:$0x1f]  }
  0x7a   : > { %1778 = vmatpush1.bf16.msra.mxu0 %v1453_v59  ;;  %1797 = vmatprep.mubr.bf16.mxu0 %v4122_v38  ;;  %v3893_v18 = vld [vmem:[%s4522_s4 + $0x2c0] ss:$324 sps:$4 sm:$0x1f]   ;;  %v1486_v19 = vand.u32 %v3895_v14, %v4520_v40  ;;  %v1477_v20 = vand.u32 %v3890_v15, %v4520_v40  ;;  %v3904_v22 = vld [vmem:[%s4522_s4 + $0x2cc] ss:$324 sps:$4 sm:$0x1f]  }
  0x7b   : > { %3769 = vmatmul.mubr.msk.bf16.vlgmr.msra.gmra.mxu1 %vm1432_vm2, %v4543_v57  ;;  %1779 = vmatprep.subr.bf16.mxu0 %v3874_v61  ;;  %v1483_v23 = vand.u32 %v3893_v18, %v4520_v40  ;;  %v3901_v24 = vld [vmem:[%s4522_s4 + $0x3c] ss:$324 sps:$4 sm:$0xff]   ;;  %v3907_v25 = vld [vmem:[%s4522_s4 + $0x2d4] ss:$324 sps:$4 sm:$0x1f]   ;;  %v1492_v29 = vand.u32 %v3904_v22, %v4520_v40  ;;  %s3605_s10 = sshll.u32 %s5086_s9, 3 }
  0x7c   : > { %1819 = vmatpush1.bf16.msra.mxu1 %v1459_v62  ;;  %1838 = vmatprep.mubr.bf16.mxu1 %v4122_v38  ;;  %v3896_v26 = vld [vmem:[%s4522_s4 + $0x30] ss:$324 sps:$4 sm:$0xff]   ;;  %v3902_v27 = vld [vmem:[%s4522_s4 + $0x2c8] ss:$324 sps:$4 sm:$0x1f]   ;;  %v1498_v31 = vand.u32 %v3907_v25, %v4520_v40  ;;  %s4905_s17 = scalar_lea.vmem %s5081_s3, %s3605_s10 }
  0x7d   : > { %1820 = vmatprep.subr.bf16.mxu1 %v3877_v0  ;;  %v3899_v28 = vld [vmem:[%s4522_s4 + $0x38] ss:$324 sps:$4 sm:$0xff]   ;;  %v3905_v30 = vld [vmem:[%s4522_s4 + $0x2d0] ss:$324 sps:$4 sm:$0x1f]   ;;  %v1489_v32 = vand.u32 %v3902_v27, %v4520_v40 }
  0x7e   : > { %1780 = vmatpush1.bf16.msra.mxu0 %v3872_v63  ;;  %v3910_v33 = vld [vmem:[%s4522_s4 + $0x44] ss:$324 sps:$4 sm:$0xff]   ;;  %v3916_v34 = vld [vmem:[%s4522_s4 + $0x2dc] ss:$324 sps:$4 sm:$0x1f]   ;;  %v1495_v35 = vand.u32 %v3905_v30, %v4520_v40 }
  0x7f   : > { %1859 = vmatprep.subr.bf16.mxu0 %v1468_v3  ;;  %v3908_v36 = vld [vmem:[%s4522_s4 + $0x40] ss:$324 sps:$4 sm:$0xff]   ;;  %v3913_v37 = vld [vmem:[%s4522_s4 + $0x4c] ss:$324 sps:$4 sm:$0xff]   ;;  %v1504_v42 = vand.u32 %v3916_v34, %v4520_v40  ;;  %v3922_v47 = vld [vmem:[%s4522_s4 + $0x54] ss:$324 sps:$4 sm:$0xff]  }
  0x80   : > { %1821 = vmatpush1.bf16.msra.mxu1 %v3875_v5  ;;  %v3919_v39 = vld [vmem:[%s4522_s4 + $0x2e4] ss:$324 sps:$4 sm:$0x1f]   ;;  %v3914_v41 = vld [vmem:[%s4522_s4 + $0x2d8] ss:$324 sps:$4 sm:$0x1f]  }
  0x81   : > { %3770 = vmatmul.mubr.msk.bf16.vlgmr.msra.gmra.mxu0 %vm1432_vm2, %v4543_v57  ;;  %1900 = vmatprep.subr.bf16.mxu1 %v1474_v7  ;;  %v3911_v43 = vld [vmem:[%s4522_s4 + $0x48] ss:$324 sps:$4 sm:$0xff]   ;;  %v3917_v44 = vld [vmem:[%s4522_s4 + $0x2e0] ss:$324 sps:$4 sm:$0x1f]   ;;  %v1510_v45 = vand.u32 %v3919_v39, %v4520_v40  ;;  %v1501_v46 = vand.u32 %v3914_v41, %v4520_v40 }
  0x82   : > { %1860 = vmatpush1.bf16.msra.mxu0 %v1465_v8  ;;  %1879 = vmatprep.mubr.bf16.mxu0 %v4122_v38  ;;  %v3928_v48 = vld [vmem:[%s4522_s4 + $0x2ec] ss:$324 sps:$4 sm:$0x1f]   ;;  %v1507_v49 = vand.u32 %v3917_v44, %v4520_v40  ;;  %v3925_v51 = vld [vmem:[%s4522_s4 + $0x5c] ss:$324 sps:$4 sm:$0xff]  }
  0x83   : > { %3771 = vmatmul.mubr.msk.bf16.vlgmr.msra.gmra.mxu1 %vm1432_vm2, %v4543_v57  ;;  %1861 = vmatprep.subr.bf16.mxu0 %v3886_v9  ;;  %v3920_v50 = vld [vmem:[%s4522_s4 + $0x50] ss:$324 sps:$4 sm:$0xff]   ;;  %v3926_v53 = vld [vmem:[%s4522_s4 + $0x2e8] ss:$324 sps:$4 sm:$0x1f]   ;;  %v1516_v55 = vand.u32 %v3928_v48, %v4520_v40 }
  0x84   : > { %1901 = vmatpush1.bf16.msra.mxu1 %v1471_v11  ;;  %1920 = vmatprep.mubr.bf16.mxu1 %v4122_v38  ;;  %v3931_v52 = vld [vmem:[%s4522_s4 + $0x2f4] ss:$324 sps:$4 sm:$0x1f]   ;;  %v1513_v59 = vand.u32 %v3926_v53, %v4520_v40  ;;  %v3934_v60 = vld [vmem:[%s4522_s4 + $0x64] ss:$324 sps:$4 sm:$0xff]  }
  0x85   : > { %1902 = vmatprep.subr.bf16.mxu1 %v3889_v13  ;;  %v3923_v54 = vld [vmem:[%s4522_s4 + $0x58] ss:$324 sps:$4 sm:$0xff]   ;;  %v3929_v56 = vld [vmem:[%s4522_s4 + $0x2f0] ss:$324 sps:$4 sm:$0x1f]   ;;  %v1522_v58 = vand.u32 %v3931_v52, %v4520_v40 }
  0x86   : > { %1862 = vmatpush1.bf16.msra.mxu0 %v3884_v12  ;;  %v3940_v61 = vld [vmem:[%s4522_s4 + $0x2fc] ss:$324 sps:$4 sm:$0x1f]   ;;  %v1519_v62 = vand.u32 %v3929_v56, %v4520_v40  ;;  %v3937_v63 = vld [vmem:[%s4522_s4 + $0x6c] ss:$324 sps:$4 sm:$0xff]  }
  0x87   : > { %1941 = vmatprep.subr.bf16.mxu0 %v1480_v17  ;;  %v3943_v0 = vld [vmem:[%s4522_s4 + $0x304] ss:$324 sps:$4 sm:$0x1f]   ;;  %v3938_v2 = vld [vmem:[%s4522_s4 + $0x2f8] ss:$324 sps:$4 sm:$0x1f]   ;;  %v1528_v4 = vand.u32 %v3940_v61, %v4520_v40 }
  0x88   : > { %1903 = vmatpush1.bf16.msra.mxu1 %v3887_v16  ;;  %v3932_v1 = vld [vmem:[%s4522_s4 + $0x60] ss:$324 sps:$4 sm:$0xff]   ;;  %v3935_v3 = vld [vmem:[%s4522_s4 + $0x68] ss:$324 sps:$4 sm:$0xff]   ;;  %v1534_v6 = vand.u32 %v3943_v0, %v4520_v40  ;;  %v1525_v7 = vand.u32 %v3938_v2, %v4520_v40  ;;  %v3946_v8 = vld [vmem:[%s4522_s4 + $0x74] ss:$324 sps:$4 sm:$0xff]  }
  0x89   : > { %3772 = vmatmul.mubr.msk.bf16.vlgmr.msra.gmra.mxu0 %vm1432_vm2, %v4543_v57  ;;  %1982 = vmatprep.subr.bf16.mxu1 %v1486_v19  ;;  %v3941_v5 = vld [vmem:[%s4522_s4 + $0x300] ss:$324 sps:$4 sm:$0x1f]   ;;  %v3952_v9 = vld [vmem:[%s4522_s4 + $0x30c] ss:$324 sps:$4 sm:$0x1f]  }
  0x8a   : > { %1942 = vmatpush1.bf16.msra.mxu0 %v1477_v20  ;;  %1961 = vmatprep.mubr.bf16.mxu0 %v4122_v38  ;;  %v1531_v10 = vand.u32 %v3941_v5, %v4520_v40  ;;  %v3944_v11 = vld [vmem:[%s4522_s4 + $0x70] ss:$324 sps:$4 sm:$0xff]   ;;  %v3949_v12 = vld [vmem:[%s4522_s4 + $0x7c] ss:$324 sps:$4 sm:$0xff]   ;;  %v1540_v15 = vand.u32 %v3952_v9, %v4520_v40  ;;  %v3958_v20 = vld [vmem:[%s4522_s4 + $0x84] ss:$324 sps:$4 sm:$0xff]  }
  0x8b   : > { %3773 = vmatmul.mubr.msk.bf16.vlgmr.msra.gmra.mxu1 %vm1432_vm2, %v4543_v57  ;;  %1943 = vmatprep.subr.bf16.mxu0 %v3898_v21  ;;  %v3955_v13 = vld [vmem:[%s4522_s4 + $0x314] ss:$324 sps:$4 sm:$0x1f]   ;;  %v3950_v14 = vld [vmem:[%s4522_s4 + $0x308] ss:$324 sps:$4 sm:$0x1f]  }
  0x8c   : > { %1983 = vmatpush1.bf16.msra.mxu1 %v1483_v23  ;;  %2002 = vmatprep.mubr.bf16.mxu1 %v4122_v38  ;;  %v3947_v16 = vld [vmem:[%s4522_s4 + $0x78] ss:$324 sps:$4 sm:$0xff]   ;;  %v3953_v17 = vld [vmem:[%s4522_s4 + $0x310] ss:$324 sps:$4 sm:$0x1f]   ;;  %v1546_v18 = vand.u32 %v3955_v13, %v4520_v40  ;;  %v1537_v19 = vand.u32 %v3950_v14, %v4520_v40 }
  0x8d   : > { %1984 = vmatprep.subr.bf16.mxu1 %v3901_v24  ;;  %v3964_v21 = vld [vmem:[%s4522_s4 + $0x31c] ss:$324 sps:$4 sm:$0x1f]   ;;  %v1543_v22 = vand.u32 %v3953_v17, %v4520_v40  ;;  %v3961_v24 = vld [vmem:[%s4522_s4 + $0x8c] ss:$324 sps:$4 sm:$0xff]  }
  0x8e   : > { %1944 = vmatpush1.bf16.msra.mxu0 %v3896_v26  ;;  %v3956_v23 = vld [vmem:[%s4522_s4 + $0x80] ss:$324 sps:$4 sm:$0xff]   ;;  %v3962_v26 = vld [vmem:[%s4522_s4 + $0x318] ss:$324 sps:$4 sm:$0x1f]  }
  0x8f   : > { %2023 = vmatprep.subr.bf16.mxu0 %v1492_v29  ;;  %v3967_v25 = vld [vmem:[%s4522_s4 + $0x324] ss:$324 sps:$4 sm:$0x1f]   ;;  %v3971_v41 = vld [vmem:[%s4522_s4 + $0x98] ss:$324 sps:$4 sm:$0xff]  }
  0x90   : > { %1985 = vmatpush1.bf16.msra.mxu1 %v3899_v28  ;;  %v3959_v27 = vld [vmem:[%s4522_s4 + $0x88] ss:$324 sps:$4 sm:$0xff]   ;;  %v1552_v28 = vand.u32 %v3964_v21, %v4520_v40  ;;  %v3965_v29 = vld [vmem:[%s4522_s4 + $0x320] ss:$324 sps:$4 sm:$0x1f]   ;;  %v1558_v30 = vand.u32 %v3967_v25, %v4520_v40 }
  0x91   : > { %3774 = vmatmul.mubr.msk.bf16.vlgmr.msra.gmra.mxu0 %vm1432_vm2, %v4543_v57  ;;  %2064 = vmatprep.subr.bf16.mxu1 %v1498_v31  ;;  %v1549_v31 = vand.u32 %v3962_v26, %v4520_v40  ;;  %v1555_v34 = vand.u32 %v3965_v29, %v4520_v40  ;;  %v3974_v39 = vld [vmem:[%s4522_s4 + $0x328] ss:$324 sps:$4 sm:$0x1f]   ;;  %v3986_v52 = vld [vmem:[%s4522_s4 + $0x338] ss:$324 sps:$4 sm:$0x1f]  }
  0x92   : > { %2024 = vmatpush1.bf16.msra.mxu0 %v1489_v32  ;;  %2043 = vmatprep.mubr.bf16.mxu0 %v4122_v38  ;;  %v3970_v32 = vld [vmem:[%s4522_s4 + $0x94] ss:$324 sps:$4 sm:$0xff]   ;;  %v4007_v14 = vld [vmem:[%s4522_s4 + $0xc8] ss:$324 sps:$4 sm:$0xff]  }
  0x93   : > { %3775 = vmatmul.mubr.msk.bf16.vlgmr.msra.gmra.mxu1 %vm1432_vm2, %v4543_v57  ;;  %2025 = vmatprep.subr.bf16.mxu0 %v3910_v33  ;;  %v3976_v33 = vld [vmem:[%s4522_s4 + $0x32c] ss:$324 sps:$4 sm:$0x1f]   ;;  %v3995_v2 = vld [vmem:[%s4522_s4 + $0xb8] ss:$324 sps:$4 sm:$0xff]  }
  0x94   : > { %2065 = vmatpush1.bf16.msra.mxu1 %v1495_v35  ;;  %2084 = vmatprep.mubr.bf16.mxu1 %v4122_v38  ;;  %v3973_v35 = vld [vmem:[%s4522_s4 + $0x9c] ss:$324 sps:$4 sm:$0xff]   ;;  %v3992_v0 = vld [vmem:[%s4522_s4 + $0xb0] ss:$324 sps:$4 sm:$0xff]  }
  0x95   : > { %2066 = vmatprep.subr.bf16.mxu1 %v3913_v37  ;;  %v3968_v37 = vld [vmem:[%s4522_s4 + $0x90] ss:$324 sps:$4 sm:$0xff]   ;;  %v4010_v13 = vld [vmem:[%s4522_s4 + $0x358] ss:$324 sps:$4 sm:$0x1f]  }
  0x96   : > { %2026 = vmatpush1.bf16.msra.mxu0 %v3908_v36  ;;  %v3979_v36 = vld [vmem:[%s4522_s4 + $0x334] ss:$324 sps:$4 sm:$0x1f]   ;;  %v4022_v25 = vld [vmem:[%s4522_s4 + $0x368] ss:$324 sps:$4 sm:$0x1f]  }
  0x97   : > { %2105 = vmatprep.subr.bf16.mxu0 %v1504_v42  ;;  %v1564_v42 = vand.u32 %v3976_v33, %v4520_v40  ;;  %v1570_v44 = vand.u32 %v3979_v36, %v4520_v40  ;;  %v4028_v36 = vld [vmem:[%s4522_s4 + $0xe0] ss:$324 sps:$4 sm:$0xff]  }
  0x98   : > { %2067 = vmatpush1.bf16.msra.mxu1 %v3911_v43  ;;  %v3977_v43 = vld [vmem:[%s4522_s4 + $0x330] ss:$324 sps:$4 sm:$0x1f]  }
  0x99   : > { %3776 = vmatmul.mubr.msk.bf16.vlgmr.msra.gmra.mxu0 %vm1432_vm2, %v4543_v57  ;;  %2146 = vmatprep.subr.bf16.mxu1 %v1510_v45  ;;  %v1561_v45 = vand.u32 %v3974_v39, %v4520_v40  ;;  %v1567_v48 = vand.u32 %v3977_v43, %v4520_v40 }
  0x9a   : > { %2106 = vmatpush1.bf16.msra.mxu0 %v1501_v46  ;;  %2125 = vmatprep.mubr.bf16.mxu0 %v4122_v38  ;;  %v3982_v46 = vld [vmem:[%s4522_s4 + $0xa4] ss:$324 sps:$4 sm:$0xff]  }
  0x9b   : > { %3777 = vmatmul.mubr.msk.bf16.vlgmr.msra.gmra.mxu1 %vm1432_vm2, %v4543_v57  ;;  %2107 = vmatprep.subr.bf16.mxu0 %v3922_v47  ;;  %v3988_v47 = vld [vmem:[%s4522_s4 + $0x33c] ss:$324 sps:$4 sm:$0x1f]  }
  0x9c   : > { %2147 = vmatpush1.bf16.msra.mxu1 %v1507_v49  ;;  %2166 = vmatprep.mubr.bf16.mxu1 %v4122_v38  ;;  %v3980_v49 = vld [vmem:[%s4522_s4 + $0xa0] ss:$324 sps:$4 sm:$0xff]   ;;  %v1576_v53 = vand.u32 %v3988_v47, %v4520_v40 }
  0x9d   : > { %2148 = vmatprep.subr.bf16.mxu1 %v3925_v51  ;;  %v3991_v51 = vld [vmem:[%s4522_s4 + $0x344] ss:$324 sps:$4 sm:$0x1f]  }
  0x9e   : > { %2108 = vmatpush1.bf16.msra.mxu0 %v3920_v50  ;;  %v3985_v50 = vld [vmem:[%s4522_s4 + $0xac] ss:$324 sps:$4 sm:$0xff]   ;;  %v1582_v56 = vand.u32 %v3991_v51, %v4520_v40 }
  0x9f   : > { %2187 = vmatprep.subr.bf16.mxu0 %v1516_v55  ;;  %v3989_v55 = vld [vmem:[%s4522_s4 + $0x340] ss:$324 sps:$4 sm:$0x1f]   ;;  %v4046_v51 = vld [vmem:[%s4522_s4 + $0x388] ss:$324 sps:$4 sm:$0x1f]  }
  0xa0   : > { %2149 = vmatpush1.bf16.msra.mxu1 %v3923_v54  ;;  %v3983_v54 = vld [vmem:[%s4522_s4 + $0xa8] ss:$324 sps:$4 sm:$0xff]   ;;  %v1579_v61 = vand.u32 %v3989_v55, %v4520_v40 }
  0xa1   : > { %3778 = vmatmul.mubr.msk.bf16.vlgmr.msra.gmra.mxu0 %vm1432_vm2, %v4543_v57  ;;  %2228 = vmatprep.subr.bf16.mxu1 %v1522_v58  ;;  %v1573_v58 = vand.u32 %v3986_v52, %v4520_v40 }
  0xa2   : > { %2188 = vmatpush1.bf16.msra.mxu0 %v1513_v59  ;;  %2207 = vmatprep.mubr.bf16.mxu0 %v4122_v38  ;;  %v3994_v59 = vld [vmem:[%s4522_s4 + $0xb4] ss:$324 sps:$4 sm:$0xff]  }
  0xa3   : > { %3779 = vmatmul.mubr.msk.bf16.vlgmr.msra.gmra.mxu1 %vm1432_vm2, %v4543_v57  ;;  %2189 = vmatprep.subr.bf16.mxu0 %v3934_v60  ;;  %v4000_v60 = vld [vmem:[%s4522_s4 + $0x34c] ss:$324 sps:$4 sm:$0x1f]  }
  0xa4   : > { %2229 = vmatpush1.bf16.msra.mxu1 %v1519_v62  ;;  %2248 = vmatprep.mubr.bf16.mxu1 %v4122_v38  ;;  %v3997_v62 = vld [vmem:[%s4522_s4 + $0xbc] ss:$324 sps:$4 sm:$0xff]  }
  0xa5   : > { %2230 = vmatprep.subr.bf16.mxu1 %v3937_v63  ;;  %v4003_v63 = vld [vmem:[%s4522_s4 + $0x354] ss:$324 sps:$4 sm:$0x1f]  }
  0xa6   : > { %2190 = vmatpush1.bf16.msra.mxu0 %v3932_v1  ;;  %v3998_v1 = vld [vmem:[%s4522_s4 + $0x348] ss:$324 sps:$4 sm:$0x1f]   ;;  %v1594_v5 = vand.u32 %v4003_v63, %v4520_v40  ;;  %v4052_v63 = vld [vmem:[%s4522_s4 + $0x100] ss:$324 sps:$4 sm:$0xff]  }
  0xa7   : > { %2269 = vmatprep.subr.bf16.mxu0 %v1528_v4  ;;  %v4001_v4 = vld [vmem:[%s4522_s4 + $0x350] ss:$324 sps:$4 sm:$0x1f]  }
  0xa8   : > { %2231 = vmatpush1.bf16.msra.mxu1 %v3935_v3  ;;  %v1588_v3 = vand.u32 %v4000_v60, %v4520_v40  ;;  %v1591_v9 = vand.u32 %v4001_v4, %v4520_v40  ;;  %v4824_v60 = vld [vmem:[%s5078_s0] sm:$0x7] }
  0xa9   : > { %3780 = vmatmul.mubr.msk.bf16.vlgmr.msra.gmra.mxu0 %vm1432_vm2, %v4543_v57  ;;  %2310 = vmatprep.subr.bf16.mxu1 %v1534_v6  ;;  %v1585_v6 = vand.u32 %v3998_v1, %v4520_v40 }
  0xaa   : > { %2270 = vmatpush1.bf16.msra.mxu0 %v1525_v7  ;;  %2289 = vmatprep.mubr.bf16.mxu0 %v4122_v38  ;;  %v4006_v7 = vld [vmem:[%s4522_s4 + $0xc4] ss:$324 sps:$4 sm:$0xff]  }
  0xab   : > { %3781 = vmatmul.mubr.msk.bf16.vlgmr.msra.gmra.mxu1 %vm1432_vm2, %v4543_v57  ;;  %2271 = vmatprep.subr.bf16.mxu0 %v3946_v8  ;;  %v4012_v8 = vld [vmem:[%s4522_s4 + $0x35c] ss:$324 sps:$4 sm:$0x1f]  }
  0xac   : > { %2311 = vmatpush1.bf16.msra.mxu1 %v1531_v10  ;;  %2330 = vmatprep.mubr.bf16.mxu1 %v4122_v38  ;;  %v4009_v10 = vld [vmem:[%s4522_s4 + $0xcc] ss:$324 sps:$4 sm:$0xff]  }
  0xad   : > { %2312 = vmatprep.subr.bf16.mxu1 %v3949_v12  ;;  %v4004_v12 = vld [vmem:[%s4522_s4 + $0xc0] ss:$324 sps:$4 sm:$0xff]  }
  0xae   : > { %2272 = vmatpush1.bf16.msra.mxu0 %v3944_v11  ;;  %v4015_v11 = vld [vmem:[%s4522_s4 + $0x364] ss:$324 sps:$4 sm:$0x1f]  }
  0xaf   : > { %2351 = vmatprep.subr.bf16.mxu0 %v1540_v15  ;;  %v1600_v15 = vand.u32 %v4012_v8, %v4520_v40  ;;  %v1606_v17 = vand.u32 %v4015_v11, %v4520_v40  ;;  %v4064_v11 = vld [vmem:[%s4522_s4 + $0x110] ss:$324 sps:$4 sm:$0xff]  }
  0xb0   : > { %2313 = vmatpush1.bf16.msra.mxu1 %v3947_v16  ;;  %v4013_v16 = vld [vmem:[%s4522_s4 + $0x360] ss:$324 sps:$4 sm:$0x1f]  }
  0xb1   : > { %3782 = vmatmul.mubr.msk.bf16.vlgmr.msra.gmra.mxu0 %vm1432_vm2, %v4543_v57  ;;  %2392 = vmatprep.subr.bf16.mxu1 %v1546_v18  ;;  %v1597_v18 = vand.u32 %v4010_v13, %v4520_v40  ;;  %v1603_v21 = vand.u32 %v4013_v16, %v4520_v40 }
  0xb2   : > { %2352 = vmatpush1.bf16.msra.mxu0 %v1537_v19  ;;  %2371 = vmatprep.mubr.bf16.mxu0 %v4122_v38  ;;  %v4018_v19 = vld [vmem:[%s4522_s4 + $0xd4] ss:$324 sps:$4 sm:$0xff]  }
  0xb3   : > { %3783 = vmatmul.mubr.msk.bf16.vlgmr.msra.gmra.mxu1 %vm1432_vm2, %v4543_v57  ;;  %2353 = vmatprep.subr.bf16.mxu0 %v3958_v20  ;;  %v4024_v20 = vld [vmem:[%s4522_s4 + $0x36c] ss:$324 sps:$4 sm:$0x1f]  }
  0xb4   : > { %2393 = vmatpush1.bf16.msra.mxu1 %v1543_v22  ;;  %2412 = vmatprep.mubr.bf16.mxu1 %v4122_v38  ;;  %v4016_v22 = vld [vmem:[%s4522_s4 + $0xd0] ss:$324 sps:$4 sm:$0xff]   ;;  %v1612_v26 = vand.u32 %v4024_v20, %v4520_v40 }
  0xb5   : > { %2394 = vmatprep.subr.bf16.mxu1 %v3961_v24  ;;  %v4027_v24 = vld [vmem:[%s4522_s4 + $0x374] ss:$324 sps:$4 sm:$0x1f]  }
  0xb6   : > { %2354 = vmatpush1.bf16.msra.mxu0 %v3956_v23  ;;  %v4021_v23 = vld [vmem:[%s4522_s4 + $0xdc] ss:$324 sps:$4 sm:$0xff]   ;;  %v1618_v29 = vand.u32 %v4027_v24, %v4520_v40 }
  0xb7   : > { %2433 = vmatprep.subr.bf16.mxu0 %v1552_v28  ;;  %v4025_v28 = vld [vmem:[%s4522_s4 + $0x370] ss:$324 sps:$4 sm:$0x1f]   ;;  %v4082_v24 = vld [vmem:[%s4522_s4 + $0x3b8] ss:$324 sps:$4 sm:$0x1f]  }
  0xb8   : > { %2395 = vmatpush1.bf16.msra.mxu1 %v3959_v27  ;;  %v4019_v27 = vld [vmem:[%s4522_s4 + $0xd8] ss:$324 sps:$4 sm:$0xff]   ;;  %v1615_v33 = vand.u32 %v4025_v28, %v4520_v40 }
  0xb9   : > { %3784 = vmatmul.mubr.msk.bf16.vlgmr.msra.gmra.mxu0 %vm1432_vm2, %v4543_v57  ;;  %2474 = vmatprep.subr.bf16.mxu1 %v1558_v30  ;;  %v1609_v30 = vand.u32 %v4022_v25, %v4520_v40 }
  0xba   : > { %2434 = vmatpush1.bf16.msra.mxu0 %v1549_v31  ;;  %2453 = vmatprep.mubr.bf16.mxu0 %v4122_v38  ;;  %v4030_v31 = vld [vmem:[%s4522_s4 + $0xe4] ss:$324 sps:$4 sm:$0xff]  }
  0xbb   : > { %3785 = vmatmul.mubr.msk.bf16.vlgmr.msra.gmra.mxu1 %vm1432_vm2, %v4543_v57  ;;  %2435 = vmatprep.subr.bf16.mxu0 %v3970_v32  ;;  %v4036_v32 = vld [vmem:[%s4522_s4 + $0x37c] ss:$324 sps:$4 sm:$0x1f]  }
  0xbc   : > { %2475 = vmatpush1.bf16.msra.mxu1 %v1555_v34  ;;  %2494 = vmatprep.mubr.bf16.mxu1 %v4122_v38  ;;  %v4033_v34 = vld [vmem:[%s4522_s4 + $0xec] ss:$324 sps:$4 sm:$0xff]   ;;  %v1624_v39 = vand.u32 %v4036_v32, %v4520_v40  ;;  %v4093_v32 = vld [vmem:[%s4522_s4 + $0x13c] ss:$324 sps:$4 sm:$0xff]  }
  0xbd   : > { %2476 = vmatprep.subr.bf16.mxu1 %v3973_v35  ;;  %v4039_v35 = vld [vmem:[%s4522_s4 + $0x384] ss:$324 sps:$4 sm:$0x1f]  }
  0xbe   : > { %2436 = vmatpush1.bf16.msra.mxu0 %v3968_v37  ;;  %v4034_v37 = vld [vmem:[%s4522_s4 + $0x378] ss:$324 sps:$4 sm:$0x1f]   ;;  %v1630_v43 = vand.u32 %v4039_v35, %v4520_v40 }
  0xbf   : > { %2515 = vmatprep.subr.bf16.mxu0 %v1564_v42  ;;  %v4037_v42 = vld [vmem:[%s4522_s4 + $0x380] ss:$324 sps:$4 sm:$0x1f]   ;;  %v4091_v35 = vld [vmem:[%s4522_s4 + $0x138] ss:$324 sps:$4 sm:$0xff]  }
  0xc0   : > { %2477 = vmatpush1.bf16.msra.mxu1 %v3971_v41  ;;  %v4031_v41 = vld [vmem:[%s4522_s4 + $0xe8] ss:$324 sps:$4 sm:$0xff]   ;;  %v1627_v47 = vand.u32 %v4037_v42, %v4520_v40 }
  0xc1   : > { %3786 = vmatmul.mubr.msk.bf16.vlgmr.msra.gmra.mxu0 %vm1432_vm2, %v4543_v57  ;;  %2556 = vmatprep.subr.bf16.mxu1 %v1570_v44  ;;  %v1621_v44 = vand.u32 %v4034_v37, %v4520_v40  ;;  %v4123_v37 = vmov 0.0  }
  0xc2   : > { %2516 = vmatpush1.bf16.msra.mxu0 %v1561_v45  ;;  %2535 = vmatprep.mubr.bf16.mxu0 %v4122_v38  ;;  %v4042_v45 = vld [vmem:[%s4522_s4 + $0xf4] ss:$324 sps:$4 sm:$0xff]  }
  0xc3   : > { %3787 = vmatmul.mubr.msk.bf16.vlgmr.msra.gmra.mxu1 %vm1432_vm2, %v4543_v57  ;;  %2517 = vmatprep.subr.bf16.mxu0 %v3982_v46  ;;  %v4048_v46 = vld [vmem:[%s4522_s4 + $0x38c] ss:$324 sps:$4 sm:$0x1f]  }
  0xc4   : > { %2557 = vmatpush1.bf16.msra.mxu1 %v1567_v48  ;;  %2576 = vmatprep.mubr.bf16.mxu1 %v4122_v38  ;;  %v4045_v48 = vld [vmem:[%s4522_s4 + $0xfc] ss:$324 sps:$4 sm:$0xff]   ;;  %v1636_v52 = vand.u32 %v4048_v46, %v4520_v40 }
  0xc5   : > { %2558 = vmatprep.subr.bf16.mxu1 %v3985_v50  ;;  %v4040_v50 = vld [vmem:[%s4522_s4 + $0xf0] ss:$324 sps:$4 sm:$0xff]  }
  0xc6   : > { %2518 = vmatpush1.bf16.msra.mxu0 %v3980_v49  ;;  %v4051_v49 = vld [vmem:[%s4522_s4 + $0x394] ss:$324 sps:$4 sm:$0x1f]  }
  0xc7   : > { %2597 = vmatprep.subr.bf16.mxu0 %v1576_v53  ;;  %v4043_v53 = vld [vmem:[%s4522_s4 + $0xf8] ss:$324 sps:$4 sm:$0xff]   ;;  %v1642_v55 = vand.u32 %v4051_v49, %v4520_v40 }
  0xc8   : > { %2559 = vmatpush1.bf16.msra.mxu1 %v3983_v54  ;;  %v4049_v54 = vld [vmem:[%s4522_s4 + $0x390] ss:$324 sps:$4 sm:$0x1f]  }
  0xc9   : > { %3788 = vmatmul.mubr.msk.bf16.vlgmr.msra.gmra.mxu0 %vm1432_vm2, %v4543_v57  ;;  %2638 = vmatprep.subr.bf16.mxu1 %v1582_v56  ;;  %v1633_v56 = vand.u32 %v4046_v51, %v4520_v40 }
  0xca   : > { %2598 = vmatpush1.bf16.msra.mxu0 %v1573_v58  ;;  %2617 = vmatprep.mubr.bf16.mxu0 %v4122_v38  ;;  %v4060_v58 = vld [vmem:[%s4522_s4 + $0x39c] ss:$324 sps:$4 sm:$0x1f]  }
  0xcb   : > { %3789 = vmatmul.mubr.msk.bf16.vlgmr.msra.gmra.mxu1 %vm1432_vm2, %v4543_v57  ;;  %2599 = vmatprep.subr.bf16.mxu0 %v3994_v59  ;;  %v1639_v59 = vand.u32 %v4049_v54, %v4520_v40  ;;  %v1648_v1 = vand.u32 %v4060_v58, %v4520_v40 }
  0xcc   : > { %2639 = vmatpush1.bf16.msra.mxu1 %v1579_v61  ;;  %2658 = vmatprep.mubr.bf16.mxu1 %v4122_v38  ;;  %v4057_v61 = vld [vmem:[%s4522_s4 + $0x10c] ss:$324 sps:$4 sm:$0xff]  }
  0xcd   : > { %2640 = vmatprep.subr.bf16.mxu1 %v3997_v62  ;;  %v4063_v62 = vld [vmem:[%s4522_s4 + $0x3a4] ss:$324 sps:$4 sm:$0x1f]  }
  0xce   : > { %2600 = vmatpush1.bf16.msra.mxu0 %v3992_v0  ;;  %v4058_v0 = vld [vmem:[%s4522_s4 + $0x398] ss:$324 sps:$4 sm:$0x1f]   ;;  %v1654_v4 = vand.u32 %v4063_v62, %v4520_v40 }
  0xcf   : > { %2679 = vmatprep.subr.bf16.mxu0 %v1588_v3  ;;  %v4061_v3 = vld [vmem:[%s4522_s4 + $0x3a0] ss:$324 sps:$4 sm:$0x1f]  }
  0xd0   : > { %2641 = vmatpush1.bf16.msra.mxu1 %v3995_v2  ;;  %v4055_v2 = vld [vmem:[%s4522_s4 + $0x108] ss:$324 sps:$4 sm:$0xff]   ;;  %v1651_v8 = vand.u32 %v4061_v3, %v4520_v40 }
  0xd1   : > { %3790 = vmatmul.mubr.msk.bf16.vlgmr.msra.gmra.mxu0 %vm1432_vm2, %v4543_v57  ;;  %2720 = vmatprep.subr.bf16.mxu1 %v1594_v5  ;;  %v1645_v5 = vand.u32 %v4058_v0, %v4520_v40 }
  0xd2   : > { %2680 = vmatpush1.bf16.msra.mxu0 %v1585_v6  ;;  %2699 = vmatprep.mubr.bf16.mxu0 %v4122_v38  ;;  %v4066_v6 = vld [vmem:[%s4522_s4 + $0x114] ss:$324 sps:$4 sm:$0xff]  }
  0xd3   : > { %3791 = vmatmul.mubr.msk.bf16.vlgmr.msra.gmra.mxu1 %vm1432_vm2, %v4543_v57  ;;  %2681 = vmatprep.subr.bf16.mxu0 %v4006_v7  ;;  %v4072_v7 = vld [vmem:[%s4522_s4 + $0x3ac] ss:$324 sps:$4 sm:$0x1f]  }
  0xd4   : > { %2721 = vmatpush1.bf16.msra.mxu1 %v1591_v9  ;;  %2740 = vmatprep.mubr.bf16.mxu1 %v4122_v38  ;;  %v4069_v9 = vld [vmem:[%s4522_s4 + $0x11c] ss:$324 sps:$4 sm:$0xff]   ;;  %v1660_v13 = vand.u32 %v4072_v7, %v4520_v40 }
  0xd5   : > { %2722 = vmatprep.subr.bf16.mxu1 %v4009_v10  ;;  %v4075_v10 = vld [vmem:[%s4522_s4 + $0x3b4] ss:$324 sps:$4 sm:$0x1f]  }
  0xd6   : > { %2682 = vmatpush1.bf16.msra.mxu0 %v4004_v12  ;;  %v4070_v12 = vld [vmem:[%s4522_s4 + $0x3a8] ss:$324 sps:$4 sm:$0x1f]   ;;  %v1666_v16 = vand.u32 %v4075_v10, %v4520_v40 }
  0xd7   : > { %2761 = vmatprep.subr.bf16.mxu0 %v1600_v15  ;;  %v4073_v15 = vld [vmem:[%s4522_s4 + $0x3b0] ss:$324 sps:$4 sm:$0x1f]  }
  0xd8   : > { %2723 = vmatpush1.bf16.msra.mxu1 %v4007_v14  ;;  %v4067_v14 = vld [vmem:[%s4522_s4 + $0x118] ss:$324 sps:$4 sm:$0xff]   ;;  %v1663_v20 = vand.u32 %v4073_v15, %v4520_v40 }
  0xd9   : > { %3792 = vmatmul.mubr.msk.bf16.vlgmr.msra.gmra.mxu0 %vm1432_vm2, %v4543_v57  ;;  %2802 = vmatprep.subr.bf16.mxu1 %v1606_v17  ;;  %v1657_v17 = vand.u32 %v4070_v12, %v4520_v40 }
  0xda   : > { %2762 = vmatpush1.bf16.msra.mxu0 %v1597_v18  ;;  %2781 = vmatprep.mubr.bf16.mxu0 %v4122_v38  ;;  %v4078_v18 = vld [vmem:[%s4522_s4 + $0x124] ss:$324 sps:$4 sm:$0xff]  }
  0xdb   : > { %3793 = vmatmul.mubr.msk.bf16.vlgmr.msra.gmra.mxu1 %vm1432_vm2, %v4543_v57  ;;  %2763 = vmatprep.subr.bf16.mxu0 %v4018_v19  ;;  %v4084_v19 = vld [vmem:[%s4522_s4 + $0x3bc] ss:$324 sps:$4 sm:$0x1f]  }
  0xdc   : > { %2803 = vmatpush1.bf16.msra.mxu1 %v1603_v21  ;;  %2822 = vmatprep.mubr.bf16.mxu1 %v4122_v38  ;;  %v4081_v21 = vld [vmem:[%s4522_s4 + $0x12c] ss:$324 sps:$4 sm:$0xff]   ;;  %v1672_v25 = vand.u32 %v4084_v19, %v4520_v40 }
  0xdd   : > { %2804 = vmatprep.subr.bf16.mxu1 %v4021_v23  ;;  %v4076_v23 = vld [vmem:[%s4522_s4 + $0x120] ss:$324 sps:$4 sm:$0xff]  }
  0xde   : > { %2764 = vmatpush1.bf16.msra.mxu0 %v4016_v22  ;;  %v4087_v22 = vld [vmem:[%s4522_s4 + $0x3c4] ss:$324 sps:$4 sm:$0x1f]  }
  0xdf   : > { %2843 = vmatprep.subr.bf16.mxu0 %v1612_v26  ;;  %v4079_v26 = vld [vmem:[%s4522_s4 + $0x128] ss:$324 sps:$4 sm:$0xff]   ;;  %v1678_v28 = vand.u32 %v4087_v22, %v4520_v40 }
  0xe0   : > { %2805 = vmatpush1.bf16.msra.mxu1 %v4019_v27  ;;  %v4085_v27 = vld [vmem:[%s4522_s4 + $0x3c0] ss:$324 sps:$4 sm:$0x1f]  }
  0xe1   : > { %3794 = vmatmul.mubr.msk.bf16.vlgmr.msra.gmra.mxu0 %vm1432_vm2, %v4543_v57  ;;  %2884 = vmatprep.subr.bf16.mxu1 %v1618_v29  ;;  %v1669_v29 = vand.u32 %v4082_v24, %v4520_v40 }
  0xe2   : > { %2844 = vmatpush1.bf16.msra.mxu0 %v1609_v30  ;;  %2863 = vmatprep.mubr.bf16.mxu0 %v4122_v38  ;;  %v4090_v30 = vld [vmem:[%s4522_s4 + $0x134] ss:$324 sps:$4 sm:$0xff]  }
  0xe3   : > { %3795 = vmatmul.mubr.msk.bf16.vlgmr.msra.gmra.mxu1 %vm1432_vm2, %v4543_v57  ;;  %2845 = vmatprep.subr.bf16.mxu0 %v4030_v31  ;;  %v1675_v31 = vand.u32 %v4085_v27, %v4520_v40 }
  0xe4   : > { %2885 = vmatpush1.bf16.msra.mxu1 %v1615_v33  ;;  %2904 = vmatprep.mubr.bf16.mxu1 %v4122_v38  ;;  %v4088_v33 = vld [vmem:[%s4522_s4 + $0x130] ss:$324 sps:$4 sm:$0xff]  }
  0xe5   : > { %2886 = vmatprep.subr.bf16.mxu1 %v4033_v34  ;;  %v4094_v34 = vld [vmem:[%s4522_s4 + $0x3c8] ss:$324 sps:$4 sm:$0x1f]  }
  0xe6   : > { %2846 = vmatpush1.bf16.msra.mxu0 %v4028_v36  ;;  %v1681_v36 = vand.u32 %v4094_v34, %v4520_v40 }
  0xe7   : > { %2925 = vmatprep.subr.bf16.mxu0 %v1624_v39  ;;  %v4095_v39 = vld [vmem:[%s4522_s4 + $0x140] ss:$324 sps:$4 sm:$0xff]  }
  0xe8   : > { %2887 = vmatpush1.bf16.msra.mxu1 %v4031_v41 }
  0xe9   : > { %3796 = vmatmul.mubr.msk.bf16.vlgmr.msra.gmra.mxu0 %vm1432_vm2, %v4543_v57  ;;  %2966 = vmatprep.subr.bf16.mxu1 %v1630_v43 }
  0xea   : > { %2926 = vmatpush1.bf16.msra.mxu0 %v1621_v44  ;;  %2945 = vmatprep.mubr.bf16.mxu0 %v4122_v38 }
  0xeb   : > { %3797 = vmatmul.mubr.msk.bf16.vlgmr.msra.gmra.mxu1 %vm1432_vm2, %v4543_v57  ;;  %2927 = vmatprep.subr.bf16.mxu0 %v4042_v45  ;;  %v4054_v57 = vld [vmem:[%s4522_s4 + $0x104] ss:$324 sps:$4 sm:$0xff]  }
  0xec   : > { %2967 = vmatpush1.bf16.msra.mxu1 %v1627_v47  ;;  %2986 = vmatprep.mubr.bf16.mxu1 %v4122_v38 }
  0xed   : > { %2968 = vmatprep.subr.bf16.mxu1 %v4045_v48 }
  0xee   : > { %2928 = vmatpush1.bf16.msra.mxu0 %v4040_v50 }
  0xef   : > { %3007 = vmatprep.subr.bf16.mxu0 %v1636_v52 }
  0xf0   : > { %2969 = vmatpush1.bf16.msra.mxu1 %v4043_v53 }
  0xf1   : > { %3798 = vmatmul.mubr.msk.bf16.vlgmr.msra.gmra.mxu0 %vm1432_vm2, %v4824_v60  ;;  %3048 = vmatprep.subr.bf16.mxu1 %v1642_v55 }
  0xf2   : > { %3008 = vmatpush1.bf16.msra.mxu0 %v1633_v56  ;;  %3027 = vmatprep.mubr.bf16.mxu0 %v4122_v38 }
  0xf3   : > { %3799 = vmatmul.mubr.msk.bf16.vlgmr.msra.gmra.mxu1 %vm1432_vm2, %v4824_v60  ;;  %3009 = vmatprep.subr.bf16.mxu0 %v4054_v57 }
  0xf4   : > { %3049 = vmatpush1.bf16.msra.mxu1 %v1639_v59  ;;  %3068 = vmatprep.mubr.bf16.mxu1 %v4122_v38 }
  0xf5   : > { %3050 = vmatprep.subr.bf16.mxu1 %v4057_v61 }
  0xf6   : > { %3010 = vmatpush1.bf16.msra.mxu0 %v4052_v63 }
  0xf7   : > { %3089 = vmatprep.subr.bf16.mxu0 %v1648_v1 }
  0xf8   : > { %3051 = vmatpush1.bf16.msra.mxu1 %v4055_v2 }
  0xf9   : > { %3800 = vmatmul.mubr.msk.bf16.vlgmr.msra.gmra.mxu0 %vm1432_vm2, %v4824_v60  ;;  %3130 = vmatprep.subr.bf16.mxu1 %v1654_v4 }
  0xfa   : > { %3090 = vmatpush1.bf16.msra.mxu0 %v1645_v5  ;;  %3109 = vmatprep.mubr.bf16.mxu0 %v4122_v38 }
  0xfb   : > { %3801 = vmatmul.mubr.msk.bf16.vlgmr.msra.gmra.mxu1 %vm1432_vm2, %v4824_v60  ;;  %3091 = vmatprep.subr.bf16.mxu0 %v4066_v6 }
  0xfc   : > { %3131 = vmatpush1.bf16.msra.mxu1 %v1651_v8  ;;  %3150 = vmatprep.mubr.bf16.mxu1 %v4122_v38 }
  0xfd   : > { %3132 = vmatprep.subr.bf16.mxu1 %v4069_v9 }
  0xfe   : > { %3092 = vmatpush1.bf16.msra.mxu0 %v4064_v11 }
  0xff   : > { %3171 = vmatprep.subr.bf16.mxu0 %v1660_v13 }
 0x100   : > { %3133 = vmatpush1.bf16.msra.mxu1 %v4067_v14 }
 0x101   : > { %3802 = vmatmul.mubr.msk.bf16.vlgmr.msra.gmra.mxu0 %vm1432_vm2, %v4824_v60  ;;  %3212 = vmatprep.subr.bf16.mxu1 %v1666_v16 }
 0x102   : > { %3172 = vmatpush1.bf16.msra.mxu0 %v1657_v17  ;;  %3191 = vmatprep.mubr.bf16.mxu0 %v4122_v38 }
 0x103   : > { %3803 = vmatmul.mubr.msk.bf16.vlgmr.msra.gmra.mxu1 %vm1432_vm2, %v4824_v60  ;;  %3173 = vmatprep.subr.bf16.mxu0 %v4078_v18 }
 0x104   : > { %3213 = vmatpush1.bf16.msra.mxu1 %v1663_v20  ;;  %3232 = vmatprep.mubr.bf16.mxu1 %v4122_v38 }
 0x105   : > { %3214 = vmatprep.subr.bf16.mxu1 %v4081_v21 }
 0x106   : > { %3174 = vmatpush1.bf16.msra.mxu0 %v4076_v23 }
 0x107   : > { %3253 = vmatprep.subr.bf16.mxu0 %v1672_v25 }
 0x108   : > { %3215 = vmatpush1.bf16.msra.mxu1 %v4079_v26 }
 0x109   : > { %3804 = vmatmul.mubr.msk.bf16.vlgmr.msra.gmra.mxu0 %vm1432_vm2, %v4824_v60  ;;  %3294 = vmatprep.subr.bf16.mxu1 %v1678_v28 }
 0x10a   : > { %3254 = vmatpush1.bf16.msra.mxu0 %v1669_v29  ;;  %3273 = vmatprep.mubr.bf16.mxu0 %v4122_v38 }
 0x10b   : > { %3805 = vmatmul.mubr.msk.bf16.vlgmr.msra.gmra.mxu1 %vm1432_vm2, %v4824_v60  ;;  %3255 = vmatprep.subr.bf16.mxu0 %v4090_v30 }
 0x10c   : > { %3295 = vmatpush1.bf16.msra.mxu1 %v1675_v31  ;;  %3314 = vmatprep.mubr.bf16.mxu1 %v4122_v38  ;;  %v4899_v38 = vpop.permute.xlu0 %698 }
 0x10d   : > { %3296 = vmatprep.subr.bf16.mxu1 %v4093_v32 }
 0x10e   : > { %3256 = vmatpush1.bf16.msra.mxu0 %v4088_v33 }
 0x10f   : > { %3815 = vmatprep.subr.bf16.mxu0 %v4123_v37 }
 0x110   : > { %3297 = vmatpush1.bf16.msra.mxu1 %v4091_v35 }
 0x111   : > { %3806 = vmatmul.mubr.msk.bf16.vlgmr.msra.gmra.mxu0 %vm1432_vm2, %v4824_v60 }
 0x112   : > { %3816 = vmatpush3.bf16.msra.mxu0 %v1681_v36  ;;  %3819 = vmatprep.mubr.msk.bf16.mxu0 %vm4124_vm3, %v4123_v37 }
 0x113   : > { %3807 = vmatmul.mubr.msk.bf16.vlgmr.msra.gmra.mxu1 %vm1432_vm2, %v4824_v60  ;;  %3817 = vmatprep.subr.bf16.mxu0 %v4123_v37 }
 0x116   : > { %3818 = vmatpush3.bf16.msra.mxu0 %v4095_v39 }
 0x119   : > { %3820 = vmatmul.mubr.msk.bf16.vlgmr.msra.gmra.mxu0 %vm1432_vm2, %v4824_v60 }
 0x139   : > { %v1717_v40 = vpop.f32.mrf.mxu0 }
 0x13a   : > { %v1718_v41 = vadd.f32 %v1717_v40, %v4899_v38 }
 0x13b   : > { %v1719_v42 = vpop.f32.mrf.mxu0  ;;  %v1758_v43 = vpop.f32.mrf.mxu1 }
 0x13c   : > { %v3363_v44 = vmax.f32 %v1718_v41, 0.0  ;;  %v1720_v45 = vadd.f32 %v1719_v42, %v4899_v38  ;;  %v1759_v46 = vadd.f32 %v1758_v43, %v4899_v38 }
 0x13d   : > { %v1721_v47 = vpop.f32.mrf.mxu0  ;;  %v1760_v48 = vpop.f32.mrf.mxu1 }
 0x13e   : > { %3444 = vst [vmem:[%s4905_s17] sm:$0x3f] %v3363_v44  ;;  %v3364_v49 = vmax.f32 %v1720_v45, 0.0  ;;  %v3365_v50 = vmax.f32 %v1759_v46, 0.0  ;;  %v1761_v51 = vadd.f32 %v1760_v48, %v4899_v38 }
 0x13f   : > { %v1722_v52 = vpop.f32.mrf.mxu0  ;;  %v1762_v53 = vpop.f32.mrf.mxu1 }
 0x140   : > { %3445 = vst [vmem:[%s4905_s17 + $0x8] sm:$0x3f] %v3364_v49  ;;  %3446 = vst [vmem:[%s4905_s17 + $0x10] sm:$0x3f] %v3365_v50  ;;  %v3366_v54 = vmax.f32 %v1761_v51, 0.0 }
 0x141   : > { %v1763_v55 = vpop.f32.mrf.mxu1  ;;  %v1799_v56 = vpop.f32.mrf.mxu0 }
 0x142   : > { %3447 = vst [vmem:[%s4905_s17 + $0x18] sm:$0x3f] %v3366_v54  ;;  %v1800_v57 = vadd.f32 %v1799_v56, %v4899_v38 }
 0x143   : > { %v1801_v58 = vpop.f32.mrf.mxu0  ;;  %v1840_v59 = vpop.f32.mrf.mxu1 }
 0x144   : > { %v3367_v60 = vmax.f32 %v1800_v57, 0.0  ;;  %v1802_v61 = vadd.f32 %v1801_v58, %v4899_v38  ;;  %v1841_v62 = vadd.f32 %v1840_v59, %v4899_v38 }
 0x145   : > { %v1803_v63 = vpop.f32.mrf.mxu0  ;;  %v1842_v0 = vpop.f32.mrf.mxu1 }
 0x146   : > { %3448 = vst [vmem:[%s4905_s17 + $0x20] sm:$0x3f] %v3367_v60  ;;  %v3368_v1 = vmax.f32 %v1802_v61, 0.0  ;;  %v3369_v2 = vmax.f32 %v1841_v62, 0.0  ;;  %v1843_v3 = vadd.f32 %v1842_v0, %v4899_v38 }
 0x147   : > { %v1804_v4 = vpop.f32.mrf.mxu0  ;;  %v1844_v5 = vpop.f32.mrf.mxu1 }
 0x148   : > { %3449 = vst [vmem:[%s4905_s17 + $0x28] sm:$0x3f] %v3368_v1  ;;  %3450 = vst [vmem:[%s4905_s17 + $0x30] sm:$0x3f] %v3369_v2  ;;  %v3370_v6 = vmax.f32 %v1843_v3, 0.0 }
 0x149   : > { %v1845_v7 = vpop.f32.mrf.mxu1  ;;  %v1881_v8 = vpop.f32.mrf.mxu0 }
 0x14a   : > { %3451 = vst [vmem:[%s4905_s17 + $0x38] sm:$0x3f] %v3370_v6  ;;  %v1882_v9 = vadd.f32 %v1881_v8, %v4899_v38 }
 0x14b   : > { %v1883_v10 = vpop.f32.mrf.mxu0  ;;  %v1922_v11 = vpop.f32.mrf.mxu1 }
 0x14c   : > { %v3371_v12 = vmax.f32 %v1882_v9, 0.0  ;;  %v1884_v13 = vadd.f32 %v1883_v10, %v4899_v38  ;;  %v1923_v14 = vadd.f32 %v1922_v11, %v4899_v38 }
 0x14d   : > { %v1885_v15 = vpop.f32.mrf.mxu0  ;;  %v1924_v16 = vpop.f32.mrf.mxu1 }
 0x14e   : > { %3452 = vst [vmem:[%s4905_s17 + $0x40] sm:$0x3f] %v3371_v12  ;;  %v3372_v17 = vmax.f32 %v1884_v13, 0.0  ;;  %v3373_v18 = vmax.f32 %v1923_v14, 0.0  ;;  %v1925_v19 = vadd.f32 %v1924_v16, %v4899_v38 }
 0x14f   : > { %v1886_v20 = vpop.f32.mrf.mxu0  ;;  %v1926_v21 = vpop.f32.mrf.mxu1 }
 0x150   : > { %3453 = vst [vmem:[%s4905_s17 + $0x48] sm:$0x3f] %v3372_v17  ;;  %3454 = vst [vmem:[%s4905_s17 + $0x50] sm:$0x3f] %v3373_v18  ;;  %v3374_v22 = vmax.f32 %v1925_v19, 0.0 }
 0x151   : > { %v1927_v23 = vpop.f32.mrf.mxu1  ;;  %v1963_v24 = vpop.f32.mrf.mxu0 }
 0x152   : > { %3455 = vst [vmem:[%s4905_s17 + $0x58] sm:$0x3f] %v3374_v22  ;;  %v1964_v25 = vadd.f32 %v1963_v24, %v4899_v38 }
 0x153   : > { %v1965_v26 = vpop.f32.mrf.mxu0  ;;  %v2004_v27 = vpop.f32.mrf.mxu1 }
 0x154   : > { %v3375_v28 = vmax.f32 %v1964_v25, 0.0  ;;  %v1966_v29 = vadd.f32 %v1965_v26, %v4899_v38  ;;  %v2005_v30 = vadd.f32 %v2004_v27, %v4899_v38 }
 0x155   : > { %v1967_v31 = vpop.f32.mrf.mxu0  ;;  %v2006_v32 = vpop.f32.mrf.mxu1 }
 0x156   : > { %3456 = vst [vmem:[%s4905_s17 + $0x60] sm:$0x3f] %v3375_v28  ;;  %v3376_v33 = vmax.f32 %v1966_v29, 0.0  ;;  %v3377_v34 = vmax.f32 %v2005_v30, 0.0  ;;  %v2007_v35 = vadd.f32 %v2006_v32, %v4899_v38 }
 0x157   : > { %v1968_v36 = vpop.f32.mrf.mxu0  ;;  %v2008_v37 = vpop.f32.mrf.mxu1 }
 0x158   : > { %3457 = vst [vmem:[%s4905_s17 + $0x68] sm:$0x3f] %v3376_v33  ;;  %3458 = vst [vmem:[%s4905_s17 + $0x70] sm:$0x3f] %v3377_v34  ;;  %v3378_v39 = vmax.f32 %v2007_v35, 0.0 }
 0x159   : > { %v2009_v40 = vpop.f32.mrf.mxu1  ;;  %v2045_v41 = vpop.f32.mrf.mxu0 }
 0x15a   : > { %3459 = vst [vmem:[%s4905_s17 + $0x78] sm:$0x3f] %v3378_v39  ;;  %v2046_v42 = vadd.f32 %v2045_v41, %v4899_v38 }
 0x15b   : > { %v2047_v43 = vpop.f32.mrf.mxu0  ;;  %v2086_v44 = vpop.f32.mrf.mxu1 }
 0x15c   : > { %v3379_v45 = vmax.f32 %v2046_v42, 0.0  ;;  %v2048_v46 = vadd.f32 %v2047_v43, %v4899_v38  ;;  %v2087_v47 = vadd.f32 %v2086_v44, %v4899_v38 }
 0x15d   : > { %v2049_v48 = vpop.f32.mrf.mxu0  ;;  %v2088_v49 = vpop.f32.mrf.mxu1 }
 0x15e   : > { %3460 = vst [vmem:[%s4905_s17 + $0x80] sm:$0x3f] %v3379_v45  ;;  %v3380_v50 = vmax.f32 %v2048_v46, 0.0  ;;  %v3381_v51 = vmax.f32 %v2087_v47, 0.0  ;;  %v2089_v52 = vadd.f32 %v2088_v49, %v4899_v38 }
 0x15f   : > { %v2050_v53 = vpop.f32.mrf.mxu0  ;;  %v2090_v54 = vpop.f32.mrf.mxu1 }
 0x160   : > { %3461 = vst [vmem:[%s4905_s17 + $0x88] sm:$0x3f] %v3380_v50  ;;  %3462 = vst [vmem:[%s4905_s17 + $0x90] sm:$0x3f] %v3381_v51  ;;  %v3382_v55 = vmax.f32 %v2089_v52, 0.0 }
 0x161   : > { %v2091_v56 = vpop.f32.mrf.mxu1  ;;  %v2127_v57 = vpop.f32.mrf.mxu0 }
 0x162   : > { %3463 = vst [vmem:[%s4905_s17 + $0x98] sm:$0x3f] %v3382_v55  ;;  %v2128_v58 = vadd.f32 %v2127_v57, %v4899_v38 }
 0x163   : > { %v2129_v59 = vpop.f32.mrf.mxu0  ;;  %v2168_v60 = vpop.f32.mrf.mxu1 }
 0x164   : > { %v3383_v61 = vmax.f32 %v2128_v58, 0.0  ;;  %v2130_v62 = vadd.f32 %v2129_v59, %v4899_v38  ;;  %v2169_v63 = vadd.f32 %v2168_v60, %v4899_v38 }
 0x165   : > { %v2131_v0 = vpop.f32.mrf.mxu0  ;;  %v2170_v1 = vpop.f32.mrf.mxu1 }
 0x166   : > { %3464 = vst [vmem:[%s4905_s17 + $0xa0] sm:$0x3f] %v3383_v61  ;;  %v3384_v2 = vmax.f32 %v2130_v62, 0.0  ;;  %v3385_v3 = vmax.f32 %v2169_v63, 0.0  ;;  %v2171_v4 = vadd.f32 %v2170_v1, %v4899_v38 }
 0x167   : > { %v2132_v5 = vpop.f32.mrf.mxu0  ;;  %v2172_v6 = vpop.f32.mrf.mxu1 }
 0x168   : > { %3465 = vst [vmem:[%s4905_s17 + $0xa8] sm:$0x3f] %v3384_v2  ;;  %3466 = vst [vmem:[%s4905_s17 + $0xb0] sm:$0x3f] %v3385_v3  ;;  %v3386_v7 = vmax.f32 %v2171_v4, 0.0 }
 0x169   : > { %v2173_v8 = vpop.f32.mrf.mxu1  ;;  %v2209_v9 = vpop.f32.mrf.mxu0 }
 0x16a   : > { %3467 = vst [vmem:[%s4905_s17 + $0xb8] sm:$0x3f] %v3386_v7  ;;  %v2210_v10 = vadd.f32 %v2209_v9, %v4899_v38 }
 0x16b   : > { %v2211_v11 = vpop.f32.mrf.mxu0  ;;  %v2250_v12 = vpop.f32.mrf.mxu1 }
 0x16c   : > { %v3387_v13 = vmax.f32 %v2210_v10, 0.0  ;;  %v2212_v14 = vadd.f32 %v2211_v11, %v4899_v38  ;;  %v2251_v15 = vadd.f32 %v2250_v12, %v4899_v38 }
 0x16d   : > { %v2213_v16 = vpop.f32.mrf.mxu0  ;;  %v2252_v17 = vpop.f32.mrf.mxu1 }
 0x16e   : > { %3468 = vst [vmem:[%s4905_s17 + $0xc0] sm:$0x3f] %v3387_v13  ;;  %v3388_v18 = vmax.f32 %v2212_v14, 0.0  ;;  %v3389_v19 = vmax.f32 %v2251_v15, 0.0  ;;  %v2253_v20 = vadd.f32 %v2252_v17, %v4899_v38 }
 0x16f   : > { %v2214_v21 = vpop.f32.mrf.mxu0  ;;  %v2254_v22 = vpop.f32.mrf.mxu1 }
 0x170   : > { %3469 = vst [vmem:[%s4905_s17 + $0xc8] sm:$0x3f] %v3388_v18  ;;  %3470 = vst [vmem:[%s4905_s17 + $0xd0] sm:$0x3f] %v3389_v19  ;;  %v3390_v23 = vmax.f32 %v2253_v20, 0.0 }
 0x171   : > { %v2255_v24 = vpop.f32.mrf.mxu1  ;;  %v2291_v25 = vpop.f32.mrf.mxu0 }
 0x172   : > { %3471 = vst [vmem:[%s4905_s17 + $0xd8] sm:$0x3f] %v3390_v23  ;;  %v2292_v26 = vadd.f32 %v2291_v25, %v4899_v38 }
 0x173   : > { %v2293_v27 = vpop.f32.mrf.mxu0  ;;  %v2332_v28 = vpop.f32.mrf.mxu1 }
 0x174   : > { %v3391_v29 = vmax.f32 %v2292_v26, 0.0  ;;  %v2294_v30 = vadd.f32 %v2293_v27, %v4899_v38  ;;  %v2333_v31 = vadd.f32 %v2332_v28, %v4899_v38 }
 0x175   : > { %v2295_v32 = vpop.f32.mrf.mxu0  ;;  %v2334_v33 = vpop.f32.mrf.mxu1 }
 0x176   : > { %3472 = vst [vmem:[%s4905_s17 + $0xe0] sm:$0x3f] %v3391_v29  ;;  %v3392_v34 = vmax.f32 %v2294_v30, 0.0  ;;  %v3393_v35 = vmax.f32 %v2333_v31, 0.0  ;;  %v2335_v36 = vadd.f32 %v2334_v33, %v4899_v38 }
 0x177   : > { %v2296_v37 = vpop.f32.mrf.mxu0  ;;  %v2336_v39 = vpop.f32.mrf.mxu1 }
 0x178   : > { %3473 = vst [vmem:[%s4905_s17 + $0xe8] sm:$0x3f] %v3392_v34  ;;  %3474 = vst [vmem:[%s4905_s17 + $0xf0] sm:$0x3f] %v3393_v35  ;;  %v3394_v40 = vmax.f32 %v2335_v36, 0.0 }
 0x179   : > { %v2337_v41 = vpop.f32.mrf.mxu1  ;;  %v2373_v42 = vpop.f32.mrf.mxu0 }
 0x17a   : > { %3475 = vst [vmem:[%s4905_s17 + $0xf8] sm:$0x3f] %v3394_v40  ;;  %v2374_v43 = vadd.f32 %v2373_v42, %v4899_v38 }
 0x17b   : > { %v2375_v44 = vpop.f32.mrf.mxu0  ;;  %v2414_v45 = vpop.f32.mrf.mxu1 }
 0x17c   : > { %v3395_v46 = vmax.f32 %v2374_v43, 0.0  ;;  %v2376_v47 = vadd.f32 %v2375_v44, %v4899_v38  ;;  %v2415_v48 = vadd.f32 %v2414_v45, %v4899_v38 }
 0x17d   : > { %v2377_v49 = vpop.f32.mrf.mxu0  ;;  %v2416_v50 = vpop.f32.mrf.mxu1 }
 0x17e   : > { %3476 = vst [vmem:[%s4905_s17 + $0x100] sm:$0x3f] %v3395_v46  ;;  %v3396_v51 = vmax.f32 %v2376_v47, 0.0  ;;  %v3397_v52 = vmax.f32 %v2415_v48, 0.0  ;;  %v2417_v53 = vadd.f32 %v2416_v50, %v4899_v38 }
 0x17f   : > { %v2378_v54 = vpop.f32.mrf.mxu0  ;;  %v2418_v55 = vpop.f32.mrf.mxu1 }
 0x180   : > { %3477 = vst [vmem:[%s4905_s17 + $0x108] sm:$0x3f] %v3396_v51  ;;  %3478 = vst [vmem:[%s4905_s17 + $0x110] sm:$0x3f] %v3397_v52  ;;  %v3398_v56 = vmax.f32 %v2417_v53, 0.0 }
 0x181   : > { %v2419_v57 = vpop.f32.mrf.mxu1  ;;  %v2455_v58 = vpop.f32.mrf.mxu0 }
 0x182   : > { %3479 = vst [vmem:[%s4905_s17 + $0x118] sm:$0x3f] %v3398_v56  ;;  %v2456_v59 = vadd.f32 %v2455_v58, %v4899_v38 }
 0x183   : > { %v2457_v60 = vpop.f32.mrf.mxu0  ;;  %v2496_v61 = vpop.f32.mrf.mxu1 }
 0x184   : > { %v3399_v62 = vmax.f32 %v2456_v59, 0.0  ;;  %v2458_v63 = vadd.f32 %v2457_v60, %v4899_v38  ;;  %v2497_v0 = vadd.f32 %v2496_v61, %v4899_v38 }
 0x185   : > { %v2459_v1 = vpop.f32.mrf.mxu0  ;;  %v2498_v2 = vpop.f32.mrf.mxu1 }
 0x186   : > { %3480 = vst [vmem:[%s4905_s17 + $0x120] sm:$0x3f] %v3399_v62  ;;  %v3400_v3 = vmax.f32 %v2458_v63, 0.0  ;;  %v3401_v4 = vmax.f32 %v2497_v0, 0.0  ;;  %v2499_v5 = vadd.f32 %v2498_v2, %v4899_v38 }
 0x187   : > { %v2460_v6 = vpop.f32.mrf.mxu0  ;;  %v2500_v7 = vpop.f32.mrf.mxu1 }
 0x188   : > { %3481 = vst [vmem:[%s4905_s17 + $0x128] sm:$0x3f] %v3400_v3  ;;  %3482 = vst [vmem:[%s4905_s17 + $0x130] sm:$0x3f] %v3401_v4  ;;  %v3402_v8 = vmax.f32 %v2499_v5, 0.0 }
 0x189   : > { %v2501_v9 = vpop.f32.mrf.mxu1  ;;  %v2537_v10 = vpop.f32.mrf.mxu0 }
 0x18a   : > { %3483 = vst [vmem:[%s4905_s17 + $0x138] sm:$0x3f] %v3402_v8  ;;  %v2538_v11 = vadd.f32 %v2537_v10, %v4899_v38 }
 0x18b   : > { %v2539_v12 = vpop.f32.mrf.mxu0  ;;  %v2578_v13 = vpop.f32.mrf.mxu1 }
 0x18c   : > { %v3403_v14 = vmax.f32 %v2538_v11, 0.0  ;;  %v2540_v15 = vadd.f32 %v2539_v12, %v4899_v38  ;;  %v2579_v16 = vadd.f32 %v2578_v13, %v4899_v38 }
 0x18d   : > { %v2541_v17 = vpop.f32.mrf.mxu0  ;;  %v2580_v18 = vpop.f32.mrf.mxu1 }
 0x18e   : > { %3484 = vst [vmem:[%s4905_s17 + $0x140] sm:$0x3f] %v3403_v14  ;;  %v3404_v19 = vmax.f32 %v2540_v15, 0.0  ;;  %v3405_v20 = vmax.f32 %v2579_v16, 0.0  ;;  %v2581_v21 = vadd.f32 %v2580_v18, %v4899_v38 }
 0x18f   : > { %v2542_v22 = vpop.f32.mrf.mxu0  ;;  %v2582_v23 = vpop.f32.mrf.mxu1 }
 0x190   : > { %3485 = vst [vmem:[%s4905_s17 + $0x148] sm:$0x3f] %v3404_v19  ;;  %3486 = vst [vmem:[%s4905_s17 + $0x150] sm:$0x3f] %v3405_v20  ;;  %v3406_v24 = vmax.f32 %v2581_v21, 0.0 }
 0x191   : > { %v2583_v25 = vpop.f32.mrf.mxu1  ;;  %v2619_v26 = vpop.f32.mrf.mxu0 }
 0x192   : > { %3487 = vst [vmem:[%s4905_s17 + $0x158] sm:$0x3f] %v3406_v24  ;;  %v2620_v27 = vadd.f32 %v2619_v26, %v4899_v38 }
 0x193   : > { %v2621_v28 = vpop.f32.mrf.mxu0  ;;  %v2660_v29 = vpop.f32.mrf.mxu1 }
 0x194   : > { %v3407_v30 = vmax.f32 %v2620_v27, 0.0  ;;  %v2622_v31 = vadd.f32 %v2621_v28, %v4899_v38  ;;  %v2661_v32 = vadd.f32 %v2660_v29, %v4899_v38 }
 0x195   : > { %v2623_v33 = vpop.f32.mrf.mxu0  ;;  %v2662_v34 = vpop.f32.mrf.mxu1 }
 0x196   : > { %3488 = vst [vmem:[%s4905_s17 + $0x160] sm:$0x3f] %v3407_v30  ;;  %v3408_v35 = vmax.f32 %v2622_v31, 0.0  ;;  %v3409_v36 = vmax.f32 %v2661_v32, 0.0  ;;  %v2663_v37 = vadd.f32 %v2662_v34, %v4899_v38 }
 0x197   : > { %v2624_v39 = vpop.f32.mrf.mxu0  ;;  %v2664_v40 = vpop.f32.mrf.mxu1 }
 0x198   : > { %3489 = vst [vmem:[%s4905_s17 + $0x168] sm:$0x3f] %v3408_v35  ;;  %3490 = vst [vmem:[%s4905_s17 + $0x170] sm:$0x3f] %v3409_v36  ;;  %v3410_v41 = vmax.f32 %v2663_v37, 0.0 }
 0x199   : > { %v2665_v42 = vpop.f32.mrf.mxu1  ;;  %v2701_v43 = vpop.f32.mrf.mxu0 }
 0x19a   : > { %3491 = vst [vmem:[%s4905_s17 + $0x178] sm:$0x3f] %v3410_v41  ;;  %v2702_v44 = vadd.f32 %v2701_v43, %v4899_v38 }
 0x19b   : > { %v2703_v45 = vpop.f32.mrf.mxu0  ;;  %v2742_v46 = vpop.f32.mrf.mxu1 }
 0x19c   : > { %v3411_v47 = vmax.f32 %v2702_v44, 0.0  ;;  %v2704_v48 = vadd.f32 %v2703_v45, %v4899_v38  ;;  %v2743_v49 = vadd.f32 %v2742_v46, %v4899_v38 }
 0x19d   : > { %v2705_v50 = vpop.f32.mrf.mxu0  ;;  %v2744_v51 = vpop.f32.mrf.mxu1 }
 0x19e   : > { %3492 = vst [vmem:[%s4905_s17 + $0x180] sm:$0x3f] %v3411_v47  ;;  %v3412_v52 = vmax.f32 %v2704_v48, 0.0  ;;  %v3413_v53 = vmax.f32 %v2743_v49, 0.0  ;;  %v2745_v54 = vadd.f32 %v2744_v51, %v4899_v38 }
 0x19f   : > { %v2706_v55 = vpop.f32.mrf.mxu0  ;;  %v2746_v56 = vpop.f32.mrf.mxu1 }
 0x1a0   : > { %3493 = vst [vmem:[%s4905_s17 + $0x188] sm:$0x3f] %v3412_v52  ;;  %3494 = vst [vmem:[%s4905_s17 + $0x190] sm:$0x3f] %v3413_v53  ;;  %v3414_v57 = vmax.f32 %v2745_v54, 0.0 }
 0x1a1   : > { %v2747_v58 = vpop.f32.mrf.mxu1  ;;  %v2783_v59 = vpop.f32.mrf.mxu0 }
 0x1a2   : > { %3495 = vst [vmem:[%s4905_s17 + $0x198] sm:$0x3f] %v3414_v57  ;;  %v2784_v60 = vadd.f32 %v2783_v59, %v4899_v38 }
 0x1a3   : > { %v2785_v61 = vpop.f32.mrf.mxu0  ;;  %v2824_v62 = vpop.f32.mrf.mxu1 }
 0x1a4   : > { %v3415_v63 = vmax.f32 %v2784_v60, 0.0  ;;  %v2786_v0 = vadd.f32 %v2785_v61, %v4899_v38  ;;  %v2825_v1 = vadd.f32 %v2824_v62, %v4899_v38 }
 0x1a5   : > { %v2787_v2 = vpop.f32.mrf.mxu0  ;;  %v2826_v3 = vpop.f32.mrf.mxu1 }
 0x1a6   : > { %3496 = vst [vmem:[%s4905_s17 + $0x1a0] sm:$0x3f] %v3415_v63  ;;  %v3416_v4 = vmax.f32 %v2786_v0, 0.0  ;;  %v3417_v5 = vmax.f32 %v2825_v1, 0.0  ;;  %v2827_v6 = vadd.f32 %v2826_v3, %v4899_v38 }
 0x1a7   : > { %v2788_v7 = vpop.f32.mrf.mxu0  ;;  %v2828_v8 = vpop.f32.mrf.mxu1 }
 0x1a8   : > { %3497 = vst [vmem:[%s4905_s17 + $0x1a8] sm:$0x3f] %v3416_v4  ;;  %3498 = vst [vmem:[%s4905_s17 + $0x1b0] sm:$0x3f] %v3417_v5  ;;  %v3418_v9 = vmax.f32 %v2827_v6, 0.0 }
 0x1a9   : > { %v2829_v10 = vpop.f32.mrf.mxu1  ;;  %v2865_v11 = vpop.f32.mrf.mxu0 }
 0x1aa   : > { %3499 = vst [vmem:[%s4905_s17 + $0x1b8] sm:$0x3f] %v3418_v9  ;;  %v2866_v12 = vadd.f32 %v2865_v11, %v4899_v38 }
 0x1ab   : > { %v2867_v13 = vpop.f32.mrf.mxu0  ;;  %v2906_v14 = vpop.f32.mrf.mxu1 }
 0x1ac   : > { %v3419_v15 = vmax.f32 %v2866_v12, 0.0  ;;  %v2868_v16 = vadd.f32 %v2867_v13, %v4899_v38  ;;  %v2907_v17 = vadd.f32 %v2906_v14, %v4899_v38 }
 0x1ad   : > { %v2869_v18 = vpop.f32.mrf.mxu0  ;;  %v2908_v19 = vpop.f32.mrf.mxu1 }
 0x1ae   : > { %3500 = vst [vmem:[%s4905_s17 + $0x1c0] sm:$0x3f] %v3419_v15  ;;  %v3420_v20 = vmax.f32 %v2868_v16, 0.0  ;;  %v3421_v21 = vmax.f32 %v2907_v17, 0.0  ;;  %v2909_v22 = vadd.f32 %v2908_v19, %v4899_v38 }
 0x1af   : > { %v2870_v23 = vpop.f32.mrf.mxu0  ;;  %v2910_v24 = vpop.f32.mrf.mxu1 }
 0x1b0   : > { %3501 = vst [vmem:[%s4905_s17 + $0x1c8] sm:$0x3f] %v3420_v20  ;;  %3502 = vst [vmem:[%s4905_s17 + $0x1d0] sm:$0x3f] %v3421_v21  ;;  %v3422_v25 = vmax.f32 %v2909_v22, 0.0 }
 0x1b1   : > { %v2911_v26 = vpop.f32.mrf.mxu1  ;;  %v2947_v27 = vpop.f32.mrf.mxu0 }
 0x1b2   : > { %3503 = vst [vmem:[%s4905_s17 + $0x1d8] sm:$0x3f] %v3422_v25  ;;  %v2948_v28 = vadd.f32 %v2947_v27, %v4899_v38 }
 0x1b3   : > { %v2949_v29 = vpop.f32.mrf.mxu0  ;;  %v2988_v30 = vpop.f32.mrf.mxu1 }
 0x1b4   : > { %v3423_v31 = vmax.f32 %v2948_v28, 0.0  ;;  %v2950_v32 = vadd.f32 %v2949_v29, %v4899_v38  ;;  %v2989_v33 = vadd.f32 %v2988_v30, %v4899_v38 }
 0x1b5   : > { %v2951_v34 = vpop.f32.mrf.mxu0  ;;  %v2990_v35 = vpop.f32.mrf.mxu1 }
 0x1b6   : > { %3504 = vst [vmem:[%s4905_s17 + $0x1e0] sm:$0x3f] %v3423_v31  ;;  %v3424_v36 = vmax.f32 %v2950_v32, 0.0  ;;  %v3425_v37 = vmax.f32 %v2989_v33, 0.0  ;;  %v2991_v39 = vadd.f32 %v2990_v35, %v4899_v38 }
 0x1b7   : > { %v2952_v40 = vpop.f32.mrf.mxu0  ;;  %v2992_v41 = vpop.f32.mrf.mxu1 }
 0x1b8   : > { %3505 = vst [vmem:[%s4905_s17 + $0x1e8] sm:$0x3f] %v3424_v36  ;;  %3506 = vst [vmem:[%s4905_s17 + $0x1f0] sm:$0x3f] %v3425_v37  ;;  %v3426_v42 = vmax.f32 %v2991_v39, 0.0 }
 0x1b9   : > { %v2993_v43 = vpop.f32.mrf.mxu1  ;;  %v3029_v44 = vpop.f32.mrf.mxu0 }
 0x1ba   : > { %3507 = vst [vmem:[%s4905_s17 + $0x1f8] sm:$0x3f] %v3426_v42  ;;  %v3030_v45 = vadd.f32 %v3029_v44, %v4899_v38 }
 0x1bb   : > { %v3031_v46 = vpop.f32.mrf.mxu0  ;;  %v3070_v47 = vpop.f32.mrf.mxu1 }
 0x1bc   : > { %v3427_v48 = vmax.f32 %v3030_v45, 0.0  ;;  %v3032_v49 = vadd.f32 %v3031_v46, %v4899_v38  ;;  %v3071_v50 = vadd.f32 %v3070_v47, %v4899_v38 }
 0x1bd   : > { %v3033_v51 = vpop.f32.mrf.mxu0  ;;  %v3072_v52 = vpop.f32.mrf.mxu1 }
 0x1be   : > { %3508 = vst [vmem:[%s4905_s17 + $0x200] sm:$0x3f] %v3427_v48  ;;  %v3428_v53 = vmax.f32 %v3032_v49, 0.0  ;;  %v3429_v54 = vmax.f32 %v3071_v50, 0.0  ;;  %v3073_v55 = vadd.f32 %v3072_v52, %v4899_v38 }
 0x1bf   : > { %v3034_v56 = vpop.f32.mrf.mxu0  ;;  %v3074_v57 = vpop.f32.mrf.mxu1 }
 0x1c0   : > { %3509 = vst [vmem:[%s4905_s17 + $0x208] sm:$0x3f] %v3428_v53  ;;  %3510 = vst [vmem:[%s4905_s17 + $0x210] sm:$0x3f] %v3429_v54  ;;  %v3430_v58 = vmax.f32 %v3073_v55, 0.0 }
 0x1c1   : > { %v3075_v59 = vpop.f32.mrf.mxu1  ;;  %v3111_v60 = vpop.f32.mrf.mxu0 }
 0x1c2   : > { %3511 = vst [vmem:[%s4905_s17 + $0x218] sm:$0x3f] %v3430_v58  ;;  %v3112_v61 = vadd.f32 %v3111_v60, %v4899_v38 }
 0x1c3   : > { %v3113_v62 = vpop.f32.mrf.mxu0  ;;  %v3152_v63 = vpop.f32.mrf.mxu1 }
 0x1c4   : > { %v3431_v0 = vmax.f32 %v3112_v61, 0.0  ;;  %v3114_v1 = vadd.f32 %v3113_v62, %v4899_v38  ;;  %v3153_v2 = vadd.f32 %v3152_v63, %v4899_v38 }
 0x1c5   : > { %v3115_v3 = vpop.f32.mrf.mxu0  ;;  %v3154_v4 = vpop.f32.mrf.mxu1 }
 0x1c6   : > { %3512 = vst [vmem:[%s4905_s17 + $0x220] sm:$0x3f] %v3431_v0  ;;  %v3432_v5 = vmax.f32 %v3114_v1, 0.0  ;;  %v3433_v6 = vmax.f32 %v3153_v2, 0.0  ;;  %v3155_v7 = vadd.f32 %v3154_v4, %v4899_v38 }
 0x1c7   : > { %v3116_v8 = vpop.f32.mrf.mxu0  ;;  %v3156_v9 = vpop.f32.mrf.mxu1 }
 0x1c8   : > { %3513 = vst [vmem:[%s4905_s17 + $0x228] sm:$0x3f] %v3432_v5  ;;  %3514 = vst [vmem:[%s4905_s17 + $0x230] sm:$0x3f] %v3433_v6  ;;  %v3434_v10 = vmax.f32 %v3155_v7, 0.0 }
 0x1c9   : > { %v3157_v11 = vpop.f32.mrf.mxu1  ;;  %v3193_v12 = vpop.f32.mrf.mxu0 }
 0x1ca   : > { %3515 = vst [vmem:[%s4905_s17 + $0x238] sm:$0x3f] %v3434_v10  ;;  %v3194_v13 = vadd.f32 %v3193_v12, %v4899_v38 }
 0x1cb   : > { %v3195_v14 = vpop.f32.mrf.mxu0  ;;  %v3234_v15 = vpop.f32.mrf.mxu1 }
 0x1cc   : > { %v3435_v16 = vmax.f32 %v3194_v13, 0.0  ;;  %v3196_v17 = vadd.f32 %v3195_v14, %v4899_v38  ;;  %v3235_v18 = vadd.f32 %v3234_v15, %v4899_v38 }
 0x1cd   : > { %v3197_v19 = vpop.f32.mrf.mxu0  ;;  %v3236_v20 = vpop.f32.mrf.mxu1 }
 0x1ce   : > { %3516 = vst [vmem:[%s4905_s17 + $0x240] sm:$0x3f] %v3435_v16  ;;  %v3436_v21 = vmax.f32 %v3196_v17, 0.0  ;;  %v3437_v22 = vmax.f32 %v3235_v18, 0.0  ;;  %v3237_v23 = vadd.f32 %v3236_v20, %v4899_v38 }
 0x1cf   : > { %v3198_v24 = vpop.f32.mrf.mxu0  ;;  %v3238_v25 = vpop.f32.mrf.mxu1 }
 0x1d0   : > { %3517 = vst [vmem:[%s4905_s17 + $0x248] sm:$0x3f] %v3436_v21  ;;  %3518 = vst [vmem:[%s4905_s17 + $0x250] sm:$0x3f] %v3437_v22  ;;  %v3438_v26 = vmax.f32 %v3237_v23, 0.0 }
 0x1d1   : > { %v3239_v27 = vpop.f32.mrf.mxu1  ;;  %v3275_v28 = vpop.f32.mrf.mxu0 }
 0x1d2   : > { %3519 = vst [vmem:[%s4905_s17 + $0x258] sm:$0x3f] %v3438_v26  ;;  %v3276_v29 = vadd.f32 %v3275_v28, %v4899_v38 }
 0x1d3   : > { %v3277_v30 = vpop.f32.mrf.mxu0  ;;  %v3316_v31 = vpop.f32.mrf.mxu1 }
 0x1d4   : > { %v3439_v32 = vmax.f32 %v3276_v29, 0.0  ;;  %v3278_v33 = vadd.f32 %v3277_v30, %v4899_v38  ;;  %v3317_v34 = vadd.f32 %v3316_v31, %v4899_v38 }
 0x1d5   : > { %v3279_v35 = vpop.f32.mrf.mxu0  ;;  %v3318_v36 = vpop.f32.mrf.mxu1 }
 0x1d6   : > { %3520 = vst [vmem:[%s4905_s17 + $0x260] sm:$0x3f] %v3439_v32  ;;  %v3440_v37 = vmax.f32 %v3278_v33, 0.0  ;;  %v3441_v39 = vmax.f32 %v3317_v34, 0.0  ;;  %v3319_v40 = vadd.f32 %v3318_v36, %v4899_v38 }
 0x1d7   : > { %v3280_v41 = vpop.f32.mrf.mxu0  ;;  %v3320_v42 = vpop.f32.mrf.mxu1 }
 0x1d8   : > { %3521 = vst [vmem:[%s4905_s17 + $0x268] sm:$0x3f] %v3440_v37  ;;  %3522 = vst [vmem:[%s4905_s17 + $0x270] sm:$0x3f] %v3441_v39  ;;  %v3442_v43 = vmax.f32 %v3319_v40, 0.0 }
 0x1d9   : > { %v3321_v44 = vpop.f32.mrf.mxu1  ;;  %v3357_v45 = vpop.f32.mrf.mxu0 }
 0x1da   : > { %3523 = vst [vmem:[%s4905_s17 + $0x278] sm:$0x3f] %v3442_v43  ;;  %v3358_v46 = vadd.f32 %v3357_v45, %v4899_v38 }
 0x1db   : > { %v3821_v47 = vpop.f32.mrf.mxu0 }
 0x1dc   : > { %v3443_v48 = vmax.f32 %v3358_v46, 0.0 }
 0x1dd   : > { %v3360_v49 = vpop.f32.mrf.mxu0 }
 0x1de   : > { %3524 = vst [vmem:[%s4905_s17 + $0x280] sm:$0x3f] %v3443_v48 }
 0x1df   : > { %v3822_v50 = vpop.f32.mrf.mxu0 }
 0x1e0 PF: > { %p10_p9 = scmp.ge.s32.totalorder %s4162_s16, 6   ;;  %s5082_s12 = smov %s4115_s13 }
 0x1e1   : > { %s5083_s13 = smov %s4171_s19  ;;  %s5084_s14 = smov %s4162_s16 }
 0x1e2   :  { %12 = sbr.rel (!%p10_p9) target bundleno = 2 (0x2), region = 99 }

// kernel: net_forward.5
= control target key start
LH: loop header
LB: loop body
LE: loop exit
PB: predicated region body
PF: predicated region fallthrough
CT: control target
= control target key end

     0   :  { %s5452_s12 = smov 0   ;;  %s5454_s13 = smov 0   ;;  %s7037_s0 = inlined_call_operand.vmem [shape: bf16[16,150], index: 0, kind: input, shape index: {}]   ;;  %s7038_s1 = inlined_call_operand.vmem [shape: bf16[150,9472], index: 1, kind: input, shape index: {}]   ;;  %s7039_s2 = inlined_call_operand.vmem [shape: f32[16,1], index: 2, kind: input, shape index: {}]   ;;  %s7040_s3 = inlined_call_operand.vmem [shape: f32[16,9472], index: 3, kind: output, shape index: {}]  }
   0x1   :  { %s5456_s14 = smov 0  }
   0x2 LB: > { %s4381_s15 = sadd.s32 4294967295, %s5429_s14   ;;  %s5469_s16 = sadd.s32 1, %s5429_s14   ;;  %s5429_s14 = sphi %s5456_s14, %s7044_s14   ;;  %s5425_s13 = sphi %s5454_s13, %s7043_s13   ;;  %s5421_s12 = sphi %s5452_s12, %s7042_s12  }
   0x3   : > { %s38_s17 = ssub.s32 %s5429_s14, %s5469_s16  ;;  %s41_s18 = sadd.s32 1, %s5425_s13 }
   0x4   : > { %p39_p0 = scmp.eq.s32.totalorder %s38_s17, 0  ;;  %p48_p1 = scmp.ne.s32.totalorder %s5425_s13, %s5421_s12 }
   0x5   : > { %p49_p2 = scmp.eq.s32.totalorder %s5429_s14, 0  ;;  %p99_p3 = scmp.eq.s32.totalorder %s4381_s15, 1 }
   0x6   : > { %s5480_s19 = scalar_select %p39_p0, %s5425_s13, %s41_s18  }
   0x7   : > { %p50_p4 = por %p49_p2, %p48_p1  ;;  %p5482_p5 = por %p99_p3, %p48_p1 }
   0x8   : > { %p4384_p6 = scmp.ge.s32.totalorder %s5429_s14, 2 }
   0xa   : > { %127 = sbr.rel (%p4384_p6) target bundleno = 203 (0xcb), region = 24 }
   0xf   : > { %130 = sbr.rel (!%p50_p4) target bundleno = 203 (0xcb), region = 28  ;;  %s132_s21 = sand.u32 (%p50_p4), 1, %s5425_s13  }
  0x10   : > { %s4837_s22 = smul.u32 (%p50_p4), 148, %s5429_s14 }
  0x11   : > { %s4839_s23 = smul.u32 (%p50_p4), 2812, %s132_s21 }
  0x12   : > { %s5492_s26 = scalar_lea.vmem (%p50_p4), %s7038_s1, %s4837_s22 }
  0x13   : > { %v152_v0 = vld [vmem:[%s5492_s26] sm:$0xff] (%p50_p4)  ;;  %v154_v1 = vld [vmem:[%s5492_s26 + $0x8] sm:$0xff] (%p50_p4)  ;;  %v156_v2 = vld [vmem:[%s5492_s26 + $0x10] sm:$0xff] (%p50_p4)  ;;  %s5497_s27 = scalar_lea.vmem (%p50_p4), [#allocation2], %s4839_s23 }
  0x14   : > { %153 = vst [vmem:[%s5497_s27] sm:$0xff] %v152_v0  ;;  %155 = vst [vmem:[%s5497_s27 + $0x8] sm:$0xff] %v154_v1  ;;  %v158_v3 = vld [vmem:[%s5492_s26 + $0x18] sm:$0xff]  ;;  %v160_v4 = vld [vmem:[%s5492_s26 + $0x20] sm:$0xff] }
  0x15   : > { %157 = vst [vmem:[%s5497_s27 + $0x10] sm:$0xff] %v156_v2  ;;  %v162_v5 = vld [vmem:[%s5492_s26 + $0x28] sm:$0xff]  ;;  %159 = vst [vmem:[%s5497_s27 + $0x18] sm:$0xff] %v158_v3  ;;  %v164_v6 = vld [vmem:[%s5492_s26 + $0x30] sm:$0xff] }
  0x16   : > { %161 = vst [vmem:[%s5497_s27 + $0x20] sm:$0xff] %v160_v4  ;;  %163 = vst [vmem:[%s5497_s27 + $0x28] sm:$0xff] %v162_v5  ;;  %v166_v7 = vld [vmem:[%s5492_s26 + $0x38] sm:$0xff]  ;;  %v168_v8 = vld [vmem:[%s5492_s26 + $0x40] sm:$0xff] }
  0x17   : > { %165 = vst [vmem:[%s5497_s27 + $0x30] sm:$0xff] %v164_v6  ;;  %167 = vst [vmem:[%s5497_s27 + $0x38] sm:$0xff] %v166_v7  ;;  %v170_v9 = vld [vmem:[%s5492_s26 + $0x48] sm:$0xff]  ;;  %v172_v10 = vld [vmem:[%s5492_s26 + $0x50] sm:$0xff] }
  0x18   : > { %169 = vst [vmem:[%s5497_s27 + $0x40] sm:$0xff] %v168_v8  ;;  %v174_v11 = vld [vmem:[%s5492_s26 + $0x58] sm:$0xff]  ;;  %171 = vst [vmem:[%s5497_s27 + $0x48] sm:$0xff] %v170_v9  ;;  %v176_v12 = vld [vmem:[%s5492_s26 + $0x60] sm:$0xff] }
  0x19   : > { %173 = vst [vmem:[%s5497_s27 + $0x50] sm:$0xff] %v172_v10  ;;  %175 = vst [vmem:[%s5497_s27 + $0x58] sm:$0xff] %v174_v11  ;;  %v178_v13 = vld [vmem:[%s5492_s26 + $0x68] sm:$0xff]  ;;  %v180_v14 = vld [vmem:[%s5492_s26 + $0x70] sm:$0xff] }
  0x1a   : > { %177 = vst [vmem:[%s5497_s27 + $0x60] sm:$0xff] %v176_v12  ;;  %179 = vst [vmem:[%s5497_s27 + $0x68] sm:$0xff] %v178_v13  ;;  %v182_v15 = vld [vmem:[%s5492_s26 + $0x78] sm:$0xff]  ;;  %v184_v16 = vld [vmem:[%s5492_s26 + $0x80] sm:$0xff] }
  0x1b   : > { %181 = vst [vmem:[%s5497_s27 + $0x70] sm:$0xff] %v180_v14  ;;  %v186_v17 = vld [vmem:[%s5492_s26 + $0x88] sm:$0xff]  ;;  %183 = vst [vmem:[%s5497_s27 + $0x78] sm:$0xff] %v182_v15  ;;  %v190_v19 = vld [vmem:[%s5492_s26 + $0x130] sm:$0xff] }
  0x1c   : > { %185 = vst [vmem:[%s5497_s27 + $0x80] sm:$0xff] %v184_v16  ;;  %187 = vst [vmem:[%s5497_s27 + $0x88] sm:$0xff] %v186_v17  ;;  %v188_v18 = vld [vmem:[%s5492_s26 + $0x128] sm:$0xff]  ;;  %v192_v20 = vld [vmem:[%s5492_s26 + $0x138] sm:$0xff] }
  0x1d   : > { %189 = vst [vmem:[%s5497_s27 + $0x94] sm:$0xff] %v188_v18  ;;  %191 = vst [vmem:[%s5497_s27 + $0x9c] sm:$0xff] %v190_v19  ;;  %v194_v21 = vld [vmem:[%s5492_s26 + $0x140] sm:$0xff]  ;;  %v196_v22 = vld [vmem:[%s5492_s26 + $0x148] sm:$0xff] }
  0x1e   : > { %193 = vst [vmem:[%s5497_s27 + $0xa4] sm:$0xff] %v192_v20  ;;  %v198_v23 = vld [vmem:[%s5492_s26 + $0x150] sm:$0xff]  ;;  %195 = vst [vmem:[%s5497_s27 + $0xac] sm:$0xff] %v194_v21  ;;  %v200_v24 = vld [vmem:[%s5492_s26 + $0x158] sm:$0xff] }
  0x1f   : > { %197 = vst [vmem:[%s5497_s27 + $0xb4] sm:$0xff] %v196_v22  ;;  %199 = vst [vmem:[%s5497_s27 + $0xbc] sm:$0xff] %v198_v23  ;;  %v202_v25 = vld [vmem:[%s5492_s26 + $0x160] sm:$0xff]  ;;  %v204_v26 = vld [vmem:[%s5492_s26 + $0x168] sm:$0xff] }
  0x20   : > { %201 = vst [vmem:[%s5497_s27 + $0xc4] sm:$0xff] %v200_v24  ;;  %203 = vst [vmem:[%s5497_s27 + $0xcc] sm:$0xff] %v202_v25  ;;  %v206_v27 = vld [vmem:[%s5492_s26 + $0x170] sm:$0xff]  ;;  %v208_v28 = vld [vmem:[%s5492_s26 + $0x178] sm:$0xff] }
  0x21   : > { %205 = vst [vmem:[%s5497_s27 + $0xd4] sm:$0xff] %v204_v26  ;;  %v210_v29 = vld [vmem:[%s5492_s26 + $0x180] sm:$0xff]  ;;  %207 = vst [vmem:[%s5497_s27 + $0xdc] sm:$0xff] %v206_v27  ;;  %v212_v30 = vld [vmem:[%s5492_s26 + $0x188] sm:$0xff] }
  0x22   : > { %209 = vst [vmem:[%s5497_s27 + $0xe4] sm:$0xff] %v208_v28  ;;  %211 = vst [vmem:[%s5497_s27 + $0xec] sm:$0xff] %v210_v29  ;;  %v214_v31 = vld [vmem:[%s5492_s26 + $0x190] sm:$0xff]  ;;  %v216_v32 = vld [vmem:[%s5492_s26 + $0x198] sm:$0xff] }
  0x23   : > { %213 = vst [vmem:[%s5497_s27 + $0xf4] sm:$0xff] %v212_v30  ;;  %215 = vst [vmem:[%s5497_s27 + $0xfc] sm:$0xff] %v214_v31  ;;  %v218_v33 = vld [vmem:[%s5492_s26 + $0x1a0] sm:$0xff]  ;;  %v220_v34 = vld [vmem:[%s5492_s26 + $0x1a8] sm:$0xff] }
  0x24   : > { %217 = vst [vmem:[%s5497_s27 + $0x104] sm:$0xff] %v216_v32  ;;  %v222_v35 = vld [vmem:[%s5492_s26 + $0x1b0] sm:$0xff]  ;;  %219 = vst [vmem:[%s5497_s27 + $0x10c] sm:$0xff] %v218_v33  ;;  %v226_v37 = vld [vmem:[%s5492_s26 + $0x258] sm:$0xff] }
  0x25   : > { %221 = vst [vmem:[%s5497_s27 + $0x114] sm:$0xff] %v220_v34  ;;  %223 = vst [vmem:[%s5497_s27 + $0x11c] sm:$0xff] %v222_v35  ;;  %v224_v36 = vld [vmem:[%s5492_s26 + $0x250] sm:$0xff]  ;;  %v228_v38 = vld [vmem:[%s5492_s26 + $0x260] sm:$0xff] }
  0x26   : > { %225 = vst [vmem:[%s5497_s27 + $0x128] sm:$0xff] %v224_v36  ;;  %227 = vst [vmem:[%s5497_s27 + $0x130] sm:$0xff] %v226_v37  ;;  %v230_v39 = vld [vmem:[%s5492_s26 + $0x268] sm:$0xff]  ;;  %v232_v40 = vld [vmem:[%s5492_s26 + $0x270] sm:$0xff] }
  0x27   : > { %229 = vst [vmem:[%s5497_s27 + $0x138] sm:$0xff] %v228_v38  ;;  %v234_v41 = vld [vmem:[%s5492_s26 + $0x278] sm:$0xff]  ;;  %231 = vst [vmem:[%s5497_s27 + $0x140] sm:$0xff] %v230_v39  ;;  %v236_v42 = vld [vmem:[%s5492_s26 + $0x280] sm:$0xff] }
  0x28   : > { %233 = vst [vmem:[%s5497_s27 + $0x148] sm:$0xff] %v232_v40  ;;  %235 = vst [vmem:[%s5497_s27 + $0x150] sm:$0xff] %v234_v41  ;;  %v238_v43 = vld [vmem:[%s5492_s26 + $0x288] sm:$0xff]  ;;  %v240_v44 = vld [vmem:[%s5492_s26 + $0x290] sm:$0xff] }
  0x29   : > { %237 = vst [vmem:[%s5497_s27 + $0x158] sm:$0xff] %v236_v42  ;;  %239 = vst [vmem:[%s5497_s27 + $0x160] sm:$0xff] %v238_v43  ;;  %v242_v45 = vld [vmem:[%s5492_s26 + $0x298] sm:$0xff]  ;;  %v244_v46 = vld [vmem:[%s5492_s26 + $0x2a0] sm:$0xff] }
  0x2a   : > { %241 = vst [vmem:[%s5497_s27 + $0x168] sm:$0xff] %v240_v44  ;;  %v246_v47 = vld [vmem:[%s5492_s26 + $0x2a8] sm:$0xff]  ;;  %243 = vst [vmem:[%s5497_s27 + $0x170] sm:$0xff] %v242_v45  ;;  %v248_v48 = vld [vmem:[%s5492_s26 + $0x2b0] sm:$0xff] }
  0x2b   : > { %245 = vst [vmem:[%s5497_s27 + $0x178] sm:$0xff] %v244_v46  ;;  %247 = vst [vmem:[%s5497_s27 + $0x180] sm:$0xff] %v246_v47  ;;  %v250_v49 = vld [vmem:[%s5492_s26 + $0x2b8] sm:$0xff]  ;;  %v252_v50 = vld [vmem:[%s5492_s26 + $0x2c0] sm:$0xff] }
  0x2c   : > { %249 = vst [vmem:[%s5497_s27 + $0x188] sm:$0xff] %v248_v48  ;;  %251 = vst [vmem:[%s5497_s27 + $0x190] sm:$0xff] %v250_v49  ;;  %v254_v51 = vld [vmem:[%s5492_s26 + $0x2c8] sm:$0xff]  ;;  %v256_v52 = vld [vmem:[%s5492_s26 + $0x2d0] sm:$0xff] }
  0x2d   : > { %253 = vst [vmem:[%s5497_s27 + $0x198] sm:$0xff] %v252_v50  ;;  %v258_v53 = vld [vmem:[%s5492_s26 + $0x2d8] sm:$0xff]  ;;  %255 = vst [vmem:[%s5497_s27 + $0x1a0] sm:$0xff] %v254_v51  ;;  %v262_v55 = vld [vmem:[%s5492_s26 + $0x380] sm:$0xff] }
  0x2e   : > { %257 = vst [vmem:[%s5497_s27 + $0x1a8] sm:$0xff] %v256_v52  ;;  %259 = vst [vmem:[%s5497_s27 + $0x1b0] sm:$0xff] %v258_v53  ;;  %v260_v54 = vld [vmem:[%s5492_s26 + $0x378] sm:$0xff]  ;;  %v264_v56 = vld [vmem:[%s5492_s26 + $0x388] sm:$0xff] }
  0x2f   : > { %261 = vst [vmem:[%s5497_s27 + $0x1bc] sm:$0xff] %v260_v54  ;;  %263 = vst [vmem:[%s5497_s27 + $0x1c4] sm:$0xff] %v262_v55  ;;  %v266_v57 = vld [vmem:[%s5492_s26 + $0x390] sm:$0xff]  ;;  %v268_v58 = vld [vmem:[%s5492_s26 + $0x398] sm:$0xff] }
  0x30   : > { %265 = vst [vmem:[%s5497_s27 + $0x1cc] sm:$0xff] %v264_v56  ;;  %v270_v59 = vld [vmem:[%s5492_s26 + $0x3a0] sm:$0xff]  ;;  %267 = vst [vmem:[%s5497_s27 + $0x1d4] sm:$0xff] %v266_v57  ;;  %v272_v60 = vld [vmem:[%s5492_s26 + $0x3a8] sm:$0xff] }
  0x31   : > { %269 = vst [vmem:[%s5497_s27 + $0x1dc] sm:$0xff] %v268_v58  ;;  %271 = vst [vmem:[%s5497_s27 + $0x1e4] sm:$0xff] %v270_v59  ;;  %v274_v61 = vld [vmem:[%s5492_s26 + $0x3b0] sm:$0xff]  ;;  %v276_v62 = vld [vmem:[%s5492_s26 + $0x3b8] sm:$0xff] }
  0x32   : > { %273 = vst [vmem:[%s5497_s27 + $0x1ec] sm:$0xff] %v272_v60  ;;  %275 = vst [vmem:[%s5497_s27 + $0x1f4] sm:$0xff] %v274_v61  ;;  %v278_v63 = vld [vmem:[%s5492_s26 + $0x3c0] sm:$0xff]  ;;  %v280_v0 = vld [vmem:[%s5492_s26 + $0x3c8] sm:$0xff] }
  0x33   : > { %277 = vst [vmem:[%s5497_s27 + $0x1fc] sm:$0xff] %v276_v62  ;;  %v282_v1 = vld [vmem:[%s5492_s26 + $0x3d0] sm:$0xff]  ;;  %279 = vst [vmem:[%s5497_s27 + $0x204] sm:$0xff] %v278_v63  ;;  %v284_v2 = vld [vmem:[%s5492_s26 + $0x3d8] sm:$0xff] }
  0x34   : > { %281 = vst [vmem:[%s5497_s27 + $0x20c] sm:$0xff] %v280_v0  ;;  %283 = vst [vmem:[%s5497_s27 + $0x214] sm:$0xff] %v282_v1  ;;  %v286_v3 = vld [vmem:[%s5492_s26 + $0x3e0] sm:$0xff]  ;;  %v288_v4 = vld [vmem:[%s5492_s26 + $0x3e8] sm:$0xff] }
  0x35   : > { %285 = vst [vmem:[%s5497_s27 + $0x21c] sm:$0xff] %v284_v2  ;;  %287 = vst [vmem:[%s5497_s27 + $0x224] sm:$0xff] %v286_v3  ;;  %v290_v5 = vld [vmem:[%s5492_s26 + $0x3f0] sm:$0xff]  ;;  %v292_v6 = vld [vmem:[%s5492_s26 + $0x3f8] sm:$0xff] }
  0x36   : > { %289 = vst [vmem:[%s5497_s27 + $0x22c] sm:$0xff] %v288_v4  ;;  %v294_v7 = vld [vmem:[%s5492_s26 + $0x400] sm:$0xff]  ;;  %291 = vst [vmem:[%s5497_s27 + $0x234] sm:$0xff] %v290_v5  ;;  %v298_v9 = vld [vmem:[%s5492_s26 + $0x4a8] sm:$0xff] }
  0x37   : > { %293 = vst [vmem:[%s5497_s27 + $0x23c] sm:$0xff] %v292_v6  ;;  %295 = vst [vmem:[%s5497_s27 + $0x244] sm:$0xff] %v294_v7  ;;  %v296_v8 = vld [vmem:[%s5492_s26 + $0x4a0] sm:$0xff]  ;;  %v300_v10 = vld [vmem:[%s5492_s26 + $0x4b0] sm:$0xff] }
  0x38   : > { %297 = vst [vmem:[%s5497_s27 + $0x250] sm:$0xff] %v296_v8  ;;  %299 = vst [vmem:[%s5497_s27 + $0x258] sm:$0xff] %v298_v9  ;;  %v302_v11 = vld [vmem:[%s5492_s26 + $0x4b8] sm:$0xff]  ;;  %v304_v12 = vld [vmem:[%s5492_s26 + $0x4c0] sm:$0xff] }
  0x39   : > { %301 = vst [vmem:[%s5497_s27 + $0x260] sm:$0xff] %v300_v10  ;;  %v306_v13 = vld [vmem:[%s5492_s26 + $0x4c8] sm:$0xff]  ;;  %303 = vst [vmem:[%s5497_s27 + $0x268] sm:$0xff] %v302_v11  ;;  %v308_v14 = vld [vmem:[%s5492_s26 + $0x4d0] sm:$0xff] }
  0x3a   : > { %305 = vst [vmem:[%s5497_s27 + $0x270] sm:$0xff] %v304_v12  ;;  %307 = vst [vmem:[%s5497_s27 + $0x278] sm:$0xff] %v306_v13  ;;  %v310_v15 = vld [vmem:[%s5492_s26 + $0x4d8] sm:$0xff]  ;;  %v312_v16 = vld [vmem:[%s5492_s26 + $0x4e0] sm:$0xff] }
  0x3b   : > { %309 = vst [vmem:[%s5497_s27 + $0x280] sm:$0xff] %v308_v14  ;;  %311 = vst [vmem:[%s5497_s27 + $0x288] sm:$0xff] %v310_v15  ;;  %v314_v17 = vld [vmem:[%s5492_s26 + $0x4e8] sm:$0xff]  ;;  %v316_v18 = vld [vmem:[%s5492_s26 + $0x4f0] sm:$0xff] }
  0x3c   : > { %313 = vst [vmem:[%s5497_s27 + $0x290] sm:$0xff] %v312_v16  ;;  %v318_v19 = vld [vmem:[%s5492_s26 + $0x4f8] sm:$0xff]  ;;  %315 = vst [vmem:[%s5497_s27 + $0x298] sm:$0xff] %v314_v17  ;;  %v320_v20 = vld [vmem:[%s5492_s26 + $0x500] sm:$0xff] }
  0x3d   : > { %317 = vst [vmem:[%s5497_s27 + $0x2a0] sm:$0xff] %v316_v18  ;;  %319 = vst [vmem:[%s5497_s27 + $0x2a8] sm:$0xff] %v318_v19  ;;  %v322_v21 = vld [vmem:[%s5492_s26 + $0x508] sm:$0xff]  ;;  %v324_v22 = vld [vmem:[%s5492_s26 + $0x510] sm:$0xff] }
  0x3e   : > { %321 = vst [vmem:[%s5497_s27 + $0x2b0] sm:$0xff] %v320_v20  ;;  %323 = vst [vmem:[%s5497_s27 + $0x2b8] sm:$0xff] %v322_v21  ;;  %v326_v23 = vld [vmem:[%s5492_s26 + $0x518] sm:$0xff]  ;;  %v328_v24 = vld [vmem:[%s5492_s26 + $0x520] sm:$0xff] }
  0x3f   : > { %325 = vst [vmem:[%s5497_s27 + $0x2c0] sm:$0xff] %v324_v22  ;;  %v330_v25 = vld [vmem:[%s5492_s26 + $0x528] sm:$0xff]  ;;  %327 = vst [vmem:[%s5497_s27 + $0x2c8] sm:$0xff] %v326_v23  ;;  %v334_v27 = vld [vmem:[%s5492_s26 + $0x5d0] sm:$0xff] }
  0x40   : > { %329 = vst [vmem:[%s5497_s27 + $0x2d0] sm:$0xff] %v328_v24  ;;  %331 = vst [vmem:[%s5497_s27 + $0x2d8] sm:$0xff] %v330_v25  ;;  %v332_v26 = vld [vmem:[%s5492_s26 + $0x5c8] sm:$0xff]  ;;  %v336_v28 = vld [vmem:[%s5492_s26 + $0x5d8] sm:$0xff] }
  0x41   : > { %333 = vst [vmem:[%s5497_s27 + $0x2e4] sm:$0xff] %v332_v26  ;;  %335 = vst [vmem:[%s5497_s27 + $0x2ec] sm:$0xff] %v334_v27  ;;  %v338_v29 = vld [vmem:[%s5492_s26 + $0x5e0] sm:$0xff]  ;;  %v340_v30 = vld [vmem:[%s5492_s26 + $0x5e8] sm:$0xff] }
  0x42   : > { %337 = vst [vmem:[%s5497_s27 + $0x2f4] sm:$0xff] %v336_v28  ;;  %v342_v31 = vld [vmem:[%s5492_s26 + $0x5f0] sm:$0xff]  ;;  %339 = vst [vmem:[%s5497_s27 + $0x2fc] sm:$0xff] %v338_v29  ;;  %v344_v32 = vld [vmem:[%s5492_s26 + $0x5f8] sm:$0xff] }
  0x43   : > { %341 = vst [vmem:[%s5497_s27 + $0x304] sm:$0xff] %v340_v30  ;;  %343 = vst [vmem:[%s5497_s27 + $0x30c] sm:$0xff] %v342_v31  ;;  %v346_v33 = vld [vmem:[%s5492_s26 + $0x600] sm:$0xff]  ;;  %v348_v34 = vld [vmem:[%s5492_s26 + $0x608] sm:$0xff] }
  0x44   : > { %345 = vst [vmem:[%s5497_s27 + $0x314] sm:$0xff] %v344_v32  ;;  %347 = vst [vmem:[%s5497_s27 + $0x31c] sm:$0xff] %v346_v33  ;;  %v350_v35 = vld [vmem:[%s5492_s26 + $0x610] sm:$0xff]  ;;  %v352_v36 = vld [vmem:[%s5492_s26 + $0x618] sm:$0xff] }
  0x45   : > { %349 = vst [vmem:[%s5497_s27 + $0x324] sm:$0xff] %v348_v34  ;;  %v354_v37 = vld [vmem:[%s5492_s26 + $0x620] sm:$0xff]  ;;  %351 = vst [vmem:[%s5497_s27 + $0x32c] sm:$0xff] %v350_v35  ;;  %v356_v38 = vld [vmem:[%s5492_s26 + $0x628] sm:$0xff] }
  0x46   : > { %353 = vst [vmem:[%s5497_s27 + $0x334] sm:$0xff] %v352_v36  ;;  %355 = vst [vmem:[%s5497_s27 + $0x33c] sm:$0xff] %v354_v37  ;;  %v358_v39 = vld [vmem:[%s5492_s26 + $0x630] sm:$0xff]  ;;  %v360_v40 = vld [vmem:[%s5492_s26 + $0x638] sm:$0xff] }
  0x47   : > { %357 = vst [vmem:[%s5497_s27 + $0x344] sm:$0xff] %v356_v38  ;;  %359 = vst [vmem:[%s5497_s27 + $0x34c] sm:$0xff] %v358_v39  ;;  %v362_v41 = vld [vmem:[%s5492_s26 + $0x640] sm:$0xff]  ;;  %v364_v42 = vld [vmem:[%s5492_s26 + $0x648] sm:$0xff] }
  0x48   : > { %361 = vst [vmem:[%s5497_s27 + $0x354] sm:$0xff] %v360_v40  ;;  %v366_v43 = vld [vmem:[%s5492_s26 + $0x650] sm:$0xff]  ;;  %363 = vst [vmem:[%s5497_s27 + $0x35c] sm:$0xff] %v362_v41  ;;  %v370_v45 = vld [vmem:[%s5492_s26 + $0x6f8] sm:$0xff] }
  0x49   : > { %365 = vst [vmem:[%s5497_s27 + $0x364] sm:$0xff] %v364_v42  ;;  %367 = vst [vmem:[%s5497_s27 + $0x36c] sm:$0xff] %v366_v43  ;;  %v368_v44 = vld [vmem:[%s5492_s26 + $0x6f0] sm:$0xff]  ;;  %v372_v46 = vld [vmem:[%s5492_s26 + $0x700] sm:$0xff] }
  0x4a   : > { %369 = vst [vmem:[%s5497_s27 + $0x378] sm:$0xff] %v368_v44  ;;  %371 = vst [vmem:[%s5497_s27 + $0x380] sm:$0xff] %v370_v45  ;;  %v374_v47 = vld [vmem:[%s5492_s26 + $0x708] sm:$0xff]  ;;  %v376_v48 = vld [vmem:[%s5492_s26 + $0x710] sm:$0xff] }
  0x4b   : > { %373 = vst [vmem:[%s5497_s27 + $0x388] sm:$0xff] %v372_v46  ;;  %v378_v49 = vld [vmem:[%s5492_s26 + $0x718] sm:$0xff]  ;;  %375 = vst [vmem:[%s5497_s27 + $0x390] sm:$0xff] %v374_v47  ;;  %v380_v50 = vld [vmem:[%s5492_s26 + $0x720] sm:$0xff] }
  0x4c   : > { %377 = vst [vmem:[%s5497_s27 + $0x398] sm:$0xff] %v376_v48  ;;  %379 = vst [vmem:[%s5497_s27 + $0x3a0] sm:$0xff] %v378_v49  ;;  %v382_v51 = vld [vmem:[%s5492_s26 + $0x728] sm:$0xff]  ;;  %v384_v52 = vld [vmem:[%s5492_s26 + $0x730] sm:$0xff] }
  0x4d   : > { %381 = vst [vmem:[%s5497_s27 + $0x3a8] sm:$0xff] %v380_v50  ;;  %383 = vst [vmem:[%s5497_s27 + $0x3b0] sm:$0xff] %v382_v51  ;;  %v386_v53 = vld [vmem:[%s5492_s26 + $0x738] sm:$0xff]  ;;  %v388_v54 = vld [vmem:[%s5492_s26 + $0x740] sm:$0xff] }
  0x4e   : > { %385 = vst [vmem:[%s5497_s27 + $0x3b8] sm:$0xff] %v384_v52  ;;  %v390_v55 = vld [vmem:[%s5492_s26 + $0x748] sm:$0xff]  ;;  %387 = vst [vmem:[%s5497_s27 + $0x3c0] sm:$0xff] %v386_v53  ;;  %v392_v56 = vld [vmem:[%s5492_s26 + $0x750] sm:$0xff] }
  0x4f   : > { %389 = vst [vmem:[%s5497_s27 + $0x3c8] sm:$0xff] %v388_v54  ;;  %391 = vst [vmem:[%s5497_s27 + $0x3d0] sm:$0xff] %v390_v55  ;;  %v394_v57 = vld [vmem:[%s5492_s26 + $0x758] sm:$0xff]  ;;  %v396_v58 = vld [vmem:[%s5492_s26 + $0x760] sm:$0xff] }
  0x50   : > { %393 = vst [vmem:[%s5497_s27 + $0x3d8] sm:$0xff] %v392_v56  ;;  %395 = vst [vmem:[%s5497_s27 + $0x3e0] sm:$0xff] %v394_v57  ;;  %v398_v59 = vld [vmem:[%s5492_s26 + $0x768] sm:$0xff]  ;;  %v400_v60 = vld [vmem:[%s5492_s26 + $0x770] sm:$0xff] }
  0x51   : > { %397 = vst [vmem:[%s5497_s27 + $0x3e8] sm:$0xff] %v396_v58  ;;  %v402_v61 = vld [vmem:[%s5492_s26 + $0x778] sm:$0xff]  ;;  %399 = vst [vmem:[%s5497_s27 + $0x3f0] sm:$0xff] %v398_v59  ;;  %v406_v63 = vld [vmem:[%s5492_s26 + $0x820] sm:$0xff] }
  0x52   : > { %401 = vst [vmem:[%s5497_s27 + $0x3f8] sm:$0xff] %v400_v60  ;;  %403 = vst [vmem:[%s5497_s27 + $0x400] sm:$0xff] %v402_v61  ;;  %v404_v62 = vld [vmem:[%s5492_s26 + $0x818] sm:$0xff]  ;;  %v408_v0 = vld [vmem:[%s5492_s26 + $0x828] sm:$0xff] }
  0x53   : > { %405 = vst [vmem:[%s5497_s27 + $0x40c] sm:$0xff] %v404_v62  ;;  %407 = vst [vmem:[%s5497_s27 + $0x414] sm:$0xff] %v406_v63  ;;  %v410_v1 = vld [vmem:[%s5492_s26 + $0x830] sm:$0xff]  ;;  %v412_v2 = vld [vmem:[%s5492_s26 + $0x838] sm:$0xff] }
  0x54   : > { %409 = vst [vmem:[%s5497_s27 + $0x41c] sm:$0xff] %v408_v0  ;;  %v414_v3 = vld [vmem:[%s5492_s26 + $0x840] sm:$0xff]  ;;  %411 = vst [vmem:[%s5497_s27 + $0x424] sm:$0xff] %v410_v1  ;;  %v416_v4 = vld [vmem:[%s5492_s26 + $0x848] sm:$0xff] }
  0x55   : > { %413 = vst [vmem:[%s5497_s27 + $0x42c] sm:$0xff] %v412_v2  ;;  %415 = vst [vmem:[%s5497_s27 + $0x434] sm:$0xff] %v414_v3  ;;  %v418_v5 = vld [vmem:[%s5492_s26 + $0x850] sm:$0xff]  ;;  %v420_v6 = vld [vmem:[%s5492_s26 + $0x858] sm:$0xff] }
  0x56   : > { %417 = vst [vmem:[%s5497_s27 + $0x43c] sm:$0xff] %v416_v4  ;;  %419 = vst [vmem:[%s5497_s27 + $0x444] sm:$0xff] %v418_v5  ;;  %v422_v7 = vld [vmem:[%s5492_s26 + $0x860] sm:$0xff]  ;;  %v424_v8 = vld [vmem:[%s5492_s26 + $0x868] sm:$0xff] }
  0x57   : > { %421 = vst [vmem:[%s5497_s27 + $0x44c] sm:$0xff] %v420_v6  ;;  %v426_v9 = vld [vmem:[%s5492_s26 + $0x870] sm:$0xff]  ;;  %423 = vst [vmem:[%s5497_s27 + $0x454] sm:$0xff] %v422_v7  ;;  %v428_v10 = vld [vmem:[%s5492_s26 + $0x878] sm:$0xff] }
  0x58   : > { %425 = vst [vmem:[%s5497_s27 + $0x45c] sm:$0xff] %v424_v8  ;;  %427 = vst [vmem:[%s5497_s27 + $0x464] sm:$0xff] %v426_v9  ;;  %v430_v11 = vld [vmem:[%s5492_s26 + $0x880] sm:$0xff]  ;;  %v432_v12 = vld [vmem:[%s5492_s26 + $0x888] sm:$0xff] }
  0x59   : > { %429 = vst [vmem:[%s5497_s27 + $0x46c] sm:$0xff] %v428_v10  ;;  %431 = vst [vmem:[%s5497_s27 + $0x474] sm:$0xff] %v430_v11  ;;  %v434_v13 = vld [vmem:[%s5492_s26 + $0x890] sm:$0xff]  ;;  %v436_v14 = vld [vmem:[%s5492_s26 + $0x898] sm:$0xff] }
  0x5a   : > { %433 = vst [vmem:[%s5497_s27 + $0x47c] sm:$0xff] %v432_v12  ;;  %v438_v15 = vld [vmem:[%s5492_s26 + $0x8a0] sm:$0xff]  ;;  %435 = vst [vmem:[%s5497_s27 + $0x484] sm:$0xff] %v434_v13  ;;  %v442_v17 = vld [vmem:[%s5492_s26 + $0x948] sm:$0xff] }
  0x5b   : > { %437 = vst [vmem:[%s5497_s27 + $0x48c] sm:$0xff] %v436_v14  ;;  %439 = vst [vmem:[%s5497_s27 + $0x494] sm:$0xff] %v438_v15  ;;  %v440_v16 = vld [vmem:[%s5492_s26 + $0x940] sm:$0xff]  ;;  %v444_v18 = vld [vmem:[%s5492_s26 + $0x950] sm:$0xff] }
  0x5c   : > { %441 = vst [vmem:[%s5497_s27 + $0x4a0] sm:$0xff] %v440_v16  ;;  %443 = vst [vmem:[%s5497_s27 + $0x4a8] sm:$0xff] %v442_v17  ;;  %v446_v19 = vld [vmem:[%s5492_s26 + $0x958] sm:$0xff]  ;;  %v448_v20 = vld [vmem:[%s5492_s26 + $0x960] sm:$0xff] }
  0x5d   : > { %445 = vst [vmem:[%s5497_s27 + $0x4b0] sm:$0xff] %v444_v18  ;;  %v450_v21 = vld [vmem:[%s5492_s26 + $0x968] sm:$0xff]  ;;  %447 = vst [vmem:[%s5497_s27 + $0x4b8] sm:$0xff] %v446_v19  ;;  %v452_v22 = vld [vmem:[%s5492_s26 + $0x970] sm:$0xff] }
  0x5e   : > { %449 = vst [vmem:[%s5497_s27 + $0x4c0] sm:$0xff] %v448_v20  ;;  %451 = vst [vmem:[%s5497_s27 + $0x4c8] sm:$0xff] %v450_v21  ;;  %v454_v23 = vld [vmem:[%s5492_s26 + $0x978] sm:$0xff]  ;;  %v456_v24 = vld [vmem:[%s5492_s26 + $0x980] sm:$0xff] }
  0x5f   : > { %453 = vst [vmem:[%s5497_s27 + $0x4d0] sm:$0xff] %v452_v22  ;;  %455 = vst [vmem:[%s5497_s27 + $0x4d8] sm:$0xff] %v454_v23  ;;  %v458_v25 = vld [vmem:[%s5492_s26 + $0x988] sm:$0xff]  ;;  %v460_v26 = vld [vmem:[%s5492_s26 + $0x990] sm:$0xff] }
  0x60   : > { %457 = vst [vmem:[%s5497_s27 + $0x4e0] sm:$0xff] %v456_v24  ;;  %v462_v27 = vld [vmem:[%s5492_s26 + $0x998] sm:$0xff]  ;;  %459 = vst [vmem:[%s5497_s27 + $0x4e8] sm:$0xff] %v458_v25  ;;  %v464_v28 = vld [vmem:[%s5492_s26 + $0x9a0] sm:$0xff] }
  0x61   : > { %461 = vst [vmem:[%s5497_s27 + $0x4f0] sm:$0xff] %v460_v26  ;;  %463 = vst [vmem:[%s5497_s27 + $0x4f8] sm:$0xff] %v462_v27  ;;  %v466_v29 = vld [vmem:[%s5492_s26 + $0x9a8] sm:$0xff]  ;;  %v468_v30 = vld [vmem:[%s5492_s26 + $0x9b0] sm:$0xff] }
  0x62   : > { %465 = vst [vmem:[%s5497_s27 + $0x500] sm:$0xff] %v464_v28  ;;  %467 = vst [vmem:[%s5497_s27 + $0x508] sm:$0xff] %v466_v29  ;;  %v470_v31 = vld [vmem:[%s5492_s26 + $0x9b8] sm:$0xff]  ;;  %v472_v32 = vld [vmem:[%s5492_s26 + $0x9c0] sm:$0xff] }
  0x63   : > { %469 = vst [vmem:[%s5497_s27 + $0x510] sm:$0xff] %v468_v30  ;;  %v474_v33 = vld [vmem:[%s5492_s26 + $0x9c8] sm:$0xff]  ;;  %471 = vst [vmem:[%s5497_s27 + $0x518] sm:$0xff] %v470_v31  ;;  %v478_v35 = vld [vmem:[%s5492_s26 + $0xa70] sm:$0xff] }
  0x64   : > { %473 = vst [vmem:[%s5497_s27 + $0x520] sm:$0xff] %v472_v32  ;;  %475 = vst [vmem:[%s5497_s27 + $0x528] sm:$0xff] %v474_v33  ;;  %v476_v34 = vld [vmem:[%s5492_s26 + $0xa68] sm:$0xff]  ;;  %v480_v36 = vld [vmem:[%s5492_s26 + $0xa78] sm:$0xff] }
  0x65   : > { %477 = vst [vmem:[%s5497_s27 + $0x534] sm:$0xff] %v476_v34  ;;  %479 = vst [vmem:[%s5497_s27 + $0x53c] sm:$0xff] %v478_v35  ;;  %v482_v37 = vld [vmem:[%s5492_s26 + $0xa80] sm:$0xff]  ;;  %v484_v38 = vld [vmem:[%s5492_s26 + $0xa88] sm:$0xff] }
  0x66   : > { %481 = vst [vmem:[%s5497_s27 + $0x544] sm:$0xff] %v480_v36  ;;  %v486_v39 = vld [vmem:[%s5492_s26 + $0xa90] sm:$0xff]  ;;  %483 = vst [vmem:[%s5497_s27 + $0x54c] sm:$0xff] %v482_v37  ;;  %v488_v40 = vld [vmem:[%s5492_s26 + $0xa98] sm:$0xff] }
  0x67   : > { %485 = vst [vmem:[%s5497_s27 + $0x554] sm:$0xff] %v484_v38  ;;  %487 = vst [vmem:[%s5497_s27 + $0x55c] sm:$0xff] %v486_v39  ;;  %v490_v41 = vld [vmem:[%s5492_s26 + $0xaa0] sm:$0xff]  ;;  %v492_v42 = vld [vmem:[%s5492_s26 + $0xaa8] sm:$0xff] }
  0x68   : > { %489 = vst [vmem:[%s5497_s27 + $0x564] sm:$0xff] %v488_v40  ;;  %491 = vst [vmem:[%s5497_s27 + $0x56c] sm:$0xff] %v490_v41  ;;  %v494_v43 = vld [vmem:[%s5492_s26 + $0xab0] sm:$0xff]  ;;  %v496_v44 = vld [vmem:[%s5492_s26 + $0xab8] sm:$0xff] }
  0x69   : > { %493 = vst [vmem:[%s5497_s27 + $0x574] sm:$0xff] %v492_v42  ;;  %v498_v45 = vld [vmem:[%s5492_s26 + $0xac0] sm:$0xff]  ;;  %495 = vst [vmem:[%s5497_s27 + $0x57c] sm:$0xff] %v494_v43  ;;  %v500_v46 = vld [vmem:[%s5492_s26 + $0xac8] sm:$0xff] }
  0x6a   : > { %497 = vst [vmem:[%s5497_s27 + $0x584] sm:$0xff] %v496_v44  ;;  %499 = vst [vmem:[%s5497_s27 + $0x58c] sm:$0xff] %v498_v45  ;;  %v502_v47 = vld [vmem:[%s5492_s26 + $0xad0] sm:$0xff]  ;;  %v504_v48 = vld [vmem:[%s5492_s26 + $0xad8] sm:$0xff] }
  0x6b   : > { %501 = vst [vmem:[%s5497_s27 + $0x594] sm:$0xff] %v500_v46  ;;  %503 = vst [vmem:[%s5497_s27 + $0x59c] sm:$0xff] %v502_v47  ;;  %v506_v49 = vld [vmem:[%s5492_s26 + $0xae0] sm:$0xff]  ;;  %v508_v50 = vld [vmem:[%s5492_s26 + $0xae8] sm:$0xff] }
  0x6c   : > { %505 = vst [vmem:[%s5497_s27 + $0x5a4] sm:$0xff] %v504_v48  ;;  %v510_v51 = vld [vmem:[%s5492_s26 + $0xaf0] sm:$0xff]  ;;  %507 = vst [vmem:[%s5497_s27 + $0x5ac] sm:$0xff] %v506_v49  ;;  %v514_v53 = vld [vmem:[%s5492_s26 + $0xb98] sm:$0xff] }
  0x6d   : > { %509 = vst [vmem:[%s5497_s27 + $0x5b4] sm:$0xff] %v508_v50  ;;  %511 = vst [vmem:[%s5497_s27 + $0x5bc] sm:$0xff] %v510_v51  ;;  %v512_v52 = vld [vmem:[%s5492_s26 + $0xb90] sm:$0xff]  ;;  %v516_v54 = vld [vmem:[%s5492_s26 + $0xba0] sm:$0xff] }
  0x6e   : > { %513 = vst [vmem:[%s5497_s27 + $0x5c8] sm:$0xff] %v512_v52  ;;  %515 = vst [vmem:[%s5497_s27 + $0x5d0] sm:$0xff] %v514_v53  ;;  %v518_v55 = vld [vmem:[%s5492_s26 + $0xba8] sm:$0xff]  ;;  %v520_v56 = vld [vmem:[%s5492_s26 + $0xbb0] sm:$0xff] }
  0x6f   : > { %517 = vst [vmem:[%s5497_s27 + $0x5d8] sm:$0xff] %v516_v54  ;;  %v522_v57 = vld [vmem:[%s5492_s26 + $0xbb8] sm:$0xff]  ;;  %519 = vst [vmem:[%s5497_s27 + $0x5e0] sm:$0xff] %v518_v55  ;;  %v524_v58 = vld [vmem:[%s5492_s26 + $0xbc0] sm:$0xff] }
  0x70   : > { %521 = vst [vmem:[%s5497_s27 + $0x5e8] sm:$0xff] %v520_v56  ;;  %523 = vst [vmem:[%s5497_s27 + $0x5f0] sm:$0xff] %v522_v57  ;;  %v526_v59 = vld [vmem:[%s5492_s26 + $0xbc8] sm:$0xff]  ;;  %v528_v60 = vld [vmem:[%s5492_s26 + $0xbd0] sm:$0xff] }
  0x71   : > { %525 = vst [vmem:[%s5497_s27 + $0x5f8] sm:$0xff] %v524_v58  ;;  %527 = vst [vmem:[%s5497_s27 + $0x600] sm:$0xff] %v526_v59  ;;  %v530_v61 = vld [vmem:[%s5492_s26 + $0xbd8] sm:$0xff]  ;;  %v532_v62 = vld [vmem:[%s5492_s26 + $0xbe0] sm:$0xff] }
  0x72   : > { %529 = vst [vmem:[%s5497_s27 + $0x608] sm:$0xff] %v528_v60  ;;  %v534_v63 = vld [vmem:[%s5492_s26 + $0xbe8] sm:$0xff]  ;;  %531 = vst [vmem:[%s5497_s27 + $0x610] sm:$0xff] %v530_v61  ;;  %v536_v0 = vld [vmem:[%s5492_s26 + $0xbf0] sm:$0xff] }
  0x73   : > { %533 = vst [vmem:[%s5497_s27 + $0x618] sm:$0xff] %v532_v62  ;;  %535 = vst [vmem:[%s5497_s27 + $0x620] sm:$0xff] %v534_v63  ;;  %v538_v1 = vld [vmem:[%s5492_s26 + $0xbf8] sm:$0xff]  ;;  %v540_v2 = vld [vmem:[%s5492_s26 + $0xc00] sm:$0xff] }
  0x74   : > { %537 = vst [vmem:[%s5497_s27 + $0x628] sm:$0xff] %v536_v0  ;;  %539 = vst [vmem:[%s5497_s27 + $0x630] sm:$0xff] %v538_v1  ;;  %v542_v3 = vld [vmem:[%s5492_s26 + $0xc08] sm:$0xff]  ;;  %v544_v4 = vld [vmem:[%s5492_s26 + $0xc10] sm:$0xff] }
  0x75   : > { %541 = vst [vmem:[%s5497_s27 + $0x638] sm:$0xff] %v540_v2  ;;  %v546_v5 = vld [vmem:[%s5492_s26 + $0xc18] sm:$0xff]  ;;  %543 = vst [vmem:[%s5497_s27 + $0x640] sm:$0xff] %v542_v3  ;;  %v550_v7 = vld [vmem:[%s5492_s26 + $0xcc0] sm:$0xff] }
  0x76   : > { %545 = vst [vmem:[%s5497_s27 + $0x648] sm:$0xff] %v544_v4  ;;  %547 = vst [vmem:[%s5497_s27 + $0x650] sm:$0xff] %v546_v5  ;;  %v548_v6 = vld [vmem:[%s5492_s26 + $0xcb8] sm:$0xff]  ;;  %v552_v8 = vld [vmem:[%s5492_s26 + $0xcc8] sm:$0xff] }
  0x77   : > { %549 = vst [vmem:[%s5497_s27 + $0x65c] sm:$0xff] %v548_v6  ;;  %551 = vst [vmem:[%s5497_s27 + $0x664] sm:$0xff] %v550_v7  ;;  %v554_v9 = vld [vmem:[%s5492_s26 + $0xcd0] sm:$0xff]  ;;  %v556_v10 = vld [vmem:[%s5492_s26 + $0xcd8] sm:$0xff] }
  0x78   : > { %553 = vst [vmem:[%s5497_s27 + $0x66c] sm:$0xff] %v552_v8  ;;  %v558_v11 = vld [vmem:[%s5492_s26 + $0xce0] sm:$0xff]  ;;  %555 = vst [vmem:[%s5497_s27 + $0x674] sm:$0xff] %v554_v9  ;;  %v560_v12 = vld [vmem:[%s5492_s26 + $0xce8] sm:$0xff] }
  0x79   : > { %557 = vst [vmem:[%s5497_s27 + $0x67c] sm:$0xff] %v556_v10  ;;  %559 = vst [vmem:[%s5497_s27 + $0x684] sm:$0xff] %v558_v11  ;;  %v562_v13 = vld [vmem:[%s5492_s26 + $0xcf0] sm:$0xff]  ;;  %v564_v14 = vld [vmem:[%s5492_s26 + $0xcf8] sm:$0xff] }
  0x7a   : > { %561 = vst [vmem:[%s5497_s27 + $0x68c] sm:$0xff] %v560_v12  ;;  %563 = vst [vmem:[%s5497_s27 + $0x694] sm:$0xff] %v562_v13  ;;  %v566_v15 = vld [vmem:[%s5492_s26 + $0xd00] sm:$0xff]  ;;  %v568_v16 = vld [vmem:[%s5492_s26 + $0xd08] sm:$0xff] }
  0x7b   : > { %565 = vst [vmem:[%s5497_s27 + $0x69c] sm:$0xff] %v564_v14  ;;  %v570_v17 = vld [vmem:[%s5492_s26 + $0xd10] sm:$0xff]  ;;  %567 = vst [vmem:[%s5497_s27 + $0x6a4] sm:$0xff] %v566_v15  ;;  %v572_v18 = vld [vmem:[%s5492_s26 + $0xd18] sm:$0xff] }
  0x7c   : > { %569 = vst [vmem:[%s5497_s27 + $0x6ac] sm:$0xff] %v568_v16  ;;  %571 = vst [vmem:[%s5497_s27 + $0x6b4] sm:$0xff] %v570_v17  ;;  %v574_v19 = vld [vmem:[%s5492_s26 + $0xd20] sm:$0xff]  ;;  %v576_v20 = vld [vmem:[%s5492_s26 + $0xd28] sm:$0xff] }
  0x7d   : > { %573 = vst [vmem:[%s5497_s27 + $0x6bc] sm:$0xff] %v572_v18  ;;  %575 = vst [vmem:[%s5497_s27 + $0x6c4] sm:$0xff] %v574_v19  ;;  %v578_v21 = vld [vmem:[%s5492_s26 + $0xd30] sm:$0xff]  ;;  %v580_v22 = vld [vmem:[%s5492_s26 + $0xd38] sm:$0xff] }
  0x7e   : > { %577 = vst [vmem:[%s5497_s27 + $0x6cc] sm:$0xff] %v576_v20  ;;  %v582_v23 = vld [vmem:[%s5492_s26 + $0xd40] sm:$0xff]  ;;  %579 = vst [vmem:[%s5497_s27 + $0x6d4] sm:$0xff] %v578_v21  ;;  %v586_v25 = vld [vmem:[%s5492_s26 + $0xde8] sm:$0xff] }
  0x7f   : > { %581 = vst [vmem:[%s5497_s27 + $0x6dc] sm:$0xff] %v580_v22  ;;  %583 = vst [vmem:[%s5497_s27 + $0x6e4] sm:$0xff] %v582_v23  ;;  %v584_v24 = vld [vmem:[%s5492_s26 + $0xde0] sm:$0xff]  ;;  %v588_v26 = vld [vmem:[%s5492_s26 + $0xdf0] sm:$0xff] }
  0x80   : > { %585 = vst [vmem:[%s5497_s27 + $0x6f0] sm:$0xff] %v584_v24  ;;  %587 = vst [vmem:[%s5497_s27 + $0x6f8] sm:$0xff] %v586_v25  ;;  %v590_v27 = vld [vmem:[%s5492_s26 + $0xdf8] sm:$0xff]  ;;  %v592_v28 = vld [vmem:[%s5492_s26 + $0xe00] sm:$0xff] }
  0x81   : > { %589 = vst [vmem:[%s5497_s27 + $0x700] sm:$0xff] %v588_v26  ;;  %v594_v29 = vld [vmem:[%s5492_s26 + $0xe08] sm:$0xff]  ;;  %591 = vst [vmem:[%s5497_s27 + $0x708] sm:$0xff] %v590_v27  ;;  %v596_v30 = vld [vmem:[%s5492_s26 + $0xe10] sm:$0xff] }
  0x82   : > { %593 = vst [vmem:[%s5497_s27 + $0x710] sm:$0xff] %v592_v28  ;;  %595 = vst [vmem:[%s5497_s27 + $0x718] sm:$0xff] %v594_v29  ;;  %v598_v31 = vld [vmem:[%s5492_s26 + $0xe18] sm:$0xff]  ;;  %v600_v32 = vld [vmem:[%s5492_s26 + $0xe20] sm:$0xff] }
  0x83   : > { %597 = vst [vmem:[%s5497_s27 + $0x720] sm:$0xff] %v596_v30  ;;  %599 = vst [vmem:[%s5497_s27 + $0x728] sm:$0xff] %v598_v31  ;;  %v602_v33 = vld [vmem:[%s5492_s26 + $0xe28] sm:$0xff]  ;;  %v604_v34 = vld [vmem:[%s5492_s26 + $0xe30] sm:$0xff] }
  0x84   : > { %601 = vst [vmem:[%s5497_s27 + $0x730] sm:$0xff] %v600_v32  ;;  %v606_v35 = vld [vmem:[%s5492_s26 + $0xe38] sm:$0xff]  ;;  %603 = vst [vmem:[%s5497_s27 + $0x738] sm:$0xff] %v602_v33  ;;  %v608_v36 = vld [vmem:[%s5492_s26 + $0xe40] sm:$0xff] }
  0x85   : > { %605 = vst [vmem:[%s5497_s27 + $0x740] sm:$0xff] %v604_v34  ;;  %607 = vst [vmem:[%s5497_s27 + $0x748] sm:$0xff] %v606_v35  ;;  %v610_v37 = vld [vmem:[%s5492_s26 + $0xe48] sm:$0xff]  ;;  %v612_v38 = vld [vmem:[%s5492_s26 + $0xe50] sm:$0xff] }
  0x86   : > { %609 = vst [vmem:[%s5497_s27 + $0x750] sm:$0xff] %v608_v36  ;;  %611 = vst [vmem:[%s5497_s27 + $0x758] sm:$0xff] %v610_v37  ;;  %v614_v39 = vld [vmem:[%s5492_s26 + $0xe58] sm:$0xff]  ;;  %v616_v40 = vld [vmem:[%s5492_s26 + $0xe60] sm:$0xff] }
  0x87   : > { %613 = vst [vmem:[%s5497_s27 + $0x760] sm:$0xff] %v612_v38  ;;  %v618_v41 = vld [vmem:[%s5492_s26 + $0xe68] sm:$0xff]  ;;  %615 = vst [vmem:[%s5497_s27 + $0x768] sm:$0xff] %v614_v39  ;;  %v622_v43 = vld [vmem:[%s5492_s26 + $0xf10] sm:$0xff] }
  0x88   : > { %617 = vst [vmem:[%s5497_s27 + $0x770] sm:$0xff] %v616_v40  ;;  %619 = vst [vmem:[%s5497_s27 + $0x778] sm:$0xff] %v618_v41  ;;  %v620_v42 = vld [vmem:[%s5492_s26 + $0xf08] sm:$0xff]  ;;  %v624_v44 = vld [vmem:[%s5492_s26 + $0xf18] sm:$0xff] }
  0x89   : > { %621 = vst [vmem:[%s5497_s27 + $0x784] sm:$0xff] %v620_v42  ;;  %623 = vst [vmem:[%s5497_s27 + $0x78c] sm:$0xff] %v622_v43  ;;  %v626_v45 = vld [vmem:[%s5492_s26 + $0xf20] sm:$0xff]  ;;  %v628_v46 = vld [vmem:[%s5492_s26 + $0xf28] sm:$0xff] }
  0x8a   : > { %625 = vst [vmem:[%s5497_s27 + $0x794] sm:$0xff] %v624_v44  ;;  %v630_v47 = vld [vmem:[%s5492_s26 + $0xf30] sm:$0xff]  ;;  %627 = vst [vmem:[%s5497_s27 + $0x79c] sm:$0xff] %v626_v45  ;;  %v632_v48 = vld [vmem:[%s5492_s26 + $0xf38] sm:$0xff] }
  0x8b   : > { %629 = vst [vmem:[%s5497_s27 + $0x7a4] sm:$0xff] %v628_v46  ;;  %631 = vst [vmem:[%s5497_s27 + $0x7ac] sm:$0xff] %v630_v47  ;;  %v634_v49 = vld [vmem:[%s5492_s26 + $0xf40] sm:$0xff]  ;;  %v636_v50 = vld [vmem:[%s5492_s26 + $0xf48] sm:$0xff] }
  0x8c   : > { %633 = vst [vmem:[%s5497_s27 + $0x7b4] sm:$0xff] %v632_v48  ;;  %635 = vst [vmem:[%s5497_s27 + $0x7bc] sm:$0xff] %v634_v49  ;;  %v638_v51 = vld [vmem:[%s5492_s26 + $0xf50] sm:$0xff]  ;;  %v640_v52 = vld [vmem:[%s5492_s26 + $0xf58] sm:$0xff] }
  0x8d   : > { %637 = vst [vmem:[%s5497_s27 + $0x7c4] sm:$0xff] %v636_v50  ;;  %v642_v53 = vld [vmem:[%s5492_s26 + $0xf60] sm:$0xff]  ;;  %639 = vst [vmem:[%s5497_s27 + $0x7cc] sm:$0xff] %v638_v51  ;;  %v644_v54 = vld [vmem:[%s5492_s26 + $0xf68] sm:$0xff] }
  0x8e   : > { %641 = vst [vmem:[%s5497_s27 + $0x7d4] sm:$0xff] %v640_v52  ;;  %643 = vst [vmem:[%s5497_s27 + $0x7dc] sm:$0xff] %v642_v53  ;;  %v646_v55 = vld [vmem:[%s5492_s26 + $0xf70] sm:$0xff]  ;;  %v648_v56 = vld [vmem:[%s5492_s26 + $0xf78] sm:$0xff] }
  0x8f   : > { %645 = vst [vmem:[%s5497_s27 + $0x7e4] sm:$0xff] %v644_v54  ;;  %647 = vst [vmem:[%s5497_s27 + $0x7ec] sm:$0xff] %v646_v55  ;;  %v650_v57 = vld [vmem:[%s5492_s26 + $0xf80] sm:$0xff]  ;;  %v652_v58 = vld [vmem:[%s5492_s26 + $0xf88] sm:$0xff] }
  0x90   : > { %649 = vst [vmem:[%s5497_s27 + $0x7f4] sm:$0xff] %v648_v56  ;;  %v654_v59 = vld [vmem:[%s5492_s26 + $0xf90] sm:$0xff]  ;;  %651 = vst [vmem:[%s5497_s27 + $0x7fc] sm:$0xff] %v650_v57  ;;  %v658_v61 = vld [vmem:[%s5492_s26 + $0x1038] sm:$0xff] }
  0x91   : > { %653 = vst [vmem:[%s5497_s27 + $0x804] sm:$0xff] %v652_v58  ;;  %655 = vst [vmem:[%s5497_s27 + $0x80c] sm:$0xff] %v654_v59  ;;  %v656_v60 = vld [vmem:[%s5492_s26 + $0x1030] sm:$0xff]  ;;  %v660_v62 = vld [vmem:[%s5492_s26 + $0x1040] sm:$0xff] }
  0x92   : > { %657 = vst [vmem:[%s5497_s27 + $0x818] sm:$0xff] %v656_v60  ;;  %659 = vst [vmem:[%s5497_s27 + $0x820] sm:$0xff] %v658_v61  ;;  %v662_v63 = vld [vmem:[%s5492_s26 + $0x1048] sm:$0xff]  ;;  %v664_v0 = vld [vmem:[%s5492_s26 + $0x1050] sm:$0xff] }
  0x93   : > { %661 = vst [vmem:[%s5497_s27 + $0x828] sm:$0xff] %v660_v62  ;;  %v666_v1 = vld [vmem:[%s5492_s26 + $0x1058] sm:$0xff]  ;;  %663 = vst [vmem:[%s5497_s27 + $0x830] sm:$0xff] %v662_v63  ;;  %v668_v2 = vld [vmem:[%s5492_s26 + $0x1060] sm:$0xff] }
  0x94   : > { %665 = vst [vmem:[%s5497_s27 + $0x838] sm:$0xff] %v664_v0  ;;  %667 = vst [vmem:[%s5497_s27 + $0x840] sm:$0xff] %v666_v1  ;;  %v670_v3 = vld [vmem:[%s5492_s26 + $0x1068] sm:$0xff]  ;;  %v672_v4 = vld [vmem:[%s5492_s26 + $0x1070] sm:$0xff] }
  0x95   : > { %669 = vst [vmem:[%s5497_s27 + $0x848] sm:$0xff] %v668_v2  ;;  %671 = vst [vmem:[%s5497_s27 + $0x850] sm:$0xff] %v670_v3  ;;  %v674_v5 = vld [vmem:[%s5492_s26 + $0x1078] sm:$0xff]  ;;  %v676_v6 = vld [vmem:[%s5492_s26 + $0x1080] sm:$0xff] }
  0x96   : > { %673 = vst [vmem:[%s5497_s27 + $0x858] sm:$0xff] %v672_v4  ;;  %v678_v7 = vld [vmem:[%s5492_s26 + $0x1088] sm:$0xff]  ;;  %675 = vst [vmem:[%s5497_s27 + $0x860] sm:$0xff] %v674_v5  ;;  %v680_v8 = vld [vmem:[%s5492_s26 + $0x1090] sm:$0xff] }
  0x97   : > { %677 = vst [vmem:[%s5497_s27 + $0x868] sm:$0xff] %v676_v6  ;;  %679 = vst [vmem:[%s5497_s27 + $0x870] sm:$0xff] %v678_v7  ;;  %v682_v9 = vld [vmem:[%s5492_s26 + $0x1098] sm:$0xff]  ;;  %v684_v10 = vld [vmem:[%s5492_s26 + $0x10a0] sm:$0xff] }
  0x98   : > { %681 = vst [vmem:[%s5497_s27 + $0x878] sm:$0xff] %v680_v8  ;;  %683 = vst [vmem:[%s5497_s27 + $0x880] sm:$0xff] %v682_v9  ;;  %v686_v11 = vld [vmem:[%s5492_s26 + $0x10a8] sm:$0xff]  ;;  %v688_v12 = vld [vmem:[%s5492_s26 + $0x10b0] sm:$0xff] }
  0x99   : > { %685 = vst [vmem:[%s5497_s27 + $0x888] sm:$0xff] %v684_v10  ;;  %v690_v13 = vld [vmem:[%s5492_s26 + $0x10b8] sm:$0xff]  ;;  %687 = vst [vmem:[%s5497_s27 + $0x890] sm:$0xff] %v686_v11  ;;  %v694_v15 = vld [vmem:[%s5492_s26 + $0x1160] sm:$0xff] }
  0x9a   : > { %689 = vst [vmem:[%s5497_s27 + $0x898] sm:$0xff] %v688_v12  ;;  %691 = vst [vmem:[%s5497_s27 + $0x8a0] sm:$0xff] %v690_v13  ;;  %v692_v14 = vld [vmem:[%s5492_s26 + $0x1158] sm:$0xff]  ;;  %v696_v16 = vld [vmem:[%s5492_s26 + $0x1168] sm:$0xff] }
  0x9b   : > { %693 = vst [vmem:[%s5497_s27 + $0x8ac] sm:$0xff] %v692_v14  ;;  %695 = vst [vmem:[%s5497_s27 + $0x8b4] sm:$0xff] %v694_v15  ;;  %v698_v17 = vld [vmem:[%s5492_s26 + $0x1170] sm:$0xff]  ;;  %v700_v18 = vld [vmem:[%s5492_s26 + $0x1178] sm:$0xff] }
  0x9c   : > { %697 = vst [vmem:[%s5497_s27 + $0x8bc] sm:$0xff] %v696_v16  ;;  %v702_v19 = vld [vmem:[%s5492_s26 + $0x1180] sm:$0xff]  ;;  %699 = vst [vmem:[%s5497_s27 + $0x8c4] sm:$0xff] %v698_v17  ;;  %v704_v20 = vld [vmem:[%s5492_s26 + $0x1188] sm:$0xff] }
  0x9d   : > { %701 = vst [vmem:[%s5497_s27 + $0x8cc] sm:$0xff] %v700_v18  ;;  %703 = vst [vmem:[%s5497_s27 + $0x8d4] sm:$0xff] %v702_v19  ;;  %v706_v21 = vld [vmem:[%s5492_s26 + $0x1190] sm:$0xff]  ;;  %v708_v22 = vld [vmem:[%s5492_s26 + $0x1198] sm:$0xff] }
  0x9e   : > { %705 = vst [vmem:[%s5497_s27 + $0x8dc] sm:$0xff] %v704_v20  ;;  %707 = vst [vmem:[%s5497_s27 + $0x8e4] sm:$0xff] %v706_v21  ;;  %v710_v23 = vld [vmem:[%s5492_s26 + $0x11a0] sm:$0xff]  ;;  %v712_v24 = vld [vmem:[%s5492_s26 + $0x11a8] sm:$0xff] }
  0x9f   : > { %709 = vst [vmem:[%s5497_s27 + $0x8ec] sm:$0xff] %v708_v22  ;;  %v714_v25 = vld [vmem:[%s5492_s26 + $0x11b0] sm:$0xff]  ;;  %711 = vst [vmem:[%s5497_s27 + $0x8f4] sm:$0xff] %v710_v23  ;;  %v716_v26 = vld [vmem:[%s5492_s26 + $0x11b8] sm:$0xff] }
  0xa0   : > { %713 = vst [vmem:[%s5497_s27 + $0x8fc] sm:$0xff] %v712_v24  ;;  %715 = vst [vmem:[%s5497_s27 + $0x904] sm:$0xff] %v714_v25  ;;  %v718_v27 = vld [vmem:[%s5492_s26 + $0x11c0] sm:$0xff]  ;;  %v720_v28 = vld [vmem:[%s5492_s26 + $0x11c8] sm:$0xff] }
  0xa1   : > { %717 = vst [vmem:[%s5497_s27 + $0x90c] sm:$0xff] %v716_v26  ;;  %719 = vst [vmem:[%s5497_s27 + $0x914] sm:$0xff] %v718_v27  ;;  %v722_v29 = vld [vmem:[%s5492_s26 + $0x11d0] sm:$0xff]  ;;  %v724_v30 = vld [vmem:[%s5492_s26 + $0x11d8] sm:$0xff] }
  0xa2   : > { %721 = vst [vmem:[%s5497_s27 + $0x91c] sm:$0xff] %v720_v28  ;;  %v726_v31 = vld [vmem:[%s5492_s26 + $0x11e0] sm:$0xff]  ;;  %723 = vst [vmem:[%s5497_s27 + $0x924] sm:$0xff] %v722_v29  ;;  %v730_v33 = vld [vmem:[%s5492_s26 + $0x1288] sm:$0xff] }
  0xa3   : > { %725 = vst [vmem:[%s5497_s27 + $0x92c] sm:$0xff] %v724_v30  ;;  %727 = vst [vmem:[%s5497_s27 + $0x934] sm:$0xff] %v726_v31  ;;  %v728_v32 = vld [vmem:[%s5492_s26 + $0x1280] sm:$0xff]  ;;  %v732_v34 = vld [vmem:[%s5492_s26 + $0x1290] sm:$0xff] }
  0xa4   : > { %729 = vst [vmem:[%s5497_s27 + $0x940] sm:$0xff] %v728_v32  ;;  %731 = vst [vmem:[%s5497_s27 + $0x948] sm:$0xff] %v730_v33  ;;  %v734_v35 = vld [vmem:[%s5492_s26 + $0x1298] sm:$0xff]  ;;  %v736_v36 = vld [vmem:[%s5492_s26 + $0x12a0] sm:$0xff] }
  0xa5   : > { %733 = vst [vmem:[%s5497_s27 + $0x950] sm:$0xff] %v732_v34  ;;  %v738_v37 = vld [vmem:[%s5492_s26 + $0x12a8] sm:$0xff]  ;;  %735 = vst [vmem:[%s5497_s27 + $0x958] sm:$0xff] %v734_v35  ;;  %v740_v38 = vld [vmem:[%s5492_s26 + $0x12b0] sm:$0xff] }
  0xa6   : > { %737 = vst [vmem:[%s5497_s27 + $0x960] sm:$0xff] %v736_v36  ;;  %739 = vst [vmem:[%s5497_s27 + $0x968] sm:$0xff] %v738_v37  ;;  %v742_v39 = vld [vmem:[%s5492_s26 + $0x12b8] sm:$0xff]  ;;  %v744_v40 = vld [vmem:[%s5492_s26 + $0x12c0] sm:$0xff] }
  0xa7   : > { %741 = vst [vmem:[%s5497_s27 + $0x970] sm:$0xff] %v740_v38  ;;  %743 = vst [vmem:[%s5497_s27 + $0x978] sm:$0xff] %v742_v39  ;;  %v746_v41 = vld [vmem:[%s5492_s26 + $0x12c8] sm:$0xff]  ;;  %v748_v42 = vld [vmem:[%s5492_s26 + $0x12d0] sm:$0xff] }
  0xa8   : > { %745 = vst [vmem:[%s5497_s27 + $0x980] sm:$0xff] %v744_v40  ;;  %v750_v43 = vld [vmem:[%s5492_s26 + $0x12d8] sm:$0xff]  ;;  %747 = vst [vmem:[%s5497_s27 + $0x988] sm:$0xff] %v746_v41  ;;  %v752_v44 = vld [vmem:[%s5492_s26 + $0x12e0] sm:$0xff] }
  0xa9   : > { %749 = vst [vmem:[%s5497_s27 + $0x990] sm:$0xff] %v748_v42  ;;  %751 = vst [vmem:[%s5497_s27 + $0x998] sm:$0xff] %v750_v43  ;;  %v754_v45 = vld [vmem:[%s5492_s26 + $0x12e8] sm:$0xff]  ;;  %v756_v46 = vld [vmem:[%s5492_s26 + $0x12f0] sm:$0xff] }
  0xaa   : > { %753 = vst [vmem:[%s5497_s27 + $0x9a0] sm:$0xff] %v752_v44  ;;  %755 = vst [vmem:[%s5497_s27 + $0x9a8] sm:$0xff] %v754_v45  ;;  %v758_v47 = vld [vmem:[%s5492_s26 + $0x12f8] sm:$0xff]  ;;  %v760_v48 = vld [vmem:[%s5492_s26 + $0x1300] sm:$0xff] }
  0xab   : > { %757 = vst [vmem:[%s5497_s27 + $0x9b0] sm:$0xff] %v756_v46  ;;  %v762_v49 = vld [vmem:[%s5492_s26 + $0x1308] sm:$0xff]  ;;  %759 = vst [vmem:[%s5497_s27 + $0x9b8] sm:$0xff] %v758_v47  ;;  %v766_v51 = vld [vmem:[%s5492_s26 + $0x13b0] sm:$0xff] }
  0xac   : > { %761 = vst [vmem:[%s5497_s27 + $0x9c0] sm:$0xff] %v760_v48  ;;  %763 = vst [vmem:[%s5497_s27 + $0x9c8] sm:$0xff] %v762_v49  ;;  %v764_v50 = vld [vmem:[%s5492_s26 + $0x13a8] sm:$0xff]  ;;  %v768_v52 = vld [vmem:[%s5492_s26 + $0x13b8] sm:$0xff] }
  0xad   : > { %765 = vst [vmem:[%s5497_s27 + $0x9d4] sm:$0xff] %v764_v50  ;;  %767 = vst [vmem:[%s5497_s27 + $0x9dc] sm:$0xff] %v766_v51  ;;  %v770_v53 = vld [vmem:[%s5492_s26 + $0x13c0] sm:$0xff]  ;;  %v772_v54 = vld [vmem:[%s5492_s26 + $0x13c8] sm:$0xff] }
  0xae   : > { %769 = vst [vmem:[%s5497_s27 + $0x9e4] sm:$0xff] %v768_v52  ;;  %v774_v55 = vld [vmem:[%s5492_s26 + $0x13d0] sm:$0xff]  ;;  %771 = vst [vmem:[%s5497_s27 + $0x9ec] sm:$0xff] %v770_v53  ;;  %v776_v56 = vld [vmem:[%s5492_s26 + $0x13d8] sm:$0xff] }
  0xaf   : > { %773 = vst [vmem:[%s5497_s27 + $0x9f4] sm:$0xff] %v772_v54  ;;  %775 = vst [vmem:[%s5497_s27 + $0x9fc] sm:$0xff] %v774_v55  ;;  %v778_v57 = vld [vmem:[%s5492_s26 + $0x13e0] sm:$0xff]  ;;  %v780_v58 = vld [vmem:[%s5492_s26 + $0x13e8] sm:$0xff] }
  0xb0   : > { %777 = vst [vmem:[%s5497_s27 + $0xa04] sm:$0xff] %v776_v56  ;;  %779 = vst [vmem:[%s5497_s27 + $0xa0c] sm:$0xff] %v778_v57  ;;  %v782_v59 = vld [vmem:[%s5492_s26 + $0x13f0] sm:$0xff]  ;;  %v784_v60 = vld [vmem:[%s5492_s26 + $0x13f8] sm:$0xff] }
  0xb1   : > { %781 = vst [vmem:[%s5497_s27 + $0xa14] sm:$0xff] %v780_v58  ;;  %v786_v61 = vld [vmem:[%s5492_s26 + $0x1400] sm:$0xff]  ;;  %783 = vst [vmem:[%s5497_s27 + $0xa1c] sm:$0xff] %v782_v59  ;;  %v788_v62 = vld [vmem:[%s5492_s26 + $0x1408] sm:$0xff] }
  0xb2   : > { %785 = vst [vmem:[%s5497_s27 + $0xa24] sm:$0xff] %v784_v60  ;;  %787 = vst [vmem:[%s5497_s27 + $0xa2c] sm:$0xff] %v786_v61  ;;  %v790_v63 = vld [vmem:[%s5492_s26 + $0x1410] sm:$0xff]  ;;  %v792_v0 = vld [vmem:[%s5492_s26 + $0x1418] sm:$0xff] }
  0xb3   : > { %789 = vst [vmem:[%s5497_s27 + $0xa34] sm:$0xff] %v788_v62  ;;  %791 = vst [vmem:[%s5497_s27 + $0xa3c] sm:$0xff] %v790_v63  ;;  %v794_v1 = vld [vmem:[%s5492_s26 + $0x1420] sm:$0xff]  ;;  %v796_v2 = vld [vmem:[%s5492_s26 + $0x1428] sm:$0xff] }
  0xb4   : > { %793 = vst [vmem:[%s5497_s27 + $0xa44] sm:$0xff] %v792_v0  ;;  %v798_v3 = vld [vmem:[%s5492_s26 + $0x1430] sm:$0xff]  ;;  %795 = vst [vmem:[%s5497_s27 + $0xa4c] sm:$0xff] %v794_v1  ;;  %v802_v5 = vld [vmem:[%s5492_s26 + $0x14d8] sm:$0xff] }
  0xb5   : > { %797 = vst [vmem:[%s5497_s27 + $0xa54] sm:$0xff] %v796_v2  ;;  %799 = vst [vmem:[%s5497_s27 + $0xa5c] sm:$0xff] %v798_v3  ;;  %v800_v4 = vld [vmem:[%s5492_s26 + $0x14d0] sm:$0xff]  ;;  %v804_v6 = vld [vmem:[%s5492_s26 + $0x14e0] sm:$0xff] }
  0xb6   : > { %801 = vst [vmem:[%s5497_s27 + $0xa68] sm:$0xff] %v800_v4  ;;  %803 = vst [vmem:[%s5497_s27 + $0xa70] sm:$0xff] %v802_v5  ;;  %v806_v7 = vld [vmem:[%s5492_s26 + $0x14e8] sm:$0xff]  ;;  %v808_v8 = vld [vmem:[%s5492_s26 + $0x14f0] sm:$0xff] }
  0xb7   : > { %805 = vst [vmem:[%s5497_s27 + $0xa78] sm:$0xff] %v804_v6  ;;  %v810_v9 = vld [vmem:[%s5492_s26 + $0x14f8] sm:$0xff]  ;;  %807 = vst [vmem:[%s5497_s27 + $0xa80] sm:$0xff] %v806_v7  ;;  %v812_v10 = vld [vmem:[%s5492_s26 + $0x1500] sm:$0xff] }
  0xb8   : > { %809 = vst [vmem:[%s5497_s27 + $0xa88] sm:$0xff] %v808_v8  ;;  %811 = vst [vmem:[%s5497_s27 + $0xa90] sm:$0xff] %v810_v9  ;;  %v814_v11 = vld [vmem:[%s5492_s26 + $0x1508] sm:$0xff]  ;;  %v816_v12 = vld [vmem:[%s5492_s26 + $0x1510] sm:$0xff] }
  0xb9   : > { %813 = vst [vmem:[%s5497_s27 + $0xa98] sm:$0xff] %v812_v10  ;;  %815 = vst [vmem:[%s5497_s27 + $0xaa0] sm:$0xff] %v814_v11  ;;  %v818_v13 = vld [vmem:[%s5492_s26 + $0x1518] sm:$0xff]  ;;  %v820_v14 = vld [vmem:[%s5492_s26 + $0x1520] sm:$0xff] }
  0xba   : > { %817 = vst [vmem:[%s5497_s27 + $0xaa8] sm:$0xff] %v816_v12  ;;  %v822_v15 = vld [vmem:[%s5492_s26 + $0x1528] sm:$0xff]  ;;  %819 = vst [vmem:[%s5497_s27 + $0xab0] sm:$0xff] %v818_v13  ;;  %v824_v16 = vld [vmem:[%s5492_s26 + $0x1530] sm:$0xff] }
  0xbb   : > { %821 = vst [vmem:[%s5497_s27 + $0xab8] sm:$0xff] %v820_v14  ;;  %823 = vst [vmem:[%s5497_s27 + $0xac0] sm:$0xff] %v822_v15  ;;  %v826_v17 = vld [vmem:[%s5492_s26 + $0x1538] sm:$0xff]  ;;  %v828_v18 = vld [vmem:[%s5492_s26 + $0x1540] sm:$0xff] }
  0xbc   : > { %825 = vst [vmem:[%s5497_s27 + $0xac8] sm:$0xff] %v824_v16  ;;  %827 = vst [vmem:[%s5497_s27 + $0xad0] sm:$0xff] %v826_v17  ;;  %v830_v19 = vld [vmem:[%s5492_s26 + $0x1548] sm:$0xff]  ;;  %v832_v20 = vld [vmem:[%s5492_s26 + $0x1550] sm:$0xff] }
  0xbd   : > { %829 = vst [vmem:[%s5497_s27 + $0xad8] sm:$0xff] %v828_v18  ;;  %v834_v21 = vld [vmem:[%s5492_s26 + $0x1558] sm:$0xff]  ;;  %831 = vst [vmem:[%s5497_s27 + $0xae0] sm:$0xff] %v830_v19  ;;  %v4386_v22 = vld [vmem:[%s5492_s26 + $0x90] sm:$0xf] }
  0xbe   : > { %833 = vst [vmem:[%s5497_s27 + $0xae8] sm:$0xff] %v832_v20  ;;  %835 = vst [vmem:[%s5497_s27 + $0xaf0] sm:$0xff] %v834_v21  ;;  %v4388_v23 = vld [vmem:[%s5492_s26 + $0x1b8] sm:$0xf]  ;;  %v4390_v24 = vld [vmem:[%s5492_s26 + $0x2e0] sm:$0xf] }
  0xbf   : > { %4387 = vst [vmem:[%s5497_s27 + $0x90] sm:$0xf] %v4386_v22  ;;  %4389 = vst [vmem:[%s5497_s27 + $0x124] sm:$0xf] %v4388_v23  ;;  %v4392_v25 = vld [vmem:[%s5492_s26 + $0x408] sm:$0xf] }
  0xc0   : > { %4391 = vst [vmem:[%s5497_s27 + $0x1b8] sm:$0xf] %v4390_v24  ;;  %v4394_v26 = vld [vmem:[%s5492_s26 + $0x530] sm:$0xf]  ;;  %v4396_v27 = vld [vmem:[%s5492_s26 + $0x658] sm:$0xf] }
  0xc1   : > { %4393 = vst [vmem:[%s5497_s27 + $0x24c] sm:$0xf] %v4392_v25  ;;  %4395 = vst [vmem:[%s5497_s27 + $0x2e0] sm:$0xf] %v4394_v26  ;;  %v4398_v28 = vld [vmem:[%s5492_s26 + $0x780] sm:$0xf] }
  0xc2   : > { %4397 = vst [vmem:[%s5497_s27 + $0x374] sm:$0xf] %v4396_v27  ;;  %v4400_v29 = vld [vmem:[%s5492_s26 + $0x8a8] sm:$0xf]  ;;  %v4402_v30 = vld [vmem:[%s5492_s26 + $0x9d0] sm:$0xf] }
  0xc3   : > { %4399 = vst [vmem:[%s5497_s27 + $0x408] sm:$0xf] %v4398_v28  ;;  %4401 = vst [vmem:[%s5497_s27 + $0x49c] sm:$0xf] %v4400_v29  ;;  %v4404_v31 = vld [vmem:[%s5492_s26 + $0xaf8] sm:$0xf] }
  0xc4   : > { %4403 = vst [vmem:[%s5497_s27 + $0x530] sm:$0xf] %v4402_v30  ;;  %v4406_v32 = vld [vmem:[%s5492_s26 + $0xc20] sm:$0xf]  ;;  %v4408_v33 = vld [vmem:[%s5492_s26 + $0xd48] sm:$0xf] }
  0xc5   : > { %4405 = vst [vmem:[%s5497_s27 + $0x5c4] sm:$0xf] %v4404_v31  ;;  %4407 = vst [vmem:[%s5497_s27 + $0x658] sm:$0xf] %v4406_v32  ;;  %v4410_v34 = vld [vmem:[%s5492_s26 + $0xe70] sm:$0xf] }
  0xc6   : > { %4409 = vst [vmem:[%s5497_s27 + $0x6ec] sm:$0xf] %v4408_v33  ;;  %v4412_v35 = vld [vmem:[%s5492_s26 + $0xf98] sm:$0xf]  ;;  %v4414_v36 = vld [vmem:[%s5492_s26 + $0x10c0] sm:$0xf] }
  0xc7   : > { %4411 = vst [vmem:[%s5497_s27 + $0x780] sm:$0xf] %v4410_v34  ;;  %4413 = vst [vmem:[%s5497_s27 + $0x814] sm:$0xf] %v4412_v35  ;;  %v4416_v37 = vld [vmem:[%s5492_s26 + $0x11e8] sm:$0xf] }
  0xc8   : > { %4415 = vst [vmem:[%s5497_s27 + $0x8a8] sm:$0xf] %v4414_v36  ;;  %v4418_v38 = vld [vmem:[%s5492_s26 + $0x1310] sm:$0xf]  ;;  %v4420_v39 = vld [vmem:[%s5492_s26 + $0x1438] sm:$0xf] }
  0xc9   : > { %4417 = vst [vmem:[%s5497_s27 + $0x93c] sm:$0xf] %v4416_v37  ;;  %4419 = vst [vmem:[%s5497_s27 + $0x9d0] sm:$0xf] %v4418_v38  ;;  %v4422_v40 = vld [vmem:[%s5492_s26 + $0x1560] sm:$0xf] }
  0xca   : > { %4421 = vst [vmem:[%s5497_s27 + $0xa64] sm:$0xf] %v4420_v39  ;;  %4423 = vst [vmem:[%s5497_s27 + $0xaf8] sm:$0xf] %v4422_v40 }
  0xcb PF: > { %p4424_p7 = scmp.ge.s32.totalorder %s5429_s14, 1  ;;  %p886_p8 = scmp.lt.s32.totalorder %s5429_s14, 3 }
  0xcd   : > { %p887_p9 = pnand %p4424_p7, %p886_p8 }
  0xce   : > { %s893_s28 = sand.u32 (!%p887_p9), 1, %s5421_s12  }
  0xcf   : > { %890 = sbr.rel (%p887_p9) target bundleno = 825 (0x339), region = 54 }
  0xd0   : > { %s4840_s4 = smul.u32 (!%p887_p9), 2812, %s893_s28 }
  0xd1   : > { %s4841_s23 = smul.u32 (!%p887_p9), 592, %s893_s28 }
  0xd2   : > { %s6239_s9 = scalar_lea.vmem (!%p887_p9), [#allocation2], %s4840_s4 }
  0xd3   : > { %s6543_s12 = scalar_lea.vmem (!%p887_p9), [#allocation3], %s4841_s23 }
  0xd4   : > { %v6224_v41 = vld [vmem:[%s7037_s0 + $0x4] ss:$8 sps:$4 sm:$0xff]   ;;  %vm3069_vm0 = vcmask 179200   ;;  %v5431_v43 = vmov 0   ;;  %v4879_v52 = vld [vmem:[%s6239_s9 + $0x4a0] ss:$148 sps:$4 sm:$0xff]  }
  0xd5   : > { %v1281_v42 = vld [vmem:[%s7039_s2] sm:$0xff]  ;;  %4798 = vmatprep.mubr.msk.bf16.mxu0 %vm3069_vm0, %v6224_v41  ;;  %4800 = vmatprep.mubr.msk.bf16.mxu1 %vm3069_vm0, %v6224_v41  ;;  %v1282_v44 = vld [vmem:[%s7039_s2 + $0x8] sm:$0xff]  ;;  %vm3073_vm1 = vcmask 1042432   ;;  %s4838_s28 = smul.u32 (%p5482_p5), 296, %s4381_s15 }
  0xd6   : > { %4867 = vset.pattern.permute.xlu0 %v5431_v43  ;;  %v4868_v45 = vld [vmem:[%s6239_s9 + $0x81c] ss:$148 sps:$4 sm:$0xff]   ;;  %v4870_v46 = vld [vmem:[%s6239_s9 + $0x818] ss:$148 sps:$4 sm:$0xff]   ;;  %v4871_v47 = vld [vmem:[%s6239_s9 + $0x6f4] ss:$148 sps:$4 sm:$0xff]  }
  0xd7   : > { %1285 = vperm.xlu0 %4867, %v1281_v42   ;;  %3185 = vmatprep.subr.bf16.mxu0 %v4868_v45  ;;  %v4873_v48 = vld [vmem:[%s6239_s9 + $0x6f0] ss:$148 sps:$4 sm:$0xff]   ;;  %v4874_v49 = vld [vmem:[%s6239_s9 + $0x5cc] ss:$148 sps:$4 sm:$0xff]   ;;  %v4876_v50 = vld [vmem:[%s6239_s9 + $0x5c8] ss:$148 sps:$4 sm:$0xff]   ;;  %s6883_s29 = scalar_lea.vmem (%p5482_p5), %s7040_s3, %s4838_s28 }
  0xd8   : > { %3186 = vmatpush1.bf16.msra.mxu0 %v4870_v46  ;;  %v4877_v51 = vld [vmem:[%s6239_s9 + $0x4a4] ss:$148 sps:$4 sm:$0xff]   ;;  %v4880_v53 = vld [vmem:[%s6239_s9 + $0x37c] ss:$148 sps:$4 sm:$0xff]   ;;  %v4896_v55 = vld [vmem:[%s6239_s9 + $0x820] ss:$148 sps:$4 sm:$0xff]  }
  0xd9   : > { %3187 = vmatprep.subr.bf16.mxu0 %v4871_v47  ;;  %v4893_v54 = vld [vmem:[%s6239_s9 + $0x824] ss:$148 sps:$4 sm:$0xff]   ;;  %v4899_v57 = vld [vmem:[%s6239_s9 + $0x6fc] ss:$148 sps:$4 sm:$0xff]   ;;  %v4906_v59 = vld [vmem:[%s6239_s9 + $0x5d4] ss:$148 sps:$4 sm:$0xff]  }
  0xda   : > { %3228 = vmatprep.subr.bf16.mxu1 %v4893_v54  ;;  %v4882_v56 = vld [vmem:[%s6239_s9 + $0x378] ss:$148 sps:$4 sm:$0xff]   ;;  %v4883_v60 = vld [vmem:[%s6239_s9 + $0x254] ss:$148 sps:$4 sm:$0xff]   ;;  %v4911_v61 = vld [vmem:[%s6239_s9 + $0x5d0] ss:$148 sps:$4 sm:$0xff]  }
  0xdb   : > { %1290 = vperm.xlu0 %4867, %v1282_v44   ;;  %3229 = vmatpush1.bf16.msra.mxu1 %v4896_v55  ;;  %v4902_v58 = vld [vmem:[%s6239_s9 + $0x6f8] ss:$148 sps:$4 sm:$0xff]   ;;  %v4885_v62 = vld [vmem:[%s6239_s9 + $0x250] ss:$148 sps:$4 sm:$0xff]   ;;  %v4888_v1 = vld [vmem:[%s6239_s9 + $0x128] ss:$148 sps:$4 sm:$0xff]  }
  0xdc   : > { %3188 = vmatpush1.bf16.msra.mxu0 %v4873_v48  ;;  %3230 = vmatprep.subr.bf16.mxu1 %v4899_v57  ;;  %v4912_v63 = vld [vmem:[%s6239_s9 + $0x4ac] ss:$148 sps:$4 sm:$0xff]   ;;  %v4917_v2 = vld [vmem:[%s6239_s9 + $0x4a8] ss:$148 sps:$4 sm:$0xff]   ;;  %v4918_v3 = vld [vmem:[%s6239_s9 + $0x384] ss:$148 sps:$4 sm:$0xff]  }
  0xdd   : > { %3189 = vmatprep.subr.bf16.mxu0 %v4874_v49  ;;  %v4886_v0 = vld [vmem:[%s6239_s9 + $0x12c] ss:$148 sps:$4 sm:$0xff]   ;;  %v4889_v4 = vld [vmem:[%s6239_s9 + $0x4] ss:$148 sps:$4 sm:$0xff]   ;;  %v4924_v8 = vld [vmem:[%s6239_s9 + $0x25c] ss:$148 sps:$4 sm:$0xff]  }
  0xde   : > { %v1262_v5 = vld [vmem:[%s6239_s9 + $0xa68] sm:$0x77]  ;;  %v4923_v6 = vld [vmem:[%s6239_s9 + $0x380] ss:$148 sps:$4 sm:$0xff]   ;;  %v4897_v14 = vld [vmem:[%s6239_s9 + $0x944] ss:$148 sps:$4 sm:$0xff]  }
  0xdf   : > { %3231 = vmatpush1.bf16.msra.mxu1 %v4902_v58  ;;  %v4891_v7 = vld [vmem:[%s6239_s9] ss:$148 sps:$4 sm:$0xff]   ;;  %v4761_v9 = vcombine.high %v1262_v5, %v1262_v5  ;;  %v4760_v10 = vcombine.low %v1262_v5, %v1262_v5  ;;  %v4929_v11 = vld [vmem:[%s6239_s9 + $0x258] ss:$148 sps:$4 sm:$0xff]   ;;  %v4935_v15 = vld [vmem:[%s6239_s9 + $0x130] ss:$148 sps:$4 sm:$0xff]  }
  0xe0   : > { %3190 = vmatpush1.bf16.msra.mxu0 %v4876_v50  ;;  %3232 = vmatprep.subr.bf16.mxu1 %v4906_v59  ;;  %v4930_v12 = vld [vmem:[%s6239_s9 + $0x134] ss:$148 sps:$4 sm:$0xff]   ;;  %v4936_v17 = vld [vmem:[%s6239_s9 + $0xc] ss:$148 sps:$4 sm:$0xff]   ;;  %v4916_v25 = vld [vmem:[%s6239_s9 + $0x704] ss:$148 sps:$4 sm:$0xff]  }
  0xe1   : > { %3191 = vmatprep.subr.bf16.mxu0 %v4877_v51  ;;  %v3075_v13 = vsel %vm3073_vm1, %v4760_v10, 0  ;;  %v4901_v16 = vld [vmem:[%s6239_s9 + $0x940] ss:$148 sps:$4 sm:$0xff]   ;;  %v4941_v21 = vld [vmem:[%s6239_s9 + $0x8] ss:$148 sps:$4 sm:$0xff]  }
  0xe2   : > { %v4910_v18 = vld [vmem:[%s6239_s9 + $0x82c] ss:$148 sps:$4 sm:$0xff]   ;;  %v1263_v19 = vld [vmem:[%s6239_s9 + $0xa70] sm:$0x77]  ;;  %v4908_v22 = vld [vmem:[%s6239_s9 + $0x828] ss:$148 sps:$4 sm:$0xff]  }
  0xe3   : > { %3233 = vmatpush1.bf16.msra.mxu1 %v4911_v61  ;;  %v6282_v20 = vld [vmem:[%s7037_s0] ss:$8 sps:$4 sm:$0xff]   ;;  %v4763_v23 = vcombine.high %v1263_v19, %v1263_v19  ;;  %v4762_v24 = vcombine.low %v1263_v19, %v1263_v19  ;;  %v4922_v29 = vld [vmem:[%s6239_s9 + $0x5dc] ss:$148 sps:$4 sm:$0xff]  }
  0xe4   : > { %3192 = vmatpush1.bf16.msra.mxu0 %v4879_v52  ;;  %3234 = vmatprep.subr.bf16.mxu1 %v4912_v63  ;;  %v4914_v26 = vld [vmem:[%s6239_s9 + $0x700] ss:$148 sps:$4 sm:$0xff]   ;;  %v4952_v30 = vld [vmem:[%s6239_s9 + $0x948] ss:$148 sps:$4 sm:$0xff]   ;;  %v4920_v31 = vld [vmem:[%s6239_s9 + $0x5d8] ss:$148 sps:$4 sm:$0xff]  }
  0xe5   : > { %3193 = vmatprep.subr.bf16.mxu0 %v4880_v53  ;;  %v3081_v27 = vsel %vm3073_vm1, %v4762_v24, 0  ;;  %v4947_v28 = vld [vmem:[%s6239_s9 + $0x94c] ss:$148 sps:$4 sm:$0xff]   ;;  %v4956_v32 = vld [vmem:[%s6239_s9 + $0x834] ss:$148 sps:$4 sm:$0xff]  }
  0xe6   : > { %v4928_v33 = vld [vmem:[%s6239_s9 + $0x4b4] ss:$148 sps:$4 sm:$0xff]   ;;  %v4954_v34 = vld [vmem:[%s6239_s9 + $0x830] ss:$148 sps:$4 sm:$0xff]   ;;  %v4963_v36 = vld [vmem:[%s6239_s9 + $0x70c] ss:$148 sps:$4 sm:$0xff]  }
  0xe7   : > { %3235 = vmatpush1.bf16.msra.mxu1 %v4917_v2  ;;  %v4926_v35 = vld [vmem:[%s6239_s9 + $0x4b0] ss:$148 sps:$4 sm:$0xff]   ;;  %v4934_v37 = vld [vmem:[%s6239_s9 + $0x38c] ss:$148 sps:$4 sm:$0xff]   ;;  %v4961_v38 = vld [vmem:[%s6239_s9 + $0x708] ss:$148 sps:$4 sm:$0xff]  }
  0xe8   : > { %3194 = vmatpush1.bf16.msra.mxu0 %v4882_v56  ;;  %3236 = vmatprep.subr.bf16.mxu1 %v4918_v3  ;;  %v4932_v39 = vld [vmem:[%s6239_s9 + $0x388] ss:$148 sps:$4 sm:$0xff]   ;;  %v4966_v40 = vld [vmem:[%s6239_s9 + $0x5e4] ss:$148 sps:$4 sm:$0xff]   ;;  %v4964_v44 = vld [vmem:[%s6239_s9 + $0x5e0] ss:$148 sps:$4 sm:$0xff]  }
  0xe9   : > { %3195 = vmatprep.subr.bf16.mxu0 %v4883_v60  ;;  %v4940_v42 = vld [vmem:[%s6239_s9 + $0x264] ss:$148 sps:$4 sm:$0xff]   ;;  %v4938_v45 = vld [vmem:[%s6239_s9 + $0x260] ss:$148 sps:$4 sm:$0xff]   ;;  %v4972_v46 = vld [vmem:[%s6239_s9 + $0x4bc] ss:$148 sps:$4 sm:$0xff]  }
  0xea   : > { %v4945_v47 = vld [vmem:[%s6239_s9 + $0x13c] ss:$148 sps:$4 sm:$0xff]   ;;  %v4943_v48 = vld [vmem:[%s6239_s9 + $0x138] ss:$148 sps:$4 sm:$0xff]   ;;  %v4978_v50 = vld [vmem:[%s6239_s9 + $0x394] ss:$148 sps:$4 sm:$0xff]  }
  0xeb   : > { %3237 = vmatpush1.bf16.msra.mxu1 %v4923_v6  ;;  %v4970_v49 = vld [vmem:[%s6239_s9 + $0x4b8] ss:$148 sps:$4 sm:$0xff]   ;;  %v4951_v51 = vld [vmem:[%s6239_s9 + $0x14] ss:$148 sps:$4 sm:$0xff]   ;;  %v4949_v53 = vld [vmem:[%s6239_s9 + $0x10] ss:$148 sps:$4 sm:$0xff]  }
  0xec   : > { %3196 = vmatpush1.bf16.msra.mxu0 %v4885_v62  ;;  %3238 = vmatprep.subr.bf16.mxu1 %v4924_v8  ;;  %v1264_v52 = vld [vmem:[%s6239_s9 + $0xa78] sm:$0x77]  ;;  %v4976_v54 = vld [vmem:[%s6239_s9 + $0x390] ss:$148 sps:$4 sm:$0xff]   ;;  %v4984_v55 = vld [vmem:[%s6239_s9 + $0x26c] ss:$148 sps:$4 sm:$0xff]  }
  0xed   : > { %3197 = vmatprep.subr.bf16.mxu0 %v4886_v0  ;;  %v4765_v56 = vcombine.high %v1264_v52, %v1264_v52  ;;  %v4764_v57 = vcombine.low %v1264_v52, %v1264_v52  ;;  %v4982_v58 = vld [vmem:[%s6239_s9 + $0x268] ss:$148 sps:$4 sm:$0xff]   ;;  %v4990_v59 = vld [vmem:[%s6239_s9 + $0x144] ss:$148 sps:$4 sm:$0xff]   ;;  %v4988_v0 = vld [vmem:[%s6239_s9 + $0x140] ss:$148 sps:$4 sm:$0xff]  }
  0xee   : > { %v4960_v61 = vld [vmem:[%s6239_s9 + $0x954] ss:$148 sps:$4 sm:$0xff]   ;;  %v4958_v62 = vld [vmem:[%s6239_s9 + $0x950] ss:$148 sps:$4 sm:$0xff]   ;;  %v4994_v3 = vld [vmem:[%s6239_s9 + $0x18] ss:$148 sps:$4 sm:$0xff]  }
  0xef   : > { %3239 = vmatpush1.bf16.msra.mxu1 %v4929_v11  ;;  %v3087_v60 = vsel %vm3073_vm1, %v4764_v57, 0  ;;  %v4969_v63 = vld [vmem:[%s6239_s9 + $0x83c] ss:$148 sps:$4 sm:$0xff]   ;;  %v1265_v2 = vld [vmem:[%s6239_s9 + $0xa80] sm:$0x77] }
  0xf0   : > { %3198 = vmatpush1.bf16.msra.mxu0 %v4888_v1  ;;  %3240 = vmatprep.subr.bf16.mxu1 %v4930_v12  ;;  %v4996_v1 = vld [vmem:[%s6239_s9 + $0x1c] ss:$148 sps:$4 sm:$0xff]   ;;  %v4767_v5 = vcombine.high %v1265_v2, %v1265_v2  ;;  %v4766_v6 = vcombine.low %v1265_v2, %v1265_v2  ;;  %v4981_v11 = vld [vmem:[%s6239_s9 + $0x5ec] ss:$148 sps:$4 sm:$0xff]   ;;  %v4999_v24 = vld [vmem:[%s6239_s9 + $0x274] ss:$148 sps:$4 sm:$0xff]  }
  0xf1   : > { %3199 = vmatprep.subr.bf16.mxu0 %v4889_v4  ;;  %v4967_v4 = vld [vmem:[%s6239_s9 + $0x838] ss:$148 sps:$4 sm:$0xff]   ;;  %v4973_v8 = vld [vmem:[%s6239_s9 + $0x710] ss:$148 sps:$4 sm:$0xff]  }
  0xf2   : > { %v5007_v10 = vld [vmem:[%s6239_s9 + $0x95c] ss:$148 sps:$4 sm:$0xff]   ;;  %v5005_v12 = vld [vmem:[%s6239_s9 + $0x958] ss:$148 sps:$4 sm:$0xff]  }
  0xf3   : > { %3241 = vmatpush1.bf16.msra.mxu1 %v4935_v15  ;;  %v4987_v15 = vld [vmem:[%s6239_s9 + $0x4c4] ss:$148 sps:$4 sm:$0xff]   ;;  %v4993_v19 = vld [vmem:[%s6239_s9 + $0x39c] ss:$148 sps:$4 sm:$0xff]   ;;  %v5065_v57 = vld [vmem:[%s6239_s9 + $0x96c] ss:$148 sps:$4 sm:$0xff]  }
  0xf4   : > { %3200 = vmatpush1.bf16.msra.mxu0 %v4891_v7  ;;  %3242 = vmatprep.subr.bf16.mxu1 %v4936_v17  ;;  %v4975_v7 = vld [vmem:[%s6239_s9 + $0x714] ss:$148 sps:$4 sm:$0xff]   ;;  %v5051_v2 = vld [vmem:[%s6239_s9 + $0x3ac] ss:$148 sps:$4 sm:$0xff]  }
  0xf5   : > { %4797 = vmatprep.subr.msk.bf16.mxu0 %vm3073_vm1, %v4761_v9  ;;  %v3093_v9 = vsel %vm3073_vm1, %v4766_v6, 0  ;;  %v4985_v17 = vld [vmem:[%s6239_s9 + $0x4c0] ss:$148 sps:$4 sm:$0xff]   ;;  %v5057_v6 = vld [vmem:[%s6239_s9 + $0x284] ss:$148 sps:$4 sm:$0xff]  }
  0xf7   : > { %3243 = vmatpush1.bf16.msra.mxu1 %v4941_v21  ;;  %v5019_v21 = vld [vmem:[%s6239_s9 + $0x718] ss:$148 sps:$4 sm:$0xff]  }
  0xf8   : > { %3214 = vmatpush2.bf16.msra.mxu0 %v3075_v13  ;;  %4799 = vmatprep.subr.msk.bf16.mxu1 %vm3073_vm1, %v4763_v23  ;;  %v4979_v13 = vld [vmem:[%s6239_s9 + $0x5e8] ss:$148 sps:$4 sm:$0xff]  }
  0xf9   : > { %3215 = vmatprep.subr.bf16.mxu0 %v4897_v14  ;;  %v5014_v14 = vld [vmem:[%s6239_s9 + $0x844] ss:$148 sps:$4 sm:$0xff]   ;;  %v5024_v23 = vld [vmem:[%s6239_s9 + $0x5f4] ss:$148 sps:$4 sm:$0xff]  }
  0xfb   : > { %3257 = vmatpush2.bf16.msra.mxu1 %v3081_v27  ;;  %v5030_v27 = vld [vmem:[%s6239_s9 + $0x4cc] ss:$148 sps:$4 sm:$0xff]  }
  0xfc   : > { %3216 = vmatpush2.bf16.msra.mxu0 %v4901_v16  ;;  %3258 = vmatprep.subr.bf16.mxu1 %v4947_v28  ;;  %v5012_v16 = vld [vmem:[%s6239_s9 + $0x840] ss:$148 sps:$4 sm:$0xff]  }
  0xfd   : > { %3271 = vmatprep.subr.bf16.mxu0 %v4910_v18  ;;  %v5021_v18 = vld [vmem:[%s6239_s9 + $0x71c] ss:$148 sps:$4 sm:$0xff]   ;;  %v5003_v28 = vld [vmem:[%s6239_s9 + $0x14c] ss:$148 sps:$4 sm:$0xff]  }
  0xff   : > { %3218 = vmatmul.mubr.bf16.vlgmr.msra.gmra.mxu0 %v6282_v20  ;;  %3259 = vmatpush2.bf16.msra.mxu1 %v4952_v30  ;;  %v5001_v30 = vld [vmem:[%s6239_s9 + $0x148] ss:$148 sps:$4 sm:$0xff]  }
 0x100   : > { %3272 = vmatpush1.bf16.msra.mxu0 %v4908_v22  ;;  %4802 = vmatprep.mubr.msk.bf16.mxu0 %vm3069_vm0, %v6224_v41  ;;  %v4991_v22 = vld [vmem:[%s6239_s9 + $0x398] ss:$148 sps:$4 sm:$0xff]  }
 0x101   : > { %3273 = vmatprep.subr.bf16.mxu0 %v4916_v25  ;;  %3314 = vmatprep.subr.bf16.mxu1 %v4956_v32  ;;  %v5022_v25 = vld [vmem:[%s6239_s9 + $0x5f0] ss:$148 sps:$4 sm:$0xff]  }
 0x102   : > { %3261 = vmatmul.mubr.bf16.vlgmr.msra.gmra.mxu1 %v6282_v20  ;;  %v5010_v32 = vld [vmem:[%s6239_s9 + $0x24] ss:$148 sps:$4 sm:$0xff]  }
 0x103   : > { %3315 = vmatpush1.bf16.msra.mxu1 %v4954_v34  ;;  %4804 = vmatprep.mubr.msk.bf16.mxu1 %vm3069_vm0, %v6224_v41  ;;  %v5034_v34 = vld [vmem:[%s6239_s9 + $0x3a0] ss:$148 sps:$4 sm:$0xff]  }
 0x104   : > { %3274 = vmatpush1.bf16.msra.mxu0 %v4914_v26  ;;  %3316 = vmatprep.subr.bf16.mxu1 %v4963_v36  ;;  %v4997_v26 = vld [vmem:[%s6239_s9 + $0x270] ss:$148 sps:$4 sm:$0xff]  }
 0x105   : > { %3275 = vmatprep.subr.bf16.mxu0 %v4922_v29  ;;  %v5028_v29 = vld [vmem:[%s6239_s9 + $0x4c8] ss:$148 sps:$4 sm:$0xff]  }
 0x106   : > { %v5042_v36 = vld [vmem:[%s6239_s9 + $0x27c] ss:$148 sps:$4 sm:$0xff]  }
 0x107   : > { %3317 = vmatpush1.bf16.msra.mxu1 %v4961_v38 }
 0x108   : > { %3276 = vmatpush1.bf16.msra.mxu0 %v4920_v31  ;;  %3318 = vmatprep.subr.bf16.mxu1 %v4966_v40  ;;  %v5036_v31 = vld [vmem:[%s6239_s9 + $0x3a4] ss:$148 sps:$4 sm:$0xff]   ;;  %v5048_v40 = vld [vmem:[%s6239_s9 + $0x154] ss:$148 sps:$4 sm:$0xff]  }
 0x109   : > { %3277 = vmatprep.subr.bf16.mxu0 %v4928_v33  ;;  %v1266_v33 = vld [vmem:[%s6239_s9 + $0xa88] sm:$0x77] }
 0x10a   : > { %v4768_v38 = vcombine.low %v1266_v33, %v1266_v33 }
 0x10b   : > { %3319 = vmatpush1.bf16.msra.mxu1 %v4964_v44  ;;  %v5018_v44 = vld [vmem:[%s6239_s9 + $0x964] ss:$148 sps:$4 sm:$0xff]  }
 0x10c   : > { %3278 = vmatpush1.bf16.msra.mxu0 %v4926_v35  ;;  %3320 = vmatprep.subr.bf16.mxu1 %v4972_v46  ;;  %v5008_v35 = vld [vmem:[%s6239_s9 + $0x20] ss:$148 sps:$4 sm:$0xff]  }
 0x10d   : > { %3279 = vmatprep.subr.bf16.mxu0 %v4934_v37  ;;  %v4769_v37 = vcombine.high %v1266_v33, %v1266_v33  ;;  %v5027_v46 = vld [vmem:[%s6239_s9 + $0x84c] ss:$148 sps:$4 sm:$0xff]  }
 0x10f   : > { %3321 = vmatpush1.bf16.msra.mxu1 %v4970_v49  ;;  %v1267_v49 = vld [vmem:[%s6239_s9 + $0xa90] sm:$0x77] }
 0x110   : > { %3280 = vmatpush1.bf16.msra.mxu0 %v4932_v39  ;;  %3322 = vmatprep.subr.bf16.mxu1 %v4978_v50  ;;  %v5040_v39 = vld [vmem:[%s6239_s9 + $0x278] ss:$148 sps:$4 sm:$0xff]   ;;  %v5052_v50 = vld [vmem:[%s6239_s9 + $0x28] ss:$148 sps:$4 sm:$0xff]   ;;  %v4771_v52 = vcombine.high %v1267_v49, %v1267_v49 }
 0x111   : > { %3281 = vmatprep.subr.bf16.mxu0 %v4940_v42  ;;  %v3099_v42 = vsel %vm3073_vm1, %v4768_v38, 0  ;;  %v5097_v38 = vld [vmem:[%s6239_s9 + $0x60c] ss:$148 sps:$4 sm:$0xff]  }
 0x113   : > { %3323 = vmatpush1.bf16.msra.mxu1 %v4976_v54  ;;  %v5033_v54 = vld [vmem:[%s6239_s9 + $0x724] ss:$148 sps:$4 sm:$0xff]  }
 0x114   : > { %3282 = vmatpush1.bf16.msra.mxu0 %v4938_v45  ;;  %3324 = vmatprep.subr.bf16.mxu1 %v4984_v55  ;;  %v5016_v45 = vld [vmem:[%s6239_s9 + $0x960] ss:$148 sps:$4 sm:$0xff]  }
 0x115   : > { %3283 = vmatprep.subr.bf16.mxu0 %v4945_v47  ;;  %v5046_v47 = vld [vmem:[%s6239_s9 + $0x150] ss:$148 sps:$4 sm:$0xff]   ;;  %v5031_v55 = vld [vmem:[%s6239_s9 + $0x720] ss:$148 sps:$4 sm:$0xff]  }
 0x117   : > { %3325 = vmatpush1.bf16.msra.mxu1 %v4982_v58  ;;  %v5039_v58 = vld [vmem:[%s6239_s9 + $0x5fc] ss:$148 sps:$4 sm:$0xff]  }
 0x118   : > { %3284 = vmatpush1.bf16.msra.mxu0 %v4943_v48  ;;  %3326 = vmatprep.subr.bf16.mxu1 %v4990_v59  ;;  %v5054_v48 = vld [vmem:[%s6239_s9 + $0x2c] ss:$148 sps:$4 sm:$0xff]  }
 0x119   : > { %3285 = vmatprep.subr.bf16.mxu0 %v4951_v51  ;;  %v5025_v51 = vld [vmem:[%s6239_s9 + $0x848] ss:$148 sps:$4 sm:$0xff]   ;;  %v5037_v59 = vld [vmem:[%s6239_s9 + $0x5f8] ss:$148 sps:$4 sm:$0xff]  }
 0x11b   : > { %3327 = vmatpush1.bf16.msra.mxu1 %v4988_v0  ;;  %v5070_v0 = vld [vmem:[%s6239_s9 + $0x850] ss:$148 sps:$4 sm:$0xff]  }
 0x11c   : > { %3286 = vmatpush1.bf16.msra.mxu0 %v4949_v53  ;;  %3328 = vmatprep.subr.bf16.mxu1 %v4996_v1  ;;  %v4770_v53 = vcombine.low %v1267_v49, %v1267_v49  ;;  %v5079_v1 = vld [vmem:[%s6239_s9 + $0x72c] ss:$148 sps:$4 sm:$0xff]   ;;  %v5109_v49 = vld [vmem:[%s6239_s9 + $0x3bc] ss:$148 sps:$4 sm:$0xff]  }
 0x11d   : > { %4801 = vmatprep.subr.msk.bf16.mxu0 %vm3073_vm1, %v4765_v56 }
 0x11e   : > { %v3105_v56 = vsel %vm3073_vm1, %v4770_v53, 0  ;;  %v5115_v53 = vld [vmem:[%s6239_s9 + $0x294] ss:$148 sps:$4 sm:$0xff]  }
 0x11f   : > { %3329 = vmatpush1.bf16.msra.mxu1 %v4994_v3  ;;  %v5077_v3 = vld [vmem:[%s6239_s9 + $0x728] ss:$148 sps:$4 sm:$0xff]  }
 0x120   : > { %3300 = vmatpush2.bf16.msra.mxu0 %v3087_v60  ;;  %4803 = vmatprep.subr.msk.bf16.mxu1 %vm3073_vm1, %v4767_v5  ;;  %v5063_v60 = vld [vmem:[%s6239_s9 + $0x968] ss:$148 sps:$4 sm:$0xff]   ;;  %v5082_v5 = vld [vmem:[%s6239_s9 + $0x604] ss:$148 sps:$4 sm:$0xff]  }
 0x121   : > { %3301 = vmatprep.subr.bf16.mxu0 %v4960_v61  ;;  %v5072_v61 = vld [vmem:[%s6239_s9 + $0x854] ss:$148 sps:$4 sm:$0xff]  }
 0x123   : > { %3343 = vmatpush2.bf16.msra.mxu1 %v3093_v9  ;;  %v5088_v9 = vld [vmem:[%s6239_s9 + $0x4dc] ss:$148 sps:$4 sm:$0xff]  }
 0x124   : > { %3302 = vmatpush2.bf16.msra.mxu0 %v4958_v62  ;;  %3344 = vmatprep.subr.bf16.mxu1 %v5007_v10  ;;  %v5045_v62 = vld [vmem:[%s6239_s9 + $0x4d4] ss:$148 sps:$4 sm:$0xff]   ;;  %v5086_v10 = vld [vmem:[%s6239_s9 + $0x4d8] ss:$148 sps:$4 sm:$0xff]  }
 0x125   : > { %3357 = vmatprep.subr.bf16.mxu0 %v4969_v63  ;;  %v5043_v63 = vld [vmem:[%s6239_s9 + $0x4d0] ss:$148 sps:$4 sm:$0xff]  }
 0x127   : > { %3304 = vmatmul.mubr.bf16.vlgmr.msra.gmra.mxu0 %v6282_v20  ;;  %3345 = vmatpush2.bf16.msra.mxu1 %v5005_v12  ;;  %v5094_v12 = vld [vmem:[%s6239_s9 + $0x3b4] ss:$148 sps:$4 sm:$0xff]  }
 0x128   : > { %3358 = vmatpush1.bf16.msra.mxu0 %v4967_v4  ;;  %4806 = vmatprep.mubr.msk.bf16.mxu0 %vm3069_vm0, %v6224_v41  ;;  %v5049_v4 = vld [vmem:[%s6239_s9 + $0x3a8] ss:$148 sps:$4 sm:$0xff]  }
 0x129   : > { %3359 = vmatprep.subr.bf16.mxu0 %v4975_v7  ;;  %3400 = vmatprep.subr.bf16.mxu1 %v5014_v14  ;;  %v5080_v7 = vld [vmem:[%s6239_s9 + $0x600] ss:$148 sps:$4 sm:$0xff]   ;;  %v1268_v14 = vld [vmem:[%s6239_s9 + $0xa98] sm:$0x77] }
 0x12a   : > { %3347 = vmatmul.mubr.bf16.vlgmr.msra.gmra.mxu1 %v6282_v20 }
 0x12b   : > { %3401 = vmatpush1.bf16.msra.mxu1 %v5012_v16  ;;  %4808 = vmatprep.mubr.msk.bf16.mxu1 %vm3069_vm0, %v6224_v41  ;;  %v5066_v16 = vld [vmem:[%s6239_s9 + $0x30] ss:$148 sps:$4 sm:$0xff]  }
 0x12c   : > { %3360 = vmatpush1.bf16.msra.mxu0 %v4973_v8  ;;  %3402 = vmatprep.subr.bf16.mxu1 %v5021_v18  ;;  %v5055_v8 = vld [vmem:[%s6239_s9 + $0x280] ss:$148 sps:$4 sm:$0xff]   ;;  %v4773_v18 = vcombine.high %v1268_v14, %v1268_v14 }
 0x12d   : > { %3361 = vmatprep.subr.bf16.mxu0 %v4981_v11  ;;  %v5059_v11 = vld [vmem:[%s6239_s9 + $0x158] ss:$148 sps:$4 sm:$0xff]  }
 0x12f   : > { %3403 = vmatpush1.bf16.msra.mxu1 %v5019_v21  ;;  %v5098_v21 = vld [vmem:[%s6239_s9 + $0x288] ss:$148 sps:$4 sm:$0xff]  }
 0x130   : > { %3362 = vmatpush1.bf16.msra.mxu0 %v4979_v13  ;;  %3404 = vmatprep.subr.bf16.mxu1 %v5024_v23  ;;  %v5068_v13 = vld [vmem:[%s6239_s9 + $0x34] ss:$148 sps:$4 sm:$0xff]  }
 0x131   : > { %3363 = vmatprep.subr.bf16.mxu0 %v4987_v15  ;;  %v5092_v15 = vld [vmem:[%s6239_s9 + $0x3b0] ss:$148 sps:$4 sm:$0xff]  }
 0x133   : > { %3405 = vmatpush1.bf16.msra.mxu1 %v5022_v25  ;;  %v5074_v25 = vld [vmem:[%s6239_s9 + $0x970] ss:$148 sps:$4 sm:$0xff]  }
 0x134   : > { %3364 = vmatpush1.bf16.msra.mxu0 %v4985_v17  ;;  %3406 = vmatprep.subr.bf16.mxu1 %v5030_v27  ;;  %v5100_v17 = vld [vmem:[%s6239_s9 + $0x28c] ss:$148 sps:$4 sm:$0xff]   ;;  %v5085_v27 = vld [vmem:[%s6239_s9 + $0x85c] ss:$148 sps:$4 sm:$0xff]  }
 0x135   : > { %3365 = vmatprep.subr.bf16.mxu0 %v4993_v19  ;;  %v4772_v19 = vcombine.low %v1268_v14, %v1268_v14 }
 0x137   : > { %3407 = vmatpush1.bf16.msra.mxu1 %v5028_v29  ;;  %v3111_v23 = vsel %vm3073_vm1, %v4772_v19, 0  ;;  %v1269_v29 = vld [vmem:[%s6239_s9 + $0xaa0] sm:$0x77] }
 0x138   : > { %3366 = vmatpush1.bf16.msra.mxu0 %v4991_v22  ;;  %3408 = vmatprep.subr.bf16.mxu1 %v5036_v31  ;;  %v5106_v22 = vld [vmem:[%s6239_s9 + $0x164] ss:$148 sps:$4 sm:$0xff]   ;;  %v4774_v33 = vcombine.low %v1269_v29, %v1269_v29 }
 0x139   : > { %3367 = vmatprep.subr.bf16.mxu0 %v4999_v24  ;;  %v5076_v24 = vld [vmem:[%s6239_s9 + $0x974] ss:$148 sps:$4 sm:$0xff]   ;;  %v5083_v31 = vld [vmem:[%s6239_s9 + $0x858] ss:$148 sps:$4 sm:$0xff]  }
 0x13b   : > { %3409 = vmatpush1.bf16.msra.mxu1 %v5034_v34  ;;  %v5091_v34 = vld [vmem:[%s6239_s9 + $0x734] ss:$148 sps:$4 sm:$0xff]  }
 0x13c   : > { %3368 = vmatpush1.bf16.msra.mxu0 %v4997_v26  ;;  %3410 = vmatprep.subr.bf16.mxu1 %v5042_v36  ;;  %v5104_v26 = vld [vmem:[%s6239_s9 + $0x160] ss:$148 sps:$4 sm:$0xff]   ;;  %v3117_v36 = vsel %vm3073_vm1, %v4774_v33, 0  ;;  %v5198_v33 = vld [vmem:[%s6239_s9 + $0x624] ss:$148 sps:$4 sm:$0xff]  }
 0x13d   : > { %3369 = vmatprep.subr.bf16.mxu0 %v5003_v28  ;;  %v5112_v28 = vld [vmem:[%s6239_s9 + $0x3c] ss:$148 sps:$4 sm:$0xff]  }
 0x13f   : > { %3411 = vmatpush1.bf16.msra.mxu1 %v5040_v39  ;;  %v6440_v39 = vld [vmem:[%s7037_s0 + $0x4] ss:$8 sps:$4 sm:$0xff]  }
 0x140   : > { %3370 = vmatpush1.bf16.msra.mxu0 %v5001_v30  ;;  %3412 = vmatprep.subr.bf16.mxu1 %v5048_v40  ;;  %v5110_v30 = vld [vmem:[%s6239_s9 + $0x38] ss:$148 sps:$4 sm:$0xff]   ;;  %v5095_v40 = vld [vmem:[%s6239_s9 + $0x608] ss:$148 sps:$4 sm:$0xff]  }
 0x141   : > { %3371 = vmatprep.subr.bf16.mxu0 %v5010_v32  ;;  %v4775_v32 = vcombine.high %v1269_v29, %v1269_v29  ;;  %v5195_v29 = vld [vmem:[%s6239_s9 + $0x74c] ss:$148 sps:$4 sm:$0xff]  }
 0x143   : > { %3413 = vmatpush1.bf16.msra.mxu1 %v5046_v47  ;;  %v5128_v47 = vld [vmem:[%s6239_s9 + $0x860] ss:$148 sps:$4 sm:$0xff]  }
 0x144   : > { %3372 = vmatpush1.bf16.msra.mxu0 %v5008_v35  ;;  %3414 = vmatprep.subr.bf16.mxu1 %v5054_v48  ;;  %v5089_v35 = vld [vmem:[%s6239_s9 + $0x730] ss:$148 sps:$4 sm:$0xff]  }
 0x145   : > { %4805 = vmatprep.subr.msk.bf16.mxu0 %vm3073_vm1, %v4769_v37  ;;  %v5123_v37 = vld [vmem:[%s6239_s9 + $0x97c] ss:$148 sps:$4 sm:$0xff]  }
 0x146   : > { %v5137_v48 = vld [vmem:[%s6239_s9 + $0x73c] ss:$148 sps:$4 sm:$0xff]  }
 0x147   : > { %3415 = vmatpush1.bf16.msra.mxu1 %v5052_v50  ;;  %v5107_v50 = vld [vmem:[%s6239_s9 + $0x3b8] ss:$148 sps:$4 sm:$0xff]  }
 0x148   : > { %3386 = vmatpush2.bf16.msra.mxu0 %v3099_v42  ;;  %4807 = vmatprep.subr.msk.bf16.mxu1 %vm3073_vm1, %v4771_v52  ;;  %v5121_v42 = vld [vmem:[%s6239_s9 + $0x978] ss:$148 sps:$4 sm:$0xff]   ;;  %v5140_v52 = vld [vmem:[%s6239_s9 + $0x614] ss:$148 sps:$4 sm:$0xff]  }
 0x149   : > { %3387 = vmatprep.subr.bf16.mxu0 %v5018_v44  ;;  %v5130_v44 = vld [vmem:[%s6239_s9 + $0x864] ss:$148 sps:$4 sm:$0xff]  }
 0x14b   : > { %3429 = vmatpush2.bf16.msra.mxu1 %v3105_v56  ;;  %v5119_v56 = vld [vmem:[%s6239_s9 + $0x16c] ss:$148 sps:$4 sm:$0xff]  }
 0x14c   : > { %3388 = vmatpush2.bf16.msra.mxu0 %v5016_v45  ;;  %3430 = vmatprep.subr.bf16.mxu1 %v5065_v57  ;;  %v5103_v45 = vld [vmem:[%s6239_s9 + $0x4e4] ss:$148 sps:$4 sm:$0xff]   ;;  %v5117_v57 = vld [vmem:[%s6239_s9 + $0x168] ss:$148 sps:$4 sm:$0xff]  }
 0x14d   : > { %3443 = vmatprep.subr.bf16.mxu0 %v5027_v46  ;;  %v5101_v46 = vld [vmem:[%s6239_s9 + $0x4e0] ss:$148 sps:$4 sm:$0xff]  }
 0x14f   : > { %3390 = vmatmul.mubr.bf16.vlgmr.msra.gmra.mxu0 %v6282_v20  ;;  %3431 = vmatpush2.bf16.msra.mxu1 %v5063_v60  ;;  %v1270_v60 = vld [vmem:[%s6239_s9 + $0xaa8] sm:$0x77] }
 0x150   : > { %3444 = vmatpush1.bf16.msra.mxu0 %v5025_v51  ;;  %4810 = vmatprep.mubr.msk.bf16.mxu0 %vm3069_vm0, %v6224_v41  ;;  %v5135_v51 = vld [vmem:[%s6239_s9 + $0x738] ss:$148 sps:$4 sm:$0xff]  }
 0x151   : > { %3445 = vmatprep.subr.bf16.mxu0 %v5033_v54  ;;  %3486 = vmatprep.subr.bf16.mxu1 %v5072_v61  ;;  %v5113_v54 = vld [vmem:[%s6239_s9 + $0x290] ss:$148 sps:$4 sm:$0xff]  }
 0x152   : > { %3433 = vmatmul.mubr.bf16.vlgmr.msra.gmra.mxu1 %v6282_v20  ;;  %v5152_v61 = vld [vmem:[%s6239_s9 + $0x3c4] ss:$148 sps:$4 sm:$0xff]  }
 0x153   : > { %3487 = vmatpush1.bf16.msra.mxu1 %v5070_v0  ;;  %4812 = vmatprep.mubr.msk.bf16.mxu1 %vm3069_vm0, %v6224_v41  ;;  %v5061_v41 = vld [vmem:[%s6239_s9 + $0x15c] ss:$148 sps:$4 sm:$0xff]  }
 0x154   : > { %3446 = vmatpush1.bf16.msra.mxu0 %v5031_v55  ;;  %3488 = vmatprep.subr.bf16.mxu1 %v5079_v1  ;;  %v5146_v55 = vld [vmem:[%s6239_s9 + $0x4ec] ss:$148 sps:$4 sm:$0xff]   ;;  %v5158_v0 = vld [vmem:[%s6239_s9 + $0x29c] ss:$148 sps:$4 sm:$0xff]   ;;  %v4777_v1 = vcombine.high %v1270_v60, %v1270_v60 }
 0x155   : > { %3447 = vmatprep.subr.bf16.mxu0 %v5039_v58  ;;  %v5126_v58 = vld [vmem:[%s6239_s9 + $0x44] ss:$148 sps:$4 sm:$0xff]  }
 0x157   : > { %3489 = vmatpush1.bf16.msra.mxu1 %v5077_v3  ;;  %v5156_v3 = vld [vmem:[%s6239_s9 + $0x298] ss:$148 sps:$4 sm:$0xff]  }
 0x158   : > { %3448 = vmatpush1.bf16.msra.mxu0 %v5037_v59  ;;  %3490 = vmatprep.subr.bf16.mxu1 %v5082_v5  ;;  %v5144_v59 = vld [vmem:[%s6239_s9 + $0x4e8] ss:$148 sps:$4 sm:$0xff]  }
 0x159   : > { %3449 = vmatprep.subr.bf16.mxu0 %v5045_v62  ;;  %v5150_v62 = vld [vmem:[%s6239_s9 + $0x3c0] ss:$148 sps:$4 sm:$0xff]  }
 0x15b   : > { %3491 = vmatpush1.bf16.msra.mxu1 %v5080_v7  ;;  %v5132_v7 = vld [vmem:[%s6239_s9 + $0x980] ss:$148 sps:$4 sm:$0xff]  }
 0x15c   : > { %3450 = vmatpush1.bf16.msra.mxu0 %v5043_v63  ;;  %3492 = vmatprep.subr.bf16.mxu1 %v5088_v9  ;;  %v5124_v63 = vld [vmem:[%s6239_s9 + $0x40] ss:$148 sps:$4 sm:$0xff]  }
 0x15d   : > { %3451 = vmatprep.subr.bf16.mxu0 %v5051_v2  ;;  %v4776_v2 = vcombine.low %v1270_v60, %v1270_v60  ;;  %v5170_v9 = vld [vmem:[%s6239_s9 + $0x4c] ss:$148 sps:$4 sm:$0xff]  }
 0x15f   : > { %3493 = vmatpush1.bf16.msra.mxu1 %v5086_v10  ;;  %v3123_v5 = vsel %vm3073_vm1, %v4776_v2, 0  ;;  %v1271_v10 = vld [vmem:[%s6239_s9 + $0xab0] sm:$0x77] }
 0x160   : > { %3452 = vmatpush1.bf16.msra.mxu0 %v5049_v4  ;;  %3494 = vmatprep.subr.bf16.mxu1 %v5094_v12  ;;  %v5164_v4 = vld [vmem:[%s6239_s9 + $0x174] ss:$148 sps:$4 sm:$0xff]   ;;  %v4778_v14 = vcombine.low %v1271_v10, %v1271_v10 }
 0x161   : > { %3453 = vmatprep.subr.bf16.mxu0 %v5057_v6  ;;  %v5134_v6 = vld [vmem:[%s6239_s9 + $0x984] ss:$148 sps:$4 sm:$0xff]   ;;  %v5141_v12 = vld [vmem:[%s6239_s9 + $0x868] ss:$148 sps:$4 sm:$0xff]  }
 0x162   : > { %v3129_v19 = vsel %vm3073_vm1, %v4778_v14, 0 }
 0x163   : > { %3495 = vmatpush1.bf16.msra.mxu1 %v5092_v15  ;;  %v5149_v15 = vld [vmem:[%s6239_s9 + $0x744] ss:$148 sps:$4 sm:$0xff]  }
 0x164   : > { %3454 = vmatpush1.bf16.msra.mxu0 %v5055_v8  ;;  %3496 = vmatprep.subr.bf16.mxu1 %v5100_v17  ;;  %v5162_v8 = vld [vmem:[%s6239_s9 + $0x170] ss:$148 sps:$4 sm:$0xff]  }
 0x165   : > { %3455 = vmatprep.subr.bf16.mxu0 %v5061_v41  ;;  %v5143_v41 = vld [vmem:[%s6239_s9 + $0x86c] ss:$148 sps:$4 sm:$0xff]  }
 0x166   : > { %v6488_v17 = vld [vmem:[%s7037_s0] ss:$8 sps:$4 sm:$0xff]  }
 0x167   : > { %3497 = vmatpush1.bf16.msra.mxu1 %v5098_v21  ;;  %v5181_v21 = vld [vmem:[%s6239_s9 + $0x98c] ss:$148 sps:$4 sm:$0xff]  }
 0x168   : > { %3456 = vmatpush1.bf16.msra.mxu0 %v5059_v11  ;;  %3498 = vmatprep.subr.bf16.mxu1 %v5106_v22  ;;  %v5168_v11 = vld [vmem:[%s6239_s9 + $0x48] ss:$148 sps:$4 sm:$0xff]  }
 0x169   : > { %3457 = vmatprep.subr.bf16.mxu0 %v5068_v13  ;;  %v4779_v13 = vcombine.high %v1271_v10, %v1271_v10  ;;  %v5179_v22 = vld [vmem:[%s6239_s9 + $0x988] ss:$148 sps:$4 sm:$0xff]  }
 0x16b   : > { %3499 = vmatpush1.bf16.msra.mxu1 %v5104_v26  ;;  %v5186_v26 = vld [vmem:[%s6239_s9 + $0x870] ss:$148 sps:$4 sm:$0xff]  }
 0x16c   : > { %3458 = vmatpush1.bf16.msra.mxu0 %v5066_v16  ;;  %3500 = vmatprep.subr.bf16.mxu1 %v5112_v28  ;;  %v5147_v16 = vld [vmem:[%s6239_s9 + $0x740] ss:$148 sps:$4 sm:$0xff]  }
 0x16d   : > { %4809 = vmatprep.subr.msk.bf16.mxu0 %vm3073_vm1, %v4773_v18  ;;  %v5155_v18 = vld [vmem:[%s6239_s9 + $0x61c] ss:$148 sps:$4 sm:$0xff]   ;;  %v5167_v28 = vld [vmem:[%s6239_s9 + $0x3cc] ss:$148 sps:$4 sm:$0xff]  }
 0x16f   : > { %3501 = vmatpush1.bf16.msra.mxu1 %v5110_v30  ;;  %v5193_v30 = vld [vmem:[%s6239_s9 + $0x748] ss:$148 sps:$4 sm:$0xff]  }
 0x170   : > { %3472 = vmatpush2.bf16.msra.mxu0 %v3111_v23  ;;  %4811 = vmatprep.subr.msk.bf16.mxu1 %vm3073_vm1, %v4775_v32  ;;  %v5153_v23 = vld [vmem:[%s6239_s9 + $0x618] ss:$148 sps:$4 sm:$0xff]  }
 0x171   : > { %3473 = vmatprep.subr.bf16.mxu0 %v5076_v24  ;;  %v5161_v24 = vld [vmem:[%s6239_s9 + $0x4f4] ss:$148 sps:$4 sm:$0xff]   ;;  %v5173_v32 = vld [vmem:[%s6239_s9 + $0x2a4] ss:$148 sps:$4 sm:$0xff]  }
 0x173   : > { %3515 = vmatpush2.bf16.msra.mxu1 %v3117_v36  ;;  %v5204_v36 = vld [vmem:[%s6239_s9 + $0x4fc] ss:$148 sps:$4 sm:$0xff]  }
 0x174   : > { %3474 = vmatpush2.bf16.msra.mxu0 %v5074_v25  ;;  %3516 = vmatprep.subr.bf16.mxu1 %v5123_v37  ;;  %v5188_v25 = vld [vmem:[%s6239_s9 + $0x874] ss:$148 sps:$4 sm:$0xff]   ;;  %v5177_v37 = vld [vmem:[%s6239_s9 + $0x17c] ss:$148 sps:$4 sm:$0xff]  }
 0x175   : > { %3529 = vmatprep.subr.bf16.mxu0 %v5085_v27  ;;  %v5159_v27 = vld [vmem:[%s6239_s9 + $0x4f0] ss:$148 sps:$4 sm:$0xff]  }
 0x177   : > { %3476 = vmatmul.mubr.bf16.vlgmr.msra.gmra.mxu0 %v6282_v20  ;;  %3517 = vmatpush2.bf16.msra.mxu1 %v5121_v42  ;;  %v5210_v42 = vld [vmem:[%s6239_s9 + $0x3d4] ss:$148 sps:$4 sm:$0xff]  }
 0x178   : > { %3530 = vmatpush1.bf16.msra.mxu0 %v5083_v31  ;;  %4814 = vmatprep.mubr.msk.bf16.mxu0 %vm3069_vm0, %v6440_v39  ;;  %v5165_v31 = vld [vmem:[%s6239_s9 + $0x3c8] ss:$148 sps:$4 sm:$0xff]  }
 0x179   : > { %3531 = vmatprep.subr.bf16.mxu0 %v5091_v34  ;;  %3572 = vmatprep.subr.bf16.mxu1 %v5130_v44  ;;  %v5196_v34 = vld [vmem:[%s6239_s9 + $0x620] ss:$148 sps:$4 sm:$0xff]  }
 0x17a   : > { %3519 = vmatmul.mubr.bf16.vlgmr.msra.gmra.mxu1 %v6282_v20  ;;  %v5138_v20 = vld [vmem:[%s6239_s9 + $0x610] ss:$148 sps:$4 sm:$0xff]   ;;  %v5184_v44 = vld [vmem:[%s6239_s9 + $0x54] ss:$148 sps:$4 sm:$0xff]  }
 0x17b   : > { %3573 = vmatpush1.bf16.msra.mxu1 %v5128_v47  ;;  %4816 = vmatprep.mubr.msk.bf16.mxu1 %vm3069_vm0, %v6440_v39  ;;  %v5182_v47 = vld [vmem:[%s6239_s9 + $0x50] ss:$148 sps:$4 sm:$0xff]  }
 0x17c   : > { %3532 = vmatpush1.bf16.msra.mxu0 %v5089_v35  ;;  %3574 = vmatprep.subr.bf16.mxu1 %v5137_v48  ;;  %v5171_v35 = vld [vmem:[%s6239_s9 + $0x2a0] ss:$148 sps:$4 sm:$0xff]  }
 0x17d   : > { %3533 = vmatprep.subr.bf16.mxu0 %v5097_v38  ;;  %v5202_v38 = vld [vmem:[%s6239_s9 + $0x4f8] ss:$148 sps:$4 sm:$0xff]  }
 0x17e   : > { %v5216_v48 = vld [vmem:[%s6239_s9 + $0x2ac] ss:$148 sps:$4 sm:$0xff]  }
 0x17f   : > { %3575 = vmatpush1.bf16.msra.mxu1 %v5135_v51  ;;  %v6524_v51 = vpop.permute.xlu0 %1285 }
 0x180   : > { %3534 = vmatpush1.bf16.msra.mxu0 %v5095_v40  ;;  %3576 = vmatprep.subr.bf16.mxu1 %v5140_v52  ;;  %v5175_v40 = vld [vmem:[%s6239_s9 + $0x178] ss:$148 sps:$4 sm:$0xff]   ;;  %v5214_v52 = vld [vmem:[%s6239_s9 + $0x2a8] ss:$148 sps:$4 sm:$0xff]  }
 0x181   : > { %3535 = vmatprep.subr.bf16.mxu0 %v5103_v45  ;;  %v1272_v45 = vld [vmem:[%s6239_s9 + $0xab8] sm:$0x77] }
 0x183   : > { %3577 = vmatpush1.bf16.msra.mxu1 %v5138_v20  ;;  %v5192_v20 = vld [vmem:[%s6239_s9 + $0x994] ss:$148 sps:$4 sm:$0xff]  }
 0x184   : > { %3536 = vmatpush1.bf16.msra.mxu0 %v5101_v46  ;;  %3578 = vmatprep.subr.bf16.mxu1 %v5146_v55  ;;  %v5208_v46 = vld [vmem:[%s6239_s9 + $0x3d0] ss:$148 sps:$4 sm:$0xff]  }
 0x185   : > { %3537 = vmatprep.subr.bf16.mxu0 %v5109_v49  ;;  %v4781_v49 = vcombine.high %v1272_v45, %v1272_v45 }
 0x187   : > { %3579 = vmatpush1.bf16.msra.mxu1 %v5144_v59  ;;  %v5228_v59 = vld [vmem:[%s6239_s9 + $0x5c] ss:$148 sps:$4 sm:$0xff]  }
 0x188   : > { %3538 = vmatpush1.bf16.msra.mxu0 %v5107_v50  ;;  %3580 = vmatprep.subr.bf16.mxu1 %v5152_v61  ;;  %v4780_v50 = vcombine.low %v1272_v45, %v1272_v45  ;;  %v6537_v61 = vpop.permute.xlu0 %1290  ;;  %v5231_v45 = vld [vmem:[%s6239_s9 + $0x2b4] ss:$148 sps:$4 sm:$0xff]  }
 0x189   : > { %3539 = vmatprep.subr.bf16.mxu0 %v5115_v53  ;;  %v5222_v53 = vld [vmem:[%s6239_s9 + $0x184] ss:$148 sps:$4 sm:$0xff]  }
 0x18b   : > { %3581 = vmatpush1.bf16.msra.mxu1 %v5150_v62  ;;  %v5201_v62 = vld [vmem:[%s6239_s9 + $0x87c] ss:$148 sps:$4 sm:$0xff]  }
 0x18c   : > { %3540 = vmatpush1.bf16.msra.mxu0 %v5113_v54  ;;  %3582 = vmatprep.subr.bf16.mxu1 %v5158_v0  ;;  %v3135_v54 = vsel %vm3073_vm1, %v4780_v50, 0  ;;  %v5260_v50 = vld [vmem:[%s6239_s9 + $0x508] ss:$148 sps:$4 sm:$0xff]  }
 0x18d   : > { %3541 = vmatprep.subr.bf16.mxu0 %v5119_v56  ;;  %v5220_v56 = vld [vmem:[%s6239_s9 + $0x180] ss:$148 sps:$4 sm:$0xff]  }
 0x18f   : > { %3583 = vmatpush1.bf16.msra.mxu1 %v5156_v3  ;;  %v5226_v3 = vld [vmem:[%s6239_s9 + $0x58] ss:$148 sps:$4 sm:$0xff]  }
 0x190   : > { %3542 = vmatpush1.bf16.msra.mxu0 %v5117_v57  ;;  %3584 = vmatprep.subr.bf16.mxu1 %v5164_v4 }
 0x191   : > { %3543 = vmatprep.subr.bf16.mxu0 %v5126_v58  ;;  %v5190_v58 = vld [vmem:[%s6239_s9 + $0x990] ss:$148 sps:$4 sm:$0xff]  }
 0x193   : > { %3585 = vmatpush1.bf16.msra.mxu1 %v5162_v8 }
 0x194   : > { %3544 = vmatpush1.bf16.msra.mxu0 %v5124_v63  ;;  %3586 = vmatprep.subr.bf16.mxu1 %v5170_v9  ;;  %v1273_v63 = vld [vmem:[%s6239_s9 + $0xac0] sm:$0x77] }
 0x195   : > { %4813 = vmatprep.subr.msk.bf16.mxu0 %vm3073_vm1, %v4777_v1  ;;  %v4782_v8 = vcombine.low %v1273_v63, %v1273_v63 }
 0x197   : > { %3587 = vmatpush1.bf16.msra.mxu1 %v5168_v11  ;;  %v3141_v14 = vsel %vm3073_vm1, %v4782_v8, 0  ;;  %v1275_v8 = vld [vmem:[%s6239_s9 + $0xad0] sm:$0x77] }
 0x198   : > { %3558 = vmatpush2.bf16.msra.mxu0 %v3123_v5  ;;  %4815 = vmatprep.subr.msk.bf16.mxu1 %vm3073_vm1, %v4779_v13  ;;  %v5205_v13 = vld [vmem:[%s6239_s9 + $0x750] ss:$148 sps:$4 sm:$0xff]  }
 0x199   : > { %3559 = vmatprep.subr.bf16.mxu0 %v5134_v6  ;;  %v5199_v6 = vld [vmem:[%s6239_s9 + $0x878] ss:$148 sps:$4 sm:$0xff]  }
 0x19b   : > { %3601 = vmatpush2.bf16.msra.mxu1 %v3129_v19 }
 0x19c   : > { %3560 = vmatpush2.bf16.msra.mxu0 %v5132_v7  ;;  %3602 = vmatprep.subr.bf16.mxu1 %v5181_v21  ;;  %v4783_v7 = vcombine.high %v1273_v63, %v1273_v63  ;;  %v5237_v21 = vld [vmem:[%s6239_s9 + $0x998] ss:$148 sps:$4 sm:$0xff]  }
 0x19d   : > { %3615 = vmatprep.subr.bf16.mxu0 %v5143_v41  ;;  %v5207_v41 = vld [vmem:[%s6239_s9 + $0x754] ss:$148 sps:$4 sm:$0xff]  }
 0x19f   : > { %3562 = vmatmul.mubr.bf16.vlgmr.msra.gmra.mxu0 %v6488_v17  ;;  %3603 = vmatpush2.bf16.msra.mxu1 %v5179_v22  ;;  %v5211_v22 = vld [vmem:[%s6239_s9 + $0x628] ss:$148 sps:$4 sm:$0xff]  }
 0x1a0   : > { %3616 = vmatpush1.bf16.msra.mxu0 %v5141_v12  ;;  %4818 = vmatprep.mubr.msk.bf16.mxu0 %vm3069_vm0, %v6440_v39 }
 0x1a1   : > { %3617 = vmatprep.subr.bf16.mxu0 %v5149_v15  ;;  %3658 = vmatprep.subr.bf16.mxu1 %v5188_v25  ;;  %v5239_v15 = vld [vmem:[%s6239_s9 + $0x99c] ss:$148 sps:$4 sm:$0xff]   ;;  %v5219_v25 = vld [vmem:[%s6239_s9 + $0x504] ss:$148 sps:$4 sm:$0xff]  }
 0x1a2   : > { %3605 = vmatmul.mubr.bf16.vlgmr.msra.gmra.mxu1 %v6488_v17 }
 0x1a3   : > { %3659 = vmatpush1.bf16.msra.mxu1 %v5186_v26  ;;  %4820 = vmatprep.mubr.msk.bf16.mxu1 %vm3069_vm0, %v6440_v39 }
 0x1a4   : > { %3618 = vmatpush1.bf16.msra.mxu0 %v5147_v16  ;;  %3660 = vmatprep.subr.bf16.mxu1 %v5195_v29  ;;  %v5213_v16 = vld [vmem:[%s6239_s9 + $0x62c] ss:$148 sps:$4 sm:$0xff]  }
 0x1a5   : > { %3619 = vmatprep.subr.bf16.mxu0 %v5155_v18 }
 0x1a7   : > { %3661 = vmatpush1.bf16.msra.mxu1 %v5193_v30 }
 0x1a8   : > { %3620 = vmatpush1.bf16.msra.mxu0 %v5153_v23  ;;  %3662 = vmatprep.subr.bf16.mxu1 %v5198_v33 }
 0x1a9   : > { %3621 = vmatprep.subr.bf16.mxu0 %v5161_v24  ;;  %v5246_v24 = vld [vmem:[%s6239_s9 + $0x884] ss:$148 sps:$4 sm:$0xff]  }
 0x1ab   : > { %3663 = vmatpush1.bf16.msra.mxu1 %v5196_v34  ;;  %v5253_v34 = vld [vmem:[%s6239_s9 + $0x75c] ss:$148 sps:$4 sm:$0xff]  }
 0x1ac   : > { %3622 = vmatpush1.bf16.msra.mxu0 %v5159_v27  ;;  %3664 = vmatprep.subr.bf16.mxu1 %v5204_v36 }
 0x1ad   : > { %3623 = vmatprep.subr.bf16.mxu0 %v5167_v28 }
 0x1af   : > { %3665 = vmatpush1.bf16.msra.mxu1 %v5202_v38 }
 0x1b0   : > { %3624 = vmatpush1.bf16.msra.mxu0 %v5165_v31  ;;  %3666 = vmatprep.subr.bf16.mxu1 %v5210_v42  ;;  %v5244_v31 = vld [vmem:[%s6239_s9 + $0x880] ss:$148 sps:$4 sm:$0xff]   ;;  %v5223_v42 = vld [vmem:[%s6239_s9 + $0x3d8] ss:$148 sps:$4 sm:$0xff]  }
 0x1b1   : > { %3625 = vmatprep.subr.bf16.mxu0 %v5173_v32  ;;  %v5217_v32 = vld [vmem:[%s6239_s9 + $0x500] ss:$148 sps:$4 sm:$0xff]  }
 0x1b3   : > { %3667 = vmatpush1.bf16.msra.mxu1 %v5208_v46  ;;  %v5254_v46 = vld [vmem:[%s6239_s9 + $0x630] ss:$148 sps:$4 sm:$0xff]  }
 0x1b4   : > { %3626 = vmatpush1.bf16.msra.mxu0 %v5171_v35  ;;  %3668 = vmatprep.subr.bf16.mxu1 %v5216_v48  ;;  %v5225_v35 = vld [vmem:[%s6239_s9 + $0x3dc] ss:$148 sps:$4 sm:$0xff]   ;;  %v5262_v48 = vld [vmem:[%s6239_s9 + $0x50c] ss:$148 sps:$4 sm:$0xff]  }
 0x1b5   : > { %3627 = vmatprep.subr.bf16.mxu0 %v5177_v37 }
 0x1b7   : > { %3669 = vmatpush1.bf16.msra.mxu1 %v5214_v52  ;;  %v5233_v52 = vld [vmem:[%s6239_s9 + $0x188] ss:$148 sps:$4 sm:$0xff]  }
 0x1b8   : > { %3628 = vmatpush1.bf16.msra.mxu0 %v5175_v40  ;;  %3670 = vmatprep.subr.bf16.mxu1 %v5222_v53  ;;  %v5251_v40 = vld [vmem:[%s6239_s9 + $0x758] ss:$148 sps:$4 sm:$0xff]  }
 0x1b9   : > { %3629 = vmatprep.subr.bf16.mxu0 %v5184_v44  ;;  %v5256_v44 = vld [vmem:[%s6239_s9 + $0x634] ss:$148 sps:$4 sm:$0xff]   ;;  %v5268_v53 = vld [vmem:[%s6239_s9 + $0x3e4] ss:$148 sps:$4 sm:$0xff]  }
 0x1bb   : > { %3671 = vmatpush1.bf16.msra.mxu1 %v5220_v56  ;;  %v5240_v56 = vld [vmem:[%s6239_s9 + $0x60] ss:$148 sps:$4 sm:$0xff]  }
 0x1bc   : > { %3630 = vmatpush1.bf16.msra.mxu0 %v5182_v47  ;;  %3672 = vmatprep.subr.bf16.mxu1 %v5228_v59  ;;  %v5229_v47 = vld [vmem:[%s6239_s9 + $0x2b0] ss:$148 sps:$4 sm:$0xff]  }
 0x1bd   : > { %4817 = vmatprep.subr.msk.bf16.mxu0 %vm3073_vm1, %v4781_v49  ;;  %v5235_v49 = vld [vmem:[%s6239_s9 + $0x18c] ss:$148 sps:$4 sm:$0xff]  }
 0x1bf   : > { %v3219_v55 = vpop.f32.mrf.mxu0  ;;  %3673 = vmatpush1.bf16.msra.mxu1 %v5226_v3 }
 0x1c0   : > { %v3220_v57 = vadd.f32 %v3219_v55, %v6524_v51  ;;  %3644 = vmatpush2.bf16.msra.mxu0 %v3135_v54  ;;  %4819 = vmatprep.subr.msk.bf16.mxu1 %vm3073_vm1, %v4783_v7  ;;  %v5242_v54 = vld [vmem:[%s6239_s9 + $0x64] ss:$148 sps:$4 sm:$0xff]   ;;  %v5266_v55 = vld [vmem:[%s6239_s9 + $0x3e0] ss:$148 sps:$4 sm:$0xff]  }
 0x1c1   : > { %v3221_v60 = vpop.f32.mrf.mxu0  ;;  %3645 = vmatprep.subr.bf16.mxu0 %v5192_v20  ;;  %v1274_v20 = vld [vmem:[%s6239_s9 + $0xac8] sm:$0x77] }
 0x1c2   : > { %v4000_v0 = vmax.f32 %v3220_v57, 0.0  ;;  %v3222_v1 = vadd.f32 %v3221_v60, %v6524_v51  ;;  %v3262_v18 = vpop.f32.mrf.mxu1  ;;  %v5274_v57 = vld [vmem:[%s6239_s9 + $0x2bc] ss:$148 sps:$4 sm:$0xff]   ;;  %v4784_v59 = vcombine.low %v1274_v20, %v1274_v20  ;;  %v5272_v60 = vld [vmem:[%s6239_s9 + $0x2b8] ss:$148 sps:$4 sm:$0xff]  }
 0x1c3   : > { %v3223_v2 = vpop.f32.mrf.mxu0  ;;  %v3263_v19 = vadd.f32 %v3262_v18, %v6524_v51  ;;  %3687 = vmatpush2.bf16.msra.mxu1 %v3141_v14  ;;  %v5259_v7 = vld [vmem:[%s6239_s9 + $0x88c] ss:$148 sps:$4 sm:$0xff]   ;;  %v5257_v14 = vld [vmem:[%s6239_s9 + $0x888] ss:$148 sps:$4 sm:$0xff]  }
 0x1c4   : > { %4074 = vst [vmem:[%s6543_s12] sm:$0xff] %v4000_v0  ;;  %v4001_v4 = vmax.f32 %v3222_v1, 0.0  ;;  %v3224_v5 = vadd.f32 %v3223_v2, %v6537_v61  ;;  %3646 = vmatpush2.bf16.msra.mxu0 %v5190_v58  ;;  %v3264_v23 = vpop.f32.mrf.mxu1  ;;  %3688 = vmatprep.subr.bf16.mxu1 %v5239_v15  ;;  %v4785_v58 = vcombine.high %v1274_v20, %v1274_v20  ;;  %v3147_v63 = vsel %vm3073_vm1, %v4784_v59, 0  ;;  %v5250_v0 = vld [vmem:[%s6239_s9 + $0x9a4] ss:$148 sps:$4 sm:$0xff]  }
 0x1c5   : > { %v3225_v9 = vpop.f32.mrf.mxu0  ;;  %3701 = vmatprep.subr.bf16.mxu0 %v5201_v62  ;;  %v4002_v26 = vmax.f32 %v3263_v19, 0.0  ;;  %v3265_v27 = vadd.f32 %v3264_v23, %v6524_v51  ;;  %v5280_v62 = vld [vmem:[%s6239_s9 + $0x194] ss:$148 sps:$4 sm:$0xff]   ;;  %v5278_v2 = vld [vmem:[%s6239_s9 + $0x190] ss:$148 sps:$4 sm:$0xff]   ;;  %v4787_v15 = vcombine.high %v1275_v8, %v1275_v8 }
 0x1c6   : > { %4075 = vst [vmem:[%s6543_s12 + $0x8] sm:$0xff] %v4001_v4  ;;  %v4037_v10 = vmax.f32 %v3224_v5, 0.0  ;;  %v3226_v11 = vadd.f32 %v3225_v9, %v6537_v61  ;;  %v3266_v28 = vpop.f32.mrf.mxu1  ;;  %v5248_v4 = vld [vmem:[%s6239_s9 + $0x9a0] ss:$148 sps:$4 sm:$0xff]   ;;  %v5265_v19 = vld [vmem:[%s6239_s9 + $0x764] ss:$148 sps:$4 sm:$0xff]  }
 0x1c7   : > { %3648 = vmatmul.mubr.bf16.vlgmr.msra.gmra.mxu0 %v6488_v17  ;;  %4076 = vst [vmem:[%s6543_s12 + $0x10] sm:$0xff] %v4002_v26  ;;  %v4003_v29 = vmax.f32 %v3265_v27, 0.0  ;;  %v3267_v30 = vadd.f32 %v3266_v28, %v6537_v61  ;;  %3689 = vmatpush2.bf16.msra.mxu1 %v5237_v21  ;;  %v5286_v5 = vld [vmem:[%s6239_s9 + $0x6c] ss:$148 sps:$4 sm:$0xff]   ;;  %v5271_v27 = vld [vmem:[%s6239_s9 + $0x63c] ss:$148 sps:$4 sm:$0xff]  }
 0x1c8   : > { %4111 = vst [vmem:[%s6543_s12 + $0x128] sm:$0xff] %v4037_v10  ;;  %v4038_v12 = vmax.f32 %v3226_v11, 0.0  ;;  %3702 = vmatpush1.bf16.msra.mxu0 %v5199_v6  ;;  %4822 = vmatprep.mubr.msk.bf16.mxu0 %vm3069_vm0, %v6440_v39  ;;  %v3268_v33 = vpop.f32.mrf.mxu1  ;;  %v5284_v11 = vld [vmem:[%s6239_s9 + $0x68] ss:$148 sps:$4 sm:$0xff]   ;;  %v5297_v26 = vld [vmem:[%s6239_s9 + $0x9ac] ss:$148 sps:$4 sm:$0xff]  }
 0x1c9   : > { %3703 = vmatprep.subr.bf16.mxu0 %v5207_v41  ;;  %3744 = vmatprep.subr.bf16.mxu1 %v5246_v24  ;;  %4077 = vst [vmem:[%s6543_s12 + $0x18] sm:$0xff] %v4003_v29  ;;  %v4039_v36 = vmax.f32 %v3267_v30, 0.0  ;;  %v3269_v37 = vadd.f32 %v3268_v33, %v6537_v61  ;;  %v5263_v24 = vld [vmem:[%s6239_s9 + $0x760] ss:$148 sps:$4 sm:$0xff]   ;;  %v5295_v30 = vld [vmem:[%s6239_s9 + $0x9a8] ss:$148 sps:$4 sm:$0xff]  }
 0x1ca   : > { %4112 = vst [vmem:[%s6543_s12 + $0x130] sm:$0xff] %v4038_v12  ;;  %3691 = vmatmul.mubr.bf16.vlgmr.msra.gmra.mxu1 %v6488_v17  ;;  %v5304_v33 = vld [vmem:[%s6239_s9 + $0x894] ss:$148 sps:$4 sm:$0xff]   ;;  %v5289_v20 = vld [vmem:[%s6239_s9 + $0x2c4] ss:$148 sps:$4 sm:$0xff]  }
 0x1cb   : > { %4113 = vst [vmem:[%s6543_s12 + $0x138] sm:$0xff] %v4039_v36  ;;  %v4040_v38 = vmax.f32 %v3269_v37, 0.0  ;;  %3745 = vmatpush1.bf16.msra.mxu1 %v5244_v31  ;;  %4824 = vmatprep.mubr.msk.bf16.mxu1 %vm3069_vm0, %v6440_v39  ;;  %v5269_v31 = vld [vmem:[%s6239_s9 + $0x638] ss:$148 sps:$4 sm:$0xff]  }
 0x1cc   : > { %3704 = vmatpush1.bf16.msra.mxu0 %v5205_v13  ;;  %3746 = vmatprep.subr.bf16.mxu1 %v5253_v34  ;;  %v5277_v34 = vld [vmem:[%s6239_s9 + $0x514] ss:$148 sps:$4 sm:$0xff]   ;;  %v5291_v59 = vld [vmem:[%s6239_s9 + $0x198] ss:$148 sps:$4 sm:$0xff]  }
 0x1cd   : > { %3705 = vmatprep.subr.bf16.mxu0 %v5213_v16  ;;  %4114 = vst [vmem:[%s6543_s12 + $0x140] sm:$0xff] %v4040_v38  ;;  %v4786_v16 = vcombine.low %v1275_v8, %v1275_v8  ;;  %v5308_v8 = vld [vmem:[%s6239_s9 + $0x9b4] ss:$148 sps:$4 sm:$0xff]  }
 0x1cf   : > { %3747 = vmatpush1.bf16.msra.mxu1 %v5251_v40 }
 0x1d0   : > { %3706 = vmatpush1.bf16.msra.mxu0 %v5211_v22  ;;  %3748 = vmatprep.subr.bf16.mxu1 %v5256_v44  ;;  %v5275_v44 = vld [vmem:[%s6239_s9 + $0x510] ss:$148 sps:$4 sm:$0xff]  }
 0x1d1   : > { %3707 = vmatprep.subr.bf16.mxu0 %v5219_v25  ;;  %v3153_v25 = vsel %vm3073_vm1, %v4786_v16, 0 }
 0x1d3   : > { %3749 = vmatpush1.bf16.msra.mxu1 %v5254_v46  ;;  %v5311_v46 = vld [vmem:[%s6239_s9 + $0x76c] ss:$148 sps:$4 sm:$0xff]  }
 0x1d4   : > { %3708 = vmatpush1.bf16.msra.mxu0 %v5217_v32  ;;  %3750 = vmatprep.subr.bf16.mxu1 %v5262_v48 }
 0x1d5   : > { %3709 = vmatprep.subr.bf16.mxu0 %v5225_v35 }
 0x1d7   : > { %3751 = vmatpush1.bf16.msra.mxu1 %v5260_v50 }
 0x1d8   : > { %3710 = vmatpush1.bf16.msra.mxu0 %v5223_v42  ;;  %3752 = vmatprep.subr.bf16.mxu1 %v5268_v53  ;;  %v5302_v42 = vld [vmem:[%s6239_s9 + $0x890] ss:$148 sps:$4 sm:$0xff]   ;;  %v5281_v53 = vld [vmem:[%s6239_s9 + $0x3e8] ss:$148 sps:$4 sm:$0xff]  }
 0x1d9   : > { %3711 = vmatprep.subr.bf16.mxu0 %v5231_v45 }
 0x1db   : > { %3753 = vmatpush1.bf16.msra.mxu1 %v5266_v55  ;;  %v5312_v55 = vld [vmem:[%s6239_s9 + $0x640] ss:$148 sps:$4 sm:$0xff]  }
 0x1dc   : > { %3712 = vmatpush1.bf16.msra.mxu0 %v5229_v47  ;;  %3754 = vmatprep.subr.bf16.mxu1 %v5274_v57  ;;  %v5283_v47 = vld [vmem:[%s6239_s9 + $0x3ec] ss:$148 sps:$4 sm:$0xff]   ;;  %v5293_v57 = vld [vmem:[%s6239_s9 + $0x19c] ss:$148 sps:$4 sm:$0xff]  }
 0x1dd   : > { %3713 = vmatprep.subr.bf16.mxu0 %v5235_v49 }
 0x1df   : > { %3755 = vmatpush1.bf16.msra.mxu1 %v5272_v60  ;;  %v5326_v60 = vld [vmem:[%s6239_s9 + $0x3f4] ss:$148 sps:$4 sm:$0xff]  }
 0x1e0   : > { %3714 = vmatpush1.bf16.msra.mxu0 %v5233_v52  ;;  %3756 = vmatprep.subr.bf16.mxu1 %v5280_v62  ;;  %v5309_v52 = vld [vmem:[%s6239_s9 + $0x768] ss:$148 sps:$4 sm:$0xff]  }
 0x1e1   : > { %3715 = vmatprep.subr.bf16.mxu0 %v5242_v54  ;;  %v5314_v54 = vld [vmem:[%s6239_s9 + $0x644] ss:$148 sps:$4 sm:$0xff]   ;;  %v5300_v62 = vld [vmem:[%s6239_s9 + $0x74] ss:$148 sps:$4 sm:$0xff]  }
 0x1e3   : > { %3757 = vmatpush1.bf16.msra.mxu1 %v5278_v2  ;;  %v5332_v2 = vld [vmem:[%s6239_s9 + $0x2cc] ss:$148 sps:$4 sm:$0xff]  }
 0x1e4   : > { %3716 = vmatpush1.bf16.msra.mxu0 %v5240_v56  ;;  %3758 = vmatprep.subr.bf16.mxu1 %v5286_v5  ;;  %v5287_v56 = vld [vmem:[%s6239_s9 + $0x2c0] ss:$148 sps:$4 sm:$0xff]   ;;  %v5330_v5 = vld [vmem:[%s6239_s9 + $0x2c8] ss:$148 sps:$4 sm:$0xff]  }
 0x1e5   : > { %4821 = vmatprep.subr.msk.bf16.mxu0 %vm3073_vm1, %v4785_v58  ;;  %v5318_v58 = vld [vmem:[%s6239_s9 + $0x518] ss:$148 sps:$4 sm:$0xff]  }
 0x1e7   : > { %v3305_v1 = vpop.f32.mrf.mxu0  ;;  %3759 = vmatpush1.bf16.msra.mxu1 %v5284_v11  ;;  %v5306_v11 = vld [vmem:[%s6239_s9 + $0x9b0] ss:$148 sps:$4 sm:$0xff]  }
 0x1e8   : > { %v3306_v3 = vadd.f32 %v3305_v1, %v6524_v51  ;;  %3730 = vmatpush2.bf16.msra.mxu0 %v3147_v63  ;;  %4823 = vmatprep.subr.msk.bf16.mxu1 %vm3073_vm1, %v4787_v15  ;;  %v1276_v63 = vld [vmem:[%s6239_s9 + $0xad8] sm:$0x77]  ;;  %v5298_v1 = vld [vmem:[%s6239_s9 + $0x70] ss:$148 sps:$4 sm:$0xff]  }
 0x1e9   : > { %v3307_v6 = vpop.f32.mrf.mxu0  ;;  %3731 = vmatprep.subr.bf16.mxu0 %v5250_v0  ;;  %v5324_v0 = vld [vmem:[%s6239_s9 + $0x3f0] ss:$148 sps:$4 sm:$0xff]  }
 0x1ea   : > { %v4004_v9 = vmax.f32 %v3306_v3, 0.0  ;;  %v3308_v41 = vadd.f32 %v3307_v6, %v6524_v51  ;;  %v3348_v28 = vpop.f32.mrf.mxu1  ;;  %v4789_v3 = vcombine.high %v1276_v63, %v1276_v63  ;;  %v5338_v6 = vld [vmem:[%s6239_s9 + $0x1a4] ss:$148 sps:$4 sm:$0xff]  }
 0x1eb   : > { %v3309_v10 = vpop.f32.mrf.mxu0  ;;  %v3349_v29 = vadd.f32 %v3348_v28, %v6524_v51  ;;  %3773 = vmatpush2.bf16.msra.mxu1 %v3153_v25  ;;  %v1277_v15 = vld [vmem:[%s6239_s9 + $0xae0] sm:$0x77]  ;;  %v5323_v28 = vld [vmem:[%s6239_s9 + $0x774] ss:$148 sps:$4 sm:$0xff]  }
 0x1ec   : > { %4078 = vst [vmem:[%s6543_s12 + $0x20] sm:$0xff] %v4004_v9  ;;  %v4005_v12 = vmax.f32 %v3308_v41, 0.0  ;;  %v3310_v13 = vadd.f32 %v3309_v10, %v6537_v61  ;;  %3732 = vmatpush2.bf16.msra.mxu0 %v5248_v4  ;;  %v3350_v32 = vpop.f32.mrf.mxu1  ;;  %3774 = vmatprep.subr.bf16.mxu1 %v5297_v26  ;;  %v4788_v4 = vcombine.low %v1276_v63, %v1276_v63  ;;  %v5336_v41 = vld [vmem:[%s6239_s9 + $0x1a0] ss:$148 sps:$4 sm:$0xff]  }
 0x1ed   : > { %v3311_v18 = vpop.f32.mrf.mxu0  ;;  %3787 = vmatprep.subr.bf16.mxu0 %v5259_v7  ;;  %v4006_v35 = vmax.f32 %v3349_v29, 0.0  ;;  %v3351_v36 = vadd.f32 %v3350_v32, %v6524_v51  ;;  %v4791_v25 = vcombine.high %v1277_v15, %v1277_v15  ;;  %v4790_v26 = vcombine.low %v1277_v15, %v1277_v15  ;;  %v5321_v32 = vld [vmem:[%s6239_s9 + $0x770] ss:$148 sps:$4 sm:$0xff]   ;;  %v5347_v63 = vld [vmem:[%s6239_s9 + $0x2d4] ss:$148 sps:$4 sm:$0xff]  }
 0x1ee   : > { %4079 = vst [vmem:[%s6543_s12 + $0x28] sm:$0xff] %v4005_v12  ;;  %v4041_v21 = vmax.f32 %v3310_v13, 0.0  ;;  %v3312_v22 = vadd.f32 %v3311_v18, %v6537_v61  ;;  %v3352_v37 = vpop.f32.mrf.mxu1  ;;  %v3159_v7 = vsel %vm3073_vm1, %v4788_v4, 0  ;;  %v5344_v12 = vld [vmem:[%s6239_s9 + $0x7c] ss:$148 sps:$4 sm:$0xff]  }
 0x1ef   : > { %3734 = vmatmul.mubr.bf16.vlgmr.msra.gmra.mxu0 %v6488_v17  ;;  %4080 = vst [vmem:[%s6543_s12 + $0x30] sm:$0xff] %v4006_v35  ;;  %v4007_v38 = vmax.f32 %v3351_v36, 0.0  ;;  %v3353_v40 = vadd.f32 %v3352_v37, %v6537_v61  ;;  %3775 = vmatpush2.bf16.msra.mxu1 %v5295_v30  ;;  %v5329_v35 = vld [vmem:[%s6239_s9 + $0x64c] ss:$148 sps:$4 sm:$0xff]   ;;  %v5374_v4 = vld [vmem:[%s6239_s9 + $0x528] ss:$148 sps:$4 sm:$0xff]  }
 0x1f0   : > { %4115 = vst [vmem:[%s6543_s12 + $0x148] sm:$0xff] %v4041_v21  ;;  %v4042_v23 = vmax.f32 %v3312_v22, 0.0  ;;  %3788 = vmatpush1.bf16.msra.mxu0 %v5257_v14  ;;  %4826 = vmatprep.mubr.msk.bf16.mxu0 %vm3069_vm0, %v6440_v39  ;;  %v3354_v45 = vpop.f32.mrf.mxu1  ;;  %v5317_v14 = vld [vmem:[%s6239_s9 + $0x89c] ss:$148 sps:$4 sm:$0xff]   ;;  %v5342_v21 = vld [vmem:[%s6239_s9 + $0x78] ss:$148 sps:$4 sm:$0xff]  }
 0x1f1   : > { %3789 = vmatprep.subr.bf16.mxu0 %v5265_v19  ;;  %3830 = vmatprep.subr.bf16.mxu1 %v5304_v33  ;;  %4081 = vst [vmem:[%s6543_s12 + $0x38] sm:$0xff] %v4007_v38  ;;  %v4043_v48 = vmax.f32 %v3353_v40, 0.0  ;;  %v3355_v49 = vadd.f32 %v3354_v45, %v6537_v61  ;;  %v3165_v33 = vsel %vm3073_vm1, %v4790_v26, 0  ;;  %v6689_v36 = vld [vmem:[%s7037_s0 + $0x4] ss:$8 sps:$4 sm:$0xff]  }
 0x1f2   : > { %4116 = vst [vmem:[%s6543_s12 + $0x150] sm:$0xff] %v4042_v23  ;;  %3777 = vmatmul.mubr.bf16.vlgmr.msra.gmra.mxu1 %v6488_v17  ;;  %v5353_v40 = vld [vmem:[%s6239_s9 + $0x9b8] ss:$148 sps:$4 sm:$0xff]  }
 0x1f3   : > { %4117 = vst [vmem:[%s6543_s12 + $0x158] sm:$0xff] %v4043_v48  ;;  %v4044_v50 = vmax.f32 %v3355_v49, 0.0  ;;  %3831 = vmatpush1.bf16.msra.mxu1 %v5302_v42  ;;  %4828 = vmatprep.mubr.msk.bf16.mxu1 %vm3069_vm0, %v6440_v39  ;;  %v5320_v39 = vld [vmem:[%s6239_s9 + $0x51c] ss:$148 sps:$4 sm:$0xff]   ;;  %v5362_v45 = vld [vmem:[%s6239_s9 + $0x8a4] ss:$148 sps:$4 sm:$0xff]  }
 0x1f4   : > { %3790 = vmatpush1.bf16.msra.mxu0 %v5263_v24  ;;  %3832 = vmatprep.subr.bf16.mxu1 %v5311_v46  ;;  %v5315_v24 = vld [vmem:[%s6239_s9 + $0x898] ss:$148 sps:$4 sm:$0xff]   ;;  %v5327_v42 = vld [vmem:[%s6239_s9 + $0x648] ss:$148 sps:$4 sm:$0xff]  }
 0x1f5   : > { %3791 = vmatprep.subr.bf16.mxu0 %v5271_v27  ;;  %4118 = vst [vmem:[%s6543_s12 + $0x160] sm:$0xff] %v4044_v50  ;;  %v5335_v46 = vld [vmem:[%s6239_s9 + $0x524] ss:$148 sps:$4 sm:$0xff]  }
 0x1f7   : > { %3833 = vmatpush1.bf16.msra.mxu1 %v5309_v52 }
 0x1f8   : > { %3792 = vmatpush1.bf16.msra.mxu0 %v5269_v31  ;;  %3834 = vmatprep.subr.bf16.mxu1 %v5314_v54  ;;  %v5333_v54 = vld [vmem:[%s6239_s9 + $0x520] ss:$148 sps:$4 sm:$0xff]  }
 0x1f9   : > { %3793 = vmatprep.subr.bf16.mxu0 %v5277_v34  ;;  %v5355_v34 = vld [vmem:[%s6239_s9 + $0x9bc] ss:$148 sps:$4 sm:$0xff]  }
 0x1fb   : > { %3835 = vmatpush1.bf16.msra.mxu1 %v5312_v55  ;;  %v5369_v55 = vld [vmem:[%s6239_s9 + $0x77c] ss:$148 sps:$4 sm:$0xff]  }
 0x1fc   : > { %3794 = vmatpush1.bf16.msra.mxu0 %v5275_v44  ;;  %3836 = vmatprep.subr.bf16.mxu1 %v5320_v39 }
 0x1fd   : > { %3795 = vmatprep.subr.bf16.mxu0 %v5283_v47 }
 0x1ff   : > { %3837 = vmatpush1.bf16.msra.mxu1 %v5318_v58 }
 0x200   : > { %3796 = vmatpush1.bf16.msra.mxu0 %v5281_v53  ;;  %3838 = vmatprep.subr.bf16.mxu1 %v5326_v60  ;;  %v5360_v53 = vld [vmem:[%s6239_s9 + $0x8a0] ss:$148 sps:$4 sm:$0xff]   ;;  %v5339_v60 = vld [vmem:[%s6239_s9 + $0x3f8] ss:$148 sps:$4 sm:$0xff]  }
 0x201   : > { %3797 = vmatprep.subr.bf16.mxu0 %v5289_v20 }
 0x203   : > { %3839 = vmatpush1.bf16.msra.mxu1 %v5324_v0  ;;  %v5370_v0 = vld [vmem:[%s6239_s9 + $0x650] ss:$148 sps:$4 sm:$0xff]  }
 0x204   : > { %3798 = vmatpush1.bf16.msra.mxu0 %v5287_v56  ;;  %3840 = vmatprep.subr.bf16.mxu1 %v5332_v2  ;;  %v5341_v56 = vld [vmem:[%s6239_s9 + $0x3fc] ss:$148 sps:$4 sm:$0xff]   ;;  %v5376_v2 = vld [vmem:[%s6239_s9 + $0x52c] ss:$148 sps:$4 sm:$0xff]  }
 0x205   : > { %3799 = vmatprep.subr.bf16.mxu0 %v5293_v57 }
 0x207   : > { %3841 = vmatpush1.bf16.msra.mxu1 %v5330_v5  ;;  %v5349_v5 = vld [vmem:[%s6239_s9 + $0x1a8] ss:$148 sps:$4 sm:$0xff]  }
 0x208   : > { %3800 = vmatpush1.bf16.msra.mxu0 %v5291_v59  ;;  %3842 = vmatprep.subr.bf16.mxu1 %v5338_v6  ;;  %v5367_v59 = vld [vmem:[%s6239_s9 + $0x778] ss:$148 sps:$4 sm:$0xff]  }
 0x209   : > { %3801 = vmatprep.subr.bf16.mxu0 %v5300_v62  ;;  %v5372_v62 = vld [vmem:[%s6239_s9 + $0x654] ss:$148 sps:$4 sm:$0xff]   ;;  %v5380_v6 = vld [vmem:[%s6239_s9 + $0x404] ss:$148 sps:$4 sm:$0xff]  }
 0x20b   : > { %3843 = vmatpush1.bf16.msra.mxu1 %v5336_v41  ;;  %v5356_v41 = vld [vmem:[%s6239_s9 + $0x80] ss:$148 sps:$4 sm:$0xff]  }
 0x20c   : > { %3802 = vmatpush1.bf16.msra.mxu0 %v5298_v1  ;;  %3844 = vmatprep.subr.bf16.mxu1 %v5344_v12  ;;  %v5345_v1 = vld [vmem:[%s6239_s9 + $0x2d0] ss:$148 sps:$4 sm:$0xff]  }
 0x20d   : > { %4825 = vmatprep.subr.msk.bf16.mxu0 %vm3073_vm1, %v4789_v3  ;;  %v5351_v3 = vld [vmem:[%s6239_s9 + $0x1ac] ss:$148 sps:$4 sm:$0xff]  }
 0x20f   : > { %v3391_v9 = vpop.f32.mrf.mxu0  ;;  %3845 = vmatpush1.bf16.msra.mxu1 %v5342_v21 }
 0x210   : > { %v3392_v10 = vadd.f32 %v3391_v9, %v6524_v51  ;;  %3816 = vmatpush2.bf16.msra.mxu0 %v3159_v7  ;;  %4827 = vmatprep.subr.msk.bf16.mxu1 %vm3073_vm1, %v4791_v25  ;;  %v5358_v7 = vld [vmem:[%s6239_s9 + $0x84] ss:$148 sps:$4 sm:$0xff]   ;;  %v5378_v9 = vld [vmem:[%s6239_s9 + $0x400] ss:$148 sps:$4 sm:$0xff]  }
 0x211   : > { %v3393_v13 = vpop.f32.mrf.mxu0  ;;  %3817 = vmatprep.subr.bf16.mxu0 %v5308_v8  ;;  %v1278_v8 = vld [vmem:[%s6239_s9 + $0xae8] sm:$0x77]  ;;  %v1279_v25 = vld [vmem:[%s6239_s9 + $0xaf0] sm:$0x77] }
 0x212   : > { %v4008_v16 = vmax.f32 %v3392_v10, 0.0  ;;  %v3394_v18 = vadd.f32 %v3393_v13, %v6524_v51  ;;  %v3434_v37 = vpop.f32.mrf.mxu1  ;;  %v5384_v10 = vld [vmem:[%s6239_s9 + $0x2dc] ss:$148 sps:$4 sm:$0xff]   ;;  %v4792_v12 = vcombine.low %v1278_v8, %v1278_v8  ;;  %v5382_v13 = vld [vmem:[%s6239_s9 + $0x2d8] ss:$148 sps:$4 sm:$0xff]  }
 0x213   : > { %v3395_v19 = vpop.f32.mrf.mxu0  ;;  %v3435_v38 = vadd.f32 %v3434_v37, %v6524_v51  ;;  %3859 = vmatpush2.bf16.msra.mxu1 %v3165_v33  ;;  %v4795_v33 = vcombine.high %v1279_v25, %v1279_v25 }
 0x214   : > { %4082 = vst [vmem:[%s6543_s12 + $0x40] sm:$0xff] %v4008_v16  ;;  %v4009_v22 = vmax.f32 %v3394_v18, 0.0  ;;  %v3396_v23 = vadd.f32 %v3395_v19, %v6537_v61  ;;  %3818 = vmatpush2.bf16.msra.mxu0 %v5306_v11  ;;  %v3436_v44 = vpop.f32.mrf.mxu1  ;;  %3860 = vmatprep.subr.bf16.mxu1 %v5355_v34  ;;  %v4793_v11 = vcombine.high %v1278_v8, %v1278_v8  ;;  %v3171_v15 = vsel %vm3073_vm1, %v4792_v12, 0  ;;  %v5366_v16 = vld [vmem:[%s6239_s9 + $0x9c4] ss:$148 sps:$4 sm:$0xff]  }
 0x215   : > { %v3397_v27 = vpop.f32.mrf.mxu0  ;;  %3873 = vmatprep.subr.bf16.mxu0 %v5317_v14  ;;  %v4010_v47 = vmax.f32 %v3435_v38, 0.0  ;;  %v3437_v48 = vadd.f32 %v3436_v44, %v6524_v51  ;;  %v5388_v14 = vld [vmem:[%s6239_s9 + $0x1b4] ss:$148 sps:$4 sm:$0xff]   ;;  %v5386_v19 = vld [vmem:[%s6239_s9 + $0x1b0] ss:$148 sps:$4 sm:$0xff]   ;;  %v4794_v34 = vcombine.low %v1279_v25, %v1279_v25 }
 0x216   : > { %4083 = vst [vmem:[%s6543_s12 + $0x48] sm:$0xff] %v4009_v22  ;;  %v4045_v29 = vmax.f32 %v3396_v23, 0.0  ;;  %v3398_v30 = vadd.f32 %v3397_v27, %v6537_v61  ;;  %v3438_v49 = vpop.f32.mrf.mxu1  ;;  %v5364_v22 = vld [vmem:[%s6239_s9 + $0x9c0] ss:$148 sps:$4 sm:$0xff]  }
 0x217   : > { %3820 = vmatmul.mubr.bf16.vlgmr.msra.gmra.mxu0 %v6488_v17  ;;  %4084 = vst [vmem:[%s6543_s12 + $0x50] sm:$0xff] %v4010_v47  ;;  %v4011_v50 = vmax.f32 %v3437_v48, 0.0  ;;  %v3439_v52 = vadd.f32 %v3438_v49, %v6537_v61  ;;  %3861 = vmatpush2.bf16.msra.mxu1 %v5353_v40  ;;  %v5392_v23 = vld [vmem:[%s6239_s9 + $0x8c] ss:$148 sps:$4 sm:$0xff]   ;;  %v3177_v44 = vsel %vm3073_vm1, %v4794_v34, 0 }
 0x218   : > { %4119 = vst [vmem:[%s6543_s12 + $0x168] sm:$0xff] %v4045_v29  ;;  %v4046_v31 = vmax.f32 %v3398_v30, 0.0  ;;  %3874 = vmatpush1.bf16.msra.mxu0 %v5315_v24  ;;  %4830 = vmatprep.mubr.msk.bf16.mxu0 %vm3069_vm0, %v6689_v36  ;;  %v3440_v20 = vpop.f32.mrf.mxu1  ;;  %v5390_v29 = vld [vmem:[%s6239_s9 + $0x88] ss:$148 sps:$4 sm:$0xff]   ;;  %v5381_v48 = vld [vmem:[%s6239_s9 + $0x658] ss:$148 sps:$4 sm:$0xff]  }
 0x219   : > { %3875 = vmatprep.subr.bf16.mxu0 %v5323_v28  ;;  %3916 = vmatprep.subr.bf16.mxu1 %v5362_v45  ;;  %4085 = vst [vmem:[%s6543_s12 + $0x58] sm:$0xff] %v4011_v50  ;;  %v4047_v39 = vmax.f32 %v3439_v52, 0.0  ;;  %v3441_v57 = vadd.f32 %v3440_v20, %v6537_v61  ;;  %v5399_v45 = vld [vmem:[%s6239_s9 + $0x9cc] ss:$148 sps:$4 sm:$0xff]   ;;  %v5397_v47 = vld [vmem:[%s6239_s9 + $0x9c8] ss:$148 sps:$4 sm:$0xff]  }
 0x21a   : > { %4120 = vst [vmem:[%s6543_s12 + $0x170] sm:$0xff] %v4046_v31  ;;  %3863 = vmatmul.mubr.bf16.vlgmr.msra.gmra.mxu1 %v6488_v17  ;;  %v5385_v20 = vld [vmem:[%s6239_s9 + $0x530] ss:$148 sps:$4 sm:$0xff]  }
 0x21b   : > { %4121 = vst [vmem:[%s6543_s12 + $0x178] sm:$0xff] %v4047_v39  ;;  %v4048_v58 = vmax.f32 %v3441_v57, 0.0  ;;  %3917 = vmatpush1.bf16.msra.mxu1 %v5360_v53  ;;  %4832 = vmatprep.mubr.msk.bf16.mxu1 %vm3069_vm0, %v6689_v36  ;;  %v5406_v57 = vld [vmem:[%s7037_s0] ss:$8 sps:$4 sm:$0xff]  }
 0x21c   : > { %3876 = vmatpush1.bf16.msra.mxu0 %v5321_v32  ;;  %3918 = vmatprep.subr.bf16.mxu1 %v5369_v55  ;;  %v5373_v32 = vld [vmem:[%s6239_s9 + $0x8a8] ss:$148 sps:$4 sm:$0xff]  }
 0x21d   : > { %3877 = vmatprep.subr.bf16.mxu0 %v5329_v35  ;;  %4122 = vst [vmem:[%s6543_s12 + $0x180] sm:$0xff] %v4048_v58 }
 0x21f   : > { %3919 = vmatpush1.bf16.msra.mxu1 %v5367_v59  ;;  %v5389_v59 = vld [vmem:[%s6239_s9 + $0x408] ss:$148 sps:$4 sm:$0xff]  }
 0x220   : > { %3878 = vmatpush1.bf16.msra.mxu0 %v5327_v42  ;;  %3920 = vmatprep.subr.bf16.mxu1 %v5372_v62  ;;  %v5377_v42 = vld [vmem:[%s6239_s9 + $0x780] ss:$148 sps:$4 sm:$0xff]   ;;  %v5396_v62 = vld [vmem:[%s6239_s9 + $0x1b8] ss:$148 sps:$4 sm:$0xff]  }
 0x221   : > { %3879 = vmatprep.subr.bf16.mxu0 %v5335_v46 }
 0x223   : > { %3921 = vmatpush1.bf16.msra.mxu1 %v5370_v0  ;;  %v5401_v0 = vld [vmem:[%s6239_s9 + $0xaf8] ss:$0 sps:$4 sm:$0x77]  }
 0x224   : > { %3880 = vmatpush1.bf16.msra.mxu0 %v5333_v54  ;;  %3922 = vmatprep.subr.bf16.mxu1 %v5376_v2 }
 0x225   : > { %3881 = vmatprep.subr.bf16.mxu0 %v5341_v56 }
 0x227   : > { %3923 = vmatpush1.bf16.msra.mxu1 %v5374_v4  ;;  %v5402_v4 = vld [vmem:[%s6239_s9 + $0x9d0] ss:$148 sps:$4 sm:$0xff]  }
 0x228   : > { %3882 = vmatpush1.bf16.msra.mxu0 %v5339_v60  ;;  %3924 = vmatprep.subr.bf16.mxu1 %v5380_v6  ;;  %v5393_v60 = vld [vmem:[%s6239_s9 + $0x2e0] ss:$148 sps:$4 sm:$0xff]  }
 0x229   : > { %3883 = vmatprep.subr.bf16.mxu0 %v5347_v63  ;;  %v5400_v63 = vld [vmem:[%s6239_s9 + $0x90] ss:$148 sps:$4 sm:$0xff]  }
 0x22b   : > { %3925 = vmatpush1.bf16.msra.mxu1 %v5378_v9 }
 0x22c   : > { %3884 = vmatpush1.bf16.msra.mxu0 %v5345_v1  ;;  %3926 = vmatprep.subr.bf16.mxu1 %v5384_v10  ;;  %v3183_v1 = vsel %vm3073_vm1, %v5401_v0, 0 }
 0x22d   : > { %3885 = vmatprep.subr.bf16.mxu0 %v5351_v3 }
 0x22f   : > { %3927 = vmatpush1.bf16.msra.mxu1 %v5382_v13 }
 0x230   : > { %3886 = vmatpush1.bf16.msra.mxu0 %v5349_v5  ;;  %3928 = vmatprep.subr.bf16.mxu1 %v5388_v14 }
 0x231   : > { %3887 = vmatprep.subr.bf16.mxu0 %v5358_v7 }
 0x233   : > { %3929 = vmatpush1.bf16.msra.mxu1 %v5386_v19 }
 0x234   : > { %3888 = vmatpush1.bf16.msra.mxu0 %v5356_v41  ;;  %3930 = vmatprep.subr.bf16.mxu1 %v5392_v23 }
 0x235   : > { %4829 = vmatprep.subr.msk.bf16.mxu0 %vm3073_vm1, %v4793_v11 }
 0x237   : > { %v3477_v18 = vpop.f32.mrf.mxu0  ;;  %3931 = vmatpush1.bf16.msra.mxu1 %v5390_v29 }
 0x238   : > { %v3478_v21 = vadd.f32 %v3477_v18, %v6524_v51  ;;  %3902 = vmatpush2.bf16.msra.mxu0 %v3171_v15  ;;  %4831 = vmatprep.subr.msk.bf16.mxu1 %vm3073_vm1, %v4795_v33 }
 0x239   : > { %v3479_v24 = vpop.f32.mrf.mxu0  ;;  %3903 = vmatprep.subr.bf16.mxu0 %v5366_v16 }
 0x23a   : > { %v4012_v26 = vmax.f32 %v3478_v21, 0.0  ;;  %v3480_v27 = vadd.f32 %v3479_v24, %v6524_v51  ;;  %v3520_v46 = vpop.f32.mrf.mxu1 }
 0x23b   : > { %v3481_v28 = vpop.f32.mrf.mxu0  ;;  %3945 = vmatpush2.bf16.msra.mxu1 %v3177_v44 }
 0x23c   : > { %4086 = vst [vmem:[%s6543_s12 + $0x60] sm:$0xff] %v4012_v26  ;;  %v4013_v30 = vmax.f32 %v3480_v27, 0.0  ;;  %v3482_v31 = vadd.f32 %v3481_v28, %v6537_v61  ;;  %3904 = vmatpush2.bf16.msra.mxu0 %v5364_v22  ;;  %v3522_v49 = vpop.f32.mrf.mxu1  ;;  %3946 = vmatprep.subr.bf16.mxu1 %v5399_v45 }
 0x23d   : > { %v3483_v35 = vpop.f32.mrf.mxu0  ;;  %3959 = vmatprep.subr.bf16.mxu0 %v5431_v43  ;;  %v3523_v52 = vadd.f32 %v3522_v49, %v6524_v51 }
 0x23e   : > { %4087 = vst [vmem:[%s6543_s12 + $0x68] sm:$0xff] %v4013_v30  ;;  %v4049_v37 = vmax.f32 %v3482_v31, 0.0  ;;  %v3484_v38 = vadd.f32 %v3483_v35, %v6537_v61  ;;  %v3524_v53 = vpop.f32.mrf.mxu1 }
 0x23f   : > { %3906 = vmatmul.mubr.bf16.vlgmr.msra.gmra.mxu0 %v6488_v17  ;;  %v3521_v17 = vadd.f32 %v3520_v46, %v6524_v51  ;;  %v3525_v54 = vadd.f32 %v3524_v53, %v6537_v61  ;;  %3947 = vmatpush2.bf16.msra.mxu1 %v5397_v47 }
 0x240   : > { %4123 = vst [vmem:[%s6543_s12 + $0x188] sm:$0xff] %v4049_v37  ;;  %v4050_v40 = vmax.f32 %v3484_v38, 0.0  ;;  %3960 = vmatpush1.bf16.msra.mxu0 %v5373_v32  ;;  %4833 = vmatprep.mubr.msk.bf16.mxu0 %vm3069_vm0, %v6689_v36  ;;  %v4015_v36 = vmax.f32 %v3523_v52, 0.0  ;;  %v3526_v55 = vpop.f32.mrf.mxu1 }
 0x241   : > { %3961 = vmatprep.subr.bf16.mxu0 %v5431_v43  ;;  %v4014_v50 = vmax.f32 %v3521_v17, 0.0  ;;  %v4051_v56 = vmax.f32 %v3525_v54, 0.0  ;;  %v3527_v39 = vadd.f32 %v3526_v55, %v6537_v61 }
 0x242   : > { %4124 = vst [vmem:[%s6543_s12 + $0x190] sm:$0xff] %v4050_v40  ;;  %4089 = vst [vmem:[%s6543_s12 + $0x78] sm:$0xff] %v4015_v36  ;;  %3949 = vmatmul.mubr.bf16.vlgmr.msra.gmra.mxu1 %v5406_v57 }
 0x243   : > { %4088 = vst [vmem:[%s6543_s12 + $0x70] sm:$0xff] %v4014_v50  ;;  %4125 = vst [vmem:[%s6543_s12 + $0x198] sm:$0xff] %v4051_v56  ;;  %v4052_v58 = vmax.f32 %v3527_v39, 0.0 }
 0x244   : > { %3962 = vmatpush1.bf16.msra.mxu0 %v5377_v42 }
 0x245   : > { %3963 = vmatprep.subr.bf16.mxu0 %v5431_v43  ;;  %4126 = vst [vmem:[%s6543_s12 + $0x1a0] sm:$0xff] %v4052_v58 }
 0x248   : > { %3964 = vmatpush1.bf16.msra.mxu0 %v5381_v48 }
 0x249   : > { %3965 = vmatprep.subr.bf16.mxu0 %v5431_v43 }
 0x24c   : > { %3966 = vmatpush1.bf16.msra.mxu0 %v5385_v20 }
 0x24d   : > { %3967 = vmatprep.subr.bf16.mxu0 %v5431_v43 }
 0x250   : > { %3968 = vmatpush1.bf16.msra.mxu0 %v5389_v59 }
 0x251   : > { %3969 = vmatprep.subr.bf16.mxu0 %v5431_v43 }
 0x254   : > { %3970 = vmatpush1.bf16.msra.mxu0 %v5393_v60 }
 0x255   : > { %3971 = vmatprep.subr.bf16.mxu0 %v5431_v43 }
 0x258   : > { %3972 = vmatpush1.bf16.msra.mxu0 %v5396_v62 }
 0x259   : > { %3973 = vmatprep.subr.bf16.mxu0 %v5431_v43 }
 0x25c   : > { %3974 = vmatpush1.bf16.msra.mxu0 %v5400_v63 }
 0x25d   : > { %3987 = vmatprep.subr.bf16.mxu0 %v5431_v43 }
 0x25f   : > { %v3563_v2 = vpop.f32.mrf.mxu0 }
 0x260   : > { %v3564_v3 = vadd.f32 %v3563_v2, %v6524_v51  ;;  %3988 = vmatpush2.bf16.msra.mxu0 %v3183_v1 }
 0x261   : > { %v3565_v5 = vpop.f32.mrf.mxu0  ;;  %3989 = vmatprep.subr.bf16.mxu0 %v5431_v43 }
 0x262   : > { %v4016_v6 = vmax.f32 %v3564_v3, 0.0  ;;  %v3566_v7 = vadd.f32 %v3565_v5, %v6524_v51  ;;  %v3606_v13 = vpop.f32.mrf.mxu1 }
 0x263   : > { %v3567_v8 = vpop.f32.mrf.mxu0  ;;  %v3607_v14 = vadd.f32 %v3606_v13, %v6524_v51 }
 0x264   : > { %4090 = vst [vmem:[%s6543_s12 + $0x80] sm:$0xff] %v4016_v6  ;;  %v4017_v9 = vmax.f32 %v3566_v7, 0.0  ;;  %v3568_v41 = vadd.f32 %v3567_v8, %v6537_v61  ;;  %3990 = vmatpush2.bf16.msra.mxu0 %v5402_v4  ;;  %v3608_v15 = vpop.f32.mrf.mxu1 }
 0x265   : > { %v3569_v10 = vpop.f32.mrf.mxu0  ;;  %v4018_v16 = vmax.f32 %v3607_v14, 0.0  ;;  %v3609_v18 = vadd.f32 %v3608_v15, %v6524_v51 }
 0x266   : > { %4091 = vst [vmem:[%s6543_s12 + $0x88] sm:$0xff] %v4017_v9  ;;  %v4053_v11 = vmax.f32 %v3568_v41, 0.0  ;;  %v3570_v12 = vadd.f32 %v3569_v10, %v6537_v61  ;;  %v3610_v19 = vpop.f32.mrf.mxu1 }
 0x267   : > { %3992 = vmatmul.mubr.bf16.vlgmr.msra.gmra.mxu0 %v5406_v57  ;;  %4092 = vst [vmem:[%s6543_s12 + $0x90] sm:$0xff] %v4018_v16  ;;  %v4019_v21 = vmax.f32 %v3609_v18, 0.0  ;;  %v3611_v22 = vadd.f32 %v3610_v19, %v6537_v61 }
 0x268   : > { %4127 = vst [vmem:[%s6543_s12 + $0x1a8] sm:$0xff] %v4053_v11  ;;  %v4054_v43 = vmax.f32 %v3570_v12, 0.0  ;;  %v3612_v23 = vpop.f32.mrf.mxu1 }
 0x269   : > { %4093 = vst [vmem:[%s6543_s12 + $0x98] sm:$0xff] %v4019_v21  ;;  %v4055_v24 = vmax.f32 %v3611_v22, 0.0  ;;  %v3613_v25 = vadd.f32 %v3612_v23, %v6537_v61 }
 0x26a   : > { %4128 = vst [vmem:[%s6543_s12 + $0x1b0] sm:$0xff] %v4054_v43 }
 0x26b   : > { %4129 = vst [vmem:[%s6543_s12 + $0x1b8] sm:$0xff] %v4055_v24  ;;  %v4056_v26 = vmax.f32 %v3613_v25, 0.0 }
 0x26d   : > { %4130 = vst [vmem:[%s6543_s12 + $0x1c0] sm:$0xff] %v4056_v26 }
 0x287   : > { %v3649_v27 = vpop.f32.mrf.mxu0 }
 0x288   : > { %v3650_v28 = vadd.f32 %v3649_v27, %v6524_v51 }
 0x289   : > { %v3651_v29 = vpop.f32.mrf.mxu0 }
 0x28a   : > { %v4020_v30 = vmax.f32 %v3650_v28, 0.0  ;;  %v3652_v31 = vadd.f32 %v3651_v29, %v6524_v51  ;;  %v3692_v42 = vpop.f32.mrf.mxu1 }
 0x28b   : > { %v3653_v32 = vpop.f32.mrf.mxu0  ;;  %v3693_v44 = vadd.f32 %v3692_v42, %v6524_v51 }
 0x28c   : > { %4094 = vst [vmem:[%s6543_s12 + $0xa0] sm:$0xff] %v4020_v30  ;;  %v4021_v33 = vmax.f32 %v3652_v31, 0.0  ;;  %v3654_v34 = vadd.f32 %v3653_v32, %v6537_v61  ;;  %v3694_v45 = vpop.f32.mrf.mxu1 }
 0x28d   : > { %v3655_v35 = vpop.f32.mrf.mxu0  ;;  %v4022_v46 = vmax.f32 %v3693_v44, 0.0  ;;  %v3695_v17 = vadd.f32 %v3694_v45, %v6524_v51 }
 0x28e   : > { %4095 = vst [vmem:[%s6543_s12 + $0xa8] sm:$0xff] %v4021_v33  ;;  %v4057_v37 = vmax.f32 %v3654_v34, 0.0  ;;  %v3656_v38 = vadd.f32 %v3655_v35, %v6537_v61  ;;  %v3696_v47 = vpop.f32.mrf.mxu1 }
 0x28f   : > { %4096 = vst [vmem:[%s6543_s12 + $0xb0] sm:$0xff] %v4022_v46  ;;  %v4023_v48 = vmax.f32 %v3695_v17, 0.0  ;;  %v3697_v49 = vadd.f32 %v3696_v47, %v6537_v61 }
 0x290   : > { %4131 = vst [vmem:[%s6543_s12 + $0x1c8] sm:$0xff] %v4057_v37  ;;  %v4058_v40 = vmax.f32 %v3656_v38, 0.0  ;;  %v3698_v50 = vpop.f32.mrf.mxu1 }
 0x291   : > { %4097 = vst [vmem:[%s6543_s12 + $0xb8] sm:$0xff] %v4023_v48  ;;  %v4059_v52 = vmax.f32 %v3697_v49, 0.0  ;;  %v3699_v53 = vadd.f32 %v3698_v50, %v6537_v61 }
 0x292   : > { %4132 = vst [vmem:[%s6543_s12 + $0x1d0] sm:$0xff] %v4058_v40 }
 0x293   : > { %4133 = vst [vmem:[%s6543_s12 + $0x1d8] sm:$0xff] %v4059_v52  ;;  %v4060_v36 = vmax.f32 %v3699_v53, 0.0 }
 0x295   : > { %4134 = vst [vmem:[%s6543_s12 + $0x1e0] sm:$0xff] %v4060_v36 }
 0x2af   : > { %v3735_v54 = vpop.f32.mrf.mxu0 }
 0x2b0   : > { %v3736_v20 = vadd.f32 %v3735_v54, %v6524_v51 }
 0x2b1   : > { %v3737_v55 = vpop.f32.mrf.mxu0 }
 0x2b2   : > { %v4024_v56 = vmax.f32 %v3736_v20, 0.0  ;;  %v3738_v39 = vadd.f32 %v3737_v55, %v6524_v51  ;;  %v3778_v1 = vpop.f32.mrf.mxu1 }
 0x2b3   : > { %v3739_v57 = vpop.f32.mrf.mxu0  ;;  %v3779_v2 = vadd.f32 %v3778_v1, %v6524_v51 }
 0x2b4   : > { %4098 = vst [vmem:[%s6543_s12 + $0xc0] sm:$0xff] %v4024_v56  ;;  %v4025_v58 = vmax.f32 %v3738_v39, 0.0  ;;  %v3740_v59 = vadd.f32 %v3739_v57, %v6537_v61  ;;  %v3780_v3 = vpop.f32.mrf.mxu1 }
 0x2b5   : > { %v3741_v60 = vpop.f32.mrf.mxu0  ;;  %v4026_v4 = vmax.f32 %v3779_v2, 0.0  ;;  %v3781_v5 = vadd.f32 %v3780_v3, %v6524_v51 }
 0x2b6   : > { %4099 = vst [vmem:[%s6543_s12 + $0xc8] sm:$0xff] %v4025_v58  ;;  %v4061_v62 = vmax.f32 %v3740_v59, 0.0  ;;  %v3742_v63 = vadd.f32 %v3741_v60, %v6537_v61  ;;  %v3782_v6 = vpop.f32.mrf.mxu1 }
 0x2b7   : > { %4100 = vst [vmem:[%s6543_s12 + $0xd0] sm:$0xff] %v4026_v4  ;;  %v4027_v7 = vmax.f32 %v3781_v5, 0.0  ;;  %v3783_v8 = vadd.f32 %v3782_v6, %v6537_v61 }
 0x2b8   : > { %4135 = vst [vmem:[%s6543_s12 + $0x1e8] sm:$0xff] %v4061_v62  ;;  %v4062_v0 = vmax.f32 %v3742_v63, 0.0  ;;  %v3784_v9 = vpop.f32.mrf.mxu1 }
 0x2b9   : > { %4101 = vst [vmem:[%s6543_s12 + $0xd8] sm:$0xff] %v4027_v7  ;;  %v4063_v41 = vmax.f32 %v3783_v8, 0.0  ;;  %v3785_v10 = vadd.f32 %v3784_v9, %v6537_v61  ;;  %v4174_v7 = vld [vmem:[%s6543_s12 + $0x10] sm:$0xff] (%p5482_p5)  ;;  %v4176_v8 = vld [vmem:[%s6543_s12 + $0x18] sm:$0xff] (%p5482_p5)  ;;  %v4178_v9 = vld [vmem:[%s6543_s12 + $0x20] sm:$0xff] (%p5482_p5) }
 0x2ba   : > { %4136 = vst [vmem:[%s6543_s12 + $0x1f0] sm:$0xff] %v4062_v0  ;;  %4175 = vst [vmem:[%s6883_s29 + $0x10] sm:$0xff] (%p5482_p5), %v4174_v7 }
 0x2bb   : > { %4137 = vst [vmem:[%s6543_s12 + $0x1f8] sm:$0xff] %v4063_v41  ;;  %v4064_v11 = vmax.f32 %v3785_v10, 0.0  ;;  %v4180_v41 = vld [vmem:[%s6543_s12 + $0x28] sm:$0xff] (%p5482_p5)  ;;  %v4182_v10 = vld [vmem:[%s6543_s12 + $0x30] sm:$0xff] (%p5482_p5)  ;;  %4177 = vst [vmem:[%s6883_s29 + $0x18] sm:$0xff] (%p5482_p5), %v4176_v8 }
 0x2bc   : > { %4179 = vst [vmem:[%s6883_s29 + $0x20] sm:$0xff] (%p5482_p5), %v4178_v9  ;;  %4181 = vst [vmem:[%s6883_s29 + $0x28] sm:$0xff] (%p5482_p5), %v4180_v41 }
 0x2bd   : > { %4138 = vst [vmem:[%s6543_s12 + $0x200] sm:$0xff] %v4064_v11  ;;  %v4184_v11 = vld [vmem:[%s6543_s12 + $0x38] sm:$0xff] (%p5482_p5)  ;;  %4183 = vst [vmem:[%s6883_s29 + $0x30] sm:$0xff] (%p5482_p5), %v4182_v10 }
 0x2be   : > { %4185 = vst [vmem:[%s6883_s29 + $0x38] sm:$0xff] (%p5482_p5), %v4184_v11 }
 0x2d7   : > { %v3821_v12 = vpop.f32.mrf.mxu0 }
 0x2d8   : > { %v3822_v43 = vadd.f32 %v3821_v12, %v6524_v51  ;;  %v4186_v12 = vld [vmem:[%s6543_s12 + $0x40] sm:$0xff] (%p5482_p5) }
 0x2d9   : > { %v3823_v13 = vpop.f32.mrf.mxu0  ;;  %4187 = vst [vmem:[%s6883_s29 + $0x40] sm:$0xff] (%p5482_p5), %v4186_v12 }
 0x2da   : > { %v4028_v14 = vmax.f32 %v3822_v43, 0.0  ;;  %v3824_v15 = vadd.f32 %v3823_v13, %v6524_v51  ;;  %v3864_v25 = vpop.f32.mrf.mxu1  ;;  %v4188_v43 = vld [vmem:[%s6543_s12 + $0x48] sm:$0xff] (%p5482_p5)  ;;  %v4190_v13 = vld [vmem:[%s6543_s12 + $0x50] sm:$0xff] (%p5482_p5) }
 0x2db   : > { %v3825_v16 = vpop.f32.mrf.mxu0  ;;  %v3865_v26 = vadd.f32 %v3864_v25, %v6524_v51  ;;  %4189 = vst [vmem:[%s6883_s29 + $0x48] sm:$0xff] (%p5482_p5), %v4188_v43  ;;  %4191 = vst [vmem:[%s6883_s29 + $0x50] sm:$0xff] (%p5482_p5), %v4190_v13  ;;  %v4210_v25 = vld [vmem:[%s6543_s12 + $0xa0] sm:$0xff] (%p5482_p5) }
 0x2dc   : > { %4102 = vst [vmem:[%s6543_s12 + $0xe0] sm:$0xff] %v4028_v14  ;;  %v4029_v18 = vmax.f32 %v3824_v15, 0.0  ;;  %v3826_v19 = vadd.f32 %v3825_v16, %v6537_v61  ;;  %v3866_v27 = vpop.f32.mrf.mxu1  ;;  %v4192_v14 = vld [vmem:[%s6543_s12 + $0x58] sm:$0xff] (%p5482_p5)  ;;  %v4194_v15 = vld [vmem:[%s6543_s12 + $0x60] sm:$0xff] (%p5482_p5)  ;;  %v4196_v16 = vld [vmem:[%s6543_s12 + $0x68] sm:$0xff] (%p5482_p5) }
 0x2dd   : > { %v3827_v21 = vpop.f32.mrf.mxu0  ;;  %v4030_v28 = vmax.f32 %v3865_v26, 0.0  ;;  %v3867_v29 = vadd.f32 %v3866_v27, %v6524_v51  ;;  %4193 = vst [vmem:[%s6883_s29 + $0x58] sm:$0xff] (%p5482_p5), %v4192_v14  ;;  %4195 = vst [vmem:[%s6883_s29 + $0x60] sm:$0xff] (%p5482_p5), %v4194_v15  ;;  %v4212_v26 = vld [vmem:[%s6543_s12 + $0xa8] sm:$0xff] (%p5482_p5)  ;;  %v4214_v27 = vld [vmem:[%s6543_s12 + $0xb0] sm:$0xff] (%p5482_p5) }
 0x2de   : > { %4103 = vst [vmem:[%s6543_s12 + $0xe8] sm:$0xff] %v4029_v18  ;;  %v4065_v22 = vmax.f32 %v3826_v19, 0.0  ;;  %v3828_v23 = vadd.f32 %v3827_v21, %v6537_v61  ;;  %v3868_v30 = vpop.f32.mrf.mxu1  ;;  %v4198_v18 = vld [vmem:[%s6543_s12 + $0x70] sm:$0xff] (%p5482_p5)  ;;  %4197 = vst [vmem:[%s6883_s29 + $0x68] sm:$0xff] (%p5482_p5), %v4196_v16  ;;  %v4200_v19 = vld [vmem:[%s6543_s12 + $0x78] sm:$0xff] (%p5482_p5) }
 0x2df   : > { %4104 = vst [vmem:[%s6543_s12 + $0xf0] sm:$0xff] %v4030_v28  ;;  %v4031_v31 = vmax.f32 %v3867_v29, 0.0  ;;  %v3869_v32 = vadd.f32 %v3868_v30, %v6537_v61  ;;  %4199 = vst [vmem:[%s6883_s29 + $0x70] sm:$0xff] (%p5482_p5), %v4198_v18  ;;  %v4202_v21 = vld [vmem:[%s6543_s12 + $0x80] sm:$0xff] (%p5482_p5)  ;;  %v4216_v28 = vld [vmem:[%s6543_s12 + $0xb8] sm:$0xff] (%p5482_p5) }
 0x2e0   : > { %4139 = vst [vmem:[%s6543_s12 + $0x208] sm:$0xff] %v4065_v22  ;;  %v4066_v24 = vmax.f32 %v3828_v23, 0.0  ;;  %v3870_v33 = vpop.f32.mrf.mxu1  ;;  %v4204_v22 = vld [vmem:[%s6543_s12 + $0x88] sm:$0xff] (%p5482_p5)  ;;  %4201 = vst [vmem:[%s6883_s29 + $0x78] sm:$0xff] (%p5482_p5), %v4200_v19  ;;  %v4206_v23 = vld [vmem:[%s6543_s12 + $0x90] sm:$0xff] (%p5482_p5) }
 0x2e1   : > { %4105 = vst [vmem:[%s6543_s12 + $0xf8] sm:$0xff] %v4031_v31  ;;  %v4067_v34 = vmax.f32 %v3869_v32, 0.0  ;;  %v3871_v35 = vadd.f32 %v3870_v33, %v6537_v61  ;;  %4203 = vst [vmem:[%s6883_s29 + $0x80] sm:$0xff] (%p5482_p5), %v4202_v21  ;;  %v4218_v29 = vld [vmem:[%s6543_s12 + $0xc0] sm:$0xff] (%p5482_p5)  ;;  %v4220_v30 = vld [vmem:[%s6543_s12 + $0xc8] sm:$0xff] (%p5482_p5) }
 0x2e2   : > { %4140 = vst [vmem:[%s6543_s12 + $0x210] sm:$0xff] %v4066_v24  ;;  %4205 = vst [vmem:[%s6883_s29 + $0x88] sm:$0xff] (%p5482_p5), %v4204_v22  ;;  %v4208_v24 = vld [vmem:[%s6543_s12 + $0x98] sm:$0xff] (%p5482_p5)  ;;  %v4222_v31 = vld [vmem:[%s6543_s12 + $0xd0] sm:$0xff] (%p5482_p5) }
 0x2e3   : > { %4141 = vst [vmem:[%s6543_s12 + $0x218] sm:$0xff] %v4067_v34  ;;  %v4068_v37 = vmax.f32 %v3871_v35, 0.0  ;;  %4207 = vst [vmem:[%s6883_s29 + $0x90] sm:$0xff] (%p5482_p5), %v4206_v23  ;;  %v4224_v32 = vld [vmem:[%s6543_s12 + $0xd8] sm:$0xff] (%p5482_p5)  ;;  %v4226_v33 = vld [vmem:[%s6543_s12 + $0xe0] sm:$0xff] (%p5482_p5) }
 0x2e4   : > { %4209 = vst [vmem:[%s6883_s29 + $0x98] sm:$0xff] (%p5482_p5), %v4208_v24  ;;  %4211 = vst [vmem:[%s6883_s29 + $0xa0] sm:$0xff] (%p5482_p5), %v4210_v25 }
 0x2e5   : > { %4142 = vst [vmem:[%s6543_s12 + $0x220] sm:$0xff] %v4068_v37  ;;  %4213 = vst [vmem:[%s6883_s29 + $0xa8] sm:$0xff] (%p5482_p5), %v4212_v26  ;;  %v4228_v34 = vld [vmem:[%s6543_s12 + $0xe8] sm:$0xff] (%p5482_p5) }
 0x2e6   : > { %4215 = vst [vmem:[%s6883_s29 + $0xb0] sm:$0xff] (%p5482_p5), %v4214_v27  ;;  %4217 = vst [vmem:[%s6883_s29 + $0xb8] sm:$0xff] (%p5482_p5), %v4216_v28  ;;  %v4230_v35 = vld [vmem:[%s6543_s12 + $0xf0] sm:$0xff] (%p5482_p5) }
 0x2e7   : > { %4219 = vst [vmem:[%s6883_s29 + $0xc0] sm:$0xff] (%p5482_p5), %v4218_v29  ;;  %4221 = vst [vmem:[%s6883_s29 + $0xc8] sm:$0xff] (%p5482_p5), %v4220_v30 }
 0x2e8   : > { %4223 = vst [vmem:[%s6883_s29 + $0xd0] sm:$0xff] (%p5482_p5), %v4222_v31  ;;  %4225 = vst [vmem:[%s6883_s29 + $0xd8] sm:$0xff] (%p5482_p5), %v4224_v32  ;;  %v4232_v37 = vld [vmem:[%s6543_s12 + $0xf8] sm:$0xff] (%p5482_p5) }
 0x2e9   : > { %4227 = vst [vmem:[%s6883_s29 + $0xe0] sm:$0xff] (%p5482_p5), %v4226_v33  ;;  %4229 = vst [vmem:[%s6883_s29 + $0xe8] sm:$0xff] (%p5482_p5), %v4228_v34  ;;  %v4302_v7 = vld [vmem:[%s6543_s12 + $0x210] sm:$0xff] (%p5482_p5) }
 0x2ea   : > { %4231 = vst [vmem:[%s6883_s29 + $0xf0] sm:$0xff] (%p5482_p5), %v4230_v35  ;;  %4233 = vst [vmem:[%s6883_s29 + $0xf8] sm:$0xff] (%p5482_p5), %v4232_v37  ;;  %v4304_v8 = vld [vmem:[%s6543_s12 + $0x218] sm:$0xff] (%p5482_p5) }
 0x2eb   : > { %4303 = vst [vmem:[%s6883_s29 + $0x338] sm:$0xff] (%p5482_p5), %v4302_v7  ;;  %4305 = vst [vmem:[%s6883_s29 + $0x340] sm:$0xff] (%p5482_p5), %v4304_v8 }
 0x2ec   : > { %v4306_v9 = vld [vmem:[%s6543_s12 + $0x220] sm:$0xff] (%p5482_p5) }
 0x2ed   : > { %4307 = vst [vmem:[%s6883_s29 + $0x348] sm:$0xff] (%p5482_p5), %v4306_v9 }
 0x2ff   : > { %v3907_v38 = vpop.f32.mrf.mxu0 }
 0x300   : > { %v3908_v40 = vadd.f32 %v3907_v38, %v6524_v51 }
 0x301   : > { %v3909_v42 = vpop.f32.mrf.mxu0 }
 0x302   : > { %v4032_v44 = vmax.f32 %v3908_v40, 0.0  ;;  %v3910_v45 = vadd.f32 %v3909_v42, %v6524_v51  ;;  %v3950_v53 = vpop.f32.mrf.mxu1 }
 0x303   : > { %v3911_v46 = vpop.f32.mrf.mxu0  ;;  %v3951_v36 = vadd.f32 %v3950_v53, %v6524_v51  ;;  %v4258_v53 = vld [vmem:[%s6543_s12 + $0x160] sm:$0xff] (%p5482_p5) }
 0x304   : > { %4106 = vst [vmem:[%s6543_s12 + $0x100] sm:$0xff] %v4032_v44  ;;  %v4033_v17 = vmax.f32 %v3910_v45, 0.0  ;;  %v3912_v47 = vadd.f32 %v3911_v46, %v6537_v61  ;;  %v3952_v54 = vpop.f32.mrf.mxu1  ;;  %v4244_v46 = vld [vmem:[%s6543_s12 + $0x128] sm:$0xff] (%p5482_p5)  ;;  %4259 = vst [vmem:[%s6883_s29 + $0x288] sm:$0xff] (%p5482_p5), %v4258_v53 }
 0x305   : > { %v3913_v48 = vpop.f32.mrf.mxu0  ;;  %v4034_v20 = vmax.f32 %v3951_v36, 0.0  ;;  %v3953_v55 = vadd.f32 %v3952_v54, %v6524_v51  ;;  %4245 = vst [vmem:[%s6883_s29 + $0x250] sm:$0xff] (%p5482_p5), %v4244_v46  ;;  %v4260_v36 = vld [vmem:[%s6543_s12 + $0x168] sm:$0xff] (%p5482_p5)  ;;  %v4262_v54 = vld [vmem:[%s6543_s12 + $0x170] sm:$0xff] (%p5482_p5) }
 0x306   : > { %4107 = vst [vmem:[%s6543_s12 + $0x108] sm:$0xff] %v4033_v17  ;;  %v4069_v49 = vmax.f32 %v3912_v47, 0.0  ;;  %v3914_v50 = vadd.f32 %v3913_v48, %v6537_v61  ;;  %v3954_v56 = vpop.f32.mrf.mxu1  ;;  %v4246_v17 = vld [vmem:[%s6543_s12 + $0x130] sm:$0xff] (%p5482_p5)  ;;  %v4248_v47 = vld [vmem:[%s6543_s12 + $0x138] sm:$0xff] (%p5482_p5)  ;;  %v4250_v48 = vld [vmem:[%s6543_s12 + $0x140] sm:$0xff] (%p5482_p5) }
 0x307   : > { %4108 = vst [vmem:[%s6543_s12 + $0x110] sm:$0xff] %v4034_v20  ;;  %v4035_v39 = vmax.f32 %v3953_v55, 0.0  ;;  %v3955_v57 = vadd.f32 %v3954_v56, %v6537_v61  ;;  %4247 = vst [vmem:[%s6883_s29 + $0x258] sm:$0xff] (%p5482_p5), %v4246_v17  ;;  %v4264_v20 = vld [vmem:[%s6543_s12 + $0x178] sm:$0xff] (%p5482_p5)  ;;  %v4266_v55 = vld [vmem:[%s6543_s12 + $0x180] sm:$0xff] (%p5482_p5) }
 0x308   : > { %4143 = vst [vmem:[%s6543_s12 + $0x228] sm:$0xff] %v4069_v49  ;;  %v4070_v52 = vmax.f32 %v3914_v50, 0.0  ;;  %v3956_v58 = vpop.f32.mrf.mxu1  ;;  %v4252_v49 = vld [vmem:[%s6543_s12 + $0x148] sm:$0xff] (%p5482_p5)  ;;  %4249 = vst [vmem:[%s6883_s29 + $0x260] sm:$0xff] (%p5482_p5), %v4248_v47  ;;  %v4254_v50 = vld [vmem:[%s6543_s12 + $0x150] sm:$0xff] (%p5482_p5) }
 0x309   : > { %4109 = vst [vmem:[%s6543_s12 + $0x118] sm:$0xff] %v4035_v39  ;;  %v4071_v59 = vmax.f32 %v3955_v57, 0.0  ;;  %v3957_v60 = vadd.f32 %v3956_v58, %v6537_v61  ;;  %4251 = vst [vmem:[%s6883_s29 + $0x268] sm:$0xff] (%p5482_p5), %v4250_v48  ;;  %v4268_v56 = vld [vmem:[%s6543_s12 + $0x188] sm:$0xff] (%p5482_p5)  ;;  %v4270_v39 = vld [vmem:[%s6543_s12 + $0x190] sm:$0xff] (%p5482_p5) }
 0x30a   : > { %4144 = vst [vmem:[%s6543_s12 + $0x230] sm:$0xff] %v4070_v52  ;;  %4253 = vst [vmem:[%s6883_s29 + $0x270] sm:$0xff] (%p5482_p5), %v4252_v49  ;;  %v4256_v52 = vld [vmem:[%s6543_s12 + $0x158] sm:$0xff] (%p5482_p5)  ;;  %v4274_v58 = vld [vmem:[%s6543_s12 + $0x1a0] sm:$0xff] (%p5482_p5) }
 0x30b   : > { %4145 = vst [vmem:[%s6543_s12 + $0x238] sm:$0xff] %v4071_v59  ;;  %v4072_v62 = vmax.f32 %v3957_v60, 0.0  ;;  %v4234_v38 = vld [vmem:[%s6543_s12 + $0x100] sm:$0xff] (%p5482_p5)  ;;  %4255 = vst [vmem:[%s6883_s29 + $0x278] sm:$0xff] (%p5482_p5), %v4254_v50  ;;  %v4272_v57 = vld [vmem:[%s6543_s12 + $0x198] sm:$0xff] (%p5482_p5) }
 0x30c   : > { %4235 = vst [vmem:[%s6883_s29 + $0x100] sm:$0xff] (%p5482_p5), %v4234_v38  ;;  %4257 = vst [vmem:[%s6883_s29 + $0x280] sm:$0xff] (%p5482_p5), %v4256_v52  ;;  %v4276_v59 = vld [vmem:[%s6543_s12 + $0x1a8] sm:$0xff] (%p5482_p5)  ;;  %v4278_v60 = vld [vmem:[%s6543_s12 + $0x1b0] sm:$0xff] (%p5482_p5) }
 0x30d   : > { %4146 = vst [vmem:[%s6543_s12 + $0x240] sm:$0xff] %v4072_v62  ;;  %v4236_v40 = vld [vmem:[%s6543_s12 + $0x108] sm:$0xff] (%p5482_p5)  ;;  %4261 = vst [vmem:[%s6883_s29 + $0x290] sm:$0xff] (%p5482_p5), %v4260_v36  ;;  %v4280_v62 = vld [vmem:[%s6543_s12 + $0x1b8] sm:$0xff] (%p5482_p5) }
 0x30e   : > { %v4238_v42 = vld [vmem:[%s6543_s12 + $0x110] sm:$0xff] (%p5482_p5)  ;;  %4237 = vst [vmem:[%s6883_s29 + $0x108] sm:$0xff] (%p5482_p5), %v4236_v40  ;;  %4263 = vst [vmem:[%s6883_s29 + $0x298] sm:$0xff] (%p5482_p5), %v4262_v54 }
 0x30f   : > { %4239 = vst [vmem:[%s6883_s29 + $0x110] sm:$0xff] (%p5482_p5), %v4238_v42  ;;  %4265 = vst [vmem:[%s6883_s29 + $0x2a0] sm:$0xff] (%p5482_p5), %v4264_v20  ;;  %v4308_v41 = vld [vmem:[%s6543_s12 + $0x228] sm:$0xff] (%p5482_p5) }
 0x310   : > { %v4240_v44 = vld [vmem:[%s6543_s12 + $0x118] sm:$0xff] (%p5482_p5)  ;;  %4267 = vst [vmem:[%s6883_s29 + $0x2a8] sm:$0xff] (%p5482_p5), %v4266_v55  ;;  %4269 = vst [vmem:[%s6883_s29 + $0x2b0] sm:$0xff] (%p5482_p5), %v4268_v56 }
 0x311   : > { %4241 = vst [vmem:[%s6883_s29 + $0x118] sm:$0xff] (%p5482_p5), %v4240_v44  ;;  %4271 = vst [vmem:[%s6883_s29 + $0x2b8] sm:$0xff] (%p5482_p5), %v4270_v39  ;;  %v4310_v10 = vld [vmem:[%s6543_s12 + $0x230] sm:$0xff] (%p5482_p5) }
 0x312   : > { %4273 = vst [vmem:[%s6883_s29 + $0x2c0] sm:$0xff] (%p5482_p5), %v4272_v57  ;;  %4275 = vst [vmem:[%s6883_s29 + $0x2c8] sm:$0xff] (%p5482_p5), %v4274_v58  ;;  %v4312_v11 = vld [vmem:[%s6543_s12 + $0x238] sm:$0xff] (%p5482_p5) }
 0x313   : > { %4277 = vst [vmem:[%s6883_s29 + $0x2d0] sm:$0xff] (%p5482_p5), %v4276_v59  ;;  %4279 = vst [vmem:[%s6883_s29 + $0x2d8] sm:$0xff] (%p5482_p5), %v4278_v60 }
 0x314   : > { %4281 = vst [vmem:[%s6883_s29 + $0x2e0] sm:$0xff] (%p5482_p5), %v4280_v62  ;;  %4309 = vst [vmem:[%s6883_s29 + $0x350] sm:$0xff] (%p5482_p5), %v4308_v41  ;;  %v4314_v12 = vld [vmem:[%s6543_s12 + $0x240] sm:$0xff] (%p5482_p5) }
 0x315   : > { %4311 = vst [vmem:[%s6883_s29 + $0x358] sm:$0xff] (%p5482_p5), %v4310_v10  ;;  %4313 = vst [vmem:[%s6883_s29 + $0x360] sm:$0xff] (%p5482_p5), %v4312_v11 }
 0x316   : > { %4315 = vst [vmem:[%s6883_s29 + $0x368] sm:$0xff] (%p5482_p5), %v4314_v12 }
 0x327   : > { %v3993_v63 = vpop.f32.mrf.mxu0 }
 0x328   : > { %v3994_v0 = vadd.f32 %v3993_v63, %v6524_v51  ;;  %v4170_v51 = vld [vmem:[%s6543_s12] sm:$0xff] (%p5482_p5) }
 0x329   : > { %v3995_v1 = vpop.f32.mrf.mxu0  ;;  %4171 = vst [vmem:[%s6883_s29] sm:$0xff] (%p5482_p5), %v4170_v51  ;;  %v4282_v63 = vld [vmem:[%s6543_s12 + $0x1c0] sm:$0xff] (%p5482_p5) }
 0x32a   : > { %v4036_v2 = vmax.f32 %v3994_v0, 0.0  ;;  %4283 = vst [vmem:[%s6883_s29 + $0x2e8] sm:$0xff] (%p5482_p5), %v4282_v63  ;;  %v4284_v0 = vld [vmem:[%s6543_s12 + $0x1c8] sm:$0xff] (%p5482_p5)  ;;  %v4286_v1 = vld [vmem:[%s6543_s12 + $0x1d0] sm:$0xff] (%p5482_p5)  ;;  %v4298_v51 = vld [vmem:[%s6543_s12 + $0x200] sm:$0xff] (%p5482_p5) }
 0x32b   : > { %v3996_v3 = vpop.f32.mrf.mxu0  ;;  %4285 = vst [vmem:[%s6883_s29 + $0x2f0] sm:$0xff] (%p5482_p5), %v4284_v0  ;;  %4287 = vst [vmem:[%s6883_s29 + $0x2f8] sm:$0xff] (%p5482_p5), %v4286_v1 }
 0x32c   : > { %4110 = vst [vmem:[%s6543_s12 + $0x120] sm:$0xff] %v4036_v2  ;;  %v3997_v4 = vadd.f32 %v3996_v3, %v6537_v61  ;;  %4154 = sbr.rel (!%p5482_p5) target bundleno = 825 (0x339), region = 62  ;;  %v4172_v61 = vld [vmem:[%s6543_s12 + $0x8] sm:$0xff] (%p5482_p5)  ;;  %v4288_v2 = vld [vmem:[%s6543_s12 + $0x1d8] sm:$0xff] (%p5482_p5)  ;;  %v4290_v3 = vld [vmem:[%s6543_s12 + $0x1e0] sm:$0xff] (%p5482_p5) }
 0x32d   : > { %v3998_v5 = vpop.f32.mrf.mxu0  ;;  %4173 = vst [vmem:[%s6883_s29 + $0x8] sm:$0xff] (%p5482_p5), %v4172_v61  ;;  %4289 = vst [vmem:[%s6883_s29 + $0x300] sm:$0xff] (%p5482_p5), %v4288_v2  ;;  %v4300_v61 = vld [vmem:[%s6543_s12 + $0x208] sm:$0xff] (%p5482_p5) }
 0x32e   : > { %v4073_v6 = vmax.f32 %v3997_v4, 0.0  ;;  %v4292_v4 = vld [vmem:[%s6543_s12 + $0x1e8] sm:$0xff] (%p5482_p5)  ;;  %v4294_v5 = vld [vmem:[%s6543_s12 + $0x1f0] sm:$0xff] (%p5482_p5)  ;;  %4291 = vst [vmem:[%s6883_s29 + $0x308] sm:$0xff] (%p5482_p5), %v4290_v3  ;;  %4299 = vst [vmem:[%s6883_s29 + $0x328] sm:$0xff] (%p5482_p5), %v4298_v51 }
 0x32f   : > { %4293 = vst [vmem:[%s6883_s29 + $0x310] sm:$0xff] (%p5482_p5), %v4292_v4  ;;  %4295 = vst [vmem:[%s6883_s29 + $0x318] sm:$0xff] (%p5482_p5), %v4294_v5 }
 0x330   : > { %4147 = vst [vmem:[%s6543_s12 + $0x248] sm:$0xff] %v4073_v6  ;;  %v4296_v6 = vld [vmem:[%s6543_s12 + $0x1f8] sm:$0xff] (%p5482_p5)  ;;  %4301 = vst [vmem:[%s6883_s29 + $0x330] sm:$0xff] (%p5482_p5), %v4300_v61 }
 0x331   : > { %4297 = vst [vmem:[%s6883_s29 + $0x320] sm:$0xff] %v4296_v6 }
 0x333   : > { %v4242_v45 = vld [vmem:[%s6543_s12 + $0x120] sm:$0xff] }
 0x334   : > { %4243 = vst [vmem:[%s6883_s29 + $0x120] sm:$0xff] %v4242_v45 }
 0x337   : > { %v4316_v43 = vld [vmem:[%s6543_s12 + $0x248] sm:$0xff] }
 0x338   : > { %4317 = vst [vmem:[%s6883_s29 + $0x370] sm:$0xff] %v4316_v43 }
 0x339 PF: > { %p10_p10 = scmp.ge.s32.totalorder %s5469_s16, 4   ;;  %s7042_s12 = smov %s5425_s13 }
 0x33a   : > { %s7043_s13 = smov %s5480_s19  ;;  %s7044_s14 = smov %s5469_s16 }
 0x33b   :  { %12 = sbr.rel (!%p10_p10) target bundleno = 2 (0x2), region = 122 }

// kernel: net_forward.6
= control target key start
LH: loop header
LB: loop body
LE: loop exit
PB: predicated region body
PF: predicated region fallthrough
CT: control target
= control target key end

     0   :  { %s4836_s9 = smov 0   ;;  %s4838_s10 = smov 0   ;;  %s5266_s0 = inlined_call_operand.vmem [shape: bf16[2,18944], index: 0, kind: input, shape index: {}]   ;;  %s5267_s1 = inlined_call_operand.vmem [shape: bf16[18944,128], index: 1, kind: input, shape index: {}]   ;;  %s5268_s2 = inlined_call_operand.vmem [shape: f32[2,2,128], index: 2, kind: output, shape index: {}]  }
   0x1   :  { %s4840_s11 = smov 0   ;;  %s4842_s12 = smov 0  }
   0x2   :  { %s4844_s13 = smov 0  }
   0x3 LB: > { %s21_s14 = sadd.s32 1, %s4807_s11  ;;  %s24_s15 = sadd.s32 1, %s4811_s12  ;;  %s4815_s13 = sphi %s4844_s13, %s12_s13   ;;  %s4811_s12 = sphi %s4842_s12, %s5272_s12   ;;  %s4807_s11 = sphi %s4840_s11, %s5271_s11   ;;  %s4803_s10 = sphi %s4838_s10, %s5270_s10   ;;  %s4799_s9 = sphi %s4836_s9, %s5269_s9  }
   0x4   : > { %p22_p0 = scmp.ge.s32.totalorder %s21_s14, 2  ;;  %p3703_p1 = scmp.ge.s32.totalorder %s4815_s13, 1 }
   0x5   : > { %p151_p2 = scmp.lt.s32.totalorder %s4815_s13, 5 }
   0x6   : > { %s5274_s14 = smov (%p22_p0, %s21_s14), 0  ;;  %s5276_s15 = smov (!%p22_p0, %s24_s15), %s4811_s12 }
   0x7   : > { %p152_p3 = pnand %p3703_p1, %p151_p2  ;;  %p26_p4 = scmp.ge.s32.totalorder %s5276_s15, 2 }
   0x8   : > { %s3704_s16 = sshll.u32 (!%p152_p3), %s4803_s10, 1  ;;  %p199_p7 = scmp.lt.s32.totalorder (!%p152_p3), %s4803_s10, 1 }
   0x9   : > { %s5278_s15 = smov (%p26_p4, %s5276_s15), 0  ;;  %155 = sbr.rel (%p152_p3) target bundleno = 546 (0x222), region = 28 }
   0xa   : > { %s181_s17 = sadd.s32 (!%p152_p3), %s4799_s9, %s3704_s16  ;;  %p3708_p8 = scmp.ne.s32.totalorder (!%p152_p3), %s4799_s9, 0 }
   0xb   : > { %s182_s18 = smul.u32 (!%p152_p3), 37, %s181_s17 }
   0xc   : > { %s191_s19 = smul.u32 (!%p152_p3), 592, %s181_s17 }
   0xd   : > { %p183_p5 = scmp.lt.s32.totalorder (!%p152_p3), %s182_s18, 147 }
   0xe   : > { %p192_p6 = scmp.lt.s32.totalorder %s191_s19, 2367  ;;  %s5284_s10 = smov (!%p199_p7, %s4803_s10), 1 }
   0xf   : > { %s5280_s18 = smov (!%p183_p5, %s182_s18), 147  ;;  %s3707_s27 = sshll.u32 %s5284_s10, 1 }
  0x10   : > { %s5282_s19 = smov (!%p192_p6, %s191_s19), 2367  ;;  %s4872_s22 = scalar_lea.vmem %s5266_s0, %s5280_s18 }
  0x11   : > { %s3706_s23 = sshll.u32 %s5282_s19, 2  ;;  %s4882_s30 = scalar_lea.vmem %s5268_s2, %s3707_s27 }
  0x12   : > { %s4877_s26 = scalar_lea.vmem %s5267_s1, %s3706_s23  ;;  %207 = sbr.rel (%p3708_p8) target bundleno = 25 (0x19), region = 32 }
  0x17   : > { %v4817_v0 = vmov 0.0  }
  0x18   : > { %208 = vst [vmem:[%s4882_s30] sm:$0x3] %v4817_v0 }
  0x19 PF: > { %v4476_v1 = vld [vmem:[%s4877_s26 + $0x78] sm:$0xff]   ;;  %v4480_v5 = vld [vmem:[%s4877_s26 + $0x70] sm:$0xff]   ;;  %v4484_v9 = vld [vmem:[%s4877_s26 + $0x68] sm:$0xff]   ;;  %v816_v30 = vlaneseq  ;;  %v4818_v36 = vmov 1966171168   ;;  %vm4820_vm0 = vmmov 0  }
  0x1a   : > { %v4477_v2 = vld [vmem:[%s4877_s26 + $0xf8] sm:$0xff]   ;;  %4007 = vmatprep.subr.bf16.mxu0 %v4476_v1  ;;  %v4481_v6 = vld [vmem:[%s4877_s26 + $0xf0] sm:$0xff]   ;;  %v4485_v10 = vld [vmem:[%s4877_s26 + $0xe8] sm:$0xff]   ;;  %v814_v37 = vunpack.c.l.s4 %v4818_v36 }
  0x1b   : > { %v4478_v3 = vld [vmem:[%s4877_s26 + $0x38] sm:$0xff]   ;;  %4029 = vmatprep.subr.bf16.mxu1 %v4477_v2  ;;  %v4482_v7 = vld [vmem:[%s4877_s26 + $0x30] sm:$0xff]   ;;  %v4486_v11 = vld [vmem:[%s4877_s26 + $0x28] sm:$0xff]   ;;  %v817_v34 = vshrl.u32 %v816_v30, 7 }
  0x1c   : > { %v4479_v4 = vld [vmem:[%s4877_s26 + $0xb8] sm:$0xff]   ;;  %4008 = vmatpush3.bf16.msra.mxu0 %v4478_v3  ;;  %v4483_v8 = vld [vmem:[%s4877_s26 + $0xb0] sm:$0xff]   ;;  %v4487_v12 = vld [vmem:[%s4877_s26 + $0xa8] sm:$0xff]   ;;  %v815_v40 = vunpack.c.0.s8 %v814_v37 }
  0x1d   : > { %4030 = vmatpush3.bf16.msra.mxu1 %v4479_v4  ;;  %4009 = vmatprep.subr.bf16.mxu0 %v4480_v5  ;;  %v4488_v13 = vld [vmem:[%s4877_s26 + $0x60] sm:$0xff]   ;;  %v4492_v17 = vld [vmem:[%s4877_s26 + $0x58] sm:$0xff]   ;;  %v4496_v21 = vld [vmem:[%s4877_s26 + $0x50] sm:$0xff]  }
  0x1e   : > { %4031 = vmatprep.subr.bf16.mxu1 %v4481_v6  ;;  %v4489_v14 = vld [vmem:[%s4877_s26 + $0xe0] sm:$0xff]   ;;  %v4493_v18 = vld [vmem:[%s4877_s26 + $0xd8] sm:$0xff]   ;;  %v4497_v22 = vld [vmem:[%s4877_s26 + $0xd0] sm:$0xff]   ;;  %v4921_v42 = vsub.s32 %v815_v40, %v817_v34 }
  0x1f   : > { %v4490_v15 = vld [vmem:[%s4877_s26 + $0x20] sm:$0xff]   ;;  %v4494_v19 = vld [vmem:[%s4877_s26 + $0x18] sm:$0xff]   ;;  %v4498_v23 = vld [vmem:[%s4877_s26 + $0x10] sm:$0xff]  }
  0x20   : > { %4010 = vmatpush3.bf16.msra.mxu0 %v4482_v7  ;;  %v4491_v16 = vld [vmem:[%s4877_s26 + $0xa0] sm:$0xff]   ;;  %v4495_v20 = vld [vmem:[%s4877_s26 + $0x98] sm:$0xff]   ;;  %v4499_v24 = vld [vmem:[%s4877_s26 + $0x90] sm:$0xff]  }
  0x21   : > { %4032 = vmatpush3.bf16.msra.mxu1 %v4483_v8  ;;  %4011 = vmatprep.subr.bf16.mxu0 %v4484_v9  ;;  %v4500_v25 = vld [vmem:[%s4877_s26 + $0x48] sm:$0xff]   ;;  %v4504_v29 = vld [vmem:[%s4877_s26 + $0x40] sm:$0xff]   ;;  %v4509_v35 = vld [vmem:[%s4877_s26 + $0x178] sm:$0xff]  }
  0x22   : > { %4033 = vmatprep.subr.bf16.mxu1 %v4485_v10  ;;  %v4501_v26 = vld [vmem:[%s4877_s26 + $0xc8] sm:$0xff]   ;;  %v4505_v31 = vld [vmem:[%s4877_s26 + $0xc0] sm:$0xff]   ;;  %v4511_v41 = vld [vmem:[%s4877_s26 + $0x1f8] sm:$0xff]  }
  0x23   : > { %v4502_v27 = vld [vmem:[%s4877_s26 + $0x8] sm:$0xff]   ;;  %v4506_v32 = vld [vmem:[%s4877_s26] sm:$0xff]   ;;  %v4510_v48 = vld [vmem:[%s4877_s26 + $0x138] sm:$0xff]  }
  0x24   : > { %4012 = vmatpush3.bf16.msra.mxu0 %v4486_v11  ;;  %v4503_v28 = vld [vmem:[%s4877_s26 + $0x88] sm:$0xff]   ;;  %v4507_v33 = vld [vmem:[%s4877_s26 + $0x80] sm:$0xff]   ;;  %v4512_v50 = vld [vmem:[%s4877_s26 + $0x1b8] sm:$0xff]  }
  0x25   : > { %4034 = vmatpush3.bf16.msra.mxu1 %v4487_v12  ;;  %4013 = vmatprep.subr.bf16.mxu0 %v4488_v13  ;;  %v210_v38 = vld [vmem:[%s4872_s22] sm:$0xff]  ;;  %v4513_v53 = vld [vmem:[%s4877_s26 + $0x170] sm:$0xff]   ;;  %v4517_v59 = vld [vmem:[%s4877_s26 + $0x168] sm:$0xff]  }
  0x26   : > { %4035 = vmatprep.subr.bf16.mxu1 %v4489_v14  ;;  %v812_v39 = vcombine.high %v210_v38, %v210_v38  ;;  %v819_v43 = vrot.slane %v210_v38, %v4921_v42  ;;  %v4514_v55 = vld [vmem:[%s4877_s26 + $0x130] sm:$0xff]   ;;  %v4518_v60 = vld [vmem:[%s4877_s26 + $0x128] sm:$0xff]   ;;  %v4521_v63 = vld [vmem:[%s4877_s26 + $0x160] sm:$0xff]  }
  0x27   : > { %v4515_v56 = vld [vmem:[%s4877_s26 + $0x1f0] sm:$0xff]   ;;  %v4519_v61 = vld [vmem:[%s4877_s26 + $0x1e8] sm:$0xff]   ;;  %v4522_v0 = vld [vmem:[%s4877_s26 + $0x120] sm:$0xff]  }
  0x28   : > { %4014 = vmatpush3.bf16.msra.mxu0 %v4490_v15  ;;  %v4925_v44 = vrot.slane %v812_v39, %v4921_v42  ;;  %v827_v45 = vcombine.high %v819_v43, %v819_v43  ;;  %v835_v46 = vrot.slane %v819_v43, %v4921_v42  ;;  %v4516_v58 = vld [vmem:[%s4877_s26 + $0x1b0] sm:$0xff]   ;;  %v4520_v62 = vld [vmem:[%s4877_s26 + $0x1a8] sm:$0xff]   ;;  %v4523_v1 = vld [vmem:[%s4877_s26 + $0x1e0] sm:$0xff]  }
  0x29   : > { %4036 = vmatpush3.bf16.msra.mxu1 %v4491_v16  ;;  %4015 = vmatprep.subr.bf16.mxu0 %v4492_v17  ;;  %v4524_v2 = vld [vmem:[%s4877_s26 + $0x1a0] sm:$0xff]   ;;  %v4525_v3 = vld [vmem:[%s4877_s26 + $0x158] sm:$0xff]   ;;  %v4529_v7 = vld [vmem:[%s4877_s26 + $0x150] sm:$0xff]  }
  0x2a   : > { %4037 = vmatprep.subr.bf16.mxu1 %v4493_v18  ;;  %v828_v47 = vcombine.high %v4925_v44, %v4925_v44  ;;  %v849_v49 = vrot.slane %v827_v45, %v4921_v42  ;;  %v857_v52 = vcombine.high %v835_v46, %v835_v46  ;;  %v4526_v4 = vld [vmem:[%s4877_s26 + $0x118] sm:$0xff]   ;;  %v4530_v8 = vld [vmem:[%s4877_s26 + $0x110] sm:$0xff]   ;;  %v4533_v11 = vld [vmem:[%s4877_s26 + $0x148] sm:$0xff]  }
  0x2b   : > { %v4527_v5 = vld [vmem:[%s4877_s26 + $0x1d8] sm:$0xff]   ;;  %v4531_v9 = vld [vmem:[%s4877_s26 + $0x1d0] sm:$0xff]   ;;  %v4534_v12 = vld [vmem:[%s4877_s26 + $0x108] sm:$0xff]  }
  0x2c   : > { %4016 = vmatpush3.bf16.msra.mxu0 %v4494_v19  ;;  %v856_v51 = vrot.slane %v828_v47, %v4921_v42  ;;  %2892 = vmatprep.mubr.bf16.mxu0 %v849_v49  ;;  %v859_v54 = vcombine.high %v849_v49, %v849_v49  ;;  %v4528_v6 = vld [vmem:[%s4877_s26 + $0x198] sm:$0xff]   ;;  %v4532_v10 = vld [vmem:[%s4877_s26 + $0x190] sm:$0xff]   ;;  %v4535_v13 = vld [vmem:[%s4877_s26 + $0x1c8] sm:$0xff]   ;;  %v842_v19 = vrot.slane %v4925_v44, %v4921_v42 }
  0x2d   : > { %4038 = vmatpush3.bf16.msra.mxu1 %v4495_v20  ;;  %4017 = vmatprep.subr.bf16.mxu0 %v4496_v21  ;;  %v4536_v14 = vld [vmem:[%s4877_s26 + $0x188] sm:$0xff]   ;;  %v4537_v15 = vld [vmem:[%s4877_s26 + $0x140] sm:$0xff]   ;;  %v4541_v20 = vld [vmem:[%s4877_s26 + $0x278] sm:$0xff]  }
  0x2e   : > { %4039 = vmatprep.subr.bf16.mxu1 %v4497_v22  ;;  %v860_v57 = vcombine.high %v856_v51, %v856_v51  ;;  %2932 = vmatprep.mubr.bf16.mxu1 %v859_v54  ;;  %v4538_v16 = vld [vmem:[%s4877_s26 + $0x100] sm:$0xff]   ;;  %v4542_v21 = vld [vmem:[%s4877_s26 + $0x238] sm:$0xff]   ;;  %v4550_v30 = vld [vmem:[%s4877_s26 + $0x228] sm:$0xff]  }
  0x2f   : > { %v4539_v17 = vld [vmem:[%s4877_s26 + $0x1c0] sm:$0xff]   ;;  %v4543_v22 = vld [vmem:[%s4877_s26 + $0x2f8] sm:$0xff]   ;;  %v4562_v43 = vld [vmem:[%s4877_s26 + $0x210] sm:$0xff]  }
  0x30   : > { %4018 = vmatpush3.bf16.msra.mxu0 %v4498_v23  ;;  %v4540_v18 = vld [vmem:[%s4877_s26 + $0x180] sm:$0xff]   ;;  %v4544_v23 = vld [vmem:[%s4877_s26 + $0x2b8] sm:$0xff]   ;;  %v4563_v44 = vld [vmem:[%s4877_s26 + $0x2d0] sm:$0xff]  }
  0x31   : > { %4040 = vmatpush3.bf16.msra.mxu1 %v4499_v24  ;;  %4019 = vmatprep.subr.bf16.mxu0 %v4500_v25  ;;  %v858_v24 = vcombine.high %v842_v19, %v842_v19  ;;  %v4545_v25 = vld [vmem:[%s4877_s26 + $0x270] sm:$0xff]   ;;  %v4554_v34 = vld [vmem:[%s4877_s26 + $0x220] sm:$0xff]   ;;  %v4557_v37 = vld [vmem:[%s4877_s26 + $0x258] sm:$0xff]  }
  0x32   : > { %4041 = vmatprep.subr.bf16.mxu1 %v4501_v26  ;;  %v4546_v26 = vld [vmem:[%s4877_s26 + $0x230] sm:$0xff]   ;;  %v4556_v36 = vld [vmem:[%s4877_s26 + $0x2a0] sm:$0xff]   ;;  %v4558_v38 = vld [vmem:[%s4877_s26 + $0x218] sm:$0xff]  }
  0x33   : > { %v4559_v39 = vld [vmem:[%s4877_s26 + $0x2d8] sm:$0xff]   ;;  %v4564_v45 = vld [vmem:[%s4877_s26 + $0x290] sm:$0xff]   ;;  %v4565_v47 = vld [vmem:[%s4877_s26 + $0x248] sm:$0xff]  }
  0x34   : > { %4020 = vmatpush3.bf16.msra.mxu0 %v4502_v27  ;;  %v4547_v27 = vld [vmem:[%s4877_s26 + $0x2f0] sm:$0xff]   ;;  %v4560_v40 = vld [vmem:[%s4877_s26 + $0x298] sm:$0xff]   ;;  %v4568_v54 = vld [vmem:[%s4877_s26 + $0x288] sm:$0xff]  }
  0x35   : > { %4042 = vmatpush3.bf16.msra.mxu1 %v4503_v28  ;;  %4021 = vmatprep.subr.bf16.mxu0 %v4504_v29  ;;  %v4548_v28 = vld [vmem:[%s4877_s26 + $0x2b0] sm:$0xff]   ;;  %v4549_v29 = vld [vmem:[%s4877_s26 + $0x268] sm:$0xff]  }
  0x36   : > { %4043 = vmatprep.subr.bf16.mxu1 %v4505_v31  ;;  %v4551_v31 = vld [vmem:[%s4877_s26 + $0x2e8] sm:$0xff]  }
  0x38   : > { %4022 = vmatpush3.bf16.msra.mxu0 %v4506_v32  ;;  %v4552_v32 = vld [vmem:[%s4877_s26 + $0x2a8] sm:$0xff]  }
  0x39   : > { %4044 = vmatpush3.bf16.msra.mxu1 %v4507_v33  ;;  %4051 = vmatprep.subr.bf16.mxu0 %v4509_v35  ;;  %v4553_v33 = vld [vmem:[%s4877_s26 + $0x260] sm:$0xff]  }
  0x3a   : > { %4073 = vmatprep.subr.bf16.mxu1 %v4511_v41  ;;  %v4555_v35 = vld [vmem:[%s4877_s26 + $0x2e0] sm:$0xff]   ;;  %v4561_v41 = vld [vmem:[%s4877_s26 + $0x250] sm:$0xff]  }
  0x3b   : > { %2893 = vmatmul.mubr.bf16.vlgmr.msra.gmra.mxu0 %v835_v46  ;;  %v211_v46 = vld [vmem:[%s4872_s22 + $0x8] sm:$0xff] }
  0x3c   : > { %4052 = vmatpush3.bf16.msra.mxu0 %v4510_v48  ;;  %2933 = vmatmul.mubr.bf16.vlgmr.msra.gmra.mxu1 %v857_v52  ;;  %v868_v48 = vrot.slane %v211_v46, %v4921_v42  ;;  %v861_v49 = vcombine.high %v211_v46, %v211_v46  ;;  %v4615_v46 = vld [vmem:[%s4877_s26 + $0x428] sm:$0xff]  }
  0x3d   : > { %4053 = vmatprep.subr.bf16.mxu0 %v4513_v53  ;;  %4074 = vmatpush3.bf16.msra.mxu1 %v4512_v50  ;;  %v4566_v50 = vld [vmem:[%s4877_s26 + $0x208] sm:$0xff]  }
  0x3e   : > { %2972 = vmatprep.mubr.bf16.mxu0 %v856_v51  ;;  %4075 = vmatprep.subr.bf16.mxu1 %v4515_v56  ;;  %v4567_v51 = vld [vmem:[%s4877_s26 + $0x2c8] sm:$0xff]   ;;  %v876_v52 = vcombine.high %v868_v48, %v868_v48  ;;  %v4994_v53 = vrot.slane %v861_v49, %v4921_v42  ;;  %v4618_v49 = vld [vmem:[%s4877_s26 + $0x460] sm:$0xff]  }
  0x3f   : > { %3012 = vmatprep.mubr.bf16.mxu1 %v860_v57  ;;  %v4570_v57 = vld [vmem:[%s4877_s26 + $0x200] sm:$0xff]  }
  0x40   : > { %4054 = vmatpush3.bf16.msra.mxu0 %v4514_v55  ;;  %v4569_v55 = vld [vmem:[%s4877_s26 + $0x240] sm:$0xff]   ;;  %v898_v56 = vrot.slane %v876_v52, %v4921_v42 }
  0x41   : > { %4055 = vmatprep.subr.bf16.mxu0 %v4517_v59  ;;  %4076 = vmatpush3.bf16.msra.mxu1 %v4516_v58  ;;  %v877_v58 = vcombine.high %v4994_v53, %v4994_v53  ;;  %v4571_v59 = vld [vmem:[%s4877_s26 + $0x2c0] sm:$0xff]  }
  0x42   : > { %4077 = vmatprep.subr.bf16.mxu1 %v4519_v61  ;;  %v4572_v61 = vld [vmem:[%s4877_s26 + $0x280] sm:$0xff]  }
  0x43   : > { %v4621_v52 = vld [vmem:[%s4877_s26 + $0x4a0] sm:$0xff]  }
  0x44   : > { %4056 = vmatpush3.bf16.msra.mxu0 %v4518_v60  ;;  %v908_v60 = vcombine.high %v898_v56, %v898_v56 }
  0x45   : > { %4057 = vmatprep.subr.bf16.mxu0 %v4521_v63  ;;  %4078 = vmatpush3.bf16.msra.mxu1 %v4520_v62  ;;  %v884_v62 = vrot.slane %v868_v48, %v4921_v42  ;;  %v4573_v63 = vld [vmem:[%s4877_s26 + $0x378] sm:$0xff]   ;;  %v4617_v48 = vld [vmem:[%s4877_s26 + $0x4a8] sm:$0xff]  }
  0x46   : > { %4079 = vmatprep.subr.bf16.mxu1 %v4523_v1  ;;  %v905_v1 = vrot.slane %v877_v58, %v4921_v42  ;;  %v4627_v58 = vld [vmem:[%s4877_s26 + $0x410] sm:$0xff]  }
  0x48   : > { %4058 = vmatpush3.bf16.msra.mxu0 %v4522_v0  ;;  %v4574_v0 = vld [vmem:[%s4877_s26 + $0x338] sm:$0xff]  }
  0x49   : > { %4059 = vmatprep.subr.bf16.mxu0 %v4525_v3  ;;  %4080 = vmatpush3.bf16.msra.mxu1 %v4524_v2  ;;  %v4575_v2 = vld [vmem:[%s4877_s26 + $0x3f8] sm:$0xff]  }
  0x4a   : > { %4081 = vmatprep.subr.bf16.mxu1 %v4527_v5  ;;  %v4576_v3 = vld [vmem:[%s4877_s26 + $0x3b8] sm:$0xff]   ;;  %v4577_v5 = vld [vmem:[%s4877_s26 + $0x370] sm:$0xff]  }
  0x4c   : > { %4060 = vmatpush3.bf16.msra.mxu0 %v4526_v4  ;;  %v906_v4 = vcombine.high %v884_v62, %v884_v62 }
  0x4d   : > { %4061 = vmatprep.subr.bf16.mxu0 %v4529_v7  ;;  %4082 = vmatpush3.bf16.msra.mxu1 %v4528_v6  ;;  %v4578_v6 = vld [vmem:[%s4877_s26 + $0x330] sm:$0xff]   ;;  %v909_v7 = vcombine.high %v905_v1, %v905_v1 }
  0x4e   : > { %4083 = vmatprep.subr.bf16.mxu1 %v4531_v9  ;;  %v4580_v9 = vld [vmem:[%s4877_s26 + $0x3b0] sm:$0xff]  }
  0x50   : > { %4062 = vmatpush3.bf16.msra.mxu0 %v4530_v8  ;;  %v4579_v8 = vld [vmem:[%s4877_s26 + $0x3f0] sm:$0xff]  }
  0x51   : > { %4063 = vmatprep.subr.bf16.mxu0 %v4533_v11  ;;  %4084 = vmatpush3.bf16.msra.mxu1 %v4532_v10  ;;  %v4581_v10 = vld [vmem:[%s4877_s26 + $0x368] sm:$0xff]  }
  0x52   : > { %4085 = vmatprep.subr.bf16.mxu1 %v4535_v13  ;;  %v4582_v11 = vld [vmem:[%s4877_s26 + $0x328] sm:$0xff]  }
  0x53   : > { %v4584_v13 = vld [vmem:[%s4877_s26 + $0x3a8] sm:$0xff]  }
  0x54   : > { %4064 = vmatpush3.bf16.msra.mxu0 %v4534_v12  ;;  %v4583_v12 = vld [vmem:[%s4877_s26 + $0x3e8] sm:$0xff]  }
  0x55   : > { %4065 = vmatprep.subr.bf16.mxu0 %v4537_v15  ;;  %4086 = vmatpush3.bf16.msra.mxu1 %v4536_v14  ;;  %v4585_v14 = vld [vmem:[%s4877_s26 + $0x360] sm:$0xff]  }
  0x56   : > { %4087 = vmatprep.subr.bf16.mxu1 %v4539_v17  ;;  %v4586_v15 = vld [vmem:[%s4877_s26 + $0x320] sm:$0xff]  }
  0x57   : > { %v4588_v17 = vld [vmem:[%s4877_s26 + $0x3a0] sm:$0xff]  }
  0x58   : > { %4066 = vmatpush3.bf16.msra.mxu0 %v4538_v16  ;;  %v4587_v16 = vld [vmem:[%s4877_s26 + $0x3e0] sm:$0xff]  }
  0x59   : > { %4095 = vmatprep.subr.bf16.mxu0 %v4541_v20  ;;  %4088 = vmatpush3.bf16.msra.mxu1 %v4540_v18  ;;  %v4589_v18 = vld [vmem:[%s4877_s26 + $0x358] sm:$0xff]  }
  0x5a   : > { %4117 = vmatprep.subr.bf16.mxu1 %v4543_v22  ;;  %v4591_v20 = vld [vmem:[%s4877_s26 + $0x3d8] sm:$0xff]   ;;  %v4593_v22 = vld [vmem:[%s4877_s26 + $0x350] sm:$0xff]  }
  0x5b   : > { %2973 = vmatmul.mubr.bf16.vlgmr.msra.gmra.mxu0 %v842_v19  ;;  %v4590_v19 = vld [vmem:[%s4877_s26 + $0x318] sm:$0xff]  }
  0x5c   : > { %4096 = vmatpush3.bf16.msra.mxu0 %v4542_v21  ;;  %3013 = vmatmul.mubr.bf16.vlgmr.msra.gmra.mxu1 %v858_v24  ;;  %v4592_v21 = vld [vmem:[%s4877_s26 + $0x398] sm:$0xff]   ;;  %v4595_v24 = vld [vmem:[%s4877_s26 + $0x3d0] sm:$0xff]  }
  0x5d   : > { %4097 = vmatprep.subr.bf16.mxu0 %v4545_v25  ;;  %4118 = vmatpush3.bf16.msra.mxu1 %v4544_v23  ;;  %v4594_v23 = vld [vmem:[%s4877_s26 + $0x310] sm:$0xff]  }
  0x5e   : > { %4119 = vmatprep.subr.bf16.mxu1 %v4547_v27  ;;  %3052 = vmatprep.mubr.bf16.mxu0 %v898_v56  ;;  %v4596_v25 = vld [vmem:[%s4877_s26 + $0x390] sm:$0xff]   ;;  %v4598_v27 = vld [vmem:[%s4877_s26 + $0x308] sm:$0xff]   ;;  %v4625_v56 = vld [vmem:[%s4877_s26 + $0x498] sm:$0xff]  }
  0x5f   : > { %3092 = vmatprep.mubr.bf16.mxu1 %v908_v60  ;;  %v4629_v60 = vld [vmem:[%s4877_s26 + $0x490] sm:$0xff]  }
  0x60   : > { %4098 = vmatpush3.bf16.msra.mxu0 %v4546_v26  ;;  %v4597_v26 = vld [vmem:[%s4877_s26 + $0x348] sm:$0xff]  }
  0x61   : > { %4099 = vmatprep.subr.bf16.mxu0 %v4549_v29  ;;  %4120 = vmatpush3.bf16.msra.mxu1 %v4548_v28  ;;  %v4599_v28 = vld [vmem:[%s4877_s26 + $0x3c8] sm:$0xff]  }
  0x62   : > { %4121 = vmatprep.subr.bf16.mxu1 %v4551_v31  ;;  %v4600_v29 = vld [vmem:[%s4877_s26 + $0x388] sm:$0xff]   ;;  %v4602_v31 = vld [vmem:[%s4877_s26 + $0x300] sm:$0xff]  }
  0x64   : > { %4100 = vmatpush3.bf16.msra.mxu0 %v4550_v30  ;;  %v4601_v30 = vld [vmem:[%s4877_s26 + $0x340] sm:$0xff]  }
  0x65   : > { %4101 = vmatprep.subr.bf16.mxu0 %v4553_v33  ;;  %4122 = vmatpush3.bf16.msra.mxu1 %v4552_v32  ;;  %v4603_v32 = vld [vmem:[%s4877_s26 + $0x3c0] sm:$0xff]  }
  0x66   : > { %4123 = vmatprep.subr.bf16.mxu1 %v4555_v35  ;;  %v4605_v33 = vld [vmem:[%s4877_s26 + $0x380] sm:$0xff]   ;;  %v4606_v35 = vld [vmem:[%s4877_s26 + $0x478] sm:$0xff]  }
  0x68   : > { %4102 = vmatpush3.bf16.msra.mxu0 %v4554_v34  ;;  %v891_v34 = vrot.slane %v4994_v53, %v4921_v42  ;;  %v4622_v53 = vld [vmem:[%s4877_s26 + $0x458] sm:$0xff]  }
  0x69   : > { %4103 = vmatprep.subr.bf16.mxu0 %v4557_v37  ;;  %4124 = vmatpush3.bf16.msra.mxu1 %v4556_v36  ;;  %v4607_v36 = vld [vmem:[%s4877_s26 + $0x438] sm:$0xff]  }
  0x6a   : > { %4125 = vmatprep.subr.bf16.mxu1 %v4559_v39  ;;  %v4608_v37 = vld [vmem:[%s4877_s26 + $0x4f8] sm:$0xff]   ;;  %v907_v39 = vcombine.high %v891_v34, %v891_v34 }
  0x6c   : > { %4104 = vmatpush3.bf16.msra.mxu0 %v4558_v38  ;;  %v4609_v38 = vld [vmem:[%s4877_s26 + $0x4b8] sm:$0xff]  }
  0x6d   : > { %4105 = vmatprep.subr.bf16.mxu0 %v4561_v41  ;;  %4126 = vmatpush3.bf16.msra.mxu1 %v4560_v40  ;;  %v4610_v40 = vld [vmem:[%s4877_s26 + $0x470] sm:$0xff]  }
  0x6e   : > { %4127 = vmatprep.subr.bf16.mxu1 %v4563_v44  ;;  %v4611_v41 = vld [vmem:[%s4877_s26 + $0x430] sm:$0xff]  }
  0x6f   : > { %v4613_v44 = vld [vmem:[%s4877_s26 + $0x4b0] sm:$0xff]  }
  0x70   : > { %4106 = vmatpush3.bf16.msra.mxu0 %v4562_v43  ;;  %v4612_v43 = vld [vmem:[%s4877_s26 + $0x4f0] sm:$0xff]  }
  0x71   : > { %4107 = vmatprep.subr.bf16.mxu0 %v4565_v47  ;;  %4128 = vmatpush3.bf16.msra.mxu1 %v4564_v45  ;;  %v4614_v45 = vld [vmem:[%s4877_s26 + $0x468] sm:$0xff]  }
  0x72   : > { %4129 = vmatprep.subr.bf16.mxu1 %v4567_v51  ;;  %v4616_v47 = vld [vmem:[%s4877_s26 + $0x4e8] sm:$0xff]   ;;  %v4620_v51 = vld [vmem:[%s4877_s26 + $0x4e0] sm:$0xff]  }
  0x74   : > { %4108 = vmatpush3.bf16.msra.mxu0 %v4566_v50  ;;  %v4619_v50 = vld [vmem:[%s4877_s26 + $0x420] sm:$0xff]  }
  0x75   : > { %4109 = vmatprep.subr.bf16.mxu0 %v4569_v55  ;;  %4130 = vmatpush3.bf16.msra.mxu1 %v4568_v54  ;;  %v4623_v54 = vld [vmem:[%s4877_s26 + $0x418] sm:$0xff]  }
  0x76   : > { %4131 = vmatprep.subr.bf16.mxu1 %v4571_v59  ;;  %v4624_v55 = vld [vmem:[%s4877_s26 + $0x4d8] sm:$0xff]   ;;  %v4628_v59 = vld [vmem:[%s4877_s26 + $0x4d0] sm:$0xff]  }
  0x78   : > { %4110 = vmatpush3.bf16.msra.mxu0 %v4570_v57  ;;  %v4626_v57 = vld [vmem:[%s4877_s26 + $0x450] sm:$0xff]  }
  0x79   : > { %4139 = vmatprep.subr.bf16.mxu0 %v4573_v63  ;;  %4132 = vmatpush3.bf16.msra.mxu1 %v4572_v61  ;;  %v212_v61 = vld [vmem:[%s4872_s22 + $0x10] sm:$0xff] }
  0x7a   : > { %4161 = vmatprep.subr.bf16.mxu1 %v4575_v2  ;;  %v917_v63 = vrot.slane %v212_v61, %v4921_v42  ;;  %v4632_v2 = vld [vmem:[%s4877_s26 + $0x4c8] sm:$0xff]  }
  0x7b   : > { %3053 = vmatmul.mubr.bf16.vlgmr.msra.gmra.mxu0 %v884_v62  ;;  %v4630_v62 = vld [vmem:[%s4877_s26 + $0x448] sm:$0xff]  }
  0x7c   : > { %4140 = vmatpush3.bf16.msra.mxu0 %v4574_v0  ;;  %3132 = vmatprep.mubr.bf16.mxu0 %v905_v1  ;;  %v910_v0 = vcombine.high %v212_v61, %v212_v61  ;;  %v4631_v1 = vld [vmem:[%s4877_s26 + $0x408] sm:$0xff]  }
  0x7d   : > { %3093 = vmatmul.mubr.bf16.vlgmr.msra.gmra.mxu1 %v906_v4  ;;  %4141 = vmatprep.subr.bf16.mxu0 %v4577_v5  ;;  %v4633_v5 = vld [vmem:[%s4877_s26 + $0x488] sm:$0xff]  }
  0x7e   : > { %4162 = vmatpush3.bf16.msra.mxu1 %v4576_v3  ;;  %3172 = vmatprep.mubr.bf16.mxu1 %v909_v7  ;;  %v925_v3 = vcombine.high %v917_v63, %v917_v63  ;;  %v5070_v4 = vrot.slane %v910_v0, %v4921_v42  ;;  %v4680_v61 = vld [vmem:[%s4877_s26 + $0x628] sm:$0xff]   ;;  %v4683_v0 = vld [vmem:[%s4877_s26 + $0x660] sm:$0xff]  }
  0x7f   : > { %4163 = vmatprep.subr.bf16.mxu1 %v4579_v8  ;;  %v4635_v8 = vld [vmem:[%s4877_s26 + $0x400] sm:$0xff]  }
  0x80   : > { %4142 = vmatpush3.bf16.msra.mxu0 %v4578_v6  ;;  %v4634_v6 = vld [vmem:[%s4877_s26 + $0x440] sm:$0xff]   ;;  %v947_v7 = vrot.slane %v925_v3, %v4921_v42 }
  0x81   : > { %4143 = vmatprep.subr.bf16.mxu0 %v4581_v10  ;;  %v4636_v10 = vld [vmem:[%s4877_s26 + $0x4c0] sm:$0xff]  }
  0x82   : > { %4164 = vmatpush3.bf16.msra.mxu1 %v4580_v9  ;;  %v926_v9 = vcombine.high %v5070_v4, %v5070_v4  ;;  %v4686_v3 = vld [vmem:[%s4877_s26 + $0x6a0] sm:$0xff]  }
  0x83   : > { %4165 = vmatprep.subr.bf16.mxu1 %v4583_v12  ;;  %v4637_v12 = vld [vmem:[%s4877_s26 + $0x480] sm:$0xff]  }
  0x84   : > { %4144 = vmatpush3.bf16.msra.mxu0 %v4582_v11  ;;  %v957_v11 = vcombine.high %v947_v7, %v947_v7 }
  0x85   : > { %4145 = vmatprep.subr.bf16.mxu0 %v4585_v14  ;;  %v4638_v14 = vld [vmem:[%s4877_s26 + $0x578] sm:$0xff]  }
  0x86   : > { %4166 = vmatpush3.bf16.msra.mxu1 %v4584_v13  ;;  %v933_v13 = vrot.slane %v917_v63, %v4921_v42  ;;  %v4682_v63 = vld [vmem:[%s4877_s26 + $0x6a8] sm:$0xff]  }
  0x87   : > { %4167 = vmatprep.subr.bf16.mxu1 %v4587_v16  ;;  %v954_v16 = vrot.slane %v926_v9, %v4921_v42  ;;  %v4692_v9 = vld [vmem:[%s4877_s26 + $0x610] sm:$0xff]  }
  0x88   : > { %4146 = vmatpush3.bf16.msra.mxu0 %v4586_v15  ;;  %v4639_v15 = vld [vmem:[%s4877_s26 + $0x538] sm:$0xff]  }
  0x89   : > { %4147 = vmatprep.subr.bf16.mxu0 %v4589_v18  ;;  %v4641_v18 = vld [vmem:[%s4877_s26 + $0x5b8] sm:$0xff]  }
  0x8a   : > { %4168 = vmatpush3.bf16.msra.mxu1 %v4588_v17  ;;  %v4640_v17 = vld [vmem:[%s4877_s26 + $0x5f8] sm:$0xff]  }
  0x8b   : > { %4169 = vmatprep.subr.bf16.mxu1 %v4591_v20  ;;  %v4642_v20 = vld [vmem:[%s4877_s26 + $0x570] sm:$0xff]  }
  0x8c   : > { %4148 = vmatpush3.bf16.msra.mxu0 %v4590_v19  ;;  %v955_v19 = vcombine.high %v933_v13, %v933_v13 }
  0x8d   : > { %4149 = vmatprep.subr.bf16.mxu0 %v4593_v22  ;;  %v958_v22 = vcombine.high %v954_v16, %v954_v16 }
  0x8e   : > { %4170 = vmatpush3.bf16.msra.mxu1 %v4592_v21  ;;  %v4643_v21 = vld [vmem:[%s4877_s26 + $0x530] sm:$0xff]  }
  0x8f   : > { %4171 = vmatprep.subr.bf16.mxu1 %v4595_v24  ;;  %v4645_v24 = vld [vmem:[%s4877_s26 + $0x5b0] sm:$0xff]  }
  0x90   : > { %4150 = vmatpush3.bf16.msra.mxu0 %v4594_v23  ;;  %v4644_v23 = vld [vmem:[%s4877_s26 + $0x5f0] sm:$0xff]  }
  0x91   : > { %4151 = vmatprep.subr.bf16.mxu0 %v4597_v26  ;;  %v4647_v26 = vld [vmem:[%s4877_s26 + $0x528] sm:$0xff]  }
  0x92   : > { %4172 = vmatpush3.bf16.msra.mxu1 %v4596_v25  ;;  %v4646_v25 = vld [vmem:[%s4877_s26 + $0x568] sm:$0xff]  }
  0x93   : > { %4173 = vmatprep.subr.bf16.mxu1 %v4599_v28  ;;  %v4649_v28 = vld [vmem:[%s4877_s26 + $0x5a8] sm:$0xff]  }
  0x94   : > { %4152 = vmatpush3.bf16.msra.mxu0 %v4598_v27  ;;  %v4648_v27 = vld [vmem:[%s4877_s26 + $0x5e8] sm:$0xff]  }
  0x95   : > { %4153 = vmatprep.subr.bf16.mxu0 %v4601_v30  ;;  %v4651_v30 = vld [vmem:[%s4877_s26 + $0x520] sm:$0xff]  }
  0x96   : > { %4174 = vmatpush3.bf16.msra.mxu1 %v4600_v29  ;;  %v4650_v29 = vld [vmem:[%s4877_s26 + $0x560] sm:$0xff]  }
  0x97   : > { %4175 = vmatprep.subr.bf16.mxu1 %v4603_v32  ;;  %v4653_v32 = vld [vmem:[%s4877_s26 + $0x5a0] sm:$0xff]  }
  0x98   : > { %4154 = vmatpush3.bf16.msra.mxu0 %v4602_v31  ;;  %v4652_v31 = vld [vmem:[%s4877_s26 + $0x5e0] sm:$0xff]  }
  0x99   : > { %4183 = vmatprep.subr.bf16.mxu0 %v4606_v35  ;;  %v4656_v35 = vld [vmem:[%s4877_s26 + $0x5d8] sm:$0xff]  }
  0x9a   : > { %4176 = vmatpush3.bf16.msra.mxu1 %v4605_v33  ;;  %v4654_v33 = vld [vmem:[%s4877_s26 + $0x558] sm:$0xff]  }
  0x9b   : > { %3133 = vmatmul.mubr.bf16.vlgmr.msra.gmra.mxu0 %v891_v34  ;;  %4205 = vmatprep.subr.bf16.mxu1 %v4608_v37  ;;  %v4655_v34 = vld [vmem:[%s4877_s26 + $0x518] sm:$0xff]   ;;  %v4658_v37 = vld [vmem:[%s4877_s26 + $0x550] sm:$0xff]  }
  0x9c   : > { %4184 = vmatpush3.bf16.msra.mxu0 %v4607_v36  ;;  %3212 = vmatprep.mubr.bf16.mxu0 %v947_v7  ;;  %v4657_v36 = vld [vmem:[%s4877_s26 + $0x598] sm:$0xff]  }
  0x9d   : > { %3173 = vmatmul.mubr.bf16.vlgmr.msra.gmra.mxu1 %v907_v39  ;;  %4185 = vmatprep.subr.bf16.mxu0 %v4610_v40  ;;  %v4660_v39 = vld [vmem:[%s4877_s26 + $0x5d0] sm:$0xff]   ;;  %v4690_v7 = vld [vmem:[%s4877_s26 + $0x698] sm:$0xff]  }
  0x9e   : > { %4206 = vmatpush3.bf16.msra.mxu1 %v4609_v38  ;;  %3252 = vmatprep.mubr.bf16.mxu1 %v957_v11  ;;  %v4659_v38 = vld [vmem:[%s4877_s26 + $0x510] sm:$0xff]   ;;  %v4695_v11 = vld [vmem:[%s4877_s26 + $0x648] sm:$0xff]  }
  0x9f   : > { %4207 = vmatprep.subr.bf16.mxu1 %v4612_v43  ;;  %v4661_v40 = vld [vmem:[%s4877_s26 + $0x590] sm:$0xff]   ;;  %v4663_v43 = vld [vmem:[%s4877_s26 + $0x508] sm:$0xff]  }
  0xa0   : > { %4186 = vmatpush3.bf16.msra.mxu0 %v4611_v41  ;;  %v4662_v41 = vld [vmem:[%s4877_s26 + $0x548] sm:$0xff]  }
  0xa1   : > { %4187 = vmatprep.subr.bf16.mxu0 %v4614_v45  ;;  %v4665_v45 = vld [vmem:[%s4877_s26 + $0x588] sm:$0xff]  }
  0xa2   : > { %4208 = vmatpush3.bf16.msra.mxu1 %v4613_v44  ;;  %v4664_v44 = vld [vmem:[%s4877_s26 + $0x5c8] sm:$0xff]  }
  0xa3   : > { %4209 = vmatprep.subr.bf16.mxu1 %v4616_v47  ;;  %v4667_v47 = vld [vmem:[%s4877_s26 + $0x500] sm:$0xff]  }
  0xa4   : > { %4188 = vmatpush3.bf16.msra.mxu0 %v4615_v46  ;;  %v4666_v46 = vld [vmem:[%s4877_s26 + $0x540] sm:$0xff]  }
  0xa5   : > { %4189 = vmatprep.subr.bf16.mxu0 %v4618_v49  ;;  %v4670_v49 = vld [vmem:[%s4877_s26 + $0x580] sm:$0xff]  }
  0xa6   : > { %4210 = vmatpush3.bf16.msra.mxu1 %v4617_v48  ;;  %v4668_v48 = vld [vmem:[%s4877_s26 + $0x5c0] sm:$0xff]  }
  0xa7   : > { %4211 = vmatprep.subr.bf16.mxu1 %v4620_v51  ;;  %v4671_v51 = vld [vmem:[%s4877_s26 + $0x678] sm:$0xff]  }
  0xa8   : > { %4190 = vmatpush3.bf16.msra.mxu0 %v4619_v50  ;;  %v940_v50 = vrot.slane %v5070_v4, %v4921_v42  ;;  %v4687_v4 = vld [vmem:[%s4877_s26 + $0x658] sm:$0xff]  }
  0xa9   : > { %4191 = vmatprep.subr.bf16.mxu0 %v4622_v53  ;;  %v4673_v53 = vld [vmem:[%s4877_s26 + $0x6f8] sm:$0xff]  }
  0xaa   : > { %4212 = vmatpush3.bf16.msra.mxu1 %v4621_v52  ;;  %v4672_v52 = vld [vmem:[%s4877_s26 + $0x638] sm:$0xff]  }
  0xab   : > { %4213 = vmatprep.subr.bf16.mxu1 %v4624_v55  ;;  %v956_v55 = vcombine.high %v940_v50, %v940_v50 }
  0xac   : > { %4192 = vmatpush3.bf16.msra.mxu0 %v4623_v54  ;;  %v4674_v54 = vld [vmem:[%s4877_s26 + $0x6b8] sm:$0xff]  }
  0xad   : > { %4193 = vmatprep.subr.bf16.mxu0 %v4626_v57  ;;  %v4676_v57 = vld [vmem:[%s4877_s26 + $0x630] sm:$0xff]  }
  0xae   : > { %4214 = vmatpush3.bf16.msra.mxu1 %v4625_v56  ;;  %v4675_v56 = vld [vmem:[%s4877_s26 + $0x670] sm:$0xff]  }
  0xaf   : > { %4215 = vmatprep.subr.bf16.mxu1 %v4628_v59  ;;  %v4678_v59 = vld [vmem:[%s4877_s26 + $0x6b0] sm:$0xff]  }
  0xb0   : > { %4194 = vmatpush3.bf16.msra.mxu0 %v4627_v58  ;;  %v4677_v58 = vld [vmem:[%s4877_s26 + $0x6f0] sm:$0xff]  }
  0xb1   : > { %4195 = vmatprep.subr.bf16.mxu0 %v4630_v62  ;;  %v4681_v62 = vld [vmem:[%s4877_s26 + $0x6e8] sm:$0xff]  }
  0xb2   : > { %4216 = vmatpush3.bf16.msra.mxu1 %v4629_v60  ;;  %v4679_v60 = vld [vmem:[%s4877_s26 + $0x668] sm:$0xff]  }
  0xb3   : > { %4217 = vmatprep.subr.bf16.mxu1 %v4632_v2  ;;  %v4685_v2 = vld [vmem:[%s4877_s26 + $0x6e0] sm:$0xff]  }
  0xb4   : > { %4196 = vmatpush3.bf16.msra.mxu0 %v4631_v1  ;;  %v4684_v1 = vld [vmem:[%s4877_s26 + $0x620] sm:$0xff]  }
  0xb5   : > { %4197 = vmatprep.subr.bf16.mxu0 %v4634_v6  ;;  %v4689_v6 = vld [vmem:[%s4877_s26 + $0x6d8] sm:$0xff]  }
  0xb6   : > { %4218 = vmatpush3.bf16.msra.mxu1 %v4633_v5  ;;  %v4688_v5 = vld [vmem:[%s4877_s26 + $0x618] sm:$0xff]  }
  0xb7   : > { %4219 = vmatprep.subr.bf16.mxu1 %v4636_v10  ;;  %v4693_v10 = vld [vmem:[%s4877_s26 + $0x6d0] sm:$0xff]  }
  0xb8   : > { %4198 = vmatpush3.bf16.msra.mxu0 %v4635_v8  ;;  %v4691_v8 = vld [vmem:[%s4877_s26 + $0x650] sm:$0xff]  }
  0xb9   : > { %4227 = vmatprep.subr.bf16.mxu0 %v4638_v14 }
  0xba   : > { %4220 = vmatpush3.bf16.msra.mxu1 %v4637_v12  ;;  %v213_v12 = vld [vmem:[%s4872_s22 + $0x18] sm:$0xff] }
  0xbb   : > { %3213 = vmatmul.mubr.bf16.vlgmr.msra.gmra.mxu0 %v933_v13  ;;  %4249 = vmatprep.subr.bf16.mxu1 %v4640_v17  ;;  %v4694_v13 = vld [vmem:[%s4877_s26 + $0x690] sm:$0xff]   ;;  %v966_v14 = vrot.slane %v213_v12, %v4921_v42  ;;  %v4696_v17 = vld [vmem:[%s4877_s26 + $0x608] sm:$0xff]  }
  0xbc   : > { %4228 = vmatpush3.bf16.msra.mxu0 %v4639_v15  ;;  %3292 = vmatprep.mubr.bf16.mxu0 %v954_v16  ;;  %v959_v15 = vcombine.high %v213_v12, %v213_v12  ;;  %v4697_v16 = vld [vmem:[%s4877_s26 + $0x6c8] sm:$0xff]   ;;  %v4736_v12 = vld [vmem:[%s4877_s26 + $0x878] sm:$0xff]  }
  0xbd   : > { %3253 = vmatmul.mubr.bf16.vlgmr.msra.gmra.mxu1 %v955_v19  ;;  %4229 = vmatprep.subr.bf16.mxu0 %v4642_v20  ;;  %v4699_v20 = vld [vmem:[%s4877_s26 + $0x640] sm:$0xff]  }
  0xbe   : > { %4250 = vmatpush3.bf16.msra.mxu1 %v4641_v18  ;;  %3332 = vmatprep.mubr.bf16.mxu1 %v958_v22  ;;  %v974_v18 = vcombine.high %v966_v14, %v966_v14  ;;  %v5146_v19 = vrot.slane %v959_v15, %v4921_v42  ;;  %v4737_v15 = vld [vmem:[%s4877_s26 + $0x838] sm:$0xff]  }
  0xbf   : > { %4251 = vmatprep.subr.bf16.mxu1 %v4644_v23 }
  0xc0   : > { %4230 = vmatpush3.bf16.msra.mxu0 %v4643_v21  ;;  %v4698_v21 = vld [vmem:[%s4877_s26 + $0x688] sm:$0xff]   ;;  %v996_v22 = vrot.slane %v974_v18, %v4921_v42  ;;  %v975_v23 = vcombine.high %v5146_v19, %v5146_v19  ;;  %v4739_v18 = vld [vmem:[%s4877_s26 + $0x8b8] sm:$0xff]  }
  0xc1   : > { %4231 = vmatprep.subr.bf16.mxu0 %v4646_v25  ;;  %v4700_v25 = vld [vmem:[%s4877_s26 + $0x600] sm:$0xff]  }
  0xc2   : > { %4252 = vmatpush3.bf16.msra.mxu1 %v4645_v24  ;;  %v4701_v24 = vld [vmem:[%s4877_s26 + $0x6c0] sm:$0xff]  }
  0xc3   : > { %4253 = vmatprep.subr.bf16.mxu1 %v4648_v27  ;;  %v982_v27 = vrot.slane %v966_v14, %v4921_v42  ;;  %v4738_v14 = vld [vmem:[%s4877_s26 + $0x8f8] sm:$0xff]  }
  0xc4   : > { %4232 = vmatpush3.bf16.msra.mxu0 %v4647_v26  ;;  %v1006_v26 = vcombine.high %v996_v22, %v996_v22 }
  0xc5   : > { %4233 = vmatprep.subr.bf16.mxu0 %v4650_v29  ;;  %v4702_v29 = vld [vmem:[%s4877_s26 + $0x680] sm:$0xff]  }
  0xc6   : > { %4254 = vmatpush3.bf16.msra.mxu1 %v4649_v28  ;;  %v4703_v28 = vld [vmem:[%s4877_s26 + $0x778] sm:$0xff]  }
  0xc7   : > { %4255 = vmatprep.subr.bf16.mxu1 %v4652_v31  ;;  %v4705_v31 = vld [vmem:[%s4877_s26 + $0x7f8] sm:$0xff]  }
  0xc8   : > { %4234 = vmatpush3.bf16.msra.mxu0 %v4651_v30  ;;  %v1003_v30 = vrot.slane %v975_v23, %v4921_v42 }
  0xc9   : > { %4235 = vmatprep.subr.bf16.mxu0 %v4654_v33  ;;  %v1004_v33 = vcombine.high %v982_v27, %v982_v27 }
  0xca   : > { %4256 = vmatpush3.bf16.msra.mxu1 %v4653_v32  ;;  %v4704_v32 = vld [vmem:[%s4877_s26 + $0x738] sm:$0xff]  }
  0xcb   : > { %4257 = vmatprep.subr.bf16.mxu1 %v4656_v35  ;;  %v4706_v35 = vld [vmem:[%s4877_s26 + $0x7b8] sm:$0xff]  }
  0xcc   : > { %4236 = vmatpush3.bf16.msra.mxu0 %v4655_v34  ;;  %v4707_v34 = vld [vmem:[%s4877_s26 + $0x770] sm:$0xff]  }
  0xcd   : > { %4237 = vmatprep.subr.bf16.mxu0 %v4658_v37 }
  0xce   : > { %4258 = vmatpush3.bf16.msra.mxu1 %v4657_v36  ;;  %v1007_v36 = vcombine.high %v1003_v30, %v1003_v30 }
  0xcf   : > { %4259 = vmatprep.subr.bf16.mxu1 %v4660_v39  ;;  %v4708_v39 = vld [vmem:[%s4877_s26 + $0x730] sm:$0xff]  }
  0xd0   : > { %4238 = vmatpush3.bf16.msra.mxu0 %v4659_v38  ;;  %v4709_v38 = vld [vmem:[%s4877_s26 + $0x7f0] sm:$0xff]  }
  0xd1   : > { %4239 = vmatprep.subr.bf16.mxu0 %v4662_v41 }
  0xd2   : > { %4260 = vmatpush3.bf16.msra.mxu1 %v4661_v40 }
  0xd3   : > { %4261 = vmatprep.subr.bf16.mxu1 %v4664_v44 }
  0xd4   : > { %4240 = vmatpush3.bf16.msra.mxu0 %v4663_v43  ;;  %v4711_v43 = vld [vmem:[%s4877_s26 + $0x768] sm:$0xff]  }
  0xd5   : > { %4241 = vmatprep.subr.bf16.mxu0 %v4666_v46 }
  0xd6   : > { %4262 = vmatpush3.bf16.msra.mxu1 %v4665_v45  ;;  %v4710_v45 = vld [vmem:[%s4877_s26 + $0x7b0] sm:$0xff]  }
  0xd7   : > { %4263 = vmatprep.subr.bf16.mxu1 %v4668_v48  ;;  %v4713_v48 = vld [vmem:[%s4877_s26 + $0x7e8] sm:$0xff]  }
  0xd8   : > { %4242 = vmatpush3.bf16.msra.mxu0 %v4667_v47 }
  0xd9   : > { %4271 = vmatprep.subr.bf16.mxu0 %v4671_v51 }
  0xda   : > { %4264 = vmatpush3.bf16.msra.mxu1 %v4670_v49 }
  0xdb   : > { %3293 = vmatmul.mubr.bf16.vlgmr.msra.gmra.mxu0 %v940_v50  ;;  %4293 = vmatprep.subr.bf16.mxu1 %v4673_v53  ;;  %v4712_v50 = vld [vmem:[%s4877_s26 + $0x728] sm:$0xff]  }
  0xdc   : > { %4272 = vmatpush3.bf16.msra.mxu0 %v4672_v52  ;;  %3372 = vmatprep.mubr.bf16.mxu0 %v996_v22  ;;  %v4715_v52 = vld [vmem:[%s4877_s26 + $0x760] sm:$0xff]  }
  0xdd   : > { %3333 = vmatmul.mubr.bf16.vlgmr.msra.gmra.mxu1 %v956_v55  ;;  %4273 = vmatprep.subr.bf16.mxu0 %v4675_v56  ;;  %v4714_v55 = vld [vmem:[%s4877_s26 + $0x7a8] sm:$0xff]   ;;  %v4717_v56 = vld [vmem:[%s4877_s26 + $0x7e0] sm:$0xff]  }
  0xde   : > { %4294 = vmatpush3.bf16.msra.mxu1 %v4674_v54  ;;  %3412 = vmatprep.mubr.bf16.mxu1 %v1006_v26  ;;  %v4743_v26 = vld [vmem:[%s4877_s26 + $0x8b0] sm:$0xff]  }
  0xdf   : > { %4295 = vmatprep.subr.bf16.mxu1 %v4677_v58  ;;  %v4716_v58 = vld [vmem:[%s4877_s26 + $0x720] sm:$0xff]  }
  0xe0   : > { %4274 = vmatpush3.bf16.msra.mxu0 %v4676_v57 }
  0xe1   : > { %4275 = vmatprep.subr.bf16.mxu0 %v4679_v60  ;;  %v4718_v60 = vld [vmem:[%s4877_s26 + $0x7a0] sm:$0xff]  }
  0xe2   : > { %4296 = vmatpush3.bf16.msra.mxu1 %v4678_v59  ;;  %v4719_v59 = vld [vmem:[%s4877_s26 + $0x758] sm:$0xff]  }
  0xe3   : > { %4297 = vmatprep.subr.bf16.mxu1 %v4681_v62  ;;  %v4720_v62 = vld [vmem:[%s4877_s26 + $0x718] sm:$0xff]  }
  0xe4   : > { %4276 = vmatpush3.bf16.msra.mxu0 %v4680_v61  ;;  %v4721_v61 = vld [vmem:[%s4877_s26 + $0x7d8] sm:$0xff]  }
  0xe5   : > { %4277 = vmatprep.subr.bf16.mxu0 %v4683_v0  ;;  %v4722_v0 = vld [vmem:[%s4877_s26 + $0x798] sm:$0xff]  }
  0xe6   : > { %4298 = vmatpush3.bf16.msra.mxu1 %v4682_v63  ;;  %v4723_v63 = vld [vmem:[%s4877_s26 + $0x750] sm:$0xff]  }
  0xe7   : > { %4299 = vmatprep.subr.bf16.mxu1 %v4685_v2  ;;  %v4724_v2 = vld [vmem:[%s4877_s26 + $0x710] sm:$0xff]  }
  0xe8   : > { %4278 = vmatpush3.bf16.msra.mxu0 %v4684_v1  ;;  %v4725_v1 = vld [vmem:[%s4877_s26 + $0x7d0] sm:$0xff]  }
  0xe9   : > { %4279 = vmatprep.subr.bf16.mxu0 %v4687_v4  ;;  %v4726_v4 = vld [vmem:[%s4877_s26 + $0x790] sm:$0xff]  }
  0xea   : > { %4300 = vmatpush3.bf16.msra.mxu1 %v4686_v3  ;;  %v4727_v3 = vld [vmem:[%s4877_s26 + $0x748] sm:$0xff]  }
  0xeb   : > { %4301 = vmatprep.subr.bf16.mxu1 %v4689_v6  ;;  %v4728_v6 = vld [vmem:[%s4877_s26 + $0x708] sm:$0xff]  }
  0xec   : > { %4280 = vmatpush3.bf16.msra.mxu0 %v4688_v5  ;;  %v4729_v5 = vld [vmem:[%s4877_s26 + $0x7c8] sm:$0xff]  }
  0xed   : > { %4281 = vmatprep.subr.bf16.mxu0 %v4691_v8  ;;  %v4730_v8 = vld [vmem:[%s4877_s26 + $0x788] sm:$0xff]  }
  0xee   : > { %4302 = vmatpush3.bf16.msra.mxu1 %v4690_v7  ;;  %v4731_v7 = vld [vmem:[%s4877_s26 + $0x740] sm:$0xff]  }
  0xef   : > { %4303 = vmatprep.subr.bf16.mxu1 %v4693_v10  ;;  %v4732_v10 = vld [vmem:[%s4877_s26 + $0x700] sm:$0xff]  }
  0xf0   : > { %4282 = vmatpush3.bf16.msra.mxu0 %v4692_v9  ;;  %v4733_v9 = vld [vmem:[%s4877_s26 + $0x7c0] sm:$0xff]  }
  0xf1   : > { %4283 = vmatprep.subr.bf16.mxu0 %v4695_v11  ;;  %v989_v11 = vrot.slane %v5146_v19, %v4921_v42  ;;  %v4742_v19 = vld [vmem:[%s4877_s26 + $0x8f0] sm:$0xff]  }
  0xf2   : > { %4304 = vmatpush3.bf16.msra.mxu1 %v4694_v13  ;;  %v4735_v13 = vld [vmem:[%s4877_s26 + $0x780] sm:$0xff]  }
  0xf3   : > { %4305 = vmatprep.subr.bf16.mxu1 %v4697_v16  ;;  %v1005_v16 = vcombine.high %v989_v11, %v989_v11 }
  0xf4   : > { %4284 = vmatpush3.bf16.msra.mxu0 %v4696_v17  ;;  %v4740_v17 = vld [vmem:[%s4877_s26 + $0x870] sm:$0xff]  }
  0xf5   : > { %4285 = vmatprep.subr.bf16.mxu0 %v4699_v20 }
  0xf6   : > { %4306 = vmatpush3.bf16.msra.mxu1 %v4698_v21  ;;  %v4741_v21 = vld [vmem:[%s4877_s26 + $0x830] sm:$0xff]  }
  0xf7   : > { %4307 = vmatprep.subr.bf16.mxu1 %v4701_v24  ;;  %v4744_v24 = vld [vmem:[%s4877_s26 + $0x868] sm:$0xff]  }
  0xf8   : > { %4286 = vmatpush3.bf16.msra.mxu0 %v4700_v25 }
  0xf9   : > { %4315 = vmatprep.subr.bf16.mxu0 %v4703_v28 }
  0xfa   : > { %4308 = vmatpush3.bf16.msra.mxu1 %v4702_v29  ;;  %v4746_v29 = vld [vmem:[%s4877_s26 + $0x8e8] sm:$0xff]  }
  0xfb   : > { %v4023_v37 = vpop.f32.mrf.mxu0  ;;  %3373 = vmatmul.mubr.bf16.vlgmr.msra.gmra.mxu0 %v982_v27  ;;  %4337 = vmatprep.subr.bf16.mxu1 %v4705_v31 }
  0xfc   : > { %4316 = vmatpush3.bf16.msra.mxu0 %v4704_v32  ;;  %3452 = vmatprep.mubr.bf16.mxu0 %v1003_v30  ;;  %v4045_v40 = vpop.f32.mrf.mxu1  ;;  %v4745_v32 = vld [vmem:[%s4877_s26 + $0x828] sm:$0xff]  }
  0xfd   : > { %v4024_v41 = vpop.f32.mrf.mxu0  ;;  %3413 = vmatmul.mubr.bf16.vlgmr.msra.gmra.mxu1 %v1004_v33  ;;  %4317 = vmatprep.subr.bf16.mxu0 %v4707_v34  ;;  %v4748_v34 = vld [vmem:[%s4877_s26 + $0x860] sm:$0xff]  }
  0xfe   : > { %v4025_v44 = vadd.f32 %v4024_v41, %v4023_v37  ;;  %4338 = vmatpush3.bf16.msra.mxu1 %v4706_v35  ;;  %3492 = vmatprep.mubr.bf16.mxu1 %v1007_v36  ;;  %v4046_v46 = vpop.f32.mrf.mxu1  ;;  %v4747_v37 = vld [vmem:[%s4877_s26 + $0x8a8] sm:$0xff]   ;;  %v4752_v41 = vld [vmem:[%s4877_s26 + $0x858] sm:$0xff]  }
  0xff   : > { %v4026_v47 = vpop.f32.mrf.mxu0  ;;  %4339 = vmatprep.subr.bf16.mxu1 %v4709_v38  ;;  %v4047_v49 = vadd.f32 %v4046_v46, %v4045_v40  ;;  %v4750_v38 = vld [vmem:[%s4877_s26 + $0x8e0] sm:$0xff]   ;;  %v4756_v46 = vld [vmem:[%s4877_s26 + $0x850] sm:$0xff]  }
 0x100   : > { %4318 = vmatpush3.bf16.msra.mxu0 %v4708_v39  ;;  %v4048_v53 = vpop.f32.mrf.mxu1  ;;  %v4749_v40 = vld [vmem:[%s4877_s26 + $0x820] sm:$0xff]   ;;  %v4755_v47 = vld [vmem:[%s4877_s26 + $0x898] sm:$0xff]  }
 0x101   : > { %v4027_v51 = vpop.f32.mrf.mxu0  ;;  %4319 = vmatprep.subr.bf16.mxu0 %v4711_v43  ;;  %v5170_v54 = vadd.f32 %v4047_v49, %v4025_v44  ;;  %v4751_v43 = vld [vmem:[%s4877_s26 + $0x8a0] sm:$0xff]   ;;  %v4754_v44 = vld [vmem:[%s4877_s26 + $0x8d8] sm:$0xff]   ;;  %v4757_v49 = vld [vmem:[%s4877_s26 + $0x810] sm:$0xff]  }
 0x102   : > { %4340 = vmatpush3.bf16.msra.mxu1 %v4710_v45  ;;  %v4049_v57 = vpop.f32.mrf.mxu1  ;;  %v4753_v45 = vld [vmem:[%s4877_s26 + $0x818] sm:$0xff]   ;;  %v5222_v51 = vld [vmem:[%s4872_s22 + $0x20] sm:$0x1f] }
 0x103   : > { %4341 = vmatprep.subr.bf16.mxu1 %v4713_v48  ;;  %v4758_v48 = vld [vmem:[%s4877_s26 + $0x8d0] sm:$0xff]   ;;  %v1015_v53 = vrot.slane %v5222_v51, %v4921_v42  ;;  %v4764_v57 = vld [vmem:[%s4877_s26 + $0x840] sm:$0xff]  }
 0x104   : > { %4320 = vmatpush3.bf16.msra.mxu0 %v4712_v50  ;;  %v4760_v50 = vld [vmem:[%s4877_s26 + $0x848] sm:$0xff]  }
 0x105   : > { %4321 = vmatprep.subr.bf16.mxu0 %v4715_v52  ;;  %v4759_v52 = vld [vmem:[%s4877_s26 + $0x890] sm:$0xff]  }
 0x106   : > { %4342 = vmatpush3.bf16.msra.mxu1 %v4714_v55  ;;  %v4761_v55 = vld [vmem:[%s4877_s26 + $0x808] sm:$0xff]  }
 0x107   : > { %4343 = vmatprep.subr.bf16.mxu1 %v4717_v56  ;;  %v1023_v56 = vcombine.high %v1015_v53, %v1015_v53 }
 0x108   : > { %4322 = vmatpush3.bf16.msra.mxu0 %v4716_v58  ;;  %v4763_v58 = vld [vmem:[%s4877_s26 + $0x888] sm:$0xff]  }
 0x109   : > { %4323 = vmatprep.subr.bf16.mxu0 %v4719_v59  ;;  %v1044_v59 = vrot.slane %v1023_v56, %v4921_v42 }
 0x10a   : > { %4344 = vmatpush3.bf16.msra.mxu1 %v4718_v60  ;;  %v4766_v60 = vld [vmem:[%s4877_s26 + $0x8c0] sm:$0xff]  }
 0x10b   : > { %4345 = vmatprep.subr.bf16.mxu1 %v4721_v61  ;;  %v4765_v61 = vld [vmem:[%s4877_s26 + $0x800] sm:$0xff]  }
 0x10c   : > { %4324 = vmatpush3.bf16.msra.mxu0 %v4720_v62  ;;  %v1046_v62 = vcombine.high %v1044_v59, %v1044_v59 }
 0x10d   : > { %4325 = vmatprep.subr.bf16.mxu0 %v4723_v63  ;;  %v1030_v63 = vrot.slane %v1015_v53, %v4921_v42 }
 0x10e   : > { %4346 = vmatpush3.bf16.msra.mxu1 %v4722_v0  ;;  %v4768_v0 = vld [vmem:[%s4877_s26 + $0x880] sm:$0xff]  }
 0x10f   : > { %4347 = vmatprep.subr.bf16.mxu1 %v4725_v1  ;;  %v4769_v1 = vld [vmem:[%s4877_s26 + $0x938] sm:$0xff]  }
 0x110   : > { %4326 = vmatpush3.bf16.msra.mxu0 %v4724_v2  ;;  %v4819_v2 = vmov 0.0  }
 0x111   : > { %4327 = vmatprep.subr.bf16.mxu0 %v4727_v3  ;;  %v1045_v3 = vcombine.high %v1030_v63, %v1030_v63 }
 0x112   : > { %4348 = vmatpush3.bf16.msra.mxu1 %v4726_v4 }
 0x113   : > { %4349 = vmatprep.subr.bf16.mxu1 %v4729_v5  ;;  %v4770_v5 = vld [vmem:[%s4877_s26 + $0x930] sm:$0xff]  }
 0x114   : > { %4328 = vmatpush3.bf16.msra.mxu0 %v4728_v6 }
 0x115   : > { %4329 = vmatprep.subr.bf16.mxu0 %v4731_v7 }
 0x116   : > { %4350 = vmatpush3.bf16.msra.mxu1 %v4730_v8 }
 0x117   : > { %4351 = vmatprep.subr.bf16.mxu1 %v4733_v9 }
 0x118   : > { %4330 = vmatpush3.bf16.msra.mxu0 %v4732_v10 }
 0x119   : > { %4359 = vmatprep.subr.bf16.mxu0 %v4736_v12 }
 0x11a   : > { %4352 = vmatpush3.bf16.msra.mxu1 %v4735_v13  ;;  %v4771_v13 = vld [vmem:[%s4877_s26 + $0x928] sm:$0xff]  }
 0x11b   : > { %v4067_v20 = vpop.f32.mrf.mxu0  ;;  %3453 = vmatmul.mubr.bf16.vlgmr.msra.gmra.mxu0 %v989_v11  ;;  %4381 = vmatprep.subr.bf16.mxu1 %v4738_v14 }
 0x11c   : > { %4360 = vmatpush3.bf16.msra.mxu0 %v4737_v15  ;;  %v4089_v23 = vpop.f32.mrf.mxu1  ;;  %3532 = vmatprep.mubr.bf16.mxu0 %v1044_v59 }
 0x11d   : > { %v4068_v22 = vpop.f32.mrf.mxu0  ;;  %3493 = vmatmul.mubr.bf16.vlgmr.msra.gmra.mxu1 %v1005_v16  ;;  %4361 = vmatprep.subr.bf16.mxu0 %v4740_v17 }
 0x11e   : > { %v4069_v25 = vadd.f32 %v4068_v22, %v4067_v20  ;;  %4382 = vmatpush3.bf16.msra.mxu1 %v4739_v18  ;;  %v4090_v28 = vpop.f32.mrf.mxu1  ;;  %3572 = vmatprep.mubr.bf16.mxu1 %v1046_v62  ;;  %v4772_v18 = vld [vmem:[%s4877_s26 + $0x920] sm:$0xff]   ;;  %v4773_v20 = vld [vmem:[%s4877_s26 + $0x918] sm:$0xff]   ;;  %v4775_v22 = vld [vmem:[%s4877_s26 + $0x908] sm:$0xff]  }
 0x11f   : > { %v4070_v27 = vpop.f32.mrf.mxu0  ;;  %4383 = vmatprep.subr.bf16.mxu1 %v4742_v19  ;;  %v4091_v31 = vadd.f32 %v4090_v28, %v4089_v23  ;;  %v4774_v19 = vld [vmem:[%s4877_s26 + $0x910] sm:$0xff]  }
 0x120   : > { %v2975_v30 = vadd.f32 %v4069_v25, %v5170_v54  ;;  %4362 = vmatpush3.bf16.msra.mxu0 %v4741_v21  ;;  %v4092_v35 = vpop.f32.mrf.mxu1  ;;  %v4762_v54 = vld [vmem:[%s4877_s26 + $0x8c8] sm:$0xff]   ;;  %v1008_v21 = vcombine.high %v5222_v51, %v5222_v51 }
 0x121   : > { %v4071_v33 = vpop.f32.mrf.mxu0  ;;  %4363 = vmatprep.subr.bf16.mxu0 %v4744_v24  ;;  %v4776_v24 = vld [vmem:[%s4877_s26 + $0x900] sm:$0xff]  }
 0x122   : > { %v5207_v36 = vadd.f32 %v4091_v31, %v2975_v30  ;;  %4384 = vmatpush3.bf16.msra.mxu1 %v4743_v26  ;;  %v4093_v39 = vpop.f32.mrf.mxu1  ;;  %v1022_v23 = vrot.slane %v1008_v21, %v4921_v42 }
 0x123   : > { %4385 = vmatprep.subr.bf16.mxu1 %v4746_v29 }
 0x124   : > { %4364 = vmatpush3.bf16.msra.mxu0 %v4745_v32  ;;  %v1037_v25 = vrot.slane %v1022_v23, %v4921_v42 }
 0x125   : > { %4365 = vmatprep.subr.bf16.mxu0 %v4748_v34 }
 0x126   : > { %4386 = vmatpush3.bf16.msra.mxu1 %v4747_v37 }
 0x127   : > { %4387 = vmatprep.subr.bf16.mxu1 %v4750_v38 }
 0x128   : > { %4366 = vmatpush3.bf16.msra.mxu0 %v4749_v40 }
 0x129   : > { %4367 = vmatprep.subr.bf16.mxu0 %v4752_v41 }
 0x12a   : > { %4388 = vmatpush3.bf16.msra.mxu1 %v4751_v43 }
 0x12b   : > { %4389 = vmatprep.subr.bf16.mxu1 %v4754_v44 }
 0x12c   : > { %4368 = vmatpush3.bf16.msra.mxu0 %v4753_v45 }
 0x12d   : > { %4369 = vmatprep.subr.bf16.mxu0 %v4756_v46 }
 0x12e   : > { %4390 = vmatpush3.bf16.msra.mxu1 %v4755_v47 }
 0x12f   : > { %4391 = vmatprep.subr.bf16.mxu1 %v4758_v48 }
 0x130   : > { %4370 = vmatpush3.bf16.msra.mxu0 %v4757_v49 }
 0x131   : > { %4371 = vmatprep.subr.bf16.mxu0 %v4760_v50 }
 0x132   : > { %4392 = vmatpush3.bf16.msra.mxu1 %v4759_v52 }
 0x133   : > { %4393 = vmatprep.subr.bf16.mxu1 %v4762_v54 }
 0x134   : > { %4372 = vmatpush3.bf16.msra.mxu0 %v4761_v55 }
 0x135   : > { %4373 = vmatprep.subr.bf16.mxu0 %v4764_v57 }
 0x136   : > { %4394 = vmatpush3.bf16.msra.mxu1 %v4763_v58 }
 0x137   : > { %4395 = vmatprep.subr.bf16.mxu1 %v4766_v60 }
 0x138   : > { %4374 = vmatpush3.bf16.msra.mxu0 %v4765_v61 }
 0x139   : > { %4412 = vmatprep.subr.bf16.mxu0 %v4819_v2 }
 0x13a   : > { %4396 = vmatpush3.bf16.msra.mxu1 %v4768_v0 }
 0x13b   : > { %v4111_v4 = vpop.f32.mrf.mxu0  ;;  %3533 = vmatmul.mubr.bf16.vlgmr.msra.gmra.mxu0 %v1030_v63 }
 0x13c   : > { %4413 = vmatpush3.bf16.msra.mxu0 %v4769_v1  ;;  %4428 = vmatprep.mubr.msk.bf16.mxu0 %vm4820_vm0, %v4819_v2 }
 0x13d   : > { %v4112_v6 = vpop.f32.mrf.mxu0  ;;  %v4133_v7 = vpop.f32.mrf.mxu1  ;;  %3573 = vmatmul.mubr.bf16.vlgmr.msra.gmra.mxu1 %v1045_v3  ;;  %4414 = vmatprep.subr.bf16.mxu0 %v4819_v2 }
 0x13e   : > { %v4113_v8 = vadd.f32 %v4112_v6, %v4111_v4 }
 0x13f   : > { %v4114_v9 = vpop.f32.mrf.mxu0  ;;  %v4134_v10 = vpop.f32.mrf.mxu1 }
 0x140   : > { %v3055_v11 = vadd.f32 %v4113_v8, %v5207_v36  ;;  %v4135_v12 = vadd.f32 %v4134_v10, %v4133_v7  ;;  %4415 = vmatpush3.bf16.msra.mxu0 %v4770_v5 }
 0x141   : > { %v4115_v14 = vpop.f32.mrf.mxu0  ;;  %4416 = vmatprep.subr.bf16.mxu0 %v4819_v2  ;;  %v4136_v15 = vpop.f32.mrf.mxu1 }
 0x142   : > { %v3095_v16 = vadd.f32 %v4135_v12, %v3055_v11 }
 0x143   : > { %v4137_v17 = vpop.f32.mrf.mxu1 }
 0x144   : > { %4417 = vmatpush3.bf16.msra.mxu0 %v4771_v13 }
 0x145   : > { %4418 = vmatprep.subr.bf16.mxu0 %v4819_v2 }
 0x148   : > { %4419 = vmatpush3.bf16.msra.mxu0 %v4772_v18 }
 0x149   : > { %4420 = vmatprep.subr.bf16.mxu0 %v4819_v2 }
 0x14c   : > { %4421 = vmatpush3.bf16.msra.mxu0 %v4773_v20 }
 0x14d   : > { %4422 = vmatprep.subr.bf16.mxu0 %v4819_v2 }
 0x150   : > { %4423 = vmatpush3.bf16.msra.mxu0 %v4774_v19 }
 0x151   : > { %4424 = vmatprep.subr.bf16.mxu0 %v4819_v2 }
 0x154   : > { %4425 = vmatpush3.bf16.msra.mxu0 %v4775_v22 }
 0x155   : > { %4426 = vmatprep.subr.bf16.mxu0 %v4819_v2 }
 0x158   : > { %4427 = vmatpush3.bf16.msra.mxu0 %v4776_v24 }
 0x15b   : > { %v4155_v26 = vpop.f32.mrf.mxu0  ;;  %4429 = vmatmul.mubr.bf16.vlgmr.msra.gmra.mxu0 %v1037_v25 }
 0x15d   : > { %v4156_v27 = vpop.f32.mrf.mxu0  ;;  %v4177_v28 = vpop.f32.mrf.mxu1 }
 0x15e   : > { %v4157_v29 = vadd.f32 %v4156_v27, %v4155_v26 }
 0x15f   : > { %v4158_v30 = vpop.f32.mrf.mxu0  ;;  %v4178_v31 = vpop.f32.mrf.mxu1 }
 0x160   : > { %v3135_v32 = vadd.f32 %v4157_v29, %v3095_v16  ;;  %v4179_v33 = vadd.f32 %v4178_v31, %v4177_v28 }
 0x161   : > { %v4159_v34 = vpop.f32.mrf.mxu0  ;;  %v4180_v35 = vpop.f32.mrf.mxu1 }
 0x162   : > { %v3175_v36 = vadd.f32 %v4179_v33, %v3135_v32  ;;  %v209_v34 = vld [vmem:[%s4882_s30] sm:$0x3] }
 0x163   : > { %v4181_v37 = vpop.f32.mrf.mxu1 }
 0x17b   : > { %v4199_v38 = vpop.f32.mrf.mxu0 }
 0x17d   : > { %v4200_v39 = vpop.f32.mrf.mxu0  ;;  %v4221_v40 = vpop.f32.mrf.mxu1 }
 0x17e   : > { %v4201_v41 = vadd.f32 %v4200_v39, %v4199_v38 }
 0x17f   : > { %v4202_v43 = vpop.f32.mrf.mxu0  ;;  %v4222_v42 = vpop.f32.mrf.mxu1 }
 0x180   : > { %v3215_v44 = vadd.f32 %v4201_v41, %v3175_v36  ;;  %v4223_v45 = vadd.f32 %v4222_v42, %v4221_v40 }
 0x181   : > { %v4203_v46 = vpop.f32.mrf.mxu0  ;;  %v4224_v47 = vpop.f32.mrf.mxu1 }
 0x182   : > { %v3255_v48 = vadd.f32 %v4223_v45, %v3215_v44 }
 0x183   : > { %v4225_v49 = vpop.f32.mrf.mxu1 }
 0x19b   : > { %v4243_v50 = vpop.f32.mrf.mxu0 }
 0x19d   : > { %v4244_v51 = vpop.f32.mrf.mxu0  ;;  %v4265_v52 = vpop.f32.mrf.mxu1 }
 0x19e   : > { %v4245_v53 = vadd.f32 %v4244_v51, %v4243_v50 }
 0x19f   : > { %v4246_v54 = vpop.f32.mrf.mxu0  ;;  %v4266_v55 = vpop.f32.mrf.mxu1 }
 0x1a0   : > { %v3295_v56 = vadd.f32 %v4245_v53, %v3255_v48  ;;  %v4267_v57 = vadd.f32 %v4266_v55, %v4265_v52 }
 0x1a1   : > { %v4247_v58 = vpop.f32.mrf.mxu0  ;;  %v4268_v59 = vpop.f32.mrf.mxu1 }
 0x1a2   : > { %v3335_v60 = vadd.f32 %v4267_v57, %v3295_v56 }
 0x1a3   : > { %v4269_v61 = vpop.f32.mrf.mxu1 }
 0x1bb   : > { %v4287_v62 = vpop.f32.mrf.mxu0 }
 0x1bd   : > { %v4288_v63 = vpop.f32.mrf.mxu0  ;;  %v4309_v0 = vpop.f32.mrf.mxu1 }
 0x1be   : > { %v4289_v1 = vadd.f32 %v4288_v63, %v4287_v62 }
 0x1bf   : > { %v4290_v2 = vpop.f32.mrf.mxu0  ;;  %v4310_v3 = vpop.f32.mrf.mxu1 }
 0x1c0   : > { %v3375_v4 = vadd.f32 %v4289_v1, %v3335_v60  ;;  %v4311_v5 = vadd.f32 %v4310_v3, %v4309_v0 }
 0x1c1   : > { %v4291_v6 = vpop.f32.mrf.mxu0  ;;  %v4312_v7 = vpop.f32.mrf.mxu1 }
 0x1c2   : > { %v3415_v8 = vadd.f32 %v4311_v5, %v3375_v4 }
 0x1c3   : > { %v4313_v9 = vpop.f32.mrf.mxu1 }
 0x1db   : > { %v4331_v10 = vpop.f32.mrf.mxu0 }
 0x1dd   : > { %v4332_v11 = vpop.f32.mrf.mxu0  ;;  %v4353_v12 = vpop.f32.mrf.mxu1 }
 0x1de   : > { %v4333_v26 = vadd.f32 %v4332_v11, %v4331_v10 }
 0x1df   : > { %v4334_v13 = vpop.f32.mrf.mxu0  ;;  %v4354_v14 = vpop.f32.mrf.mxu1 }
 0x1e0   : > { %v3455_v27 = vadd.f32 %v4333_v26, %v3415_v8  ;;  %v4355_v28 = vadd.f32 %v4354_v14, %v4353_v12 }
 0x1e1   : > { %v4335_v15 = vpop.f32.mrf.mxu0  ;;  %v4356_v16 = vpop.f32.mrf.mxu1 }
 0x1e2   : > { %v3495_v30 = vadd.f32 %v4355_v28, %v3455_v27 }
 0x1e3   : > { %v4357_v17 = vpop.f32.mrf.mxu1 }
 0x1fb   : > { %v4375_v18 = vpop.f32.mrf.mxu0 }
 0x1fd   : > { %v4376_v20 = vpop.f32.mrf.mxu0  ;;  %v4397_v19 = vpop.f32.mrf.mxu1 }
 0x1fe   : > { %v4377_v29 = vadd.f32 %v4376_v20, %v4375_v18 }
 0x1ff   : > { %v4378_v21 = vpop.f32.mrf.mxu0  ;;  %v4398_v22 = vpop.f32.mrf.mxu1 }
 0x200   : > { %v3535_v31 = vadd.f32 %v4377_v29, %v3495_v30  ;;  %v4399_v32 = vadd.f32 %v4398_v22, %v4397_v19 }
 0x201   : > { %v4379_v23 = vpop.f32.mrf.mxu0  ;;  %v4400_v24 = vpop.f32.mrf.mxu1 }
 0x202   : > { %v3575_v33 = vadd.f32 %v4399_v32, %v3535_v31 }
 0x203   : > { %v4401_v25 = vpop.f32.mrf.mxu1 }
 0x21b   : > { %v3614_v35 = vpop.f32.mrf.mxu0 }
 0x21c   : > { %v3615_v36 = vadd.f32 %v3614_v35, %v3575_v33 }
 0x21d   : > { %v4430_v37 = vpop.f32.mrf.mxu0 }
 0x21e   : > { %v3620_v38 = vadd.f32 %v3615_v36, %v209_v34 }
 0x21f   : > { %v3617_v39 = vpop.f32.mrf.mxu0 }
 0x220   : > { %3621 = vst [vmem:[%s4882_s30] sm:$0x3] %v3620_v38 }
 0x221   : > { %v4431_v40 = vpop.f32.mrf.mxu0 }
 0x222 PF: > { %s12_s13 = sadd.s32 1, %s4815_s13   ;;  %s5269_s9 = smov %s4807_s11 }
 0x223   : > { %p9_p9 = scmp.ge.s32.totalorder %s12_s13, 6   ;;  %s5270_s10 = smov %s4811_s12 }
 0x224   : > { %s5271_s11 = smov %s5274_s14  ;;  %s5272_s12 = smov %s5278_s15 }
 0x225   :  { %11 = sbr.rel (!%p9_p9) target bundleno = 3 (0x3), region = 65 }

// kernel: net_forward.7
= control target key start
LH: loop header
LB: loop body
LE: loop exit
PB: predicated region body
PF: predicated region fallthrough
CT: control target
= control target key end

     0   :  { %v374_v1 = vmov 0.0   ;;  %vm375_vm0 = vmmov 0   ;;  %s560_s0 = inlined_call_operand.vmem [shape: f32[2,2,128], index: 0, kind: input, shape index: {}]   ;;  %s561_s1 = inlined_call_operand.vmem [shape: f32[1,128], index: 1, kind: input, shape index: {}]   ;;  %s562_s2 = inlined_call_operand.vmem [shape: f32[128,128], index: 2, kind: input, shape index: {}]   ;;  %s563_s3 = inlined_call_operand.vmem [shape: f32[1,128], index: 3, kind: input, shape index: {}]   ;;  %s564_s4 = inlined_call_operand.vmem [shape: f32[128,10], index: 4, kind: input, shape index: {}]   ;;  %s565_s5 = inlined_call_operand.vmem [shape: f32[1,10], index: 5, kind: input, shape index: {}]   ;;  %s566_s6 = inlined_call_operand.hbm [shape: f32[2,10], index: 6, kind: output, shape index: {}]  }
   0x1   :  { %v54_v0 = vld [vmem:[%s562_s2 + $0x78] sm:$0xff]  ;;  %279 = vmatprep.subr.mxu0 %v374_v1  ;;  %v53_v2 = vld [vmem:[%s562_s2 + $0x70] sm:$0xff]  ;;  %311 = vmatprep.mubr.msk.f32.mxu0 %vm375_vm0, %v374_v1  ;;  %v52_v3 = vld [vmem:[%s562_s2 + $0x68] sm:$0xff] }
   0x2   :  { %280 = vmatpush3.msra.mxu0 %v54_v0  ;;  %314 = vmatprep.subr.mxu1 %v374_v1  ;;  %v51_v4 = vld [vmem:[%s562_s2 + $0x60] sm:$0xff]  ;;  %v148_v5 = vld [vmem:[%s564_s4 + $0x78] sm:$0xff]  ;;  %v147_v6 = vld [vmem:[%s564_s4 + $0x70] sm:$0xff] }
   0x3   :  { %281 = vmatprep.subr.mxu0 %v374_v1  ;;  %346 = vmatprep.mubr.msk.f32.mxu1 %vm375_vm0, %v374_v1  ;;  %v50_v7 = vld [vmem:[%s562_s2 + $0x58] sm:$0xff]  ;;  %v146_v8 = vld [vmem:[%s564_s4 + $0x68] sm:$0xff]  ;;  %v49_v9 = vld [vmem:[%s562_s2 + $0x50] sm:$0xff] }
   0x4   :  { %282 = vmatpush3.msra.mxu0 %v53_v2  ;;  %315 = vmatpush3.msra.mxu1 %v148_v5  ;;  %v145_v10 = vld [vmem:[%s564_s4 + $0x60] sm:$0xff]  ;;  %v48_v11 = vld [vmem:[%s562_s2 + $0x48] sm:$0xff] }
   0x5   :  { %283 = vmatprep.subr.mxu0 %v374_v1  ;;  %316 = vmatprep.subr.mxu1 %v374_v1 }
   0x6   :  { %284 = vmatpush3.msra.mxu0 %v52_v3  ;;  %317 = vmatpush3.msra.mxu1 %v147_v6 }
   0x7   :  { %285 = vmatprep.subr.mxu0 %v374_v1  ;;  %318 = vmatprep.subr.mxu1 %v374_v1 }
   0x8   :  { %286 = vmatpush3.msra.mxu0 %v51_v4  ;;  %319 = vmatpush3.msra.mxu1 %v146_v8 }
   0x9   :  { %287 = vmatprep.subr.mxu0 %v374_v1 }
   0xa   :  { %288 = vmatpush3.msra.mxu0 %v50_v7 }
   0xb   :  { %289 = vmatprep.subr.mxu0 %v374_v1 }
   0xc   :  { %11 = vsyncpa [#allocation3], 0  ;;  %290 = vmatpush3.msra.mxu0 %v49_v9  ;;  %320 = vmatprep.subr.mxu1 %v374_v1  ;;  %v144_v12 = vld [vmem:[%s564_s4 + $0x58] sm:$0xff]  ;;  %v47_v13 = vld [vmem:[%s562_s2 + $0x40] sm:$0xff]  ;;  %vm26_vm1 = vcmask 1041408   ;;  %s376_s19 = smov [#allocation2]  }
   0xd   :  { %291 = vmatprep.subr.mxu0 %v374_v1  ;;  %321 = vmatpush3.msra.mxu1 %v145_v10  ;;  %v143_v14 = vld [vmem:[%s564_s4 + $0x50] sm:$0xff]  ;;  %v46_v15 = vld [vmem:[%s562_s2 + $0x38] sm:$0xff]  ;;  %v24_v16 = vld [vmem:[%s560_s0] sm:$0x3]  ;;  %s234_s20 = sshll.u32 %s376_s19, 4  ;;  %vm226_vm2 = vcmask 74752   ;;  %s235_s20 = int_to_ptr.vmem [resolvable:$true] %s234_s20 }
   0xe   :  { %292 = vmatpush3.msra.mxu0 %v48_v11  ;;  %322 = vmatprep.subr.mxu1 %v374_v1  ;;  %v25_v17 = vld [vmem:[%s560_s0 + $0x2] sm:$0x3]  ;;  %v142_v18 = vld [vmem:[%s564_s4 + $0x48] sm:$0xff]  ;;  %v45_v19 = vld [vmem:[%s562_s2 + $0x30] sm:$0xff]  ;;  %v27_v20 = vsel %vm26_vm1, %v24_v16, 0.0  ;;  %p357_p1 = scmp.lt.s32.totalorder %s235_s20, %s235_s20 }
   0xf   :  { %293 = vmatprep.subr.mxu0 %v374_v1  ;;  %323 = vmatpush3.msra.mxu1 %v144_v12  ;;  %v28_v21 = vsel %vm26_vm1, %v25_v17, 0.0  ;;  %v141_v22 = vld [vmem:[%s564_s4 + $0x40] sm:$0xff]  ;;  %v44_v23 = vld [vmem:[%s562_s2 + $0x28] sm:$0xff]  ;;  %v140_v24 = vld [vmem:[%s564_s4 + $0x38] sm:$0xff] }
  0x10   :  { %294 = vmatpush3.msra.mxu0 %v47_v13  ;;  %324 = vmatprep.subr.mxu1 %v374_v1  ;;  %v43_v25 = vld [vmem:[%s562_s2 + $0x20] sm:$0xff]  ;;  %v29_v26 = vadd.f32 %v28_v21, %v27_v20  ;;  %v139_v28 = vld [vmem:[%s564_s4 + $0x30] sm:$0xff]  ;;  %v42_v29 = vld [vmem:[%s562_s2 + $0x18] sm:$0xff] }
  0x11   :  { %295 = vmatprep.subr.mxu0 %v374_v1  ;;  %325 = vmatpush3.msra.mxu1 %v143_v14  ;;  %v242_v27 = vld [vmem:[%s561_s1] ss:$0 sm:$0xff]  ;;  %v138_v30 = vld [vmem:[%s564_s4 + $0x28] sm:$0xff]  ;;  %v41_v31 = vld [vmem:[%s562_s2 + $0x10] sm:$0xff] }
  0x12   :  { %296 = vmatpush3.msra.mxu0 %v46_v15  ;;  %326 = vmatprep.subr.mxu1 %v374_v1  ;;  %v37_v32 = vadd.f32 %v242_v27, %v29_v26  ;;  %v137_v33 = vld [vmem:[%s564_s4 + $0x20] sm:$0xff]  ;;  %v40_v34 = vld [vmem:[%s562_s2 + $0x8] sm:$0xff]  ;;  %v136_v35 = vld [vmem:[%s564_s4 + $0x18] sm:$0xff] }
  0x13   :  { %297 = vmatprep.subr.mxu0 %v374_v1  ;;  %327 = vmatpush3.msra.mxu1 %v142_v18  ;;  %v39_v36 = vld [vmem:[%s562_s2] sm:$0xff]  ;;  %v135_v38 = vld [vmem:[%s564_s4 + $0x10] sm:$0xff]  ;;  %v134_v39 = vld [vmem:[%s564_s4 + $0x8] sm:$0xff] }
  0x14   :  { %298 = vmatpush3.msra.mxu0 %v45_v19  ;;  %328 = vmatprep.subr.mxu1 %v374_v1  ;;  %v38_v37 = vmax.f32 %v37_v32, 0.0  ;;  %v133_v40 = vld [vmem:[%s564_s4] sm:$0xff]  ;;  %s352_s4 = scalar_lea.vmem %s235_s20, 32 }
  0x15   :  { %299 = vmatprep.subr.mxu0 %v374_v1  ;;  %329 = vmatpush3.msra.mxu1 %v141_v22  ;;  %v243_v41 = vld [vmem:[%s563_s3] ss:$0 sm:$0xff]  ;;  %p353_p0 = scmp.ne.s32.totalorder %s235_s20, %s352_s4  ;;  %p358_p2 = scmp.lt.s32.totalorder %s352_s4, %s352_s4 }
  0x16   :  { %300 = vmatpush3.msra.mxu0 %v44_v23  ;;  %330 = vmatprep.subr.mxu1 %v374_v1  ;;  %v244_v46 = vld [vmem:[%s565_s5] ss:$0 sm:$0xff] }
  0x17   :  { %301 = vmatprep.subr.mxu0 %v374_v1  ;;  %331 = vmatpush3.msra.mxu1 %v140_v24  ;;  %p359_p3 = por %p358_p2, %p357_p1 }
  0x18   :  { %302 = vmatpush3.msra.mxu0 %v43_v25  ;;  %332 = vmatprep.subr.mxu1 %v374_v1 }
  0x19   :  { %303 = vmatprep.subr.mxu0 %v374_v1  ;;  %333 = vmatpush3.msra.mxu1 %v139_v28  ;;  %p360_p4 = pnand %p359_p3, %p353_p0 }
  0x1a   :  { %304 = vmatpush3.msra.mxu0 %v42_v29  ;;  %334 = vmatprep.subr.mxu1 %v374_v1 }
  0x1b   :  { %305 = vmatprep.subr.mxu0 %v374_v1  ;;  %335 = vmatpush3.msra.mxu1 %v138_v30 }
  0x1c   :  { %306 = vmatpush3.msra.mxu0 %v41_v31  ;;  %336 = vmatprep.subr.mxu1 %v374_v1 }
  0x1d   :  { %307 = vmatprep.subr.mxu0 %v374_v1  ;;  %337 = vmatpush3.msra.mxu1 %v137_v33 }
  0x1e   :  { %308 = vmatpush3.msra.mxu0 %v40_v34  ;;  %338 = vmatprep.subr.mxu1 %v374_v1 }
  0x1f   :  { %309 = vmatprep.subr.mxu0 %v374_v1  ;;  %339 = vmatpush3.msra.mxu1 %v136_v35 }
  0x20   :  { %310 = vmatpush3.msra.mxu0 %v39_v36  ;;  %340 = vmatprep.subr.mxu1 %v374_v1 }
  0x21   :  { %312 = vmatmul.mubr.f32.vlgmr.msra.gmra.mxu0 %v38_v37  ;;  %341 = vmatpush3.msra.mxu1 %v135_v38 }
  0x22   :  { %342 = vmatprep.subr.mxu1 %v374_v1 }
  0x23   :  { %343 = vmatpush3.msra.mxu1 %v134_v39 }
  0x24   :  { %344 = vmatprep.subr.mxu1 %v374_v1 }
  0x25   :  { %345 = vmatpush3.msra.mxu1 %v133_v40 }
  0xe1   :  { %v128_v42 = vpop.f32.mrf.mxu0 }
  0xe2   :  { %v129_v43 = vadd.f32 %v243_v41, %v128_v42 }
  0xe3   :  { %v313_v44 = vpop.f32.mrf.mxu0 }
  0xe4   :  { %v132_v45 = vmax.f32 %v129_v43, 0.0 }
  0xe6   :  { %347 = vmatmul.mubr.f32.vlgmr.msra.gmra.mxu1 %v132_v45 }
 0x1a6   :  { %v222_v47 = vpop.f32.mrf.mxu1 }
 0x1a7   :  { %v223_v48 = vadd.f32 %v244_v46, %v222_v47 }
 0x1a8   :  { %v348_v49 = vpop.f32.mrf.mxu1 }
 0x1a9   :  { %227 = vst.msk [vmem:[#allocation2] sm:$0x3] %vm226_vm2, %v223_v48 }
 0x1aa   :  { %363 = shalt.err (!%p360_p4)
}
 0x1ab   :  { %237 = dma.vmem_to_hbm [thread:$0]  %s235_s20, 32, %s566_s6, [#allocation3]  }
 0x1ac   :  { %372 = dma.done.wait [#allocation3], 32  }
 0x1ad   :  { %373 = vsyncadd [#allocation3], 4294967264 }
 0x1ae   :  { %241 = vsyncpa [#allocation3], 1 }

</bundles_post_ra>
